<compile_context>
chip_gen: v7x
topology: tpu7x:2x2x1
jax: 0.10.0
libtpu: 0.0.40
codegen_flags: <defaults>
</compile_context>

<pallas_src>
import functools
import math

import jax
import jax.numpy as jnp
from jax import lax
from jax.experimental import pallas as pl
from jax.experimental.pallas import tpu as pltpu


def make_convlstm_kernel(H, W, K, pad, Cin, C_out, BB, activation="tanh"):
    """Fused ConvLSTM kernel body.  Grid = (B // BB, T); t = program_id(1).

    Inputs (refs):
      x_col : (1, BB, H*W, K*K*Cin) bf16   im2col'ed x_t for this batch tile
      w     : (PCOLS, 4*C_out)      bf16   [Wx rows | Wh rows | zero pad]
      b     : (1, 4*C_out)          f32
      wci/wcf/wco : (BB*H*W, C_out) f32    peephole weights (batch-tiled)
    Output:
      h_out : (1, BB, H*W, C_out)   f32
    Scratch (persist across grid steps):
      h_pad : (BB*(H+2p), W+2p, C_out) f32  zero-padded hidden state
      c_st  : (BB*H*W, C_out)          f32  cell state
      patch : (BB*H*W, PCOLS)          bf16 im2col patch fed to the MXU
    """
    HW = H * W
    Hp = H + 2 * pad
    KKCin = K * K * Cin
    if activation == "tanh":
        act = jnp.tanh
    elif activation == "relu":
        act = lambda v: jnp.maximum(v, 0.0)
    else:
        raise ValueError(activation)

    def kernel(x_col_ref, w_ref, b_ref, wci_ref, wcf_ref, wco_ref,
               h_out_ref, h_pad_ref, c_ref, patch_ref):
        t = pl.program_id(1)

        # Fresh state at the start of every batch tile's time loop.
        @pl.when(t == 0)
        def _init():
            h_pad_ref[...] = jnp.zeros_like(h_pad_ref)
            c_ref[...] = jnp.zeros_like(c_ref)
            patch_ref[...] = jnp.zeros_like(patch_ref)   # also zeroes pad cols

        # ---- build the im2col patch: [ x part | h part | zero pad ] --------
        patch_ref[:, 0:KKCin] = jnp.reshape(x_col_ref[...], (BB * HW, KKCin))
        for bidx in range(BB):
            r0 = bidx * Hp
            row0 = bidx * HW
            for kh in range(K):
                for kw in range(K):
                    col = KKCin + (kh * K + kw) * C_out
                    win = h_pad_ref[r0 + kh:r0 + kh + H, kw:kw + W, :]  # (H,W,C)
                    patch_ref[row0:row0 + HW, col:col + C_out] = jnp.reshape(
                        win, (HW, C_out)).astype(patch_ref.dtype)

        # ---- single MXU matmul for the whole conv (contraction = PCOLS) ----
        conv = jnp.dot(patch_ref[...], w_ref[...],
                       preferred_element_type=jnp.float32)   # (BB*HW, 4*C) f32
        conv = conv + b_ref[...]

        # ---- gates / state update (f32) ------------------------------------
        c_prev = c_ref[...]
        i_c = conv[:, 0 * C_out:1 * C_out]
        f_c = conv[:, 1 * C_out:2 * C_out]
        g_c = conv[:, 2 * C_out:3 * C_out]
        o_c = conv[:, 3 * C_out:4 * C_out]

        input_gate = jax.nn.sigmoid(i_c + wci_ref[...] * c_prev)
        forget_gate = jax.nn.sigmoid(f_c + wcf_ref[...] * c_prev)
        c_new = forget_gate * c_prev + input_gate * act(g_c)
        output_gate = jax.nn.sigmoid(o_c + wco_ref[...] * c_new)
        h_new = output_gate * act(c_new)                     # (BB*HW, C) f32

        c_ref[...] = c_new
        h_out_ref[...] = jnp.reshape(
            h_new, (1, BB, HW, C_out)).astype(h_out_ref.dtype)
        # Interior of the padded hidden-state scratch; the border stays zero.
        for bidx in range(BB):
            r0 = bidx * Hp
            h_pad_ref[r0 + pad:r0 + pad + H, pad:pad + W, :] = jnp.reshape(
                h_new[bidx * HW:(bidx + 1) * HW, :], (H, W, C_out))

    return kernel


def conv_lstm_forward(x, params, *, kernel_size, padding, activation="tanh"):
    """Full ConvLSTM forward.  x: (B, Cin, T, H, W) -> (B, Cout, T, H, W)."""
    B, Cin, T, H, W = x.shape
    w_hwio, b, w_ci, w_cf, w_co = params           # w_hwio: (K, K, Cin+Cout, 4*Cout)
    K = kernel_size
    p = padding
    C_out = w_hwio.shape[-1] // 4
    C4 = 4 * C_out
    assert 2 * p == K - 1, "module assumes 'same' spatial size (output[:, :, t] = h)"

    HW = H * W
    Hp = H + 2 * p
    KKCin = K * K * Cin
    KKCout = K * K * C_out
    pcols = ((KKCin + KKCout + 127) // 128) * 128   # 324 -> 384

    # ---- batch-tile size: largest divisor of B whose patch fits comfortably ----
    BB = 1
    for d in range(B, 0, -1):
        if B % d == 0 and d * HW * pcols * 2 <= 4 * 1024 * 1024:   # patch bytes
            BB = d
            break

    # ---- one-time parameter prep (layout plumbing, outside the time loop) ----
    w32 = w_hwio.astype(jnp.float32)
    w_x = jnp.reshape(w32[:, :, :Cin, :], (KKCin, C4))     # rows: (kh,kw,cin)
    w_h = jnp.reshape(w32[:, :, Cin:, :], (KKCout, C4))    # rows: (kh,kw,cout)
    w_big = jnp.zeros((pcols, C4), jnp.float32)
    w_big = w_big.at[:KKCin].set(w_x).at[KKCin:KKCin + KKCout].set(w_h)
    w_big = w_big.astype(jnp.bfloat16)

    b2d = jnp.reshape(b, (1, C4)).astype(jnp.float32)

    def prep_peephole(wp):
        v = jnp.reshape(jnp.transpose(wp, (1, 2, 0)), (HW, C_out)).astype(jnp.float32)
        return jnp.tile(v, (BB, 1))                          # (BB*HW, C)

    wci = prep_peephole(w_ci)
    wcf = prep_peephole(w_cf)
    wco = prep_peephole(w_co)

    # ---- one-time im2col of the whole input sequence (pure data movement) ----
    x_t = jnp.transpose(x, (2, 0, 3, 4, 1)).astype(jnp.bfloat16)   # (T,B,H,W,Cin)
    x_padded = jnp.pad(x_t, ((0, 0), (0, 0), (p, p), (p, p), (0, 0)))
    x_col = jnp.concatenate(
        [x_padded[:, :, kh:kh + H, kw:kw + W, :]
         for kh in range(K) for kw in range(K)], axis=-1)          # (T,B,H,W,K*K*Cin)
    x_col = jnp.reshape(x_col, (T, B, HW, KKCin))

    kernel = make_convlstm_kernel(H, W, K, p, Cin, C_out, BB, activation)

    out = pl.pallas_call(
        kernel,
        out_shape=jax.ShapeDtypeStruct((T, B, HW, C_out), jnp.float32),
        grid_spec=pltpu.PrefetchScalarGridSpec(
            num_scalar_prefetch=0,
            grid=(B // BB, T),
            in_specs=[
                pl.BlockSpec((1, BB, HW, KKCin), lambda g, tt: (tt, g, 0, 0)),
                pl.BlockSpec((pcols, C4), lambda g, tt: (0, 0)),       # resident
                pl.BlockSpec((1, C4), lambda g, tt: (0, 0)),           # resident
                pl.BlockSpec((BB * HW, C_out), lambda g, tt: (0, 0)),  # resident
                pl.BlockSpec((BB * HW, C_out), lambda g, tt: (0, 0)),  # resident
                pl.BlockSpec((BB * HW, C_out), lambda g, tt: (0, 0)),  # resident
            ],
            out_specs=pl.BlockSpec((1, BB, HW, C_out), lambda g, tt: (tt, g, 0, 0)),
            scratch_shapes=[
                pltpu.VMEM((BB * Hp, W + 2 * p, C_out), jnp.float32),  # h (padded)
                pltpu.VMEM((BB * HW, C_out), jnp.float32),             # c
                pltpu.VMEM((BB * HW, pcols), jnp.bfloat16),            # im2col patch
            ],
        ),
        compiler_params=pltpu.CompilerParams(
            dimension_semantics=("parallel", "arbitrary"),
            vmem_limit_bytes=32 * 1024 * 1024,
        ),
    )(x_col, w_big, b2d, wci, wcf, wco)

    out = jnp.reshape(out, (T, B, H, W, C_out))
    return jnp.transpose(out, (1, 4, 0, 2, 3))                      # (B, Cout, T, H, W)


# ---------------- pure-JAX reference (for verification) ----------------
def conv_lstm_reference(x, params, *, kernel_size, padding, activation="tanh",
                        mirror_bf16=False):
    """f32 reference.  mirror_bf16=True rounds the conv operands (x, h, W) to
    bf16 exactly as the Pallas kernel does, so only MXU summation order differs."""
    B, Cin, T, H, W = x.shape
    w_hwio, b, w_ci, w_cf, w_co = params
    C_out = w_hwio.shape[-1] // 4
    act = jnp.tanh if activation == "tanh" else (lambda v: jnp.maximum(v, 0.0))

    def q(v):
        return v.astype(jnp.bfloat16).astype(jnp.float32) if mirror_bf16 else v

    x_tnhwc = jnp.transpose(x, (2, 0, 3, 4, 1)).astype(jnp.float32)
    w = q(w_hwio.astype(jnp.float32))
    wci_t = jnp.transpose(w_ci, (1, 2, 0))[None]
    wcf_t = jnp.transpose(w_cf, (1, 2, 0))[None]
    wco_t = jnp.transpose(w_co, (1, 2, 0))[None]

    h = jnp.zeros((B, H, W, C_out), jnp.float32)
    c = jnp.zeros((B, H, W, C_out), jnp.float32)
    outs = []
    for t in range(T):
        xh = jnp.concatenate([q(x_tnhwc[t]), q(h)], axis=-1)
        conv = lax.conv_general_dilated(
            xh, w, (1, 1), [(padding, padding), (padding, padding)],
            dimension_numbers=("NHWC", "HWIO", "NHWC"),
            precision=lax.Precision.HIGHEST) + b[None, None, None, :]
        i_c, f_c, g_c, o_c = jnp.split(conv, 4, axis=-1)
        ig = jax.nn.sigmoid(i_c + wci_t * c)
        fg = jax.nn.sigmoid(f_c + wcf_t * c)
        c = fg * c + ig * act(g_c)
        og = jax.nn.sigmoid(o_c + wco_t * c)
        h = og * act(c)
        outs.append(h)
    hs = jnp.stack(outs, axis=0)
    return jnp.transpose(hs, (1, 4, 0, 2, 3))


if __name__ == "__main__":
    B, Cin, T, H, W = 2, 4, 8, 16, 16
    C_out = 32
    K, pad = 3, 1
    activation = "tanh"
    C_tot = Cin + C_out

    key = jax.random.PRNGKey(0)
    k1, k2, k3, k4, k5, k6 = jax.random.split(key, 6)

    # Deterministic parameter init (shapes follow nn.Conv2d / nn.Parameter).
    fan_in = C_tot * K * K
    bound = 1.0 / math.sqrt(fan_in)
    # torch conv weight is (4*Cout, C_tot, K, K); stored directly as HWIO.
    w_hwio = jax.random.uniform(k1, (K, K, C_tot, 4 * C_out), jnp.float32, -bound, bound)
    b = jax.random.uniform(k2, (4 * C_out,), jnp.float32, -bound, bound)
    w_ci = 0.1 * jax.random.normal(k3, (C_out, H, W), jnp.float32)
    w_cf = 0.1 * jax.random.normal(k4, (C_out, H, W), jnp.float32)
    w_co = 0.1 * jax.random.normal(k5, (C_out, H, W), jnp.float32)
    params = (w_hwio, b, w_ci, w_cf, w_co)

    x = jax.random.normal(k6, (B, Cin, T, H, W), jnp.float32)

    fwd = jax.jit(functools.partial(conv_lstm_forward,
                                    kernel_size=K, padding=pad, activation=activation))
    out = jax.block_until_ready(fwd(x, params))

    ref_bf16 = conv_lstm_reference(x, params, kernel_size=K, padding=pad,
                                   activation=activation, mirror_bf16=True)
    ref_f32 = conv_lstm_reference(x, params, kernel_size=K, padding=pad,
                                  activation=activation, mirror_bf16=False)
    ref_bf16 = jax.block_until_ready(ref_bf16)
    ref_f32 = jax.block_until_ready(ref_f32)

    assert out.shape == (B, C_out, T, H, W), out.shape
    # Tight check vs. a reference that mirrors the kernel's bf16 matmul inputs.
    assert jnp.allclose(out, ref_bf16, atol=1e-3, rtol=1e-3), \
        float(jnp.max(jnp.abs(out - ref_bf16)))
    # Looser sanity check vs. the full-f32 reference (bf16 MXU inputs).
    assert jnp.allclose(out, ref_f32, atol=5e-2, rtol=5e-2), \
        float(jnp.max(jnp.abs(out - ref_f32)))

    print("KERNEL_OK")
</pallas_src>

<mosaic_0001>
module attributes {stable_mosaic.version = 11 : i64} {
  func.func @kernel(%arg0: i32, %arg1: i32, %arg2: memref<1x2x256x36xbf16, #tpu.memory_space<vmem>>, %arg3: memref<384x128xbf16, #tpu.memory_space<vmem>>, %arg4: memref<1x128xf32, #tpu.memory_space<vmem>>, %arg5: memref<512x32xf32, #tpu.memory_space<vmem>>, %arg6: memref<512x32xf32, #tpu.memory_space<vmem>>, %arg7: memref<512x32xf32, #tpu.memory_space<vmem>>, %arg8: memref<1x2x256x32xf32, #tpu.memory_space<vmem>>, %arg9: memref<36x18x32xf32, #tpu.memory_space<vmem>>, %arg10: memref<512x32xf32, #tpu.memory_space<vmem>>, %arg11: memref<512x384xbf16, #tpu.memory_space<vmem>>) attributes {dimension_semantics = [#tpu.dimension_semantics<parallel>, #tpu.dimension_semantics<arbitrary>], iteration_bounds = array<i64: 1, 8>, scalar_prefetch = 0 : i64, scratch_operands = 3 : i64, tpu.core_type = #tpu.core_type<tc>, window_params = [{transform_indices = @transform_0, window_bounds = array<i64: 1, 2, 256, 36>}, {pipeline_mode = #tpu.pipeline_mode<synchronous>, transform_indices = @transform_1, window_bounds = array<i64: 384, 128>}, {pipeline_mode = #tpu.pipeline_mode<synchronous>, transform_indices = @transform_2, window_bounds = array<i64: 1, 128>}, {pipeline_mode = #tpu.pipeline_mode<synchronous>, transform_indices = @transform_3, window_bounds = array<i64: 512, 32>}, {pipeline_mode = #tpu.pipeline_mode<synchronous>, transform_indices = @transform_4, window_bounds = array<i64: 512, 32>}, {pipeline_mode = #tpu.pipeline_mode<synchronous>, transform_indices = @transform_5, window_bounds = array<i64: 512, 32>}, {transform_indices = @transform_6, window_bounds = array<i64: 1, 2, 256, 32>}]} {
    %c0_i32 = arith.constant 0 : i32
    %0 = arith.cmpi eq, %arg1, %c0_i32 : i32
    %1 = arith.extui %0 : i1 to i32
    %c0_i32_0 = arith.constant 0 : i32
    %2 = arith.cmpi ne, %1, %c0_i32_0 : i32
    scf.if %2 {
      %cst_110 = arith.constant 0.000000e+00 : f32
      %128 = vector.broadcast %cst_110 : f32 to vector<36x18x32xf32>
      %c0_111 = arith.constant 0 : index
      %c0_112 = arith.constant 0 : index
      %c0_113 = arith.constant 0 : index
      %129 = vector.load %arg9[%c0_111, %c0_112, %c0_113] : memref<36x18x32xf32, #tpu.memory_space<vmem>>, vector<36x18x32xf32>
      tpu.vector_store %arg9[%c0_111, %c0_112, %c0_113], %128 {strides = array<i32>} : memref<36x18x32xf32, #tpu.memory_space<vmem>>, vector<36x18x32xf32>,
      %cst_114 = arith.constant 0.000000e+00 : f32
      %130 = vector.broadcast %cst_114 : f32 to vector<512x32xf32>
      %c0_115 = arith.constant 0 : index
      %c0_116 = arith.constant 0 : index
      %131 = vector.load %arg10[%c0_115, %c0_116] : memref<512x32xf32, #tpu.memory_space<vmem>>, vector<512x32xf32>
      tpu.vector_store %arg10[%c0_115, %c0_116], %130 {strides = array<i32>} : memref<512x32xf32, #tpu.memory_space<vmem>>, vector<512x32xf32>,
      %cst_117 = arith.constant 0.000000e+00 : bf16
      %132 = vector.broadcast %cst_117 : bf16 to vector<512x384xbf16>
      %c0_118 = arith.constant 0 : index
      %c0_119 = arith.constant 0 : index
      %133 = vector.load %arg11[%c0_118, %c0_119] : memref<512x384xbf16, #tpu.memory_space<vmem>>, vector<512x384xbf16>
      tpu.vector_store %arg11[%c0_118, %c0_119], %132 {strides = array<i32>} : memref<512x384xbf16, #tpu.memory_space<vmem>>, vector<512x384xbf16>,
    } else {
    }
    %c0 = arith.constant 0 : index
    %c0_1 = arith.constant 0 : index
    %c0_2 = arith.constant 0 : index
    %c0_3 = arith.constant 0 : index
    %3 = vector.load %arg2[%c0, %c0_1, %c0_2, %c0_3] : memref<1x2x256x36xbf16, #tpu.memory_space<vmem>>, vector<1x2x256x36xbf16>
    %4 = vector.shape_cast %3 : vector<1x2x256x36xbf16> to vector<512x36xbf16>
    %c0_4 = arith.constant 0 : index
    %c0_5 = arith.constant 0 : index
    %5 = vector.load %arg11[%c0_4, %c0_5] : memref<512x384xbf16, #tpu.memory_space<vmem>>, vector<512x36xbf16>
    tpu.vector_store %arg11[%c0_4, %c0_5], %4 {strides = array<i32>} : memref<512x384xbf16, #tpu.memory_space<vmem>>, vector<512x36xbf16>,
    %c0_6 = arith.constant 0 : index
    %c0_7 = arith.constant 0 : index
    %c0_8 = arith.constant 0 : index
    %6 = vector.load %arg9[%c0_6, %c0_7, %c0_8] : memref<36x18x32xf32, #tpu.memory_space<vmem>>, vector<16x16x32xf32>
    %7 = vector.shape_cast %6 : vector<16x16x32xf32> to vector<256x32xf32>
    %8 = arith.truncf %7 : vector<256x32xf32> to vector<256x32xbf16>
    %c0_9 = arith.constant 0 : index
    %c36 = arith.constant 36 : index
    %9 = vector.load %arg11[%c0_9, %c36] : memref<512x384xbf16, #tpu.memory_space<vmem>>, vector<256x32xbf16>
    tpu.vector_store %arg11[%c0_9, %c36], %8 {strides = array<i32>} : memref<512x384xbf16, #tpu.memory_space<vmem>>, vector<256x32xbf16>,
    %c0_10 = arith.constant 0 : index
    %c1 = arith.constant 1 : index
    %c0_11 = arith.constant 0 : index
    %10 = vector.load %arg9[%c0_10, %c1, %c0_11] : memref<36x18x32xf32, #tpu.memory_space<vmem>>, vector<16x16x32xf32>
    %11 = vector.shape_cast %10 : vector<16x16x32xf32> to vector<256x32xf32>
    %12 = arith.truncf %11 : vector<256x32xf32> to vector<256x32xbf16>
    %c0_12 = arith.constant 0 : index
    %c68 = arith.constant 68 : index
    %13 = vector.load %arg11[%c0_12, %c68] : memref<512x384xbf16, #tpu.memory_space<vmem>>, vector<256x32xbf16>
    tpu.vector_store %arg11[%c0_12, %c68], %12 {strides = array<i32>} : memref<512x384xbf16, #tpu.memory_space<vmem>>, vector<256x32xbf16>,
    %c0_13 = arith.constant 0 : index
    %c2 = arith.constant 2 : index
    %c0_14 = arith.constant 0 : index
    %14 = vector.load %arg9[%c0_13, %c2, %c0_14] : memref<36x18x32xf32, #tpu.memory_space<vmem>>, vector<16x16x32xf32>
    %15 = vector.shape_cast %14 : vector<16x16x32xf32> to vector<256x32xf32>
    %16 = arith.truncf %15 : vector<256x32xf32> to vector<256x32xbf16>
    %c0_15 = arith.constant 0 : index
    %c100 = arith.constant 100 : index
    %17 = vector.load %arg11[%c0_15, %c100] : memref<512x384xbf16, #tpu.memory_space<vmem>>, vector<256x32xbf16>
    tpu.vector_store %arg11[%c0_15, %c100], %16 {strides = array<i32>} : memref<512x384xbf16, #tpu.memory_space<vmem>>, vector<256x32xbf16>,
    %c1_16 = arith.constant 1 : index
    %c0_17 = arith.constant 0 : index
    %c0_18 = arith.constant 0 : index
    %18 = vector.load %arg9[%c1_16, %c0_17, %c0_18] : memref<36x18x32xf32, #tpu.memory_space<vmem>>, vector<16x16x32xf32>
    %19 = vector.shape_cast %18 : vector<16x16x32xf32> to vector<256x32xf32>
    %20 = arith.truncf %19 : vector<256x32xf32> to vector<256x32xbf16>
    %c0_19 = arith.constant 0 : index
    %c132 = arith.constant 132 : index
    %21 = vector.load %arg11[%c0_19, %c132] : memref<512x384xbf16, #tpu.memory_space<vmem>>, vector<256x32xbf16>
    tpu.vector_store %arg11[%c0_19, %c132], %20 {strides = array<i32>} : memref<512x384xbf16, #tpu.memory_space<vmem>>, vector<256x32xbf16>,
    %c1_20 = arith.constant 1 : index
    %c1_21 = arith.constant 1 : index
    %c0_22 = arith.constant 0 : index
    %22 = vector.load %arg9[%c1_20, %c1_21, %c0_22] : memref<36x18x32xf32, #tpu.memory_space<vmem>>, vector<16x16x32xf32>
    %23 = vector.shape_cast %22 : vector<16x16x32xf32> to vector<256x32xf32>
    %24 = arith.truncf %23 : vector<256x32xf32> to vector<256x32xbf16>
    %c0_23 = arith.constant 0 : index
    %c164 = arith.constant 164 : index
    %25 = vector.load %arg11[%c0_23, %c164] : memref<512x384xbf16, #tpu.memory_space<vmem>>, vector<256x32xbf16>
    tpu.vector_store %arg11[%c0_23, %c164], %24 {strides = array<i32>} : memref<512x384xbf16, #tpu.memory_space<vmem>>, vector<256x32xbf16>,
    %c1_24 = arith.constant 1 : index
    %c2_25 = arith.constant 2 : index
    %c0_26 = arith.constant 0 : index
    %26 = vector.load %arg9[%c1_24, %c2_25, %c0_26] : memref<36x18x32xf32, #tpu.memory_space<vmem>>, vector<16x16x32xf32>
    %27 = vector.shape_cast %26 : vector<16x16x32xf32> to vector<256x32xf32>
    %28 = arith.truncf %27 : vector<256x32xf32> to vector<256x32xbf16>
    %c0_27 = arith.constant 0 : index
    %c196 = arith.constant 196 : index
    %29 = vector.load %arg11[%c0_27, %c196] : memref<512x384xbf16, #tpu.memory_space<vmem>>, vector<256x32xbf16>
    tpu.vector_store %arg11[%c0_27, %c196], %28 {strides = array<i32>} : memref<512x384xbf16, #tpu.memory_space<vmem>>, vector<256x32xbf16>,
    %c2_28 = arith.constant 2 : index
    %c0_29 = arith.constant 0 : index
    %c0_30 = arith.constant 0 : index
    %30 = vector.load %arg9[%c2_28, %c0_29, %c0_30] : memref<36x18x32xf32, #tpu.memory_space<vmem>>, vector<16x16x32xf32>
    %31 = vector.shape_cast %30 : vector<16x16x32xf32> to vector<256x32xf32>
    %32 = arith.truncf %31 : vector<256x32xf32> to vector<256x32xbf16>
    %c0_31 = arith.constant 0 : index
    %c228 = arith.constant 228 : index
    %33 = vector.load %arg11[%c0_31, %c228] : memref<512x384xbf16, #tpu.memory_space<vmem>>, vector<256x32xbf16>
    tpu.vector_store %arg11[%c0_31, %c228], %32 {strides = array<i32>} : memref<512x384xbf16, #tpu.memory_space<vmem>>, vector<256x32xbf16>,
    %c2_32 = arith.constant 2 : index
    %c1_33 = arith.constant 1 : index
    %c0_34 = arith.constant 0 : index
    %34 = vector.load %arg9[%c2_32, %c1_33, %c0_34] : memref<36x18x32xf32, #tpu.memory_space<vmem>>, vector<16x16x32xf32>
    %35 = vector.shape_cast %34 : vector<16x16x32xf32> to vector<256x32xf32>
    %36 = arith.truncf %35 : vector<256x32xf32> to vector<256x32xbf16>
    %c0_35 = arith.constant 0 : index
    %c260 = arith.constant 260 : index
    %37 = vector.load %arg11[%c0_35, %c260] : memref<512x384xbf16, #tpu.memory_space<vmem>>, vector<256x32xbf16>
    tpu.vector_store %arg11[%c0_35, %c260], %36 {strides = array<i32>} : memref<512x384xbf16, #tpu.memory_space<vmem>>, vector<256x32xbf16>,
    %c2_36 = arith.constant 2 : index
    %c2_37 = arith.constant 2 : index
    %c0_38 = arith.constant 0 : index
    %38 = vector.load %arg9[%c2_36, %c2_37, %c0_38] : memref<36x18x32xf32, #tpu.memory_space<vmem>>, vector<16x16x32xf32>
    %39 = vector.shape_cast %38 : vector<16x16x32xf32> to vector<256x32xf32>
    %40 = arith.truncf %39 : vector<256x32xf32> to vector<256x32xbf16>
    %c0_39 = arith.constant 0 : index
    %c292 = arith.constant 292 : index
    %41 = vector.load %arg11[%c0_39, %c292] : memref<512x384xbf16, #tpu.memory_space<vmem>>, vector<256x32xbf16>
    tpu.vector_store %arg11[%c0_39, %c292], %40 {strides = array<i32>} : memref<512x384xbf16, #tpu.memory_space<vmem>>, vector<256x32xbf16>,
    %c18 = arith.constant 18 : index
    %c0_40 = arith.constant 0 : index
    %c0_41 = arith.constant 0 : index
    %42 = vector.load %arg9[%c18, %c0_40, %c0_41] : memref<36x18x32xf32, #tpu.memory_space<vmem>>, vector<16x16x32xf32>
    %43 = vector.shape_cast %42 : vector<16x16x32xf32> to vector<256x32xf32>
    %44 = arith.truncf %43 : vector<256x32xf32> to vector<256x32xbf16>
    %c256 = arith.constant 256 : index
    %c36_42 = arith.constant 36 : index
    %45 = vector.load %arg11[%c256, %c36_42] : memref<512x384xbf16, #tpu.memory_space<vmem>>, vector<256x32xbf16>
    tpu.vector_store %arg11[%c256, %c36_42], %44 {strides = array<i32>} : memref<512x384xbf16, #tpu.memory_space<vmem>>, vector<256x32xbf16>,
    %c18_43 = arith.constant 18 : index
    %c1_44 = arith.constant 1 : index
    %c0_45 = arith.constant 0 : index
    %46 = vector.load %arg9[%c18_43, %c1_44, %c0_45] : memref<36x18x32xf32, #tpu.memory_space<vmem>>, vector<16x16x32xf32>
    %47 = vector.shape_cast %46 : vector<16x16x32xf32> to vector<256x32xf32>
    %48 = arith.truncf %47 : vector<256x32xf32> to vector<256x32xbf16>
    %c256_46 = arith.constant 256 : index
    %c68_47 = arith.constant 68 : index
    %49 = vector.load %arg11[%c256_46, %c68_47] : memref<512x384xbf16, #tpu.memory_space<vmem>>, vector<256x32xbf16>
    tpu.vector_store %arg11[%c256_46, %c68_47], %48 {strides = array<i32>} : memref<512x384xbf16, #tpu.memory_space<vmem>>, vector<256x32xbf16>,
    %c18_48 = arith.constant 18 : index
    %c2_49 = arith.constant 2 : index
    %c0_50 = arith.constant 0 : index
    %50 = vector.load %arg9[%c18_48, %c2_49, %c0_50] : memref<36x18x32xf32, #tpu.memory_space<vmem>>, vector<16x16x32xf32>
    %51 = vector.shape_cast %50 : vector<16x16x32xf32> to vector<256x32xf32>
    %52 = arith.truncf %51 : vector<256x32xf32> to vector<256x32xbf16>
    %c256_51 = arith.constant 256 : index
    %c100_52 = arith.constant 100 : index
    %53 = vector.load %arg11[%c256_51, %c100_52] : memref<512x384xbf16, #tpu.memory_space<vmem>>, vector<256x32xbf16>
    tpu.vector_store %arg11[%c256_51, %c100_52], %52 {strides = array<i32>} : memref<512x384xbf16, #tpu.memory_space<vmem>>, vector<256x32xbf16>,
    %c19 = arith.constant 19 : index
    %c0_53 = arith.constant 0 : index
    %c0_54 = arith.constant 0 : index
    %54 = vector.load %arg9[%c19, %c0_53, %c0_54] : memref<36x18x32xf32, #tpu.memory_space<vmem>>, vector<16x16x32xf32>
    %55 = vector.shape_cast %54 : vector<16x16x32xf32> to vector<256x32xf32>
    %56 = arith.truncf %55 : vector<256x32xf32> to vector<256x32xbf16>
    %c256_55 = arith.constant 256 : index
    %c132_56 = arith.constant 132 : index
    %57 = vector.load %arg11[%c256_55, %c132_56] : memref<512x384xbf16, #tpu.memory_space<vmem>>, vector<256x32xbf16>
    tpu.vector_store %arg11[%c256_55, %c132_56], %56 {strides = array<i32>} : memref<512x384xbf16, #tpu.memory_space<vmem>>, vector<256x32xbf16>,
    %c19_57 = arith.constant 19 : index
    %c1_58 = arith.constant 1 : index
    %c0_59 = arith.constant 0 : index
    %58 = vector.load %arg9[%c19_57, %c1_58, %c0_59] : memref<36x18x32xf32, #tpu.memory_space<vmem>>, vector<16x16x32xf32>
    %59 = vector.shape_cast %58 : vector<16x16x32xf32> to vector<256x32xf32>
    %60 = arith.truncf %59 : vector<256x32xf32> to vector<256x32xbf16>
    %c256_60 = arith.constant 256 : index
    %c164_61 = arith.constant 164 : index
    %61 = vector.load %arg11[%c256_60, %c164_61] : memref<512x384xbf16, #tpu.memory_space<vmem>>, vector<256x32xbf16>
    tpu.vector_store %arg11[%c256_60, %c164_61], %60 {strides = array<i32>} : memref<512x384xbf16, #tpu.memory_space<vmem>>, vector<256x32xbf16>,
    %c19_62 = arith.constant 19 : index
    %c2_63 = arith.constant 2 : index
    %c0_64 = arith.constant 0 : index
    %62 = vector.load %arg9[%c19_62, %c2_63, %c0_64] : memref<36x18x32xf32, #tpu.memory_space<vmem>>, vector<16x16x32xf32>
    %63 = vector.shape_cast %62 : vector<16x16x32xf32> to vector<256x32xf32>
    %64 = arith.truncf %63 : vector<256x32xf32> to vector<256x32xbf16>
    %c256_65 = arith.constant 256 : index
    %c196_66 = arith.constant 196 : index
    %65 = vector.load %arg11[%c256_65, %c196_66] : memref<512x384xbf16, #tpu.memory_space<vmem>>, vector<256x32xbf16>
    tpu.vector_store %arg11[%c256_65, %c196_66], %64 {strides = array<i32>} : memref<512x384xbf16, #tpu.memory_space<vmem>>, vector<256x32xbf16>,
    %c20 = arith.constant 20 : index
    %c0_67 = arith.constant 0 : index
    %c0_68 = arith.constant 0 : index
    %66 = vector.load %arg9[%c20, %c0_67, %c0_68] : memref<36x18x32xf32, #tpu.memory_space<vmem>>, vector<16x16x32xf32>
    %67 = vector.shape_cast %66 : vector<16x16x32xf32> to vector<256x32xf32>
    %68 = arith.truncf %67 : vector<256x32xf32> to vector<256x32xbf16>
    %c256_69 = arith.constant 256 : index
    %c228_70 = arith.constant 228 : index
    %69 = vector.load %arg11[%c256_69, %c228_70] : memref<512x384xbf16, #tpu.memory_space<vmem>>, vector<256x32xbf16>
    tpu.vector_store %arg11[%c256_69, %c228_70], %68 {strides = array<i32>} : memref<512x384xbf16, #tpu.memory_space<vmem>>, vector<256x32xbf16>,
    %c20_71 = arith.constant 20 : index
    %c1_72 = arith.constant 1 : index
    %c0_73 = arith.constant 0 : index
    %70 = vector.load %arg9[%c20_71, %c1_72, %c0_73] : memref<36x18x32xf32, #tpu.memory_space<vmem>>, vector<16x16x32xf32>
    %71 = vector.shape_cast %70 : vector<16x16x32xf32> to vector<256x32xf32>
    %72 = arith.truncf %71 : vector<256x32xf32> to vector<256x32xbf16>
    %c256_74 = arith.constant 256 : index
    %c260_75 = arith.constant 260 : index
    %73 = vector.load %arg11[%c256_74, %c260_75] : memref<512x384xbf16, #tpu.memory_space<vmem>>, vector<256x32xbf16>
    tpu.vector_store %arg11[%c256_74, %c260_75], %72 {strides = array<i32>} : memref<512x384xbf16, #tpu.memory_space<vmem>>, vector<256x32xbf16>,
    %c20_76 = arith.constant 20 : index
    %c2_77 = arith.constant 2 : index
    %c0_78 = arith.constant 0 : index
    %74 = vector.load %arg9[%c20_76, %c2_77, %c0_78] : memref<36x18x32xf32, #tpu.memory_space<vmem>>, vector<16x16x32xf32>
    %75 = vector.shape_cast %74 : vector<16x16x32xf32> to vector<256x32xf32>
    %76 = arith.truncf %75 : vector<256x32xf32> to vector<256x32xbf16>
    %c256_79 = arith.constant 256 : index
    %c292_80 = arith.constant 292 : index
    %77 = vector.load %arg11[%c256_79, %c292_80] : memref<512x384xbf16, #tpu.memory_space<vmem>>, vector<256x32xbf16>
    tpu.vector_store %arg11[%c256_79, %c292_80], %76 {strides = array<i32>} : memref<512x384xbf16, #tpu.memory_space<vmem>>, vector<256x32xbf16>,
    %c0_81 = arith.constant 0 : index
    %c0_82 = arith.constant 0 : index
    %78 = vector.load %arg11[%c0_81, %c0_82] : memref<512x384xbf16, #tpu.memory_space<vmem>>, vector<512x384xbf16>
    %c0_83 = arith.constant 0 : index
    %c0_84 = arith.constant 0 : index
    %79 = vector.load %arg3[%c0_83, %c0_84] : memref<384x128xbf16, #tpu.memory_space<vmem>>, vector<384x128xbf16>
    %cst = arith.constant dense<0.000000e+00> : vector<512x128xf32>
    %80 = tpu.matmul %78, %79, %cst {dimension_numbers = #tpu.dot_dimension_numbers<[1], [0], [0], [1], [0, 0, 1, 1], [], []>} : vector<512x384xbf16>, vector<384x128xbf16>, vector<512x128xf32> -> vector<512x128xf32>
    %c0_85 = arith.constant 0 : index
    %c0_86 = arith.constant 0 : index
    %81 = vector.load %arg4[%c0_85, %c0_86] : memref<1x128xf32, #tpu.memory_space<vmem>>, vector<1x128xf32>
    %82 = vector.broadcast %81 : vector<1x128xf32> to vector<512x128xf32>
    %83 = arith.addf %80, %82 : vector<512x128xf32>
    %c0_87 = arith.constant 0 : index
    %c0_88 = arith.constant 0 : index
    %84 = vector.load %arg10[%c0_87, %c0_88] : memref<512x32xf32, #tpu.memory_space<vmem>>, vector<512x32xf32>
    %85 = vector.extract_strided_slice %83 {offsets = [0, 0], sizes = [512, 32], strides = [1, 1]} : vector<512x128xf32> to vector<512x32xf32>
    %86 = vector.extract_strided_slice %83 {offsets = [0, 32], sizes = [512, 32], strides = [1, 1]} : vector<512x128xf32> to vector<512x32xf32>
    %87 = vector.extract_strided_slice %83 {offsets = [0, 64], sizes = [512, 32], strides = [1, 1]} : vector<512x128xf32> to vector<512x32xf32>
    %88 = vector.extract_strided_slice %83 {offsets = [0, 96], sizes = [512, 32], strides = [1, 1]} : vector<512x128xf32> to vector<512x32xf32>
    %c0_89 = arith.constant 0 : index
    %c0_90 = arith.constant 0 : index
    %89 = vector.load %arg5[%c0_89, %c0_90] : memref<512x32xf32, #tpu.memory_space<vmem>>, vector<512x32xf32>
    %90 = arith.mulf %89, %84 : vector<512x32xf32>
    %91 = arith.addf %85, %90 : vector<512x32xf32>
    %92 = arith.negf %91 : vector<512x32xf32>
    %93 = math.exp %92 : vector<512x32xf32>
    %cst_91 = arith.constant 1.000000e+00 : f32
    %94 = vector.broadcast %cst_91 : f32 to vector<512x32xf32>
    %95 = arith.addf %94, %93 : vector<512x32xf32>
    %96 = arith.divf %94, %95 : vector<512x32xf32>
    %c0_92 = arith.constant 0 : index
    %c0_93 = arith.constant 0 : index
    %97 = vector.load %arg6[%c0_92, %c0_93] : memref<512x32xf32, #tpu.memory_space<vmem>>, vector<512x32xf32>
    %98 = arith.mulf %97, %84 : vector<512x32xf32>
    %99 = arith.addf %86, %98 : vector<512x32xf32>
    %100 = arith.negf %99 : vector<512x32xf32>
    %101 = math.exp %100 : vector<512x32xf32>
    %cst_94 = arith.constant 1.000000e+00 : f32
    %102 = vector.broadcast %cst_94 : f32 to vector<512x32xf32>
    %103 = arith.addf %102, %101 : vector<512x32xf32>
    %104 = arith.divf %102, %103 : vector<512x32xf32>
    %105 = arith.mulf %104, %84 : vector<512x32xf32>
    %106 = math.tanh %87 : vector<512x32xf32>
    %107 = arith.mulf %96, %106 : vector<512x32xf32>
    %108 = arith.addf %105, %107 : vector<512x32xf32>
    %c0_95 = arith.constant 0 : index
    %c0_96 = arith.constant 0 : index
    %109 = vector.load %arg7[%c0_95, %c0_96] : memref<512x32xf32, #tpu.memory_space<vmem>>, vector<512x32xf32>
    %110 = arith.mulf %109, %108 : vector<512x32xf32>
    %111 = arith.addf %88, %110 : vector<512x32xf32>
    %112 = arith.negf %111 : vector<512x32xf32>
    %113 = math.exp %112 : vector<512x32xf32>
    %cst_97 = arith.constant 1.000000e+00 : f32
    %114 = vector.broadcast %cst_97 : f32 to vector<512x32xf32>
    %115 = arith.addf %114, %113 : vector<512x32xf32>
    %116 = arith.divf %114, %115 : vector<512x32xf32>
    %117 = math.tanh %108 : vector<512x32xf32>
    %118 = arith.mulf %116, %117 : vector<512x32xf32>
    %c0_98 = arith.constant 0 : index
    %c0_99 = arith.constant 0 : index
    %119 = vector.load %arg10[%c0_98, %c0_99] : memref<512x32xf32, #tpu.memory_space<vmem>>, vector<512x32xf32>
    tpu.vector_store %arg10[%c0_98, %c0_99], %108 {strides = array<i32>} : memref<512x32xf32, #tpu.memory_space<vmem>>, vector<512x32xf32>,
    %120 = vector.shape_cast %118 : vector<512x32xf32> to vector<1x2x256x32xf32>
    %c0_100 = arith.constant 0 : index
    %c0_101 = arith.constant 0 : index
    %c0_102 = arith.constant 0 : index
    %c0_103 = arith.constant 0 : index
    %121 = vector.load %arg8[%c0_100, %c0_101, %c0_102, %c0_103] : memref<1x2x256x32xf32, #tpu.memory_space<vmem>>, vector<1x2x256x32xf32>
    tpu.vector_store %arg8[%c0_100, %c0_101, %c0_102, %c0_103], %120 {strides = array<i32>} : memref<1x2x256x32xf32, #tpu.memory_space<vmem>>, vector<1x2x256x32xf32>,
    %122 = vector.extract_strided_slice %118 {offsets = [0, 0], sizes = [256, 32], strides = [1, 1]} : vector<512x32xf32> to vector<256x32xf32>
    %123 = vector.shape_cast %122 : vector<256x32xf32> to vector<16x16x32xf32>
    %c1_104 = arith.constant 1 : index
    %c1_105 = arith.constant 1 : index
    %c0_106 = arith.constant 0 : index
    %124 = vector.load %arg9[%c1_104, %c1_105, %c0_106] : memref<36x18x32xf32, #tpu.memory_space<vmem>>, vector<16x16x32xf32>
    tpu.vector_store %arg9[%c1_104, %c1_105, %c0_106], %123 {strides = array<i32>} : memref<36x18x32xf32, #tpu.memory_space<vmem>>, vector<16x16x32xf32>,
    %125 = vector.extract_strided_slice %118 {offsets = [256, 0], sizes = [256, 32], strides = [1, 1]} : vector<512x32xf32> to vector<256x32xf32>
    %126 = vector.shape_cast %125 : vector<256x32xf32> to vector<16x16x32xf32>
    %c19_107 = arith.constant 19 : index
    %c1_108 = arith.constant 1 : index
    %c0_109 = arith.constant 0 : index
    %127 = vector.load %arg9[%c19_107, %c1_108, %c0_109] : memref<36x18x32xf32, #tpu.memory_space<vmem>>, vector<16x16x32xf32>
    tpu.vector_store %arg9[%c19_107, %c1_108, %c0_109], %126 {strides = array<i32>} : memref<36x18x32xf32, #tpu.memory_space<vmem>>, vector<16x16x32xf32>,
    return
  }
  func.func @transform_0(%arg0: i32, %arg1: i32) -> (i32, i32, i32, i32) {
    %c0_i32 = arith.constant 0 : i32
    %c0_i32_0 = arith.constant 0 : i32
    %c0_i32_1 = arith.constant 0 : i32
    return %arg1, %arg0, %c0_i32, %c0_i32_0 : i32, i32, i32, i32
  }
  func.func @transform_1(%arg0: i32, %arg1: i32) -> (i32, i32) {
    %c0_i32 = arith.constant 0 : i32
    %c0_i32_0 = arith.constant 0 : i32
    %c0_i32_1 = arith.constant 0 : i32
    return %c0_i32, %c0_i32_0 : i32, i32
  }
  func.func @transform_2(%arg0: i32, %arg1: i32) -> (i32, i32) {
    %c0_i32 = arith.constant 0 : i32
    %c0_i32_0 = arith.constant 0 : i32
    %c0_i32_1 = arith.constant 0 : i32
    return %c0_i32, %c0_i32_0 : i32, i32
  }
  func.func @transform_3(%arg0: i32, %arg1: i32) -> (i32, i32) {
    %c0_i32 = arith.constant 0 : i32
    %c0_i32_0 = arith.constant 0 : i32
    %c0_i32_1 = arith.constant 0 : i32
    return %c0_i32, %c0_i32_0 : i32, i32
  }
  func.func @transform_4(%arg0: i32, %arg1: i32) -> (i32, i32) {
    %c0_i32 = arith.constant 0 : i32
    %c0_i32_0 = arith.constant 0 : i32
    %c0_i32_1 = arith.constant 0 : i32
    return %c0_i32, %c0_i32_0 : i32, i32
  }
  func.func @transform_5(%arg0: i32, %arg1: i32) -> (i32, i32) {
    %c0_i32 = arith.constant 0 : i32
    %c0_i32_0 = arith.constant 0 : i32
    %c0_i32_1 = arith.constant 0 : i32
    return %c0_i32, %c0_i32_0 : i32, i32
  }
  func.func @transform_6(%arg0: i32, %arg1: i32) -> (i32, i32, i32, i32) {
    %c0_i32 = arith.constant 0 : i32
    %c0_i32_0 = arith.constant 0 : i32
    %c0_i32_1 = arith.constant 0 : i32
    return %arg1, %arg0, %c0_i32, %c0_i32_0 : i32, i32, i32, i32
  }
}

</mosaic_0001>

<bundles_post_ra>
// kernel: conv_lstm_forward.1
= control target key start
LH: loop header
LB: loop body
LE: loop exit
PB: predicated region body
PF: predicated region fallthrough
CT: control target
= control target key end

     0   :  { %s10294_s21 = smov 0   ;;  %s10296_s22 = smov 0   ;;  %s15323_s0 = inlined_call_operand.vmem [shape: bf16[8,2,256,36], index: 0, kind: input, shape index: {}]   ;;  %s15324_s1 = inlined_call_operand.vmem [shape: bf16[384,128], index: 1, kind: input, shape index: {}]   ;;  %s15325_s2 = inlined_call_operand.vmem [shape: f32[1,128], index: 2, kind: input, shape index: {}]   ;;  %s15326_s3 = inlined_call_operand.vmem [shape: f32[512,32], index: 3, kind: input, shape index: {}]   ;;  %s15327_s4 = inlined_call_operand.vmem [shape: f32[512,32], index: 4, kind: input, shape index: {}]   ;;  %s15328_s5 = inlined_call_operand.vmem [shape: f32[512,32], index: 5, kind: input, shape index: {}]   ;;  %s15329_s6 = inlined_call_operand.vmem [shape: f32[8,2,256,32], index: 6, kind: output, shape index: {}]  }
   0x1   :  { %s10298_s23 = smov 0  }
   0x2 LB: > { %s25_s24 = sadd.s32 1, %s10243_s22  ;;  %p8628_p0 = scmp.ge.s32.totalorder %s10247_s23, 1  ;;  %s10247_s23 = sphi %s10298_s23, %s16_s23   ;;  %s10243_s22 = sphi %s10296_s22, %s16082_s22   ;;  %s10239_s21 = sphi %s10294_s21, %s16081_s21  }
   0x3   : > { %p26_p1 = scmp.ge.s32.totalorder %s25_s24, 8  ;;  %p234_p2 = scmp.lt.s32.totalorder %s10247_s23, 9 }
   0x5   : > { %s16084_s24 = smov (%p26_p1, %s25_s24), 0  ;;  %p235_p3 = pnand %p8628_p0, %p234_p2 }
   0x7   : > { %238 = sbr.rel (%p235_p3) target bundleno = 2012 (0x7dc), region = 44 }
   0xe   : > { %p275_p4 = scmp.lt.s32.totalorder %s10239_s21, 7  ;;  %p8633_p5 = scmp.ne.s32.totalorder %s10239_s21, 0 }
   0xf   : > { %vm301_vm0 = vcmask (!%p8633_p5), 261120   ;;  %vm304_vm1 = vcmask (!%p8633_p5), 254976   ;;  %v10249_v0 = vmov (!%p8633_p5), 0.0   ;;  %v10250_v1 = vmov (!%p8633_p5), 0  }
  0x10   : > { %s276_s25 = scalar_select %p275_p4, %s10239_s21, 7 }
  0x11   : > { %300 = sbr.rel (%p8633_p5) target bundleno = 151 (0x97), region = 48  ;;  %302 = vst.msk [vmem:[#allocation2] sm:$0xff] (!%p8633_p5), %vm301_vm0, %v10249_v0  ;;  %303 = vst.msk [vmem:[#allocation2 + $0x8] sm:$0xff] (!%p8633_p5), %vm301_vm0, %v10249_v0 }
  0x12   : > { %s8885_s26 = sshll.u32 %s276_s25, 8  ;;  %s8886_s27 = sshll.u32 %s276_s25, 9  ;;  %306 = vst.msk [vmem:[#allocation2 + $0x18] sm:$0xff] (!%p8633_p5), %vm301_vm0, %v10249_v0  ;;  %307 = vst.msk [vmem:[#allocation2 + $0x20] sm:$0xff] (!%p8633_p5), %vm301_vm0, %v10249_v0 }
  0x13   : > { %s10315_s30 = scalar_lea.vmem %s15323_s0, %s8885_s26  ;;  %s10320_s9 = scalar_lea.vmem %s15329_s6, %s8886_s27  ;;  %309 = vst.msk [vmem:[#allocation2 + $0x30] sm:$0xff] (!%p8633_p5), %vm301_vm0, %v10249_v0  ;;  %310 = vst.msk [vmem:[#allocation2 + $0x38] sm:$0xff] (!%p8633_p5), %vm301_vm0, %v10249_v0 }
  0x14   : > { %312 = vst.msk [vmem:[#allocation2 + $0x48] sm:$0xff] (!%p8633_p5), %vm301_vm0, %v10249_v0  ;;  %313 = vst.msk [vmem:[#allocation2 + $0x50] sm:$0xff] (!%p8633_p5), %vm301_vm0, %v10249_v0 }
  0x15   : > { %315 = vst.msk [vmem:[#allocation2 + $0x60] sm:$0xff] (!%p8633_p5), %vm301_vm0, %v10249_v0  ;;  %316 = vst.msk [vmem:[#allocation2 + $0x68] sm:$0xff] (!%p8633_p5), %vm301_vm0, %v10249_v0 }
  0x16   : > { %318 = vst.msk [vmem:[#allocation2 + $0x78] sm:$0xff] (!%p8633_p5), %vm301_vm0, %v10249_v0  ;;  %319 = vst.msk [vmem:[#allocation2 + $0x80] sm:$0xff] (!%p8633_p5), %vm301_vm0, %v10249_v0 }
  0x17   : > { %321 = vst.msk [vmem:[#allocation2 + $0x90] sm:$0xff] (!%p8633_p5), %vm301_vm0, %v10249_v0  ;;  %322 = vst.msk [vmem:[#allocation2 + $0x98] sm:$0xff] (!%p8633_p5), %vm301_vm0, %v10249_v0 }
  0x18   : > { %324 = vst.msk [vmem:[#allocation2 + $0xa8] sm:$0xff] %vm301_vm0, %v10249_v0  ;;  %325 = vst.msk [vmem:[#allocation2 + $0xb0] sm:$0xff] %vm301_vm0, %v10249_v0 }
  0x19   : > { %327 = vst.msk [vmem:[#allocation2 + $0xc0] sm:$0xff] %vm301_vm0, %v10249_v0  ;;  %328 = vst.msk [vmem:[#allocation2 + $0xc8] sm:$0xff] %vm301_vm0, %v10249_v0 }
  0x1a   : > { %330 = vst.msk [vmem:[#allocation2 + $0xd8] sm:$0xff] %vm301_vm0, %v10249_v0  ;;  %331 = vst.msk [vmem:[#allocation2 + $0xe0] sm:$0xff] %vm301_vm0, %v10249_v0 }
  0x1b   : > { %333 = vst.msk [vmem:[#allocation2 + $0xf0] sm:$0xff] %vm301_vm0, %v10249_v0  ;;  %334 = vst.msk [vmem:[#allocation2 + $0xf8] sm:$0xff] %vm301_vm0, %v10249_v0 }
  0x1c   : > { %336 = vst.msk [vmem:[#allocation2 + $0x108] sm:$0xff] %vm301_vm0, %v10249_v0  ;;  %337 = vst.msk [vmem:[#allocation2 + $0x110] sm:$0xff] %vm301_vm0, %v10249_v0 }
  0x1d   : > { %339 = vst.msk [vmem:[#allocation2 + $0x120] sm:$0xff] %vm301_vm0, %v10249_v0  ;;  %340 = vst.msk [vmem:[#allocation2 + $0x128] sm:$0xff] %vm301_vm0, %v10249_v0 }
  0x1e   : > { %342 = vst.msk [vmem:[#allocation2 + $0x138] sm:$0xff] %vm301_vm0, %v10249_v0  ;;  %343 = vst.msk [vmem:[#allocation2 + $0x140] sm:$0xff] %vm301_vm0, %v10249_v0 }
  0x1f   : > { %345 = vst.msk [vmem:[#allocation2 + $0x150] sm:$0xff] %vm301_vm0, %v10249_v0  ;;  %346 = vst.msk [vmem:[#allocation2 + $0x158] sm:$0xff] %vm301_vm0, %v10249_v0 }
  0x20   : > { %348 = vst.msk [vmem:[#allocation2 + $0x168] sm:$0xff] %vm301_vm0, %v10249_v0  ;;  %349 = vst.msk [vmem:[#allocation2 + $0x170] sm:$0xff] %vm301_vm0, %v10249_v0 }
  0x21   : > { %351 = vst.msk [vmem:[#allocation2 + $0x180] sm:$0xff] %vm301_vm0, %v10249_v0  ;;  %352 = vst.msk [vmem:[#allocation2 + $0x188] sm:$0xff] %vm301_vm0, %v10249_v0 }
  0x22   : > { %354 = vst.msk [vmem:[#allocation2 + $0x198] sm:$0xff] %vm301_vm0, %v10249_v0  ;;  %355 = vst.msk [vmem:[#allocation2 + $0x1a0] sm:$0xff] %vm301_vm0, %v10249_v0 }
  0x23   : > { %357 = vst.msk [vmem:[#allocation2 + $0x1b0] sm:$0xff] %vm301_vm0, %v10249_v0  ;;  %358 = vst.msk [vmem:[#allocation2 + $0x1b8] sm:$0xff] %vm301_vm0, %v10249_v0 }
  0x24   : > { %360 = vst.msk [vmem:[#allocation2 + $0x1c8] sm:$0xff] %vm301_vm0, %v10249_v0  ;;  %361 = vst.msk [vmem:[#allocation2 + $0x1d0] sm:$0xff] %vm301_vm0, %v10249_v0 }
  0x25   : > { %363 = vst.msk [vmem:[#allocation2 + $0x1e0] sm:$0xff] %vm301_vm0, %v10249_v0  ;;  %364 = vst.msk [vmem:[#allocation2 + $0x1e8] sm:$0xff] %vm301_vm0, %v10249_v0 }
  0x26   : > { %366 = vst.msk [vmem:[#allocation2 + $0x1f8] sm:$0xff] %vm301_vm0, %v10249_v0  ;;  %367 = vst.msk [vmem:[#allocation2 + $0x200] sm:$0xff] %vm301_vm0, %v10249_v0 }
  0x27   : > { %369 = vst.msk [vmem:[#allocation2 + $0x210] sm:$0xff] %vm301_vm0, %v10249_v0  ;;  %370 = vst.msk [vmem:[#allocation2 + $0x218] sm:$0xff] %vm301_vm0, %v10249_v0 }
  0x28   : > { %372 = vst.msk [vmem:[#allocation2 + $0x228] sm:$0xff] %vm301_vm0, %v10249_v0  ;;  %373 = vst.msk [vmem:[#allocation2 + $0x230] sm:$0xff] %vm301_vm0, %v10249_v0 }
  0x29   : > { %375 = vst.msk [vmem:[#allocation2 + $0x240] sm:$0xff] %vm301_vm0, %v10249_v0  ;;  %376 = vst.msk [vmem:[#allocation2 + $0x248] sm:$0xff] %vm301_vm0, %v10249_v0 }
  0x2a   : > { %378 = vst.msk [vmem:[#allocation2 + $0x258] sm:$0xff] %vm301_vm0, %v10249_v0  ;;  %379 = vst.msk [vmem:[#allocation2 + $0x260] sm:$0xff] %vm301_vm0, %v10249_v0 }
  0x2b   : > { %381 = vst.msk [vmem:[#allocation2 + $0x270] sm:$0xff] %vm301_vm0, %v10249_v0  ;;  %382 = vst.msk [vmem:[#allocation2 + $0x278] sm:$0xff] %vm301_vm0, %v10249_v0 }
  0x2c   : > { %384 = vst.msk [vmem:[#allocation2 + $0x288] sm:$0xff] %vm301_vm0, %v10249_v0  ;;  %385 = vst.msk [vmem:[#allocation2 + $0x290] sm:$0xff] %vm301_vm0, %v10249_v0 }
  0x2d   : > { %387 = vst.msk [vmem:[#allocation2 + $0x2a0] sm:$0xff] %vm301_vm0, %v10249_v0  ;;  %388 = vst.msk [vmem:[#allocation2 + $0x2a8] sm:$0xff] %vm301_vm0, %v10249_v0 }
  0x2e   : > { %390 = vst.msk [vmem:[#allocation2 + $0x2b8] sm:$0xff] %vm301_vm0, %v10249_v0  ;;  %391 = vst.msk [vmem:[#allocation2 + $0x2c0] sm:$0xff] %vm301_vm0, %v10249_v0 }
  0x2f   : > { %393 = vst.msk [vmem:[#allocation2 + $0x2d0] sm:$0xff] %vm301_vm0, %v10249_v0  ;;  %394 = vst.msk [vmem:[#allocation2 + $0x2d8] sm:$0xff] %vm301_vm0, %v10249_v0 }
  0x30   : > { %396 = vst.msk [vmem:[#allocation2 + $0x2e8] sm:$0xff] %vm301_vm0, %v10249_v0  ;;  %397 = vst.msk [vmem:[#allocation2 + $0x2f0] sm:$0xff] %vm301_vm0, %v10249_v0 }
  0x31   : > { %399 = vst.msk [vmem:[#allocation2 + $0x300] sm:$0xff] %vm301_vm0, %v10249_v0  ;;  %400 = vst.msk [vmem:[#allocation2 + $0x308] sm:$0xff] %vm301_vm0, %v10249_v0 }
  0x32   : > { %402 = vst.msk [vmem:[#allocation2 + $0x318] sm:$0xff] %vm301_vm0, %v10249_v0  ;;  %403 = vst.msk [vmem:[#allocation2 + $0x320] sm:$0xff] %vm301_vm0, %v10249_v0 }
  0x33   : > { %405 = vst.msk [vmem:[#allocation2 + $0x330] sm:$0xff] %vm301_vm0, %v10249_v0  ;;  %406 = vst.msk [vmem:[#allocation2 + $0x338] sm:$0xff] %vm301_vm0, %v10249_v0 }
  0x34   : > { %408 = vst.msk [vmem:[#allocation2 + $0x348] sm:$0xff] %vm301_vm0, %v10249_v0  ;;  %409 = vst.msk [vmem:[#allocation2 + $0x350] sm:$0xff] %vm301_vm0, %v10249_v0 }
  0x35   : > { %411 = vst.msk [vmem:[#allocation3] sm:$0xff] %vm301_vm0, %v10249_v0  ;;  %412 = vst.msk [vmem:[#allocation3 + $0x8] sm:$0xff] %vm301_vm0, %v10249_v0 }
  0x36   : > { %413 = vst.msk [vmem:[#allocation3 + $0x10] sm:$0xff] %vm301_vm0, %v10249_v0  ;;  %414 = vst.msk [vmem:[#allocation3 + $0x18] sm:$0xff] %vm301_vm0, %v10249_v0 }
  0x37   : > { %415 = vst.msk [vmem:[#allocation3 + $0x20] sm:$0xff] %vm301_vm0, %v10249_v0  ;;  %416 = vst.msk [vmem:[#allocation3 + $0x28] sm:$0xff] %vm301_vm0, %v10249_v0 }
  0x38   : > { %417 = vst.msk [vmem:[#allocation3 + $0x30] sm:$0xff] %vm301_vm0, %v10249_v0  ;;  %418 = vst.msk [vmem:[#allocation3 + $0x38] sm:$0xff] %vm301_vm0, %v10249_v0 }
  0x39   : > { %419 = vst.msk [vmem:[#allocation3 + $0x40] sm:$0xff] %vm301_vm0, %v10249_v0  ;;  %420 = vst.msk [vmem:[#allocation3 + $0x48] sm:$0xff] %vm301_vm0, %v10249_v0 }
  0x3a   : > { %421 = vst.msk [vmem:[#allocation3 + $0x50] sm:$0xff] %vm301_vm0, %v10249_v0  ;;  %422 = vst.msk [vmem:[#allocation3 + $0x58] sm:$0xff] %vm301_vm0, %v10249_v0 }
  0x3b   : > { %423 = vst.msk [vmem:[#allocation3 + $0x60] sm:$0xff] %vm301_vm0, %v10249_v0  ;;  %424 = vst.msk [vmem:[#allocation3 + $0x68] sm:$0xff] %vm301_vm0, %v10249_v0 }
  0x3c   : > { %425 = vst.msk [vmem:[#allocation3 + $0x70] sm:$0xff] %vm301_vm0, %v10249_v0  ;;  %426 = vst.msk [vmem:[#allocation3 + $0x78] sm:$0xff] %vm301_vm0, %v10249_v0 }
  0x3d   : > { %427 = vst.msk [vmem:[#allocation3 + $0x80] sm:$0xff] %vm301_vm0, %v10249_v0  ;;  %428 = vst.msk [vmem:[#allocation3 + $0x88] sm:$0xff] %vm301_vm0, %v10249_v0 }
  0x3e   : > { %429 = vst.msk [vmem:[#allocation3 + $0x90] sm:$0xff] %vm301_vm0, %v10249_v0  ;;  %430 = vst.msk [vmem:[#allocation3 + $0x98] sm:$0xff] %vm301_vm0, %v10249_v0 }
  0x3f   : > { %431 = vst.msk [vmem:[#allocation3 + $0xa0] sm:$0xff] %vm301_vm0, %v10249_v0  ;;  %432 = vst.msk [vmem:[#allocation3 + $0xa8] sm:$0xff] %vm301_vm0, %v10249_v0 }
  0x40   : > { %433 = vst.msk [vmem:[#allocation3 + $0xb0] sm:$0xff] %vm301_vm0, %v10249_v0  ;;  %434 = vst.msk [vmem:[#allocation3 + $0xb8] sm:$0xff] %vm301_vm0, %v10249_v0 }
  0x41   : > { %435 = vst.msk [vmem:[#allocation3 + $0xc0] sm:$0xff] %vm301_vm0, %v10249_v0  ;;  %436 = vst.msk [vmem:[#allocation3 + $0xc8] sm:$0xff] %vm301_vm0, %v10249_v0 }
  0x42   : > { %437 = vst.msk [vmem:[#allocation3 + $0xd0] sm:$0xff] %vm301_vm0, %v10249_v0  ;;  %438 = vst.msk [vmem:[#allocation3 + $0xd8] sm:$0xff] %vm301_vm0, %v10249_v0 }
  0x43   : > { %439 = vst.msk [vmem:[#allocation3 + $0xe0] sm:$0xff] %vm301_vm0, %v10249_v0  ;;  %440 = vst.msk [vmem:[#allocation3 + $0xe8] sm:$0xff] %vm301_vm0, %v10249_v0 }
  0x44   : > { %441 = vst.msk [vmem:[#allocation3 + $0xf0] sm:$0xff] %vm301_vm0, %v10249_v0  ;;  %442 = vst.msk [vmem:[#allocation3 + $0xf8] sm:$0xff] %vm301_vm0, %v10249_v0 }
  0x45   : > { %443 = vst.msk [vmem:[#allocation3 + $0x100] sm:$0xff] %vm301_vm0, %v10249_v0  ;;  %444 = vst.msk [vmem:[#allocation3 + $0x108] sm:$0xff] %vm301_vm0, %v10249_v0 }
  0x46   : > { %445 = vst.msk [vmem:[#allocation3 + $0x110] sm:$0xff] %vm301_vm0, %v10249_v0  ;;  %446 = vst.msk [vmem:[#allocation3 + $0x118] sm:$0xff] %vm301_vm0, %v10249_v0 }
  0x47   : > { %447 = vst.msk [vmem:[#allocation3 + $0x120] sm:$0xff] %vm301_vm0, %v10249_v0  ;;  %448 = vst.msk [vmem:[#allocation3 + $0x128] sm:$0xff] %vm301_vm0, %v10249_v0 }
  0x48   : > { %449 = vst.msk [vmem:[#allocation3 + $0x130] sm:$0xff] %vm301_vm0, %v10249_v0  ;;  %450 = vst.msk [vmem:[#allocation3 + $0x138] sm:$0xff] %vm301_vm0, %v10249_v0 }
  0x49   : > { %451 = vst.msk [vmem:[#allocation3 + $0x140] sm:$0xff] %vm301_vm0, %v10249_v0  ;;  %452 = vst.msk [vmem:[#allocation3 + $0x148] sm:$0xff] %vm301_vm0, %v10249_v0 }
  0x4a   : > { %453 = vst.msk [vmem:[#allocation3 + $0x150] sm:$0xff] %vm301_vm0, %v10249_v0  ;;  %454 = vst.msk [vmem:[#allocation3 + $0x158] sm:$0xff] %vm301_vm0, %v10249_v0 }
  0x4b   : > { %455 = vst.msk [vmem:[#allocation3 + $0x160] sm:$0xff] %vm301_vm0, %v10249_v0  ;;  %456 = vst.msk [vmem:[#allocation3 + $0x168] sm:$0xff] %vm301_vm0, %v10249_v0 }
  0x4c   : > { %457 = vst.msk [vmem:[#allocation3 + $0x170] sm:$0xff] %vm301_vm0, %v10249_v0  ;;  %458 = vst.msk [vmem:[#allocation3 + $0x178] sm:$0xff] %vm301_vm0, %v10249_v0 }
  0x4d   : > { %459 = vst.msk [vmem:[#allocation3 + $0x180] sm:$0xff] %vm301_vm0, %v10249_v0  ;;  %460 = vst.msk [vmem:[#allocation3 + $0x188] sm:$0xff] %vm301_vm0, %v10249_v0 }
  0x4e   : > { %461 = vst.msk [vmem:[#allocation3 + $0x190] sm:$0xff] %vm301_vm0, %v10249_v0  ;;  %462 = vst.msk [vmem:[#allocation3 + $0x198] sm:$0xff] %vm301_vm0, %v10249_v0 }
  0x4f   : > { %463 = vst.msk [vmem:[#allocation3 + $0x1a0] sm:$0xff] %vm301_vm0, %v10249_v0  ;;  %464 = vst.msk [vmem:[#allocation3 + $0x1a8] sm:$0xff] %vm301_vm0, %v10249_v0 }
  0x50   : > { %465 = vst.msk [vmem:[#allocation3 + $0x1b0] sm:$0xff] %vm301_vm0, %v10249_v0  ;;  %466 = vst.msk [vmem:[#allocation3 + $0x1b8] sm:$0xff] %vm301_vm0, %v10249_v0 }
  0x51   : > { %467 = vst.msk [vmem:[#allocation3 + $0x1c0] sm:$0xff] %vm301_vm0, %v10249_v0  ;;  %468 = vst.msk [vmem:[#allocation3 + $0x1c8] sm:$0xff] %vm301_vm0, %v10249_v0 }
  0x52   : > { %469 = vst.msk [vmem:[#allocation3 + $0x1d0] sm:$0xff] %vm301_vm0, %v10249_v0  ;;  %470 = vst.msk [vmem:[#allocation3 + $0x1d8] sm:$0xff] %vm301_vm0, %v10249_v0 }
  0x53   : > { %471 = vst.msk [vmem:[#allocation3 + $0x1e0] sm:$0xff] %vm301_vm0, %v10249_v0  ;;  %472 = vst.msk [vmem:[#allocation3 + $0x1e8] sm:$0xff] %vm301_vm0, %v10249_v0 }
  0x54   : > { %473 = vst.msk [vmem:[#allocation3 + $0x1f0] sm:$0xff] %vm301_vm0, %v10249_v0  ;;  %474 = vst.msk [vmem:[#allocation3 + $0x1f8] sm:$0xff] %vm301_vm0, %v10249_v0 }
  0x55   : > { %305 = vst.msk [vmem:[#allocation2 + $0x10] sm:$0x3] %vm304_vm1, %v10249_v0  ;;  %308 = vst.msk [vmem:[#allocation2 + $0x28] sm:$0x3] %vm304_vm1, %v10249_v0 }
  0x56   : > { %311 = vst.msk [vmem:[#allocation2 + $0x40] sm:$0x3] %vm304_vm1, %v10249_v0  ;;  %314 = vst.msk [vmem:[#allocation2 + $0x58] sm:$0x3] %vm304_vm1, %v10249_v0 }
  0x57   : > { %317 = vst.msk [vmem:[#allocation2 + $0x70] sm:$0x3] %vm304_vm1, %v10249_v0  ;;  %320 = vst.msk [vmem:[#allocation2 + $0x88] sm:$0x3] %vm304_vm1, %v10249_v0 }
  0x58   : > { %323 = vst.msk [vmem:[#allocation2 + $0xa0] sm:$0x3] %vm304_vm1, %v10249_v0  ;;  %326 = vst.msk [vmem:[#allocation2 + $0xb8] sm:$0x3] %vm304_vm1, %v10249_v0 }
  0x59   : > { %329 = vst.msk [vmem:[#allocation2 + $0xd0] sm:$0x3] %vm304_vm1, %v10249_v0  ;;  %332 = vst.msk [vmem:[#allocation2 + $0xe8] sm:$0x3] %vm304_vm1, %v10249_v0 }
  0x5a   : > { %335 = vst.msk [vmem:[#allocation2 + $0x100] sm:$0x3] %vm304_vm1, %v10249_v0  ;;  %338 = vst.msk [vmem:[#allocation2 + $0x118] sm:$0x3] %vm304_vm1, %v10249_v0 }
  0x5b   : > { %341 = vst.msk [vmem:[#allocation2 + $0x130] sm:$0x3] %vm304_vm1, %v10249_v0  ;;  %344 = vst.msk [vmem:[#allocation2 + $0x148] sm:$0x3] %vm304_vm1, %v10249_v0 }
  0x5c   : > { %347 = vst.msk [vmem:[#allocation2 + $0x160] sm:$0x3] %vm304_vm1, %v10249_v0  ;;  %350 = vst.msk [vmem:[#allocation2 + $0x178] sm:$0x3] %vm304_vm1, %v10249_v0 }
  0x5d   : > { %353 = vst.msk [vmem:[#allocation2 + $0x190] sm:$0x3] %vm304_vm1, %v10249_v0  ;;  %356 = vst.msk [vmem:[#allocation2 + $0x1a8] sm:$0x3] %vm304_vm1, %v10249_v0 }
  0x5e   : > { %359 = vst.msk [vmem:[#allocation2 + $0x1c0] sm:$0x3] %vm304_vm1, %v10249_v0  ;;  %362 = vst.msk [vmem:[#allocation2 + $0x1d8] sm:$0x3] %vm304_vm1, %v10249_v0 }
  0x5f   : > { %365 = vst.msk [vmem:[#allocation2 + $0x1f0] sm:$0x3] %vm304_vm1, %v10249_v0  ;;  %368 = vst.msk [vmem:[#allocation2 + $0x208] sm:$0x3] %vm304_vm1, %v10249_v0 }
  0x60   : > { %371 = vst.msk [vmem:[#allocation2 + $0x220] sm:$0x3] %vm304_vm1, %v10249_v0  ;;  %374 = vst.msk [vmem:[#allocation2 + $0x238] sm:$0x3] %vm304_vm1, %v10249_v0 }
  0x61   : > { %377 = vst.msk [vmem:[#allocation2 + $0x250] sm:$0x3] %vm304_vm1, %v10249_v0  ;;  %380 = vst.msk [vmem:[#allocation2 + $0x268] sm:$0x3] %vm304_vm1, %v10249_v0 }
  0x62   : > { %383 = vst.msk [vmem:[#allocation2 + $0x280] sm:$0x3] %vm304_vm1, %v10249_v0  ;;  %386 = vst.msk [vmem:[#allocation2 + $0x298] sm:$0x3] %vm304_vm1, %v10249_v0 }
  0x63   : > { %389 = vst.msk [vmem:[#allocation2 + $0x2b0] sm:$0x3] %vm304_vm1, %v10249_v0  ;;  %392 = vst.msk [vmem:[#allocation2 + $0x2c8] sm:$0x3] %vm304_vm1, %v10249_v0 }
  0x64   : > { %395 = vst.msk [vmem:[#allocation2 + $0x2e0] sm:$0x3] %vm304_vm1, %v10249_v0  ;;  %398 = vst.msk [vmem:[#allocation2 + $0x2f8] sm:$0x3] %vm304_vm1, %v10249_v0 }
  0x65   : > { %401 = vst.msk [vmem:[#allocation2 + $0x310] sm:$0x3] %vm304_vm1, %v10249_v0  ;;  %404 = vst.msk [vmem:[#allocation2 + $0x328] sm:$0x3] %vm304_vm1, %v10249_v0 }
  0x66   : > { %407 = vst.msk [vmem:[#allocation2 + $0x340] sm:$0x3] %vm304_vm1, %v10249_v0  ;;  %410 = vst.msk [vmem:[#allocation2 + $0x358] sm:$0x3] %vm304_vm1, %v10249_v0 }
  0x67   : > { %475 = vst [vmem:[#allocation4] sm:$0xff] %v10250_v1  ;;  %476 = vst [vmem:[#allocation4 + $0x8] sm:$0xff] %v10250_v1 }
  0x68   : > { %477 = vst [vmem:[#allocation4 + $0x10] sm:$0xff] %v10250_v1  ;;  %478 = vst [vmem:[#allocation4 + $0x18] sm:$0xff] %v10250_v1 }
  0x69   : > { %479 = vst [vmem:[#allocation4 + $0x20] sm:$0xff] %v10250_v1  ;;  %480 = vst [vmem:[#allocation4 + $0x28] sm:$0xff] %v10250_v1 }
  0x6a   : > { %481 = vst [vmem:[#allocation4 + $0x30] sm:$0xff] %v10250_v1  ;;  %482 = vst [vmem:[#allocation4 + $0x38] sm:$0xff] %v10250_v1 }
  0x6b   : > { %483 = vst [vmem:[#allocation4 + $0x40] sm:$0xff] %v10250_v1  ;;  %484 = vst [vmem:[#allocation4 + $0x48] sm:$0xff] %v10250_v1 }
  0x6c   : > { %485 = vst [vmem:[#allocation4 + $0x50] sm:$0xff] %v10250_v1  ;;  %486 = vst [vmem:[#allocation4 + $0x58] sm:$0xff] %v10250_v1 }
  0x6d   : > { %487 = vst [vmem:[#allocation4 + $0x60] sm:$0xff] %v10250_v1  ;;  %488 = vst [vmem:[#allocation4 + $0x68] sm:$0xff] %v10250_v1 }
  0x6e   : > { %489 = vst [vmem:[#allocation4 + $0x70] sm:$0xff] %v10250_v1  ;;  %490 = vst [vmem:[#allocation4 + $0x78] sm:$0xff] %v10250_v1 }
  0x6f   : > { %491 = vst [vmem:[#allocation4 + $0x80] sm:$0xff] %v10250_v1  ;;  %492 = vst [vmem:[#allocation4 + $0x88] sm:$0xff] %v10250_v1 }
  0x70   : > { %493 = vst [vmem:[#allocation4 + $0x90] sm:$0xff] %v10250_v1  ;;  %494 = vst [vmem:[#allocation4 + $0x98] sm:$0xff] %v10250_v1 }
  0x71   : > { %495 = vst [vmem:[#allocation4 + $0xa0] sm:$0xff] %v10250_v1  ;;  %496 = vst [vmem:[#allocation4 + $0xa8] sm:$0xff] %v10250_v1 }
  0x72   : > { %497 = vst [vmem:[#allocation4 + $0xb0] sm:$0xff] %v10250_v1  ;;  %498 = vst [vmem:[#allocation4 + $0xb8] sm:$0xff] %v10250_v1 }
  0x73   : > { %499 = vst [vmem:[#allocation4 + $0xc0] sm:$0xff] %v10250_v1  ;;  %500 = vst [vmem:[#allocation4 + $0xc8] sm:$0xff] %v10250_v1 }
  0x74   : > { %501 = vst [vmem:[#allocation4 + $0xd0] sm:$0xff] %v10250_v1  ;;  %502 = vst [vmem:[#allocation4 + $0xd8] sm:$0xff] %v10250_v1 }
  0x75   : > { %503 = vst [vmem:[#allocation4 + $0xe0] sm:$0xff] %v10250_v1  ;;  %504 = vst [vmem:[#allocation4 + $0xe8] sm:$0xff] %v10250_v1 }
  0x76   : > { %505 = vst [vmem:[#allocation4 + $0xf0] sm:$0xff] %v10250_v1  ;;  %506 = vst [vmem:[#allocation4 + $0xf8] sm:$0xff] %v10250_v1 }
  0x77   : > { %507 = vst [vmem:[#allocation4 + $0x100] sm:$0xff] %v10250_v1  ;;  %508 = vst [vmem:[#allocation4 + $0x108] sm:$0xff] %v10250_v1 }
  0x78   : > { %509 = vst [vmem:[#allocation4 + $0x110] sm:$0xff] %v10250_v1  ;;  %510 = vst [vmem:[#allocation4 + $0x118] sm:$0xff] %v10250_v1 }
  0x79   : > { %511 = vst [vmem:[#allocation4 + $0x120] sm:$0xff] %v10250_v1  ;;  %512 = vst [vmem:[#allocation4 + $0x128] sm:$0xff] %v10250_v1 }
  0x7a   : > { %513 = vst [vmem:[#allocation4 + $0x130] sm:$0xff] %v10250_v1  ;;  %514 = vst [vmem:[#allocation4 + $0x138] sm:$0xff] %v10250_v1 }
  0x7b   : > { %515 = vst [vmem:[#allocation4 + $0x140] sm:$0xff] %v10250_v1  ;;  %516 = vst [vmem:[#allocation4 + $0x148] sm:$0xff] %v10250_v1 }
  0x7c   : > { %517 = vst [vmem:[#allocation4 + $0x150] sm:$0xff] %v10250_v1  ;;  %518 = vst [vmem:[#allocation4 + $0x158] sm:$0xff] %v10250_v1 }
  0x7d   : > { %519 = vst [vmem:[#allocation4 + $0x160] sm:$0xff] %v10250_v1  ;;  %520 = vst [vmem:[#allocation4 + $0x168] sm:$0xff] %v10250_v1 }
  0x7e   : > { %521 = vst [vmem:[#allocation4 + $0x170] sm:$0xff] %v10250_v1  ;;  %522 = vst [vmem:[#allocation4 + $0x178] sm:$0xff] %v10250_v1 }
  0x7f   : > { %523 = vst [vmem:[#allocation4 + $0x180] sm:$0xff] %v10250_v1  ;;  %524 = vst [vmem:[#allocation4 + $0x188] sm:$0xff] %v10250_v1 }
  0x80   : > { %525 = vst [vmem:[#allocation4 + $0x190] sm:$0xff] %v10250_v1  ;;  %526 = vst [vmem:[#allocation4 + $0x198] sm:$0xff] %v10250_v1 }
  0x81   : > { %527 = vst [vmem:[#allocation4 + $0x1a0] sm:$0xff] %v10250_v1  ;;  %528 = vst [vmem:[#allocation4 + $0x1a8] sm:$0xff] %v10250_v1 }
  0x82   : > { %529 = vst [vmem:[#allocation4 + $0x1b0] sm:$0xff] %v10250_v1  ;;  %530 = vst [vmem:[#allocation4 + $0x1b8] sm:$0xff] %v10250_v1 }
  0x83   : > { %531 = vst [vmem:[#allocation4 + $0x1c0] sm:$0xff] %v10250_v1  ;;  %532 = vst [vmem:[#allocation4 + $0x1c8] sm:$0xff] %v10250_v1 }
  0x84   : > { %533 = vst [vmem:[#allocation4 + $0x1d0] sm:$0xff] %v10250_v1  ;;  %534 = vst [vmem:[#allocation4 + $0x1d8] sm:$0xff] %v10250_v1 }
  0x85   : > { %535 = vst [vmem:[#allocation4 + $0x1e0] sm:$0xff] %v10250_v1  ;;  %536 = vst [vmem:[#allocation4 + $0x1e8] sm:$0xff] %v10250_v1 }
  0x86   : > { %537 = vst [vmem:[#allocation4 + $0x1f0] sm:$0xff] %v10250_v1  ;;  %538 = vst [vmem:[#allocation4 + $0x1f8] sm:$0xff] %v10250_v1 }
  0x87   : > { %539 = vst [vmem:[#allocation4 + $0x200] sm:$0xff] %v10250_v1  ;;  %540 = vst [vmem:[#allocation4 + $0x208] sm:$0xff] %v10250_v1 }
  0x88   : > { %541 = vst [vmem:[#allocation4 + $0x210] sm:$0xff] %v10250_v1  ;;  %542 = vst [vmem:[#allocation4 + $0x218] sm:$0xff] %v10250_v1 }
  0x89   : > { %543 = vst [vmem:[#allocation4 + $0x220] sm:$0xff] %v10250_v1  ;;  %544 = vst [vmem:[#allocation4 + $0x228] sm:$0xff] %v10250_v1 }
  0x8a   : > { %545 = vst [vmem:[#allocation4 + $0x230] sm:$0xff] %v10250_v1  ;;  %546 = vst [vmem:[#allocation4 + $0x238] sm:$0xff] %v10250_v1 }
  0x8b   : > { %547 = vst [vmem:[#allocation4 + $0x240] sm:$0xff] %v10250_v1  ;;  %548 = vst [vmem:[#allocation4 + $0x248] sm:$0xff] %v10250_v1 }
  0x8c   : > { %549 = vst [vmem:[#allocation4 + $0x250] sm:$0xff] %v10250_v1  ;;  %550 = vst [vmem:[#allocation4 + $0x258] sm:$0xff] %v10250_v1 }
  0x8d   : > { %551 = vst [vmem:[#allocation4 + $0x260] sm:$0xff] %v10250_v1  ;;  %552 = vst [vmem:[#allocation4 + $0x268] sm:$0xff] %v10250_v1 }
  0x8e   : > { %553 = vst [vmem:[#allocation4 + $0x270] sm:$0xff] %v10250_v1  ;;  %554 = vst [vmem:[#allocation4 + $0x278] sm:$0xff] %v10250_v1 }
  0x8f   : > { %555 = vst [vmem:[#allocation4 + $0x280] sm:$0xff] %v10250_v1  ;;  %556 = vst [vmem:[#allocation4 + $0x288] sm:$0xff] %v10250_v1 }
  0x90   : > { %557 = vst [vmem:[#allocation4 + $0x290] sm:$0xff] %v10250_v1  ;;  %558 = vst [vmem:[#allocation4 + $0x298] sm:$0xff] %v10250_v1 }
  0x91   : > { %559 = vst [vmem:[#allocation4 + $0x2a0] sm:$0xff] %v10250_v1  ;;  %560 = vst [vmem:[#allocation4 + $0x2a8] sm:$0xff] %v10250_v1 }
  0x92   : > { %561 = vst [vmem:[#allocation4 + $0x2b0] sm:$0xff] %v10250_v1  ;;  %562 = vst [vmem:[#allocation4 + $0x2b8] sm:$0xff] %v10250_v1 }
  0x93   : > { %563 = vst [vmem:[#allocation4 + $0x2c0] sm:$0xff] %v10250_v1  ;;  %564 = vst [vmem:[#allocation4 + $0x2c8] sm:$0xff] %v10250_v1 }
  0x94   : > { %565 = vst [vmem:[#allocation4 + $0x2d0] sm:$0xff] %v10250_v1  ;;  %566 = vst [vmem:[#allocation4 + $0x2d8] sm:$0xff] %v10250_v1 }
  0x95   : > { %567 = vst [vmem:[#allocation4 + $0x2e0] sm:$0xff] %v10250_v1  ;;  %568 = vst [vmem:[#allocation4 + $0x2e8] sm:$0xff] %v10250_v1 }
  0x96   : > { %569 = vst [vmem:[#allocation4 + $0x2f0] sm:$0xff] %v10250_v1  ;;  %570 = vst [vmem:[#allocation4 + $0x2f8] sm:$0xff] %v10250_v1 }
  0x97 PF: > { %v860_v2 = vld [vmem:[#allocation2] sm:$0xff]  ;;  %v861_v3 = vld [vmem:[#allocation2 + $0x8] sm:$0xff]  ;;  %s10251_s10 = smov 36   ;;  %v878_v28 = vld [vmem:[#allocation2 + $0xd8] sm:$0xff]  ;;  %vm827_vm2 = vcmask 293888   ;;  %s10252_s11 = smov 68  }
  0x98   : > { %v862_v4 = vld [vmem:[#allocation2 + $0x18] sm:$0xff]  ;;  %v892_v5 = vpack.c.bf16 %v861_v3, %v860_v2  ;;  %v863_v6 = vld [vmem:[#allocation2 + $0x20] sm:$0xff]  ;;  %v877_v26 = vld [vmem:[#allocation2 + $0xc8] sm:$0xff]  ;;  %s10253_s12 = smov 100   ;;  %s10254_s13 = smov 4   ;;  %vm972_vm3 = vcmask 556320  }
  0x99   : > { %v864_v7 = vld [vmem:[#allocation2 + $0x30] sm:$0xff]  ;;  %v865_v8 = vld [vmem:[#allocation2 + $0x38] sm:$0xff]  ;;  %v10765_v11 = vpack.c.bf16 %v863_v6, %v862_v4  ;;  %v876_v25 = vld [vmem:[#allocation2 + $0xc0] sm:$0xff]  ;;  %vm1101_vm4 = vcmask 818720   ;;  %vm1230_vm5 = vcmask 1048352   ;;  %vm1232_vm6 = vcmask 31744  }
  0x9a   : > { %v10762_v9 = vpack.c.bf16 %v865_v8, %v864_v7  ;;  %v866_v10 = vld [vmem:[#allocation2 + $0x48] sm:$0xff]  ;;  %924 = vrot.lane.b32.xlu0 %v892_v5, %s10251_s10  ;;  %v867_v12 = vld [vmem:[#allocation2 + $0x50] sm:$0xff]  ;;  %v879_v29 = vld [vmem:[#allocation2 + $0xe0] sm:$0xff]  ;;  %v10789_v30 = vpack.c.bf16 %v877_v26, %v876_v25  ;;  %vm1377_vm7 = vcmask 293920   ;;  %s10257_s28 = smov 64   ;;  %s10258_s8 = smov 96  }
  0x9b   : > { %v868_v13 = vld [vmem:[#allocation2 + $0x60] sm:$0xff]  ;;  %v869_v14 = vld [vmem:[#allocation2 + $0x68] sm:$0xff]  ;;  %v10769_v15 = vpack.c.bf16 %v867_v12, %v866_v10  ;;  %v880_v31 = vld [vmem:[#allocation2 + $0xf0] sm:$0xff]  ;;  %v10793_v33 = vpack.c.bf16 %v879_v29, %v878_v28  ;;  %vm8079_vm8 = vcmask 261120  }
  0x9c   : > { %928 = vrot.lane.b32.xlu1 %v10762_v9, %s10251_s10  ;;  %v870_v16 = vld [vmem:[#allocation2 + $0x78] sm:$0xff]  ;;  %v871_v17 = vld [vmem:[#allocation2 + $0x80] sm:$0xff]  ;;  %v10773_v18 = vpack.c.bf16 %v869_v14, %v868_v13  ;;  %v882_v34 = vld [vmem:[#allocation2 + $0x108] sm:$0xff] }
  0x9d   : > { %v872_v19 = vld [vmem:[#allocation2 + $0x90] sm:$0xff]  ;;  %v873_v20 = vld [vmem:[#allocation2 + $0x98] sm:$0xff]  ;;  %v10777_v21 = vpack.c.bf16 %v871_v17, %v870_v16  ;;  %v884_v37 = vld [vmem:[#allocation2 + $0x120] sm:$0xff] }
  0x9e   : > { %926 = vrot.lane.b32.xlu0 %v10765_v11, %s10251_s10  ;;  %v874_v22 = vld [vmem:[#allocation2 + $0xa8] sm:$0xff]  ;;  %v875_v23 = vld [vmem:[#allocation2 + $0xb0] sm:$0xff]  ;;  %v10781_v24 = vpack.c.bf16 %v873_v20, %v872_v19  ;;  %v881_v32 = vld [vmem:[#allocation2 + $0xf8] sm:$0xff] }
  0x9f   : > { %v10785_v27 = vpack.c.bf16 %v875_v23, %v874_v22  ;;  %v883_v35 = vld [vmem:[#allocation2 + $0x110] sm:$0xff]  ;;  %v10797_v36 = vpack.c.bf16 %v881_v32, %v880_v31  ;;  %v885_v38 = vld [vmem:[#allocation2 + $0x128] sm:$0xff]  ;;  %v886_v40 = vld [vmem:[#allocation2 + $0x138] sm:$0xff] }
  0xa0   : > { %930 = vrot.lane.b32.xlu1 %v10769_v15, %s10251_s10  ;;  %v10801_v39 = vpack.c.bf16 %v883_v35, %v882_v34  ;;  %v887_v41 = vld [vmem:[#allocation2 + $0x140] sm:$0xff]  ;;  %v10805_v42 = vpack.c.bf16 %v885_v38, %v884_v37  ;;  %v888_v43 = vld [vmem:[#allocation2 + $0x150] sm:$0xff]  ;;  %v889_v44 = vld [vmem:[#allocation2 + $0x158] sm:$0xff] }
  0xa1   : > { %v10809_v45 = vpack.c.bf16 %v887_v41, %v886_v40  ;;  %v890_v46 = vld [vmem:[#allocation2 + $0x168] sm:$0xff]  ;;  %v891_v47 = vld [vmem:[#allocation2 + $0x170] sm:$0xff]  ;;  %v10813_v48 = vpack.c.bf16 %v889_v44, %v888_v43  ;;  %v991_v52 = vld [vmem:[#allocation2 + $0x19] sm:$0xff] }
  0xa2   : > { %932 = vrot.lane.b32.xlu0 %v10773_v18, %s10251_s10  ;;  %v989_v49 = vld [vmem:[#allocation2 + $0x1] sm:$0xff]  ;;  %v990_v50 = vld [vmem:[#allocation2 + $0x9] sm:$0xff]  ;;  %v10817_v51 = vpack.c.bf16 %v891_v47, %v890_v46  ;;  %v993_v54 = vld [vmem:[#allocation2 + $0x31] sm:$0xff] }
  0xa3   : > { %v992_v53 = vld [vmem:[#allocation2 + $0x21] sm:$0xff]  ;;  %v1021_v55 = vpack.c.bf16 %v990_v50, %v989_v49  ;;  %v994_v56 = vld [vmem:[#allocation2 + $0x39] sm:$0xff]  ;;  %v995_v57 = vld [vmem:[#allocation2 + $0x49] sm:$0xff] }
  0xa4   : > { %934 = vrot.lane.b32.xlu1 %v10777_v21, %s10251_s10  ;;  %v996_v58 = vld [vmem:[#allocation2 + $0x51] sm:$0xff]  ;;  %v10823_v59 = vpack.c.bf16 %v992_v53, %v991_v52  ;;  %v9073_v60 = vld [vmem:[%s10315_s30] sm:$0xff]   ;;  %v9074_v61 = vld [vmem:[%s10315_s30 + $0x8] sm:$0xff]   ;;  %v10830_v1 = vpack.c.bf16 %v994_v56, %v993_v54 }
  0xa5   : > { %v997_v62 = vld [vmem:[#allocation2 + $0x61] sm:$0xff]  ;;  %v998_v63 = vld [vmem:[#allocation2 + $0x69] sm:$0xff]  ;;  %828 = vst.msk [vmem:[#allocation4] sm:$0xff] %vm827_vm2, %v9073_v60  ;;  %v999_v2 = vld [vmem:[#allocation2 + $0x79] sm:$0xff]  ;;  %v10836_v5 = vpack.c.bf16 %v996_v58, %v995_v57 }
  0xa6   : > { %936 = vrot.lane.b32.xlu0 %v10781_v24, %s10251_s10  ;;  %v9075_v0 = vld [vmem:[%s10315_s30 + $0x10] sm:$0xff]   ;;  %v1000_v3 = vld [vmem:[#allocation2 + $0x81] sm:$0xff]  ;;  %829 = vst.msk [vmem:[#allocation4 + $0x18] sm:$0xff] %vm827_vm2, %v9074_v61  ;;  %v9077_v6 = vld [vmem:[%s10315_s30 + $0x18] sm:$0xff]   ;;  %v10846_v13 = vpack.c.bf16 %v998_v63, %v997_v62 }
  0xa7   : > { %v9076_v4 = vld [vmem:[%s10315_s30 + $0x20] sm:$0xff]   ;;  %830 = vst.msk [vmem:[#allocation4 + $0x30] sm:$0xff] %vm827_vm2, %v9075_v0  ;;  %v9078_v7 = vld [vmem:[%s10315_s30 + $0x30] sm:$0xff]   ;;  %831 = vst.msk [vmem:[#allocation4 + $0x48] sm:$0xff] %vm827_vm2, %v9077_v6  ;;  %v10852_v16 = vpack.c.bf16 %v1000_v3, %v999_v2 }
  0xa8   : > { %938 = vrot.lane.b32.xlu1 %v10785_v27, %s10251_s10  ;;  %832 = vst.msk [vmem:[#allocation4 + $0x60] sm:$0xff] %vm827_vm2, %v9076_v4  ;;  %v1001_v8 = vld [vmem:[#allocation2 + $0x91] sm:$0xff]  ;;  %v1002_v10 = vld [vmem:[#allocation2 + $0x99] sm:$0xff]  ;;  %v9079_v12 = vld [vmem:[%s10315_s30 + $0x28] sm:$0xff]  }
  0xa9   : > { %834 = vst.msk [vmem:[#allocation4 + $0x90] sm:$0xff] %vm827_vm2, %v9078_v7  ;;  %v9080_v14 = vld [vmem:[%s10315_s30 + $0x40] sm:$0xff]   ;;  %v1003_v17 = vld [vmem:[#allocation2 + $0xa9] sm:$0xff]  ;;  %v1004_v19 = vld [vmem:[#allocation2 + $0xb1] sm:$0xff]  ;;  %v10860_v26 = vpack.c.bf16 %v1002_v10, %v1001_v8 }
  0xaa   : > { %940 = vrot.lane.b32.xlu0 %v10789_v30, %s10251_s10  ;;  %833 = vst.msk [vmem:[#allocation4 + $0x78] sm:$0xff] %vm827_vm2, %v9079_v12  ;;  %836 = vst.msk [vmem:[#allocation4 + $0xc0] sm:$0xff] %vm827_vm2, %v9080_v14  ;;  %v9081_v20 = vld [vmem:[%s10315_s30 + $0x38] sm:$0xff]   ;;  %v1005_v22 = vld [vmem:[#allocation2 + $0xc1] sm:$0xff]  ;;  %v10866_v32 = vpack.c.bf16 %v1004_v19, %v1003_v17 }
  0xab   : > { %v1006_v23 = vld [vmem:[#allocation2 + $0xc9] sm:$0xff]  ;;  %v1007_v28 = vld [vmem:[#allocation2 + $0xd9] sm:$0xff]  ;;  %v1008_v29 = vld [vmem:[#allocation2 + $0xe1] sm:$0xff]  ;;  %835 = vst.msk [vmem:[#allocation4 + $0xa8] sm:$0xff] %vm827_vm2, %v9081_v20 }
  0xac   : > { %942 = vrot.lane.b32.xlu1 %v10793_v33, %s10251_s10  ;;  %v9082_v25 = vld [vmem:[%s10315_s30 + $0x50] sm:$0xff]   ;;  %v9083_v31 = vld [vmem:[%s10315_s30 + $0x48] sm:$0xff]   ;;  %v9084_v34 = vld [vmem:[%s10315_s30 + $0x60] sm:$0xff]   ;;  %v10876_v41 = vpack.c.bf16 %v1006_v23, %v1005_v22  ;;  %v10882_v44 = vpack.c.bf16 %v1008_v29, %v1007_v28 }
  0xad   : > { %838 = vst.msk [vmem:[#allocation4 + $0xf0] sm:$0xff] %vm827_vm2, %v9082_v25  ;;  %837 = vst.msk [vmem:[#allocation4 + $0xd8] sm:$0xff] %vm827_vm2, %v9083_v31  ;;  %v9085_v35 = vld [vmem:[%s10315_s30 + $0x58] sm:$0xff]   ;;  %v9086_v40 = vld [vmem:[%s10315_s30 + $0x70] sm:$0xff]  }
  0xae   : > { %944 = vrot.lane.b32.xlu0 %v10797_v36, %s10251_s10  ;;  %v1009_v37 = vld [vmem:[#allocation2 + $0xf1] sm:$0xff]  ;;  %v1010_v38 = vld [vmem:[#allocation2 + $0xf9] sm:$0xff]  ;;  %840 = vst.msk [vmem:[#allocation4 + $0x120] sm:$0xff] %vm827_vm2, %v9084_v34  ;;  %839 = vst.msk [vmem:[#allocation4 + $0x108] sm:$0xff] %vm827_vm2, %v9085_v35 }
  0xaf   : > { %v9087_v43 = vld [vmem:[%s10315_s30 + $0x68] sm:$0xff]   ;;  %842 = vst.msk [vmem:[#allocation4 + $0x150] sm:$0xff] %vm827_vm2, %v9086_v40  ;;  %v9088_v47 = vld [vmem:[%s10315_s30 + $0x78] sm:$0xff]   ;;  %v10890_v53 = vpack.c.bf16 %v1010_v38, %v1009_v37 }
  0xb0   : > { %946 = vrot.lane.b32.xlu1 %v10801_v39, %s10251_s10  ;;  %v1011_v46 = vld [vmem:[#allocation2 + $0x109] sm:$0xff]  ;;  %v1012_v49 = vld [vmem:[#allocation2 + $0x111] sm:$0xff]  ;;  %841 = vst.msk [vmem:[#allocation4 + $0x138] sm:$0xff] %vm827_vm2, %v9087_v43  ;;  %v1013_v50 = vld [vmem:[#allocation2 + $0x121] sm:$0xff] }
  0xb1   : > { %v1014_v52 = vld [vmem:[#allocation2 + $0x129] sm:$0xff]  ;;  %843 = vst.msk [vmem:[#allocation4 + $0x168] sm:$0xff] %vm827_vm2, %v9088_v47  ;;  %v1015_v54 = vld [vmem:[#allocation2 + $0x139] sm:$0xff]  ;;  %v10894_v56 = vpack.c.bf16 %v1012_v49, %v1011_v46  ;;  %v1017_v57 = vld [vmem:[#allocation2 + $0x151] sm:$0xff] }
  0xb2   : > { %948 = vrot.lane.b32.xlu0 %v10805_v42, %s10251_s10  ;;  %v1018_v58 = vld [vmem:[#allocation2 + $0x159] sm:$0xff]  ;;  %v10898_v60 = vpack.c.bf16 %v1014_v52, %v1013_v50  ;;  %v1019_v61 = vld [vmem:[#allocation2 + $0x169] sm:$0xff]  ;;  %v1020_v62 = vld [vmem:[#allocation2 + $0x171] sm:$0xff] }
  0xb3   : > { %v1118_v0 = vld [vmem:[#allocation2 + $0x2] sm:$0xff]  ;;  %v1119_v2 = vld [vmem:[#allocation2 + $0xa] sm:$0xff]  ;;  %v10906_v3 = vpack.c.bf16 %v1018_v58, %v1017_v57  ;;  %v1120_v4 = vld [vmem:[#allocation2 + $0x1a] sm:$0xff]  ;;  %v10910_v7 = vpack.c.bf16 %v1020_v62, %v1019_v61 }
  0xb4   : > { %950 = vrot.lane.b32.xlu1 %v10809_v45, %s10251_s10  ;;  %v1121_v6 = vld [vmem:[#allocation2 + $0x22] sm:$0xff]  ;;  %v1122_v8 = vld [vmem:[#allocation2 + $0x32] sm:$0xff]  ;;  %v1123_v10 = vld [vmem:[#allocation2 + $0x3a] sm:$0xff]  ;;  %v1150_v12 = vpack.c.bf16 %v1119_v2, %v1118_v0 }
  0xb5   : > { %v10916_v14 = vpack.c.bf16 %v1121_v6, %v1120_v4  ;;  %v1124_v17 = vld [vmem:[#allocation2 + $0x4a] sm:$0xff]  ;;  %v1125_v19 = vld [vmem:[#allocation2 + $0x52] sm:$0xff]  ;;  %v10919_v20 = vpack.c.bf16 %v1123_v10, %v1122_v8  ;;  %v1126_v22 = vld [vmem:[#allocation2 + $0x62] sm:$0xff] }
  0xb6   : > { %952 = vrot.lane.b32.xlu0 %v10813_v48, %s10251_s10  ;;  %v1127_v23 = vld [vmem:[#allocation2 + $0x6a] sm:$0xff]  ;;  %v10923_v25 = vpack.c.bf16 %v1125_v19, %v1124_v17  ;;  %v1128_v28 = vld [vmem:[#allocation2 + $0x7a] sm:$0xff]  ;;  %v1129_v29 = vld [vmem:[#allocation2 + $0x82] sm:$0xff] }
  0xb7   : > { %v10927_v31 = vpack.c.bf16 %v1127_v23, %v1126_v22  ;;  %v1130_v34 = vld [vmem:[#allocation2 + $0x92] sm:$0xff]  ;;  %v1131_v35 = vld [vmem:[#allocation2 + $0x9a] sm:$0xff]  ;;  %v10931_v37 = vpack.c.bf16 %v1129_v29, %v1128_v28  ;;  %v1132_v38 = vld [vmem:[#allocation2 + $0xaa] sm:$0xff] }
  0xb8   : > { %954 = vrot.lane.b32.xlu1 %v10817_v51, %s10251_s10  ;;  %v1133_v40 = vld [vmem:[#allocation2 + $0xb2] sm:$0xff]  ;;  %v10935_v43 = vpack.c.bf16 %v1131_v35, %v1130_v34  ;;  %v1134_v46 = vld [vmem:[#allocation2 + $0xc2] sm:$0xff]  ;;  %v1135_v47 = vld [vmem:[#allocation2 + $0xca] sm:$0xff] }
  0xb9   : > { %v10939_v49 = vpack.c.bf16 %v1133_v40, %v1132_v38  ;;  %v1136_v50 = vld [vmem:[#allocation2 + $0xda] sm:$0xff]  ;;  %v1137_v52 = vld [vmem:[#allocation2 + $0xe2] sm:$0xff]  ;;  %v1140_v61 = vld [vmem:[#allocation2 + $0x10a] sm:$0xff] }
  0xba   : > { %1053 = vrot.lane.b32.xlu0 %v1021_v55, %s10252_s11  ;;  %v1016_v55 = vld [vmem:[#allocation2 + $0x141] sm:$0xff]  ;;  %v10947_v58 = vpack.c.bf16 %v1137_v52, %v1136_v50  ;;  %v1141_v62 = vld [vmem:[#allocation2 + $0x112] sm:$0xff]  ;;  %v1143_v4 = vld [vmem:[#allocation2 + $0x12a] sm:$0xff] }
  0xbb   : > { %v10902_v63 = vpack.c.bf16 %v1016_v55, %v1015_v54  ;;  %v10943_v54 = vpack.c.bf16 %v1135_v47, %v1134_v46  ;;  %v1138_v55 = vld [vmem:[#allocation2 + $0xf2] sm:$0xff]  ;;  %v1139_v57 = vld [vmem:[#allocation2 + $0xfa] sm:$0xff]  ;;  %v1142_v2 = vld [vmem:[#allocation2 + $0x122] sm:$0xff]  ;;  %v10955_v6 = vpack.c.bf16 %v1141_v62, %v1140_v61 }
  0xbc   : > { %1055 = vrot.lane.b32.xlu1 %v10823_v59, %s10252_s11  ;;  %v10951_v0 = vpack.c.bf16 %v1139_v57, %v1138_v55  ;;  %v1144_v8 = vld [vmem:[#allocation2 + $0x13a] sm:$0xff]  ;;  %v1145_v10 = vld [vmem:[#allocation2 + $0x142] sm:$0xff]  ;;  %v1146_v17 = vld [vmem:[#allocation2 + $0x152] sm:$0xff] }
  0xbd   : > { %v1147_v19 = vld [vmem:[#allocation2 + $0x15a] sm:$0xff]  ;;  %v10963_v22 = vpack.c.bf16 %v1145_v10, %v1144_v8  ;;  %v1148_v23 = vld [vmem:[#allocation2 + $0x16a] sm:$0xff]  ;;  %v1149_v28 = vld [vmem:[#allocation2 + $0x172] sm:$0xff] }
  0xbe   : > { %1057 = vrot.lane.b32.xlu0 %v10830_v1, %s10252_s11  ;;  %v10967_v29 = vpack.c.bf16 %v1147_v19, %v1146_v17  ;;  %v10971_v34 = vpack.c.bf16 %v1149_v28, %v1148_v23  ;;  %v9091_v38 = vld [vmem:[%s15324_s1 + $0x10] sm:$0xff]   ;;  %v9092_v40 = vld [vmem:[%s15324_s1 + $0x18] sm:$0xff]   ;;  %v9093_v46 = vld [vmem:[%s15324_s1 + $0x20] sm:$0xff]  }
  0xbf   : > { %v9094_v47 = vld [vmem:[%s15324_s1 + $0x28] sm:$0xff]   ;;  %v9095_v50 = vld [vmem:[%s15324_s1 + $0x30] sm:$0xff]   ;;  %v9100_v10 = vld [vmem:[%s15324_s1 + $0x58] sm:$0xff]  }
  0xc0   : > { %1059 = vrot.lane.b32.xlu1 %v10836_v5, %s10252_s11  ;;  %v1425_v52 = vld [vmem:[#allocation2 + $0x189] sm:$0xff]  ;;  %v9101_v17 = vld [vmem:[%s15324_s1 + $0x60] sm:$0xff]  }
  0xc1   : > { %v9099_v8 = vld [vmem:[%s15324_s1 + $0x50] sm:$0xff]   ;;  %v9102_v19 = vld [vmem:[%s15324_s1 + $0x68] sm:$0xff]  }
  0xc2   : > { %1061 = vrot.lane.b32.xlu0 %v10846_v13, %s10252_s11  ;;  %v1552_v23 = vld [vmem:[#allocation2 + $0x182] sm:$0xff]  ;;  %v1553_v28 = vld [vmem:[#allocation2 + $0x18a] sm:$0xff] }
  0xc4   : > { %1063 = vrot.lane.b32.xlu1 %v10852_v16, %s10252_s11 }
  0xc6   : > { %1065 = vrot.lane.b32.xlu0 %v10860_v26, %s10252_s11 }
  0xc8   : > { %1067 = vrot.lane.b32.xlu1 %v10866_v32, %s10252_s11 }
  0xca   : > { %1069 = vrot.lane.b32.xlu0 %v10876_v41, %s10252_s11 }
  0xcc   : > { %1071 = vrot.lane.b32.xlu1 %v10882_v44, %s10252_s11 }
  0xce   : > { %1073 = vrot.lane.b32.xlu0 %v10890_v53, %s10252_s11 }
  0xd0   : > { %1075 = vrot.lane.b32.xlu1 %v10894_v56, %s10252_s11 }
  0xd2   : > { %1077 = vrot.lane.b32.xlu0 %v10898_v60, %s10252_s11 }
  0xd4   : > { %1079 = vrot.lane.b32.xlu1 %v10902_v63, %s10252_s11 }
  0xd6   : > { %1081 = vrot.lane.b32.xlu0 %v10906_v3, %s10252_s11 }
  0xd8   : > { %1083 = vrot.lane.b32.xlu1 %v10910_v7, %s10252_s11 }
  0xda   : > { %1182 = vrot.lane.b32.xlu0 %v1150_v12, %s10253_s12  ;;  %v10959_v12 = vpack.c.bf16 %v1143_v4, %v1142_v2  ;;  %v9098_v2 = vld [vmem:[%s15324_s1 + $0x48] sm:$0xff]  }
  0xdc   : > { %1184 = vrot.lane.b32.xlu1 %v10916_v14, %s10253_s12 }
  0xde   : > { %1186 = vrot.lane.b32.xlu0 %v10919_v20, %s10253_s12 }
  0xe0   : > { %1188 = vrot.lane.b32.xlu1 %v10923_v25, %s10253_s12 }
  0xe2   : > { %1190 = vrot.lane.b32.xlu0 %v10927_v31, %s10253_s12 }
  0xe4   : > { %1192 = vrot.lane.b32.xlu1 %v10931_v37, %s10253_s12 }
  0xe6   : > { %1194 = vrot.lane.b32.xlu0 %v10935_v43, %s10253_s12 }
  0xe8   : > { %1196 = vrot.lane.b32.xlu1 %v10939_v49, %s10253_s12 }
  0xea   : > { %1198 = vrot.lane.b32.xlu0 %v10943_v54, %s10253_s12 }
  0xec   : > { %1200 = vrot.lane.b32.xlu1 %v10947_v58, %s10253_s12 }
  0xee   : > { %1202 = vrot.lane.b32.xlu0 %v10951_v0, %s10253_s12 }
  0xf0   : > { %1204 = vrot.lane.b32.xlu1 %v10955_v6, %s10253_s12 }
  0xf2   : > { %1206 = vrot.lane.b32.xlu0 %v10959_v12, %s10253_s12 }
  0xf4   : > { %1208 = vrot.lane.b32.xlu1 %v10963_v22, %s10253_s12 }
  0xf6   : > { %1210 = vrot.lane.b32.xlu0 %v10967_v29, %s10253_s12 }
  0xf8   : > { %1212 = vrot.lane.b32.xlu1 %v10971_v34, %s10253_s12 }
  0xfa   : > { %1329 = vrot.lane.b32.xlu0 %v10765_v11, %s10254_s13 }
  0xfc   : > { %1331 = vrot.lane.b32.xlu1 %v10762_v9, %s10254_s13 }
  0xfe   : > { %1333 = vrot.lane.b32.xlu0 %v10769_v15, %s10254_s13 }
 0x100   : > { %1335 = vrot.lane.b32.xlu1 %v10773_v18, %s10254_s13  ;;  %v1295_v18 = vld [vmem:[#allocation2 + $0x180] sm:$0xff] }
 0x102   : > { %1337 = vrot.lane.b32.xlu0 %v10777_v21, %s10254_s13  ;;  %v1296_v21 = vld [vmem:[#allocation2 + $0x188] sm:$0xff] }
 0x104   : > { %1339 = vrot.lane.b32.xlu1 %v10781_v24, %s10254_s13 }
 0x106   : > { %1341 = vrot.lane.b32.xlu0 %v10785_v27, %s10254_s13  ;;  %v11009_v27 = vpack.c.bf16 %v1296_v21, %v1295_v18  ;;  %v1653_v21 = vld [vmem:[#allocation2 + $0x48] sm:$0xff] }
 0x108   : > { %1343 = vrot.lane.b32.xlu1 %v10789_v30, %s10254_s13 }
 0x10a   : > { %1345 = vrot.lane.b32.xlu0 %v10793_v33, %s10254_s13 }
 0x10c   : > { %1347 = vrot.lane.b32.xlu1 %v10797_v36, %s10254_s13  ;;  %v925_v9 = vpop.permute.xlu0 %924  ;;  %v9089_v36 = vld [vmem:[%s15324_s1] sm:$0xff]  }
 0x10d   : > { %973 = vst.msk [vmem:[#allocation4] sm:$0xff] %vm972_vm3, %v925_v9  ;;  %v9104_v9 = vld [vmem:[%s15324_s1 + $0x78] sm:$0xff]  }
 0x10e   : > { %v929_v11 = vpop.permute.xlu1 %928  ;;  %1349 = vrot.lane.b32.xlu0 %v10801_v39, %s10254_s13  ;;  %v10255_v39 = vmov 0  }
 0x10f   : > { %975 = vst.msk [vmem:[#allocation4 + $0x30] sm:$0xff] %vm972_vm3, %v929_v11  ;;  %3533 = vmatprep.subr.bf16.mxu0 %v10255_v39  ;;  %9007 = vmatprep.subr.bf16.mxu1 %v10255_v39  ;;  %v1652_v11 = vld [vmem:[#allocation2 + $0x38] sm:$0xff] }
 0x110   : > { %1351 = vrot.lane.b32.xlu1 %v10805_v42, %s10254_s13  ;;  %v927_v15 = vpop.permute.xlu0 %926  ;;  %3534 = vmatpush1.bf16.msra.mxu0 %v9089_v36 }
 0x111   : > { %974 = vst.msk [vmem:[#allocation4 + $0x18] sm:$0xff] %vm972_vm3, %v927_v15  ;;  %3535 = vmatprep.subr.bf16.mxu0 %v10255_v39  ;;  %9023 = vmatpush1.bf16.msra.mxu1 %v9089_v36  ;;  %v11193_v15 = vpack.c.bf16 %v1553_v28, %v1552_v23  ;;  %v1681_v23 = vld [vmem:[#allocation2 + $0x198] sm:$0xff]  ;;  %v1682_v28 = vld [vmem:[#allocation2 + $0x1a0] sm:$0xff] }
 0x112   : > { %v931_v24 = vpop.permute.xlu1 %930  ;;  %1353 = vrot.lane.b32.xlu0 %v10809_v45, %s10254_s13  ;;  %9008 = vmatprep.subr.bf16.mxu1 %v10255_v39 }
 0x113   : > { %976 = vst.msk [vmem:[#allocation4 + $0x48] sm:$0xff] %vm972_vm3, %v931_v24  ;;  %v1654_v24 = vld [vmem:[#allocation2 + $0x50] sm:$0xff] }
 0x114   : > { %1355 = vrot.lane.b32.xlu1 %v10813_v48, %s10254_s13  ;;  %v933_v30 = vpop.permute.xlu0 %932  ;;  %v9090_v48 = vld [vmem:[%s15324_s1 + $0x8] sm:$0xff]   ;;  %v1684_v36 = vpack.c.bf16 %v1654_v24, %v1653_v21  ;;  %v1798_v24 = vld [vmem:[#allocation2 + $0x51] sm:$0xff] }
 0x115   : > { %977 = vst.msk [vmem:[#allocation4 + $0x60] sm:$0xff] %vm972_vm3, %v933_v30  ;;  %3536 = vmatpush1.bf16.msra.mxu0 %v9090_v48  ;;  %9024 = vmatpush1.bf16.msra.mxu1 %v9090_v48  ;;  %v1797_v21 = vld [vmem:[#allocation2 + $0x49] sm:$0xff] }
 0x116   : > { %v935_v33 = vpop.permute.xlu1 %934  ;;  %1357 = vrot.lane.b32.xlu0 %v10817_v51, %s10254_s13  ;;  %3537 = vmatprep.subr.bf16.mxu0 %v10255_v39 }
 0x117   : > { %978 = vst.msk [vmem:[#allocation4 + $0x78] sm:$0xff] %vm972_vm3, %v935_v33  ;;  %9009 = vmatprep.subr.bf16.mxu1 %v10255_v39  ;;  %v1656_v33 = vld [vmem:[#allocation2 + $0x68] sm:$0xff] }
 0x118   : > { %1359 = vrot.lane.b32.xlu1 %v11009_v27, %s10254_s13  ;;  %v937_v42 = vpop.permute.xlu0 %936 }
 0x119   : > { %979 = vst.msk [vmem:[#allocation4 + $0x90] sm:$0xff] %vm972_vm3, %v937_v42  ;;  %3538 = vmatpush1.bf16.msra.mxu0 %v9091_v38  ;;  %9025 = vmatpush1.bf16.msra.mxu1 %v9091_v38  ;;  %v1657_v42 = vld [vmem:[#allocation2 + $0x78] sm:$0xff] }
 0x11a   : > { %v939_v45 = vpop.permute.xlu1 %938  ;;  %1458 = vrot.lane.b32.xlu0 %v10823_v59, %s10251_s10  ;;  %3539 = vmatprep.subr.bf16.mxu0 %v10255_v39 }
 0x11b   : > { %980 = vst.msk [vmem:[#allocation4 + $0xa8] sm:$0xff] %vm972_vm3, %v939_v45  ;;  %9010 = vmatprep.subr.bf16.mxu1 %v10255_v39  ;;  %v1658_v45 = vld [vmem:[#allocation2 + $0x80] sm:$0xff] }
 0x11c   : > { %1460 = vrot.lane.b32.xlu1 %v10830_v1, %s10251_s10  ;;  %v941_v51 = vpop.permute.xlu0 %940  ;;  %v1686_v38 = vpack.c.bf16 %v1658_v45, %v1657_v42  ;;  %v1801_v42 = vld [vmem:[#allocation2 + $0x79] sm:$0xff]  ;;  %v1802_v45 = vld [vmem:[#allocation2 + $0x81] sm:$0xff] }
 0x11d   : > { %981 = vst.msk [vmem:[#allocation4 + $0xc0] sm:$0xff] %vm972_vm3, %v941_v51  ;;  %3540 = vmatpush1.bf16.msra.mxu0 %v9092_v40  ;;  %9026 = vmatpush1.bf16.msra.mxu1 %v9092_v40  ;;  %v1659_v51 = vld [vmem:[#allocation2 + $0x90] sm:$0xff] }
 0x11e   : > { %v943_v35 = vpop.permute.xlu1 %942  ;;  %1462 = vrot.lane.b32.xlu0 %v10836_v5, %s10251_s10  ;;  %3541 = vmatprep.subr.bf16.mxu0 %v10255_v39  ;;  %v1662_v40 = vld [vmem:[#allocation2 + $0xb0] sm:$0xff] }
 0x11f   : > { %982 = vst.msk [vmem:[#allocation4 + $0xd8] sm:$0xff] %vm972_vm3, %v943_v35  ;;  %9011 = vmatprep.subr.bf16.mxu1 %v10255_v39  ;;  %v1660_v35 = vld [vmem:[#allocation2 + $0x98] sm:$0xff] }
 0x120   : > { %1464 = vrot.lane.b32.xlu1 %v10846_v13, %s10251_s10  ;;  %v945_v59 = vpop.permute.xlu0 %944 }
 0x121   : > { %983 = vst.msk [vmem:[#allocation4 + $0xf0] sm:$0xff] %vm972_vm3, %v945_v59  ;;  %3542 = vmatpush1.bf16.msra.mxu0 %v9093_v46  ;;  %9027 = vmatpush1.bf16.msra.mxu1 %v9093_v46  ;;  %v1663_v46 = vld [vmem:[#allocation2 + $0xc0] sm:$0xff] }
 0x122   : > { %v947_v1 = vpop.permute.xlu1 %946  ;;  %1466 = vrot.lane.b32.xlu0 %v10852_v16, %s10251_s10  ;;  %3543 = vmatprep.subr.bf16.mxu0 %v10255_v39 }
 0x123   : > { %984 = vst.msk [vmem:[#allocation4 + $0x108] sm:$0xff] %vm972_vm3, %v947_v1  ;;  %9012 = vmatprep.subr.bf16.mxu1 %v10255_v39  ;;  %v1661_v1 = vld [vmem:[#allocation2 + $0xa8] sm:$0xff] }
 0x124   : > { %1468 = vrot.lane.b32.xlu1 %v10860_v26, %s10251_s10  ;;  %v949_v5 = vpop.permute.xlu0 %948 }
 0x125   : > { %985 = vst.msk [vmem:[#allocation4 + $0x120] sm:$0xff] %vm972_vm3, %v949_v5  ;;  %3544 = vmatpush1.bf16.msra.mxu0 %v9094_v47  ;;  %9028 = vmatpush1.bf16.msra.mxu1 %v9094_v47 }
 0x126   : > { %v951_v13 = vpop.permute.xlu1 %950  ;;  %1470 = vrot.lane.b32.xlu0 %v10866_v32, %s10251_s10  ;;  %3545 = vmatprep.subr.bf16.mxu0 %v10255_v39 }
 0x127   : > { %986 = vst.msk [vmem:[#allocation4 + $0x138] sm:$0xff] %vm972_vm3, %v951_v13  ;;  %9013 = vmatprep.subr.bf16.mxu1 %v10255_v39  ;;  %v1687_v13 = vpack.c.bf16 %v1660_v35, %v1659_v51  ;;  %v1804_v51 = vld [vmem:[#allocation2 + $0x99] sm:$0xff]  ;;  %v1830_v35 = vpack.c.bf16 %v1802_v45, %v1801_v42  ;;  %v1930_v42 = vld [vmem:[#allocation2 + $0x82] sm:$0xff] }
 0x128   : > { %1472 = vrot.lane.b32.xlu1 %v10876_v41, %s10251_s10  ;;  %v953_v16 = vpop.permute.xlu0 %952 }
 0x129   : > { %987 = vst.msk [vmem:[#allocation4 + $0x150] sm:$0xff] %vm972_vm3, %v953_v16  ;;  %3546 = vmatpush1.bf16.msra.mxu0 %v9095_v50  ;;  %9029 = vmatpush1.bf16.msra.mxu1 %v9095_v50  ;;  %v1664_v16 = vld [vmem:[#allocation2 + $0xc8] sm:$0xff] }
 0x12a   : > { %v955_v26 = vpop.permute.xlu1 %954  ;;  %1474 = vrot.lane.b32.xlu0 %v10882_v44, %s10251_s10  ;;  %3547 = vmatprep.subr.bf16.mxu0 %v10255_v39 }
 0x12b   : > { %988 = vst.msk [vmem:[#allocation4 + $0x168] sm:$0xff] %vm972_vm3, %v955_v26  ;;  %9014 = vmatprep.subr.bf16.mxu1 %v10255_v39  ;;  %v1688_v26 = vpack.c.bf16 %v1662_v40, %v1661_v1  ;;  %v1806_v1 = vld [vmem:[#allocation2 + $0xb1] sm:$0xff] }
 0x12c   : > { %1476 = vrot.lane.b32.xlu1 %v10890_v53, %s10251_s10  ;;  %v1054_v32 = vpop.permute.xlu0 %1053  ;;  %v1424_v53 = vld [vmem:[#allocation2 + $0x181] sm:$0xff] }
 0x12d   : > { %1102 = vst.msk [vmem:[#allocation4] sm:$0xff] %vm1101_vm4, %v1054_v32  ;;  %v1665_v32 = vld [vmem:[#allocation2 + $0xd8] sm:$0xff] }
 0x12e   : > { %v1056_v41 = vpop.permute.xlu1 %1055  ;;  %1478 = vrot.lane.b32.xlu0 %v10894_v56, %s10251_s10  ;;  %v9096_v56 = vld [vmem:[%s15324_s1 + $0x38] sm:$0xff]  }
 0x12f   : > { %1103 = vst.msk [vmem:[#allocation4 + $0x18] sm:$0xff] %vm1101_vm4, %v1056_v41  ;;  %3548 = vmatpush1.bf16.msra.mxu0 %v9096_v56  ;;  %9030 = vmatpush1.bf16.msra.mxu1 %v9096_v56  ;;  %v1666_v41 = vld [vmem:[#allocation2 + $0xe0] sm:$0xff] }
 0x130   : > { %1480 = vrot.lane.b32.xlu1 %v10898_v60, %s10251_s10  ;;  %v1058_v44 = vpop.permute.xlu0 %1057  ;;  %v11099_v60 = vpack.c.bf16 %v1425_v52, %v1424_v53  ;;  %3549 = vmatprep.subr.bf16.mxu0 %v10255_v39  ;;  %v1667_v53 = vld [vmem:[#allocation2 + $0xf0] sm:$0xff]  ;;  %v1668_v52 = vld [vmem:[#allocation2 + $0xf8] sm:$0xff] }
 0x131   : > { %1104 = vst.msk [vmem:[#allocation4 + $0x30] sm:$0xff] %vm1101_vm4, %v1058_v44  ;;  %9015 = vmatprep.subr.bf16.mxu1 %v10255_v39  ;;  %v1689_v44 = vpack.c.bf16 %v1664_v16, %v1663_v46  ;;  %v1808_v46 = vld [vmem:[#allocation2 + $0xc9] sm:$0xff] }
 0x132   : > { %v1060_v55 = vpop.permute.xlu1 %1059  ;;  %1482 = vrot.lane.b32.xlu0 %v10902_v63, %s10251_s10  ;;  %v9097_v63 = vld [vmem:[%s15324_s1 + $0x40] sm:$0xff]  }
 0x133   : > { %1105 = vst.msk [vmem:[#allocation4 + $0x48] sm:$0xff] %vm1101_vm4, %v1060_v55  ;;  %3550 = vmatpush1.bf16.msra.mxu0 %v9097_v63  ;;  %9031 = vmatpush1.bf16.msra.mxu1 %v9097_v63  ;;  %v1690_v55 = vpack.c.bf16 %v1666_v41, %v1665_v32  ;;  %v1810_v32 = vld [vmem:[#allocation2 + $0xe1] sm:$0xff] }
 0x134   : > { %1484 = vrot.lane.b32.xlu1 %v10906_v3, %s10251_s10  ;;  %v1062_v57 = vpop.permute.xlu0 %1061  ;;  %3551 = vmatprep.subr.bf16.mxu0 %v10255_v39 }
 0x135   : > { %1106 = vst.msk [vmem:[#allocation4 + $0x60] sm:$0xff] %vm1101_vm4, %v1062_v57  ;;  %9016 = vmatprep.subr.bf16.mxu1 %v10255_v39  ;;  %v1669_v57 = vld [vmem:[#allocation2 + $0x108] sm:$0xff] }
 0x136   : > { %v1064_v61 = vpop.permute.xlu1 %1063  ;;  %1486 = vrot.lane.b32.xlu0 %v10910_v7, %s10251_s10 }
 0x137   : > { %1107 = vst.msk [vmem:[#allocation4 + $0x78] sm:$0xff] %vm1101_vm4, %v1064_v61  ;;  %3552 = vmatpush1.bf16.msra.mxu0 %v9098_v2  ;;  %9032 = vmatpush1.bf16.msra.mxu1 %v9098_v2  ;;  %v1670_v61 = vld [vmem:[#allocation2 + $0x110] sm:$0xff]  ;;  %v1672_v2 = vld [vmem:[#allocation2 + $0x128] sm:$0xff] }
 0x138   : > { %1488 = vrot.lane.b32.xlu1 %v11099_v60, %s10251_s10  ;;  %v1066_v3 = vpop.permute.xlu0 %1065  ;;  %3553 = vmatprep.subr.bf16.mxu0 %v10255_v39 }
 0x139   : > { %1108 = vst.msk [vmem:[#allocation4 + $0x90] sm:$0xff] %vm1101_vm4, %v1066_v3  ;;  %9017 = vmatprep.subr.bf16.mxu1 %v10255_v39  ;;  %v1691_v3 = vpack.c.bf16 %v1668_v52, %v1667_v53  ;;  %v1812_v53 = vld [vmem:[#allocation2 + $0xf9] sm:$0xff] }
 0x13a   : > { %v1068_v62 = vpop.permute.xlu1 %1067  ;;  %1586 = vrot.lane.b32.xlu0 %v10916_v14, %s10252_s11 }
 0x13b   : > { %1109 = vst.msk [vmem:[#allocation4 + $0xa8] sm:$0xff] %vm1101_vm4, %v1068_v62  ;;  %3554 = vmatpush1.bf16.msra.mxu0 %v9099_v8  ;;  %9033 = vmatpush1.bf16.msra.mxu1 %v9099_v8  ;;  %v1671_v62 = vld [vmem:[#allocation2 + $0x120] sm:$0xff]  ;;  %v1673_v8 = vld [vmem:[#allocation2 + $0x138] sm:$0xff] }
 0x13c   : > { %1588 = vrot.lane.b32.xlu1 %v10919_v20, %s10252_s11  ;;  %v1070_v7 = vpop.permute.xlu0 %1069  ;;  %3555 = vmatprep.subr.bf16.mxu0 %v10255_v39 }
 0x13d   : > { %1110 = vst.msk [vmem:[#allocation4 + $0xc0] sm:$0xff] %vm1101_vm4, %v1070_v7  ;;  %9018 = vmatprep.subr.bf16.mxu1 %v10255_v39  ;;  %v1692_v7 = vpack.c.bf16 %v1670_v61, %v1669_v57  ;;  %v1814_v57 = vld [vmem:[#allocation2 + $0x111] sm:$0xff] }
 0x13e   : > { %v1072_v4 = vpop.permute.xlu1 %1071  ;;  %1590 = vrot.lane.b32.xlu0 %v10923_v25, %s10252_s11 }
 0x13f   : > { %1111 = vst.msk [vmem:[#allocation4 + $0xd8] sm:$0xff] %vm1101_vm4, %v1072_v4  ;;  %3556 = vmatpush1.bf16.msra.mxu0 %v9100_v10  ;;  %9034 = vmatpush1.bf16.msra.mxu1 %v9100_v10  ;;  %v1693_v10 = vpack.c.bf16 %v1672_v2, %v1671_v62  ;;  %v1816_v62 = vld [vmem:[#allocation2 + $0x129] sm:$0xff] }
 0x140   : > { %1592 = vrot.lane.b32.xlu1 %v10927_v31, %s10252_s11  ;;  %v1074_v14 = vpop.permute.xlu0 %1073  ;;  %3557 = vmatprep.subr.bf16.mxu0 %v10255_v39 }
 0x141   : > { %1112 = vst.msk [vmem:[#allocation4 + $0xf0] sm:$0xff] %vm1101_vm4, %v1074_v14  ;;  %9019 = vmatprep.subr.bf16.mxu1 %v10255_v39  ;;  %v1674_v14 = vld [vmem:[#allocation2 + $0x140] sm:$0xff] }
 0x142   : > { %v1076_v20 = vpop.permute.xlu1 %1075  ;;  %1594 = vrot.lane.b32.xlu0 %v10931_v37, %s10252_s11 }
 0x143   : > { %1113 = vst.msk [vmem:[#allocation4 + $0x108] sm:$0xff] %vm1101_vm4, %v1076_v20  ;;  %3558 = vmatpush1.bf16.msra.mxu0 %v9101_v17  ;;  %9035 = vmatpush1.bf16.msra.mxu1 %v9101_v17  ;;  %v1694_v17 = vpack.c.bf16 %v1674_v14, %v1673_v8  ;;  %v1818_v8 = vld [vmem:[#allocation2 + $0x141] sm:$0xff] }
 0x144   : > { %1596 = vrot.lane.b32.xlu1 %v10935_v43, %s10252_s11  ;;  %v1078_v25 = vpop.permute.xlu0 %1077  ;;  %3559 = vmatprep.subr.bf16.mxu0 %v10255_v39 }
 0x145   : > { %1114 = vst.msk [vmem:[#allocation4 + $0x120] sm:$0xff] %vm1101_vm4, %v1078_v25  ;;  %9020 = vmatprep.subr.bf16.mxu1 %v10255_v39  ;;  %v1675_v25 = vld [vmem:[#allocation2 + $0x150] sm:$0xff] }
 0x146   : > { %v1080_v31 = vpop.permute.xlu1 %1079  ;;  %1598 = vrot.lane.b32.xlu0 %v10939_v49, %s10252_s11 }
 0x147   : > { %1115 = vst.msk [vmem:[#allocation4 + $0x138] sm:$0xff] %vm1101_vm4, %v1080_v31  ;;  %3560 = vmatpush1.bf16.msra.mxu0 %v9102_v19  ;;  %9036 = vmatpush1.bf16.msra.mxu1 %v9102_v19  ;;  %v1676_v31 = vld [vmem:[#allocation2 + $0x158] sm:$0xff]  ;;  %v1678_v19 = vld [vmem:[#allocation2 + $0x170] sm:$0xff] }
 0x148   : > { %1600 = vrot.lane.b32.xlu1 %v10943_v54, %s10252_s11  ;;  %v1082_v37 = vpop.permute.xlu0 %1081  ;;  %3561 = vmatprep.subr.bf16.mxu0 %v10255_v39 }
 0x149   : > { %1116 = vst.msk [vmem:[#allocation4 + $0x150] sm:$0xff] %vm1101_vm4, %v1082_v37  ;;  %9021 = vmatprep.subr.bf16.mxu1 %v10255_v39 }
 0x14a   : > { %v1084_v43 = vpop.permute.xlu1 %1083  ;;  %1602 = vrot.lane.b32.xlu0 %v10947_v58, %s10252_s11  ;;  %v9103_v58 = vld [vmem:[%s15324_s1 + $0x70] sm:$0xff]  }
 0x14b   : > { %1117 = vst.msk [vmem:[#allocation4 + $0x168] sm:$0xff] %vm1101_vm4, %v1084_v43  ;;  %3562 = vmatpush1.bf16.msra.mxu0 %v9103_v58  ;;  %9037 = vmatpush1.bf16.msra.mxu1 %v9103_v58  ;;  %v1677_v43 = vld [vmem:[#allocation2 + $0x168] sm:$0xff] }
 0x14c   : > { %1604 = vrot.lane.b32.xlu1 %v10951_v0, %s10252_s11  ;;  %v1183_v49 = vpop.permute.xlu0 %1182  ;;  %3563 = vmatprep.subr.bf16.mxu0 %v10255_v39  ;;  %v1696_v58 = vpack.c.bf16 %v1678_v19, %v1677_v43  ;;  %v1822_v43 = vld [vmem:[#allocation2 + $0x171] sm:$0xff] }
 0x14d   : > { %1231 = vst.msk [vmem:[#allocation4] sm:$0xff] %vm1230_vm5, %v1183_v49  ;;  %9022 = vmatprep.subr.bf16.mxu1 %v10255_v39 }
 0x14e   : > { %1233 = vst.msk [vmem:[#allocation4 + $0x8] sm:$0xff] %vm1232_vm6, %v1183_v49  ;;  %v1185_v54 = vpop.permute.xlu1 %1184  ;;  %1606 = vrot.lane.b32.xlu0 %v10955_v6, %s10252_s11 }
 0x14f   : > { %1234 = vst.msk [vmem:[#allocation4 + $0x18] sm:$0xff] %vm1230_vm5, %v1185_v54  ;;  %3564 = vmatpush1.bf16.msra.mxu0 %v9104_v9  ;;  %9038 = vmatpush1.bf16.msra.mxu1 %v9104_v9  ;;  %v1795_v9 = vld [vmem:[#allocation2 + $0x31] sm:$0xff] }
 0x150   : > { %1235 = vst.msk [vmem:[#allocation4 + $0x20] sm:$0xff] %vm1232_vm6, %v1185_v54  ;;  %1608 = vrot.lane.b32.xlu1 %v10959_v12, %s10252_s11  ;;  %v1187_v0 = vpop.permute.xlu0 %1186  ;;  %v1651_v12 = vld [vmem:[#allocation2 + $0x30] sm:$0xff]  ;;  %v1695_v54 = vpack.c.bf16 %v1676_v31, %v1675_v25  ;;  %v1820_v25 = vld [vmem:[#allocation2 + $0x159] sm:$0xff] }
 0x151   : > { %1236 = vst.msk [vmem:[#allocation4 + $0x30] sm:$0xff] %vm1230_vm5, %v1187_v0  ;;  %v1683_v30 = vpack.c.bf16 %v1652_v11, %v1651_v12  ;;  %v1796_v12 = vld [vmem:[#allocation2 + $0x39] sm:$0xff]  ;;  %v1698_v11 = vpack.c.bf16 %v1682_v28, %v1681_v23  ;;  %v1826_v23 = vld [vmem:[#allocation2 + $0x1a1] sm:$0xff] }
 0x152   : > { %1237 = vst.msk [vmem:[#allocation4 + $0x38] sm:$0xff] %vm1232_vm6, %v1187_v0  ;;  %v1189_v6 = vpop.permute.xlu1 %1188  ;;  %1610 = vrot.lane.b32.xlu0 %v10963_v22, %s10252_s11 }
 0x153   : > { %1238 = vst.msk [vmem:[#allocation4 + $0x48] sm:$0xff] %vm1230_vm5, %v1189_v6 }
 0x154   : > { %1239 = vst.msk [vmem:[#allocation4 + $0x50] sm:$0xff] %vm1232_vm6, %v1189_v6  ;;  %1612 = vrot.lane.b32.xlu1 %v10967_v29, %s10252_s11  ;;  %v1191_v18 = vpop.permute.xlu0 %1190  ;;  %v1655_v29 = vld [vmem:[#allocation2 + $0x60] sm:$0xff] }
 0x155   : > { %1240 = vst.msk [vmem:[#allocation4 + $0x60] sm:$0xff] %vm1230_vm5, %v1191_v18 }
 0x156   : > { %1241 = vst.msk [vmem:[#allocation4 + $0x68] sm:$0xff] %vm1232_vm6, %v1191_v18  ;;  %v1193_v22 = vpop.permute.xlu1 %1192  ;;  %1614 = vrot.lane.b32.xlu0 %v10971_v34, %s10252_s11  ;;  %v1685_v34 = vpack.c.bf16 %v1656_v33, %v1655_v29  ;;  %v1799_v29 = vld [vmem:[#allocation2 + $0x61] sm:$0xff]  ;;  %v1800_v33 = vld [vmem:[#allocation2 + $0x69] sm:$0xff] }
 0x157   : > { %1242 = vst.msk [vmem:[#allocation4 + $0x78] sm:$0xff] %vm1230_vm5, %v1193_v22 }
 0x158   : > { %1243 = vst.msk [vmem:[#allocation4 + $0x80] sm:$0xff] %vm1232_vm6, %v1193_v22  ;;  %1616 = vrot.lane.b32.xlu1 %v11193_v15, %s10252_s11  ;;  %v1195_v39 = vpop.permute.xlu0 %1194 }
 0x159   : > { %1244 = vst.msk [vmem:[#allocation4 + $0x90] sm:$0xff] %vm1230_vm5, %v1195_v39 }
 0x15a   : > { %1245 = vst.msk [vmem:[#allocation4 + $0x98] sm:$0xff] %vm1232_vm6, %v1195_v39  ;;  %v1197_v48 = vpop.permute.xlu1 %1196  ;;  %1715 = vrot.lane.b32.xlu0 %v1683_v30, %s10253_s12  ;;  %v1827_v30 = vpack.c.bf16 %v1796_v12, %v1795_v9  ;;  %v1924_v9 = vld [vmem:[#allocation2 + $0x3a] sm:$0xff] }
 0x15b   : > { %1246 = vst.msk [vmem:[#allocation4 + $0xa8] sm:$0xff] %vm1230_vm5, %v1197_v48 }
 0x15c   : > { %1247 = vst.msk [vmem:[#allocation4 + $0xb0] sm:$0xff] %vm1232_vm6, %v1197_v48  ;;  %1717 = vrot.lane.b32.xlu1 %v1684_v36, %s10253_s12  ;;  %v1199_v59 = vpop.permute.xlu0 %1198  ;;  %v1828_v36 = vpack.c.bf16 %v1798_v24, %v1797_v21  ;;  %v1926_v21 = vld [vmem:[#allocation2 + $0x52] sm:$0xff] }
 0x15d   : > { %1248 = vst.msk [vmem:[#allocation4 + $0xc0] sm:$0xff] %vm1230_vm5, %v1199_v59 }
 0x15e   : > { %1249 = vst.msk [vmem:[#allocation4 + $0xc8] sm:$0xff] %vm1232_vm6, %v1199_v59  ;;  %v1201_v5 = vpop.permute.xlu1 %1200  ;;  %1719 = vrot.lane.b32.xlu0 %v1685_v34, %s10253_s12  ;;  %v1829_v34 = vpack.c.bf16 %v1800_v33, %v1799_v29  ;;  %v1805_v59 = vld [vmem:[#allocation2 + $0xa9] sm:$0xff] }
 0x15f   : > { %1250 = vst.msk [vmem:[#allocation4 + $0xd8] sm:$0xff] %vm1230_vm5, %v1201_v5  ;;  %v1832_v16 = vpack.c.bf16 %v1806_v1, %v1805_v59  ;;  %v1928_v29 = vld [vmem:[#allocation2 + $0x6a] sm:$0xff] }
 0x160   : > { %1251 = vst.msk [vmem:[#allocation4 + $0xe0] sm:$0xff] %vm1232_vm6, %v1201_v5  ;;  %1721 = vrot.lane.b32.xlu1 %v1686_v38, %s10253_s12  ;;  %v1203_v47 = vpop.permute.xlu0 %1202 }
 0x161   : > { %1252 = vst.msk [vmem:[#allocation4 + $0xf0] sm:$0xff] %vm1230_vm5, %v1203_v47 }
 0x162   : > { %1253 = vst.msk [vmem:[#allocation4 + $0xf8] sm:$0xff] %vm1232_vm6, %v1203_v47  ;;  %v1205_v50 = vpop.permute.xlu1 %1204  ;;  %1723 = vrot.lane.b32.xlu0 %v1687_v13, %s10253_s12  ;;  %v1807_v13 = vld [vmem:[#allocation2 + $0xc1] sm:$0xff]  ;;  %v1809_v47 = vld [vmem:[#allocation2 + $0xd9] sm:$0xff] }
 0x163   : > { %1254 = vst.msk [vmem:[#allocation4 + $0x108] sm:$0xff] %vm1230_vm5, %v1205_v50  ;;  %v1834_v52 = vpack.c.bf16 %v1810_v32, %v1809_v47 }
 0x164   : > { %1255 = vst.msk [vmem:[#allocation4 + $0x110] sm:$0xff] %vm1232_vm6, %v1205_v50  ;;  %1725 = vrot.lane.b32.xlu1 %v1688_v26, %s10253_s12  ;;  %v1207_v56 = vpop.permute.xlu0 %1206  ;;  %v1833_v50 = vpack.c.bf16 %v1808_v46, %v1807_v13 }
 0x165   : > { %1256 = vst.msk [vmem:[#allocation4 + $0x120] sm:$0xff] %vm1230_vm5, %v1207_v56 }
 0x166   : > { %1257 = vst.msk [vmem:[#allocation4 + $0x128] sm:$0xff] %vm1232_vm6, %v1207_v56  ;;  %v1209_v63 = vpop.permute.xlu1 %1208  ;;  %1727 = vrot.lane.b32.xlu0 %v1689_v44, %s10253_s12  ;;  %v1811_v44 = vld [vmem:[#allocation2 + $0xf1] sm:$0xff]  ;;  %v1813_v56 = vld [vmem:[#allocation2 + $0x109] sm:$0xff] }
 0x167   : > { %1258 = vst.msk [vmem:[#allocation4 + $0x138] sm:$0xff] %vm1230_vm5, %v1209_v63  ;;  %v1836_v2 = vpack.c.bf16 %v1814_v57, %v1813_v56 }
 0x168   : > { %1259 = vst.msk [vmem:[#allocation4 + $0x140] sm:$0xff] %vm1232_vm6, %v1209_v63  ;;  %1729 = vrot.lane.b32.xlu1 %v1690_v55, %s10253_s12  ;;  %v1211_v4 = vpop.permute.xlu0 %1210  ;;  %v1835_v63 = vpack.c.bf16 %v1812_v53, %v1811_v44 }
 0x169   : > { %1260 = vst.msk [vmem:[#allocation4 + $0x150] sm:$0xff] %vm1230_vm5, %v1211_v4 }
 0x16a   : > { %1261 = vst.msk [vmem:[#allocation4 + $0x158] sm:$0xff] %vm1232_vm6, %v1211_v4  ;;  %v1213_v20 = vpop.permute.xlu1 %1212  ;;  %1731 = vrot.lane.b32.xlu0 %v1691_v3, %s10253_s12  ;;  %v1815_v3 = vld [vmem:[#allocation2 + $0x121] sm:$0xff]  ;;  %v1817_v4 = vld [vmem:[#allocation2 + $0x139] sm:$0xff] }
 0x16b   : > { %1262 = vst.msk [vmem:[#allocation4 + $0x168] sm:$0xff] %vm1230_vm5, %v1213_v20  ;;  %v1838_v31 = vpack.c.bf16 %v1818_v8, %v1817_v4 }
 0x16c   : > { %1263 = vst.msk [vmem:[#allocation4 + $0x170] sm:$0xff] %vm1232_vm6, %v1213_v20  ;;  %1733 = vrot.lane.b32.xlu1 %v1692_v7, %s10253_s12  ;;  %v1330_v37 = vpop.permute.xlu0 %1329  ;;  %v1837_v20 = vpack.c.bf16 %v1816_v62, %v1815_v3 }
 0x16d   : > { %1378 = vst.msk [vmem:[#allocation4 + $0x8] sm:$0xff] %vm1377_vm7, %v1330_v37  ;;  %v1821_v37 = vld [vmem:[#allocation2 + $0x169] sm:$0xff] }
 0x16e   : > { %v1332_v49 = vpop.permute.xlu1 %1331  ;;  %1735 = vrot.lane.b32.xlu0 %v1693_v10, %s10253_s12  ;;  %v1819_v10 = vld [vmem:[#allocation2 + $0x151] sm:$0xff] }
 0x16f   : > { %1379 = vst.msk [vmem:[#allocation4 + $0x20] sm:$0xff] %vm1377_vm7, %v1332_v49  ;;  %v1839_v49 = vpack.c.bf16 %v1820_v25, %v1819_v10  ;;  %v1948_v10 = vld [vmem:[#allocation2 + $0x15a] sm:$0xff] }
 0x170   : > { %1737 = vrot.lane.b32.xlu1 %v1694_v17, %s10253_s12  ;;  %v1334_v0 = vpop.permute.xlu0 %1333 }
 0x171   : > { %1380 = vst.msk [vmem:[#allocation4 + $0x38] sm:$0xff] %vm1377_vm7, %v1334_v0  ;;  %v1825_v0 = vld [vmem:[#allocation2 + $0x199] sm:$0xff] }
 0x172   : > { %v1336_v6 = vpop.permute.xlu1 %1335  ;;  %1739 = vrot.lane.b32.xlu0 %v1695_v54, %s10253_s12  ;;  %v1840_v54 = vpack.c.bf16 %v1822_v43, %v1821_v37  ;;  %v1842_v12 = vpack.c.bf16 %v1826_v23, %v1825_v0  ;;  %v1950_v37 = vld [vmem:[#allocation2 + $0x172] sm:$0xff]  ;;  %v1953_v0 = vld [vmem:[#allocation2 + $0x19a] sm:$0xff]  ;;  %v1954_v23 = vld [vmem:[#allocation2 + $0x1a2] sm:$0xff] }
 0x173   : > { %1381 = vst.msk [vmem:[#allocation4 + $0x50] sm:$0xff] %vm1377_vm7, %v1336_v6  ;;  %v1923_v6 = vld [vmem:[#allocation2 + $0x32] sm:$0xff] }
 0x174   : > { %1741 = vrot.lane.b32.xlu1 %v1696_v58, %s10253_s12  ;;  %v1338_v18 = vpop.permute.xlu0 %1337 }
 0x175   : > { %1382 = vst.msk [vmem:[#allocation4 + $0x68] sm:$0xff] %vm1377_vm7, %v1338_v18  ;;  %v1925_v18 = vld [vmem:[#allocation2 + $0x4a] sm:$0xff] }
 0x176   : > { %v1340_v22 = vpop.permute.xlu1 %1339  ;;  %1743 = vrot.lane.b32.xlu0 %v11009_v27, %s10253_s12  ;;  %v1803_v27 = vld [vmem:[#allocation2 + $0x91] sm:$0xff]  ;;  %v1956_v33 = vpack.c.bf16 %v1926_v21, %v1925_v18  ;;  %v1970_v18 = vpack.c.bf16 %v1954_v23, %v1953_v0 }
 0x177   : > { %1383 = vst.msk [vmem:[#allocation4 + $0x80] sm:$0xff] %vm1377_vm7, %v1340_v22  ;;  %v1831_v5 = vpack.c.bf16 %v1804_v51, %v1803_v27  ;;  %v1955_v22 = vpack.c.bf16 %v1924_v9, %v1923_v6  ;;  %v9107_v6 = vld [vmem:[%s10315_s30 + $0x88] sm:$0xff]   ;;  %v9108_v9 = vld [vmem:[%s10315_s30 + $0xa0] sm:$0xff]   ;;  %v2076_v0 = vld [vmem:[#allocation2 + $0x2d0] sm:$0xff] }
 0x178   : > { %1745 = vrot.lane.b32.xlu1 %v1698_v11, %s10253_s12  ;;  %v1342_v39 = vpop.permute.xlu0 %1341  ;;  %845 = vst.msk [vmem:[#allocation4 + $0x198] sm:$0xff] %vm827_vm2, %v9107_v6  ;;  %848 = vst.msk [vmem:[#allocation4 + $0x1e0] sm:$0xff] %vm827_vm2, %v9108_v9  ;;  %v2077_v23 = vld [vmem:[#allocation2 + $0x2d8] sm:$0xff]  ;;  %v2078_v9 = vld [vmem:[#allocation2 + $0x2e8] sm:$0xff] }
 0x179   : > { %1384 = vst.msk [vmem:[#allocation4 + $0x98] sm:$0xff] %vm1377_vm7, %v1342_v39  ;;  %v1929_v39 = vld [vmem:[#allocation2 + $0x7a] sm:$0xff] }
 0x17a   : > { %v1344_v48 = vpop.permute.xlu1 %1343  ;;  %1859 = vrot.lane.b32.xlu0 %v1827_v30, %s10254_s13  ;;  %v1927_v30 = vld [vmem:[#allocation2 + $0x62] sm:$0xff]  ;;  %v1958_v27 = vpack.c.bf16 %v1930_v42, %v1929_v39 }
 0x17b   : > { %1385 = vst.msk [vmem:[#allocation4 + $0xb0] sm:$0xff] %vm1377_vm7, %v1344_v48  ;;  %v1957_v48 = vpack.c.bf16 %v1928_v29, %v1927_v30  ;;  %v2056_v39 = vld [vmem:[#allocation2 + $0x1e0] sm:$0xff]  ;;  %v2057_v42 = vld [vmem:[#allocation2 + $0x1e8] sm:$0xff] }
 0x17c   : > { %1861 = vrot.lane.b32.xlu1 %v1828_v36, %s10254_s13  ;;  %v1346_v38 = vpop.permute.xlu0 %1345 }
 0x17d   : > { %1386 = vst.msk [vmem:[#allocation4 + $0xc8] sm:$0xff] %vm1377_vm7, %v1346_v38  ;;  %v1934_v38 = vld [vmem:[#allocation2 + $0xb2] sm:$0xff] }
 0x17e   : > { %v1348_v40 = vpop.permute.xlu1 %1347  ;;  %1863 = vrot.lane.b32.xlu0 %v1829_v34, %s10254_s13  ;;  %v1932_v34 = vld [vmem:[#allocation2 + $0x9a] sm:$0xff] }
 0x17f   : > { %1387 = vst.msk [vmem:[#allocation4 + $0xe0] sm:$0xff] %vm1377_vm7, %v1348_v40  ;;  %v1935_v40 = vld [vmem:[#allocation2 + $0xc2] sm:$0xff] }
 0x180   : > { %1865 = vrot.lane.b32.xlu1 %v1830_v35, %s10254_s13  ;;  %v1350_v26 = vpop.permute.xlu0 %1349  ;;  %v1933_v35 = vld [vmem:[#allocation2 + $0xaa] sm:$0xff] }
 0x181   : > { %1388 = vst.msk [vmem:[#allocation4 + $0xf8] sm:$0xff] %vm1377_vm7, %v1350_v26  ;;  %v1960_v13 = vpack.c.bf16 %v1934_v38, %v1933_v35  ;;  %v1938_v26 = vld [vmem:[#allocation2 + $0xe2] sm:$0xff]  ;;  %v2060_v38 = vld [vmem:[#allocation2 + $0x210] sm:$0xff] }
 0x182   : > { %v1352_v41 = vpop.permute.xlu1 %1351  ;;  %1867 = vrot.lane.b32.xlu0 %v1831_v5, %s10254_s13  ;;  %v1936_v5 = vld [vmem:[#allocation2 + $0xca] sm:$0xff]  ;;  %v9112_v35 = vld [vmem:[%s10315_s30 + $0xc0] sm:$0xff]  }
 0x183   : > { %1389 = vst.msk [vmem:[#allocation4 + $0x110] sm:$0xff] %vm1377_vm7, %v1352_v41  ;;  %v1961_v32 = vpack.c.bf16 %v1936_v5, %v1935_v40  ;;  %v1939_v41 = vld [vmem:[#allocation2 + $0xf2] sm:$0xff]  ;;  %v2062_v5 = vld [vmem:[#allocation2 + $0x228] sm:$0xff] }
 0x184   : > { %1869 = vrot.lane.b32.xlu1 %v1832_v16, %s10254_s13  ;;  %v1354_v55 = vpop.permute.xlu0 %1353  ;;  %v1937_v16 = vld [vmem:[#allocation2 + $0xda] sm:$0xff]  ;;  %852 = vst.msk [vmem:[#allocation4 + $0x240] sm:$0xff] %vm827_vm2, %v9112_v35  ;;  %v2182_v35 = vld [vmem:[#allocation2 + $0x1c9] sm:$0xff] }
 0x185   : > { %1390 = vst.msk [vmem:[#allocation4 + $0x128] sm:$0xff] %vm1377_vm7, %v1354_v55  ;;  %v1962_v44 = vpack.c.bf16 %v1938_v26, %v1937_v16  ;;  %v1942_v55 = vld [vmem:[#allocation2 + $0x112] sm:$0xff] }
 0x186   : > { %v1356_v61 = vpop.permute.xlu1 %1355  ;;  %1871 = vrot.lane.b32.xlu0 %v1833_v50, %s10254_s13  ;;  %v1940_v50 = vld [vmem:[#allocation2 + $0xfa] sm:$0xff] }
 0x187   : > { %1391 = vst.msk [vmem:[#allocation4 + $0x140] sm:$0xff] %vm1377_vm7, %v1356_v61  ;;  %v1963_v57 = vpack.c.bf16 %v1940_v50, %v1939_v41  ;;  %v1943_v61 = vld [vmem:[#allocation2 + $0x122] sm:$0xff]  ;;  %v9113_v26 = vld [vmem:[%s10315_s30 + $0xb8] sm:$0xff]  }
 0x188   : > { %1873 = vrot.lane.b32.xlu1 %v1834_v52, %s10254_s13  ;;  %v1358_v7 = vpop.permute.xlu0 %1357  ;;  %v1941_v52 = vld [vmem:[#allocation2 + $0x10a] sm:$0xff]  ;;  %851 = vst.msk [vmem:[#allocation4 + $0x228] sm:$0xff] %vm827_vm2, %v9113_v26 }
 0x189   : > { %1392 = vst.msk [vmem:[#allocation4 + $0x158] sm:$0xff] %vm1377_vm7, %v1358_v7  ;;  %v1964_v3 = vpack.c.bf16 %v1942_v55, %v1941_v52  ;;  %v1946_v7 = vld [vmem:[#allocation2 + $0x142] sm:$0xff] }
 0x18a   : > { %v1360_v14 = vpop.permute.xlu1 %1359  ;;  %1875 = vrot.lane.b32.xlu0 %v1835_v63, %s10254_s13  ;;  %v1944_v63 = vld [vmem:[#allocation2 + $0x12a] sm:$0xff]  ;;  %v2067_v52 = vld [vmem:[#allocation2 + $0x260] sm:$0xff] }
 0x18b   : > { %1393 = vst.msk [vmem:[#allocation4 + $0x170] sm:$0xff] %vm1377_vm7, %v1360_v14  ;;  %v1965_v8 = vpack.c.bf16 %v1944_v63, %v1943_v61  ;;  %v9105_v14 = vld [vmem:[%s10315_s30 + $0x80] sm:$0xff]   ;;  %v2065_v41 = vld [vmem:[#allocation2 + $0x248] sm:$0xff]  ;;  %v2068_v63 = vld [vmem:[#allocation2 + $0x270] sm:$0xff] }
 0x18c   : > { %1877 = vrot.lane.b32.xlu1 %v1836_v2, %s10254_s13  ;;  %v1459_v17 = vpop.permute.xlu0 %1458  ;;  %v1945_v2 = vld [vmem:[#allocation2 + $0x13a] sm:$0xff]  ;;  %844 = vst.msk [vmem:[#allocation4 + $0x180] sm:$0xff] %vm827_vm2, %v9105_v14  ;;  %v2185_v26 = vld [vmem:[#allocation2 + $0x1e9] sm:$0xff] }
 0x18d   : > { %1506 = vst.msk [vmem:[#allocation4 + $0x8] sm:$0xff] %vm972_vm3, %v1459_v17  ;;  %v1966_v25 = vpack.c.bf16 %v1946_v7, %v1945_v2  ;;  %v1949_v17 = vld [vmem:[#allocation2 + $0x16a] sm:$0xff]  ;;  %v9116_v61 = vld [vmem:[%s10315_s30 + $0xe0] sm:$0xff]  }
 0x18e   : > { %v1461_v19 = vpop.permute.xlu1 %1460  ;;  %1879 = vrot.lane.b32.xlu0 %v1837_v20, %s10254_s13  ;;  %v1947_v20 = vld [vmem:[#allocation2 + $0x152] sm:$0xff]  ;;  %v2070_v7 = vld [vmem:[#allocation2 + $0x288] sm:$0xff]  ;;  %856 = vst.msk [vmem:[#allocation4 + $0x2a0] sm:$0xff] %vm827_vm2, %v9116_v61 }
 0x18f   : > { %1507 = vst.msk [vmem:[#allocation4 + $0x20] sm:$0xff] %vm972_vm3, %v1461_v19  ;;  %v1967_v19 = vpack.c.bf16 %v1948_v10, %v1947_v20  ;;  %v9117_v20 = vld [vmem:[%s10315_s30 + $0xd8] sm:$0xff]   ;;  %v9118_v10 = vld [vmem:[%s10315_s30 + $0xf0] sm:$0xff]  }
 0x190   : > { %1881 = vrot.lane.b32.xlu1 %v1838_v31, %s10254_s13  ;;  %v1463_v58 = vpop.permute.xlu0 %1462  ;;  %855 = vst.msk [vmem:[#allocation4 + $0x288] sm:$0xff] %vm827_vm2, %v9117_v20  ;;  %858 = vst.msk [vmem:[#allocation4 + $0x2d0] sm:$0xff] %vm827_vm2, %v9118_v10  ;;  %v2192_v10 = vld [vmem:[#allocation2 + $0x241] sm:$0xff] }
 0x191   : > { %1508 = vst.msk [vmem:[#allocation4 + $0x38] sm:$0xff] %vm972_vm3, %v1463_v58 }
 0x192   : > { %v1465_v28 = vpop.permute.xlu1 %1464  ;;  %1883 = vrot.lane.b32.xlu0 %v1839_v49, %s10254_s13  ;;  %v9106_v49 = vld [vmem:[%s10315_s30 + $0x90] sm:$0xff]  }
 0x193   : > { %1509 = vst.msk [vmem:[#allocation4 + $0x50] sm:$0xff] %vm972_vm3, %v1465_v28 }
 0x194   : > { %1885 = vrot.lane.b32.xlu1 %v1840_v54, %s10254_s13  ;;  %v1467_v11 = vpop.permute.xlu0 %1466  ;;  %v1968_v54 = vpack.c.bf16 %v1950_v37, %v1949_v17  ;;  %846 = vst.msk [vmem:[#allocation4 + $0x1b0] sm:$0xff] %vm827_vm2, %v9106_v49 }
 0x195   : > { %1510 = vst.msk [vmem:[#allocation4 + $0x68] sm:$0xff] %vm972_vm3, %v1467_v11  ;;  %v2053_v11 = vld [vmem:[#allocation2 + $0x1b8] sm:$0xff] }
 0x196   : > { %v1469_v24 = vpop.permute.xlu1 %1468  ;;  %1887 = vrot.lane.b32.xlu0 %v11099_v60, %s10254_s13  ;;  %v1931_v60 = vld [vmem:[#allocation2 + $0x92] sm:$0xff] }
 0x197   : > { %1511 = vst.msk [vmem:[#allocation4 + $0x80] sm:$0xff] %vm972_vm3, %v1469_v24  ;;  %v1959_v1 = vpack.c.bf16 %v1932_v34, %v1931_v60  ;;  %v2054_v24 = vld [vmem:[#allocation2 + $0x1c8] sm:$0xff]  ;;  %v2058_v60 = vld [vmem:[#allocation2 + $0x1f8] sm:$0xff]  ;;  %v2059_v34 = vld [vmem:[#allocation2 + $0x200] sm:$0xff] }
 0x198   : > { %1889 = vrot.lane.b32.xlu1 %v1842_v12, %s10254_s13  ;;  %v1471_v36 = vpop.permute.xlu0 %1470  ;;  %v2052_v12 = vld [vmem:[#allocation2 + $0x1b0] sm:$0xff] }
 0x199   : > { %1512 = vst.msk [vmem:[#allocation4 + $0x98] sm:$0xff] %vm972_vm3, %v1471_v36  ;;  %v2084_v29 = vpack.c.bf16 %v2053_v11, %v2052_v12  ;;  %v9110_v36 = vld [vmem:[%s10315_s30 + $0xb0] sm:$0xff]  }
 0x19a   : > { %v1473_v45 = vpop.permute.xlu1 %1472  ;;  %1987 = vrot.lane.b32.xlu0 %v1955_v22, %s10251_s10  ;;  %v2055_v22 = vld [vmem:[#allocation2 + $0x1d0] sm:$0xff]  ;;  %850 = vst.msk [vmem:[#allocation4 + $0x210] sm:$0xff] %vm827_vm2, %v9110_v36  ;;  %v2083_v36 = vld [vmem:[#allocation2 + $0x320] sm:$0xff] }
 0x19b   : > { %1513 = vst.msk [vmem:[#allocation4 + $0xb0] sm:$0xff] %vm972_vm3, %v1473_v45  ;;  %v11322_v45 = vpack.c.bf16 %v2055_v22, %v2054_v24  ;;  %v2079_v12 = vld [vmem:[#allocation2 + $0x2f0] sm:$0xff]  ;;  %v2080_v24 = vld [vmem:[#allocation2 + $0x300] sm:$0xff]  ;;  %v2081_v22 = vld [vmem:[#allocation2 + $0x308] sm:$0xff] }
 0x19c   : > { %1989 = vrot.lane.b32.xlu1 %v1956_v33, %s10251_s10  ;;  %v1475_v51 = vpop.permute.xlu0 %1474  ;;  %v9109_v33 = vld [vmem:[%s10315_s30 + $0x98] sm:$0xff]  }
 0x19d   : > { %1514 = vst.msk [vmem:[#allocation4 + $0xc8] sm:$0xff] %vm972_vm3, %v1475_v51  ;;  %v9111_v51 = vld [vmem:[%s10315_s30 + $0xa8] sm:$0xff]  }
 0x19e   : > { %v1477_v59 = vpop.permute.xlu1 %1476  ;;  %1991 = vrot.lane.b32.xlu0 %v1957_v48, %s10251_s10  ;;  %847 = vst.msk [vmem:[#allocation4 + $0x1c8] sm:$0xff] %vm827_vm2, %v9109_v33  ;;  %849 = vst.msk [vmem:[#allocation4 + $0x1f8] sm:$0xff] %vm827_vm2, %v9111_v51  ;;  %v2082_v33 = vld [vmem:[#allocation2 + $0x318] sm:$0xff] }
 0x19f   : > { %1515 = vst.msk [vmem:[#allocation4 + $0xe0] sm:$0xff] %vm972_vm3, %v1477_v59  ;;  %v2061_v59 = vld [vmem:[#allocation2 + $0x218] sm:$0xff] }
 0x1a0   : > { %1993 = vrot.lane.b32.xlu1 %v1958_v27, %s10251_s10  ;;  %v1479_v46 = vpop.permute.xlu0 %1478  ;;  %v11328_v27 = vpack.c.bf16 %v2057_v42, %v2056_v39  ;;  %v11342_v16 = vpack.c.bf16 %v2061_v59, %v2060_v38  ;;  %v11411_v42 = vpack.c.bf16 %v2081_v22, %v2080_v24  ;;  %v2183_v38 = vld [vmem:[#allocation2 + $0x1d1] sm:$0xff]  ;;  %v3238_v59 = vld [vmem:[#allocation4] sm:$0xff] }
 0x1a1   : > { %1516 = vst.msk [vmem:[#allocation4 + $0xf8] sm:$0xff] %vm972_vm3, %v1479_v46 }
 0x1a2   : > { %v1481_v47 = vpop.permute.xlu1 %1480  ;;  %1995 = vrot.lane.b32.xlu0 %v1959_v1, %s10251_s10  ;;  %v11335_v1 = vpack.c.bf16 %v2059_v34, %v2058_v60  ;;  %v2181_v60 = vld [vmem:[#allocation2 + $0x1b9] sm:$0xff]  ;;  %v11417_v34 = vpack.c.bf16 %v2083_v36, %v2082_v33  ;;  %v2200_v33 = vld [vmem:[#allocation2 + $0x2a1] sm:$0xff]  ;;  %v2201_v36 = vld [vmem:[#allocation2 + $0x2a9] sm:$0xff] }
 0x1a3   : > { %1517 = vst.msk [vmem:[#allocation4 + $0x110] sm:$0xff] %vm972_vm3, %v1481_v47  ;;  %v9114_v47 = vld [vmem:[%s10315_s30 + $0xd0] sm:$0xff]  }
 0x1a4   : > { %1997 = vrot.lane.b32.xlu1 %v1960_v13, %s10251_s10  ;;  %v1483_v53 = vpop.permute.xlu0 %1482  ;;  %v2063_v13 = vld [vmem:[#allocation2 + $0x230] sm:$0xff]  ;;  %854 = vst.msk [vmem:[#allocation4 + $0x270] sm:$0xff] %vm827_vm2, %v9114_v47  ;;  %v11427_v47 = vpack.c.bf16 %v2183_v38, %v2182_v35  ;;  %v11480_v35 = vpack.c.bf16 %v2201_v36, %v2200_v33  ;;  %v2315_v33 = vld [vmem:[#allocation2 + $0x202] sm:$0xff] }
 0x1a5   : > { %1518 = vst.msk [vmem:[#allocation4 + $0x128] sm:$0xff] %vm972_vm3, %v1483_v53  ;;  %v11349_v50 = vpack.c.bf16 %v2063_v13, %v2062_v5  ;;  %v2066_v53 = vld [vmem:[#allocation2 + $0x258] sm:$0xff] }
 0x1a6   : > { %v1485_v56 = vpop.permute.xlu1 %1484  ;;  %1999 = vrot.lane.b32.xlu0 %v1961_v32, %s10251_s10  ;;  %v2064_v32 = vld [vmem:[#allocation2 + $0x240] sm:$0xff]  ;;  %v2204_v38 = vld [vmem:[#allocation2 + $0x2d1] sm:$0xff] }
 0x1a7   : > { %1519 = vst.msk [vmem:[#allocation4 + $0x140] sm:$0xff] %vm972_vm3, %v1485_v56  ;;  %v11356_v56 = vpack.c.bf16 %v2065_v41, %v2064_v32  ;;  %v2186_v41 = vld [vmem:[#allocation2 + $0x1f9] sm:$0xff] }
 0x1a8   : > { %2001 = vrot.lane.b32.xlu1 %v1962_v44, %s10251_s10  ;;  %v1487_v62 = vpop.permute.xlu0 %1486 }
 0x1a9   : > { %1520 = vst.msk [vmem:[#allocation4 + $0x158] sm:$0xff] %vm972_vm3, %v1487_v62  ;;  %v11363_v62 = vpack.c.bf16 %v2067_v52, %v2066_v53 }
 0x1aa   : > { %v1489_v4 = vpop.permute.xlu1 %1488  ;;  %2003 = vrot.lane.b32.xlu0 %v1963_v57, %s10251_s10  ;;  %v9115_v57 = vld [vmem:[%s10315_s30 + $0xc8] sm:$0xff]  }
 0x1ab   : > { %1521 = vst.msk [vmem:[#allocation4 + $0x170] sm:$0xff] %vm972_vm3, %v1489_v4  ;;  %v2071_v4 = vld [vmem:[#allocation2 + $0x290] sm:$0xff] }
 0x1ac   : > { %2005 = vrot.lane.b32.xlu1 %v1964_v3, %s10251_s10  ;;  %v1587_v31 = vpop.permute.xlu0 %1586  ;;  %v2069_v3 = vld [vmem:[#allocation2 + $0x278] sm:$0xff]  ;;  %853 = vst.msk [vmem:[#allocation4 + $0x258] sm:$0xff] %vm827_vm2, %v9115_v57  ;;  %v11377_v17 = vpack.c.bf16 %v2071_v4, %v2070_v7 }
 0x1ad   : > { %1634 = vst.msk [vmem:[#allocation4 + $0x8] sm:$0xff] %vm1101_vm4, %v1587_v31  ;;  %v11370_v14 = vpack.c.bf16 %v2069_v3, %v2068_v63  ;;  %v2073_v31 = vld [vmem:[#allocation2 + $0x2a8] sm:$0xff]  ;;  %v2189_v57 = vld [vmem:[#allocation2 + $0x219] sm:$0xff] }
 0x1ae   : > { %v1589_v43 = vpop.permute.xlu1 %1588  ;;  %2007 = vrot.lane.b32.xlu0 %v1965_v8, %s10251_s10  ;;  %v2190_v3 = vld [vmem:[#allocation2 + $0x229] sm:$0xff]  ;;  %v3241_v7 = vld [vmem:[#allocation4 + $0x18] sm:$0xff] }
 0x1af   : > { %1635 = vst.msk [vmem:[#allocation4 + $0x20] sm:$0xff] %vm1101_vm4, %v1589_v43  ;;  %v2074_v43 = vld [vmem:[#allocation2 + $0x2b8] sm:$0xff] }
 0x1b0   : > { %2009 = vrot.lane.b32.xlu1 %v1966_v25, %s10251_s10  ;;  %v1591_v58 = vpop.permute.xlu0 %1590  ;;  %v2072_v25 = vld [vmem:[#allocation2 + $0x2a0] sm:$0xff] }
 0x1b1   : > { %1636 = vst.msk [vmem:[#allocation4 + $0x38] sm:$0xff] %vm1101_vm4, %v1591_v58  ;;  %v9119_v58 = vld [vmem:[%s10315_s30 + $0xe8] sm:$0xff]  }
 0x1b2   : > { %v1593_v28 = vpop.permute.xlu1 %1592  ;;  %2011 = vrot.lane.b32.xlu0 %v1967_v19, %s10251_s10  ;;  %v2075_v19 = vld [vmem:[#allocation2 + $0x2c0] sm:$0xff]  ;;  %857 = vst.msk [vmem:[#allocation4 + $0x2b8] sm:$0xff] %vm827_vm2, %v9119_v58 }
 0x1b3   : > { %1637 = vst.msk [vmem:[#allocation4 + $0x50] sm:$0xff] %vm1101_vm4, %v1593_v28  ;;  %v11390_v28 = vpack.c.bf16 %v2075_v19, %v2074_v43  ;;  %v2194_v43 = vld [vmem:[#allocation2 + $0x259] sm:$0xff]  ;;  %v2195_v19 = vld [vmem:[#allocation2 + $0x261] sm:$0xff] }
 0x1b4   : > { %2013 = vrot.lane.b32.xlu1 %v1968_v54, %s10251_s10  ;;  %v1595_v21 = vpop.permute.xlu0 %1594  ;;  %v11384_v54 = vpack.c.bf16 %v2073_v31, %v2072_v25  ;;  %v2193_v25 = vld [vmem:[#allocation2 + $0x249] sm:$0xff] }
 0x1b5   : > { %1638 = vst.msk [vmem:[#allocation4 + $0x68] sm:$0xff] %vm1101_vm4, %v1595_v21  ;;  %v9120_v21 = vld [vmem:[%s10315_s30 + $0xf8] sm:$0xff]   ;;  %v11456_v58 = vpack.c.bf16 %v2193_v25, %v2192_v10 }
 0x1b6   : > { %v1597_v30 = vpop.permute.xlu1 %1596  ;;  %2015 = vrot.lane.b32.xlu0 %v11193_v15, %s10251_s10  ;;  %859 = vst.msk [vmem:[#allocation4 + $0x2e8] sm:$0xff] %vm827_vm2, %v9120_v21  ;;  %v3244_v21 = vld [vmem:[#allocation4 + $0x30] sm:$0xff]  ;;  %v2309_v10 = vld [vmem:[#allocation2 + $0x1ba] sm:$0xff] }
 0x1b7   : > { %1639 = vst.msk [vmem:[#allocation4 + $0x80] sm:$0xff] %vm1101_vm4, %v1597_v30  ;;  %v11404_v30 = vpack.c.bf16 %v2079_v12, %v2078_v9  ;;  %v2198_v12 = vld [vmem:[#allocation2 + $0x289] sm:$0xff] }
 0x1b8   : > { %2017 = vrot.lane.b32.xlu1 %v1970_v18, %s10251_s10  ;;  %v1599_v48 = vpop.permute.xlu0 %1598  ;;  %v11397_v18 = vpack.c.bf16 %v2077_v23, %v2076_v0  ;;  %v2196_v0 = vld [vmem:[#allocation2 + $0x271] sm:$0xff]  ;;  %v2197_v23 = vld [vmem:[#allocation2 + $0x279] sm:$0xff] }
 0x1b9   : > { %1640 = vst.msk [vmem:[#allocation4 + $0x98] sm:$0xff] %vm1101_vm4, %v1599_v48  ;;  %v2180_v48 = vld [vmem:[#allocation2 + $0x1b1] sm:$0xff] }
 0x1ba   : > { %v1601_v15 = vpop.permute.xlu1 %1600  ;;  %2116 = vrot.lane.b32.xlu0 %v2084_v29, %s10251_s10  ;;  %v2212_v13 = vpack.c.bf16 %v2181_v60, %v2180_v48  ;;  %v2202_v60 = vld [vmem:[#allocation2 + $0x2b9] sm:$0xff] }
 0x1bb   : > { %1641 = vst.msk [vmem:[#allocation4 + $0xb0] sm:$0xff] %vm1101_vm4, %v1601_v15 }
 0x1bc   : > { %2118 = vrot.lane.b32.xlu1 %v11322_v45, %s10251_s10  ;;  %v1603_v40 = vpop.permute.xlu0 %1602 }
 0x1bd   : > { %1642 = vst.msk [vmem:[#allocation4 + $0xc8] sm:$0xff] %vm1101_vm4, %v1603_v40 }
 0x1be   : > { %v1605_v46 = vpop.permute.xlu1 %1604  ;;  %2120 = vrot.lane.b32.xlu0 %v11328_v27, %s10251_s10 }
 0x1bf   : > { %1643 = vst.msk [vmem:[#allocation4 + $0xe0] sm:$0xff] %vm1101_vm4, %v1605_v46  ;;  %v2184_v46 = vld [vmem:[#allocation2 + $0x1e1] sm:$0xff] }
 0x1c0   : > { %2122 = vrot.lane.b32.xlu1 %v11335_v1, %s10251_s10  ;;  %v1607_v44 = vpop.permute.xlu0 %1606  ;;  %v11432_v52 = vpack.c.bf16 %v2185_v26, %v2184_v46  ;;  %v2207_v46 = vld [vmem:[#allocation2 + $0x2f1] sm:$0xff]  ;;  %v3247_v26 = vld [vmem:[#allocation4 + $0x48] sm:$0xff] }
 0x1c1   : > { %1644 = vst.msk [vmem:[#allocation4 + $0xf8] sm:$0xff] %vm1101_vm4, %v1607_v44  ;;  %v2187_v44 = vld [vmem:[#allocation2 + $0x201] sm:$0xff] }
 0x1c2   : > { %v1609_v55 = vpop.permute.xlu1 %1608  ;;  %2124 = vrot.lane.b32.xlu0 %v11342_v16, %s10251_s10  ;;  %v11438_v61 = vpack.c.bf16 %v2187_v44, %v2186_v41 }
 0x1c3   : > { %1645 = vst.msk [vmem:[#allocation4 + $0x110] sm:$0xff] %vm1101_vm4, %v1609_v55  ;;  %v2188_v55 = vld [vmem:[#allocation2 + $0x211] sm:$0xff] }
 0x1c4   : > { %2126 = vrot.lane.b32.xlu1 %v11349_v50, %s10251_s10  ;;  %v1611_v2 = vpop.permute.xlu0 %1610  ;;  %v11444_v20 = vpack.c.bf16 %v2189_v57, %v2188_v55  ;;  %v2209_v55 = vld [vmem:[#allocation2 + $0x309] sm:$0xff] }
 0x1c5   : > { %1646 = vst.msk [vmem:[#allocation4 + $0x128] sm:$0xff] %vm1101_vm4, %v1611_v2  ;;  %v2191_v2 = vld [vmem:[#allocation2 + $0x231] sm:$0xff] }
 0x1c6   : > { %v1613_v8 = vpop.permute.xlu1 %1612  ;;  %2128 = vrot.lane.b32.xlu0 %v11356_v56, %s10251_s10  ;;  %v11450_v31 = vpack.c.bf16 %v2191_v2, %v2190_v3  ;;  %v2210_v3 = vld [vmem:[#allocation2 + $0x319] sm:$0xff]  ;;  %v2211_v2 = vld [vmem:[#allocation2 + $0x321] sm:$0xff] }
 0x1c7   : > { %1647 = vst.msk [vmem:[#allocation4 + $0x140] sm:$0xff] %vm1101_vm4, %v1613_v8  ;;  %v11506_v25 = vpack.c.bf16 %v2211_v2, %v2210_v3  ;;  %v2322_v3 = vld [vmem:[#allocation2 + $0x25a] sm:$0xff]  ;;  %v2323_v2 = vld [vmem:[#allocation2 + $0x262] sm:$0xff] }
 0x1c8   : > { %2130 = vrot.lane.b32.xlu1 %v11363_v62, %s10251_s10  ;;  %v1615_v37 = vpop.permute.xlu0 %1614 }
 0x1c9   : > { %1648 = vst.msk [vmem:[#allocation4 + $0x158] sm:$0xff] %vm1101_vm4, %v1615_v37 }
 0x1ca   : > { %v1617_v49 = vpop.permute.xlu1 %1616  ;;  %2132 = vrot.lane.b32.xlu0 %v11370_v14, %s10251_s10 }
 0x1cb   : > { %1649 = vst.msk [vmem:[#allocation4 + $0x170] sm:$0xff] %vm1101_vm4, %v1617_v49 }
 0x1cc   : > { %2134 = vrot.lane.b32.xlu1 %v11377_v17, %s10251_s10  ;;  %v1716_v6 = vpop.permute.xlu0 %1715 }
 0x1cd   : > { %1763 = vst.msk [vmem:[#allocation4 + $0x8] sm:$0xff] %vm1230_vm5, %v1716_v6 }
 0x1ce   : > { %1764 = vst.msk [vmem:[#allocation4 + $0x10] sm:$0xff] %vm1232_vm6, %v1716_v6  ;;  %v1718_v11 = vpop.permute.xlu1 %1717  ;;  %2136 = vrot.lane.b32.xlu0 %v11384_v54, %s10251_s10  ;;  %v11462_v6 = vpack.c.bf16 %v2195_v19, %v2194_v43  ;;  %v2310_v43 = vld [vmem:[#allocation2 + $0x1ca] sm:$0xff]  ;;  %v2311_v19 = vld [vmem:[#allocation2 + $0x1d2] sm:$0xff] }
 0x1cf   : > { %1765 = vst.msk [vmem:[#allocation4 + $0x20] sm:$0xff] %vm1230_vm5, %v1718_v11 }
 0x1d0   : > { %1766 = vst.msk [vmem:[#allocation4 + $0x28] sm:$0xff] %vm1232_vm6, %v1718_v11  ;;  %2138 = vrot.lane.b32.xlu1 %v11390_v28, %s10251_s10  ;;  %v1720_v29 = vpop.permute.xlu0 %1719  ;;  %v2199_v11 = vld [vmem:[#allocation2 + $0x291] sm:$0xff] }
 0x1d1   : > { %1767 = vst.msk [vmem:[#allocation4 + $0x38] sm:$0xff] %vm1230_vm5, %v1720_v29 }
 0x1d2   : > { %1768 = vst.msk [vmem:[#allocation4 + $0x40] sm:$0xff] %vm1232_vm6, %v1720_v29  ;;  %v1722_v39 = vpop.permute.xlu1 %1721  ;;  %2140 = vrot.lane.b32.xlu0 %v11397_v18, %s10251_s10  ;;  %v11468_v29 = vpack.c.bf16 %v2197_v23, %v2196_v0 }
 0x1d3   : > { %1769 = vst.msk [vmem:[#allocation4 + $0x50] sm:$0xff] %vm1230_vm5, %v1722_v39 }
 0x1d4   : > { %1770 = vst.msk [vmem:[#allocation4 + $0x58] sm:$0xff] %vm1232_vm6, %v1722_v39  ;;  %2142 = vrot.lane.b32.xlu1 %v11404_v30, %s10251_s10  ;;  %v1724_v15 = vpop.permute.xlu0 %1723  ;;  %v3239_v51 = vld [vmem:[#allocation4 + $0x8] sm:$0xff]  ;;  %v11474_v39 = vpack.c.bf16 %v2199_v11, %v2198_v12 }
 0x1d5   : > { %1771 = vst.msk [vmem:[#allocation4 + $0x68] sm:$0xff] %vm1230_vm5, %v1724_v15  ;;  %3565 = vmatprep.mubr.bf16.mxu0 %v3239_v51  ;;  %v2312_v12 = vld [vmem:[#allocation2 + $0x1e2] sm:$0xff]  ;;  %v2313_v11 = vld [vmem:[#allocation2 + $0x1ea] sm:$0xff] }
 0x1d6   : > { %1772 = vst.msk [vmem:[#allocation4 + $0x70] sm:$0xff] %vm1232_vm6, %v1724_v15  ;;  %v1726_v40 = vpop.permute.xlu1 %1725  ;;  %v3242_v5 = vld [vmem:[#allocation4 + $0x20] sm:$0xff]  ;;  %2144 = vrot.lane.b32.xlu0 %v11411_v42, %s10251_s10  ;;  %3566 = vmatmul.mubr.bf16.vlgmr.msra.gmra.mrb[0].mxu0 %v3238_v59 }
 0x1d7   : > { %1773 = vst.msk [vmem:[#allocation4 + $0x80] sm:$0xff] %vm1230_vm5, %v1726_v40  ;;  %3573 = vmatprep.mubr.bf16.mxu0 %v3242_v5  ;;  %v2203_v15 = vld [vmem:[#allocation2 + $0x2c1] sm:$0xff]  ;;  %v2205_v59 = vld [vmem:[#allocation2 + $0x2d9] sm:$0xff] }
 0x1d8   : > { %1774 = vst.msk [vmem:[#allocation4 + $0x88] sm:$0xff] %vm1232_vm6, %v1726_v40  ;;  %2146 = vrot.lane.b32.xlu1 %v11417_v34, %s10251_s10  ;;  %v1728_v32 = vpop.permute.xlu0 %1727  ;;  %v3245_v8 = vld [vmem:[#allocation4 + $0x38] sm:$0xff]  ;;  %v11486_v40 = vpack.c.bf16 %v2203_v15, %v2202_v60  ;;  %v11491_v44 = vpack.c.bf16 %v2205_v59, %v2204_v38  ;;  %v2318_v59 = vld [vmem:[#allocation2 + $0x22a] sm:$0xff] }
 0x1d9   : > { %1775 = vst.msk [vmem:[#allocation4 + $0x98] sm:$0xff] %vm1230_vm5, %v1728_v32  ;;  %v2316_v60 = vld [vmem:[#allocation2 + $0x212] sm:$0xff]  ;;  %v2317_v15 = vld [vmem:[#allocation2 + $0x21a] sm:$0xff] }
 0x1da   : > { %1776 = vst.msk [vmem:[#allocation4 + $0xa0] sm:$0xff] %vm1232_vm6, %v1728_v32  ;;  %v1730_v53 = vpop.permute.xlu1 %1729  ;;  %2244 = vrot.lane.b32.xlu0 %v2212_v13, %s10252_s11  ;;  %v3248_v22 = vld [vmem:[#allocation4 + $0x50] sm:$0xff] }
 0x1db   : > { %1777 = vst.msk [vmem:[#allocation4 + $0xb0] sm:$0xff] %vm1230_vm5, %v1730_v53  ;;  %v2206_v13 = vld [vmem:[#allocation2 + $0x2e9] sm:$0xff] }
 0x1dc   : > { %1778 = vst.msk [vmem:[#allocation4 + $0xb8] sm:$0xff] %vm1232_vm6, %v1730_v53  ;;  %2246 = vrot.lane.b32.xlu1 %v11427_v47, %s10252_s11  ;;  %v1732_v63 = vpop.permute.xlu0 %1731  ;;  %v3251_v41 = vld [vmem:[#allocation4 + $0x68] sm:$0xff]  ;;  %v11496_v57 = vpack.c.bf16 %v2207_v46, %v2206_v13  ;;  %v3253_v13 = vld [vmem:[#allocation4 + $0x78] sm:$0xff] }
 0x1dd   : > { %1779 = vst.msk [vmem:[#allocation4 + $0xc8] sm:$0xff] %vm1230_vm5, %v1732_v63  ;;  %v2208_v53 = vld [vmem:[#allocation2 + $0x301] sm:$0xff] }
 0x1de   : > { %1780 = vst.msk [vmem:[#allocation4 + $0xd0] sm:$0xff] %vm1232_vm6, %v1732_v63  ;;  %v1734_v4 = vpop.permute.xlu1 %1733  ;;  %2248 = vrot.lane.b32.xlu0 %v11432_v52, %s10252_s11  ;;  %3574 = vmatmul.mubr.bf16.gmra.mrb[4].mxu0 %v3241_v7  ;;  %v3254_v23 = vld [vmem:[#allocation4 + $0x80] sm:$0xff] }
 0x1df   : > { %1781 = vst.msk [vmem:[#allocation4 + $0xe0] sm:$0xff] %vm1230_vm5, %v1734_v4  ;;  %3581 = vmatprep.mubr.bf16.mxu0 %v3245_v8  ;;  %v2308_v8 = vld [vmem:[#allocation2 + $0x1b2] sm:$0xff] }
 0x1e0   : > { %1782 = vst.msk [vmem:[#allocation4 + $0xe8] sm:$0xff] %vm1232_vm6, %v1734_v4  ;;  %2250 = vrot.lane.b32.xlu1 %v11438_v61, %s10252_s11  ;;  %v1736_v37 = vpop.permute.xlu0 %1735  ;;  %v11501_v4 = vpack.c.bf16 %v2209_v55, %v2208_v53  ;;  %v2321_v53 = vld [vmem:[#allocation2 + $0x24a] sm:$0xff] }
 0x1e1   : > { %1783 = vst.msk [vmem:[#allocation4 + $0xf8] sm:$0xff] %vm1230_vm5, %v1736_v37 }
 0x1e2   : > { %1784 = vst.msk [vmem:[#allocation4 + $0x100] sm:$0xff] %vm1232_vm6, %v1736_v37  ;;  %v1738_v49 = vpop.permute.xlu1 %1737  ;;  %2252 = vrot.lane.b32.xlu0 %v11444_v20, %s10252_s11 }
 0x1e3   : > { %1785 = vst.msk [vmem:[#allocation4 + $0x110] sm:$0xff] %vm1230_vm5, %v1738_v49 }
 0x1e4   : > { %1786 = vst.msk [vmem:[#allocation4 + $0x118] sm:$0xff] %vm1232_vm6, %v1738_v49  ;;  %2254 = vrot.lane.b32.xlu1 %v11450_v31, %s10252_s11  ;;  %v1740_v9 = vpop.permute.xlu0 %1739  ;;  %v3250_v49 = vld [vmem:[#allocation4 + $0x60] sm:$0xff] }
 0x1e5   : > { %1787 = vst.msk [vmem:[#allocation4 + $0x128] sm:$0xff] %vm1230_vm5, %v1740_v9 }
 0x1e6   : > { %1788 = vst.msk [vmem:[#allocation4 + $0x130] sm:$0xff] %vm1232_vm6, %v1740_v9  ;;  %v1742_v24 = vpop.permute.xlu1 %1741  ;;  %2256 = vrot.lane.b32.xlu0 %v11456_v58, %s10252_s11  ;;  %3582 = vmatmul.mubr.bf16.gmra.mrb[8].mxu0 %v3244_v21  ;;  %v2340_v9 = vpack.c.bf16 %v2309_v10, %v2308_v8  ;;  %v11514_v21 = vpack.c.bf16 %v2311_v19, %v2310_v43  ;;  %v2324_v10 = vld [vmem:[#allocation2 + $0x272] sm:$0xff] }
 0x1e7   : > { %1789 = vst.msk [vmem:[#allocation4 + $0x140] sm:$0xff] %vm1230_vm5, %v1742_v24  ;;  %3589 = vmatprep.mubr.bf16.mxu0 %v3248_v22  ;;  %v2314_v22 = vld [vmem:[#allocation2 + $0x1fa] sm:$0xff]  ;;  %v11543_v43 = vpack.c.bf16 %v2323_v2, %v2322_v3  ;;  %v3263_v2 = vld [vmem:[#allocation4 + $0xc8] sm:$0xff] }
 0x1e8   : > { %1790 = vst.msk [vmem:[#allocation4 + $0x148] sm:$0xff] %vm1232_vm6, %v1742_v24  ;;  %2258 = vrot.lane.b32.xlu1 %v11462_v6, %s10252_s11  ;;  %v1744_v48 = vpop.permute.xlu0 %1743 }
 0x1e9   : > { %1791 = vst.msk [vmem:[#allocation4 + $0x158] sm:$0xff] %vm1230_vm5, %v1744_v48 }
 0x1ea   : > { %1792 = vst.msk [vmem:[#allocation4 + $0x160] sm:$0xff] %vm1232_vm6, %v1744_v48  ;;  %v1746_v51 = vpop.permute.xlu1 %1745  ;;  %2260 = vrot.lane.b32.xlu0 %v11468_v29, %s10252_s11  ;;  %v11518_v48 = vpack.c.bf16 %v2313_v11, %v2312_v12  ;;  %v3260_v12 = vld [vmem:[#allocation4 + $0xb0] sm:$0xff] }
 0x1eb   : > { %1793 = vst.msk [vmem:[#allocation4 + $0x170] sm:$0xff] %vm1230_vm5, %v1746_v51 }
 0x1ec   : > { %1794 = vst.msk [vmem:[#allocation4 + $0x178] sm:$0xff] %vm1232_vm6, %v1746_v51  ;;  %2262 = vrot.lane.b32.xlu1 %v11474_v39, %s10252_s11  ;;  %v1860_v5 = vpop.permute.xlu0 %1859  ;;  %v11523_v51 = vpack.c.bf16 %v2315_v33, %v2314_v22  ;;  %v2329_v22 = vld [vmem:[#allocation2 + $0x2aa] sm:$0xff] }
 0x1ed   : > { %1907 = vst.msk [vmem:[#allocation4 + $0x10] sm:$0xff] %vm1377_vm7, %v1860_v5  ;;  %v2319_v5 = vld [vmem:[#allocation2 + $0x232] sm:$0xff] }
 0x1ee   : > { %v1862_v32 = vpop.permute.xlu1 %1861  ;;  %2264 = vrot.lane.b32.xlu0 %v11480_v35, %s10252_s11  ;;  %3590 = vmatmul.mubr.bf16.gmra.mrb[12].mxu0 %v3247_v26  ;;  %v3257_v26 = vld [vmem:[#allocation4 + $0x98] sm:$0xff]  ;;  %v11533_v55 = vpack.c.bf16 %v2319_v5, %v2318_v59 }
 0x1ef   : > { %1908 = vst.msk [vmem:[#allocation4 + $0x28] sm:$0xff] %vm1377_vm7, %v1862_v32  ;;  %3597 = vmatprep.mubr.bf16.mxu0 %v3251_v41  ;;  %v11528_v32 = vpack.c.bf16 %v2317_v15, %v2316_v60  ;;  %v2320_v41 = vld [vmem:[#allocation2 + $0x242] sm:$0xff]  ;;  %v2330_v60 = vld [vmem:[#allocation2 + $0x2ba] sm:$0xff]  ;;  %v2332_v5 = vld [vmem:[#allocation2 + $0x2d2] sm:$0xff] }
 0x1f0   : > { %2266 = vrot.lane.b32.xlu1 %v11486_v40, %s10252_s11  ;;  %v1864_v63 = vpop.permute.xlu0 %1863  ;;  %v11538_v8 = vpack.c.bf16 %v2321_v53, %v2320_v41  ;;  %v2331_v15 = vld [vmem:[#allocation2 + $0x2c2] sm:$0xff]  ;;  %v2334_v41 = vld [vmem:[#allocation2 + $0x2ea] sm:$0xff]  ;;  %v2335_v53 = vld [vmem:[#allocation2 + $0x2f2] sm:$0xff] }
 0x1f1   : > { %1909 = vst.msk [vmem:[#allocation4 + $0x40] sm:$0xff] %vm1377_vm7, %v1864_v63 }
 0x1f2   : > { %v1866_v7 = vpop.permute.xlu1 %1865  ;;  %2268 = vrot.lane.b32.xlu0 %v11491_v44, %s10252_s11 }
 0x1f3   : > { %1910 = vst.msk [vmem:[#allocation4 + $0x58] sm:$0xff] %vm1377_vm7, %v1866_v7 }
 0x1f4   : > { %2270 = vrot.lane.b32.xlu1 %v11496_v57, %s10252_s11  ;;  %v1868_v37 = vpop.permute.xlu0 %1867 }
 0x1f5   : > { %1911 = vst.msk [vmem:[#allocation4 + $0x70] sm:$0xff] %vm1377_vm7, %v1868_v37  ;;  %v2325_v37 = vld [vmem:[#allocation2 + $0x27a] sm:$0xff] }
 0x1f6   : > { %v1870_v0 = vpop.permute.xlu1 %1869  ;;  %2272 = vrot.lane.b32.xlu0 %v11501_v4, %s10252_s11  ;;  %3598 = vmatmul.mubr.bf16.gmra.mrb[16].mxu0 %v3250_v49  ;;  %v2326_v49 = vld [vmem:[#allocation2 + $0x28a] sm:$0xff]  ;;  %v11548_v11 = vpack.c.bf16 %v2325_v37, %v2324_v10  ;;  %v2336_v10 = vld [vmem:[#allocation2 + $0x302] sm:$0xff] }
 0x1f7   : > { %1912 = vst.msk [vmem:[#allocation4 + $0x88] sm:$0xff] %vm1377_vm7, %v1870_v0  ;;  %3605 = vmatprep.mubr.bf16.mxu0 %v3254_v23  ;;  %v2327_v0 = vld [vmem:[#allocation2 + $0x292] sm:$0xff]  ;;  %v2337_v37 = vld [vmem:[#allocation2 + $0x30a] sm:$0xff] }
 0x1f8   : > { %2274 = vrot.lane.b32.xlu1 %v11506_v25, %s10252_s11  ;;  %v1872_v24 = vpop.permute.xlu0 %1871  ;;  %v3256_v23 = vld [vmem:[#allocation4 + $0x90] sm:$0xff]  ;;  %v11553_v33 = vpack.c.bf16 %v2327_v0, %v2326_v49  ;;  %v2338_v0 = vld [vmem:[#allocation2 + $0x31a] sm:$0xff] }
 0x1f9   : > { %1913 = vst.msk [vmem:[#allocation4 + $0xa0] sm:$0xff] %vm1377_vm7, %v1872_v24  ;;  %v2328_v24 = vld [vmem:[#allocation2 + $0x2a2] sm:$0xff] }
 0x1fa   : > { %v1874_v36 = vpop.permute.xlu1 %1873  ;;  %2372 = vrot.lane.b32.xlu0 %v2340_v9, %s10253_s12  ;;  %v11558_v59 = vpack.c.bf16 %v2329_v22, %v2328_v24 }
 0x1fb   : > { %1914 = vst.msk [vmem:[#allocation4 + $0xb8] sm:$0xff] %vm1377_vm7, %v1874_v36 }
 0x1fc   : > { %2374 = vrot.lane.b32.xlu1 %v11514_v21, %s10253_s12  ;;  %v1876_v38 = vpop.permute.xlu0 %1875 }
 0x1fd   : > { %1915 = vst.msk [vmem:[#allocation4 + $0xd0] sm:$0xff] %vm1377_vm7, %v1876_v38 }
 0x1fe   : > { %v1878_v46 = vpop.permute.xlu1 %1877  ;;  %2376 = vrot.lane.b32.xlu0 %v11518_v48, %s10253_s12  ;;  %3606 = vmatmul.mubr.bf16.gmra.mrb[20].mxu0 %v3253_v13  ;;  %v2333_v13 = vld [vmem:[#allocation2 + $0x2da] sm:$0xff] }
 0x1ff   : > { %1916 = vst.msk [vmem:[#allocation4 + $0xe8] sm:$0xff] %vm1377_vm7, %v1878_v46  ;;  %3613 = vmatprep.mubr.bf16.mxu0 %v3257_v26  ;;  %v11563_v46 = vpack.c.bf16 %v2331_v15, %v2330_v60  ;;  %v3266_v15 = vld [vmem:[#allocation4 + $0xe0] sm:$0xff] }
 0x200   : > { %2378 = vrot.lane.b32.xlu1 %v11523_v51, %s10253_s12  ;;  %v1880_v63 = vpop.permute.xlu0 %1879 }
 0x201   : > { %1917 = vst.msk [vmem:[#allocation4 + $0x100] sm:$0xff] %vm1377_vm7, %v1880_v63  ;;  %v3259_v63 = vld [vmem:[#allocation4 + $0xa8] sm:$0xff] }
 0x202   : > { %v1882_v7 = vpop.permute.xlu1 %1881  ;;  %2380 = vrot.lane.b32.xlu0 %v11528_v32, %s10253_s12 }
 0x203   : > { %1918 = vst.msk [vmem:[#allocation4 + $0x118] sm:$0xff] %vm1377_vm7, %v1882_v7  ;;  %v11568_v7 = vpack.c.bf16 %v2333_v13, %v2332_v5 }
 0x204   : > { %2382 = vrot.lane.b32.xlu1 %v11533_v55, %s10253_s12  ;;  %v1884_v19 = vpop.permute.xlu0 %1883 }
 0x205   : > { %1919 = vst.msk [vmem:[#allocation4 + $0x130] sm:$0xff] %vm1377_vm7, %v1884_v19  ;;  %v11573_v19 = vpack.c.bf16 %v2335_v53, %v2334_v41  ;;  %v3269_v53 = vld [vmem:[#allocation4 + $0xf8] sm:$0xff] }
 0x206   : > { %v1886_v9 = vpop.permute.xlu1 %1885  ;;  %2384 = vrot.lane.b32.xlu0 %v11538_v8, %s10253_s12  ;;  %3614 = vmatmul.mubr.bf16.gmra.mrb[24].mxu0 %v3256_v23  ;;  %v2339_v23 = vld [vmem:[#allocation2 + $0x322] sm:$0xff] }
 0x207   : > { %1920 = vst.msk [vmem:[#allocation4 + $0x148] sm:$0xff] %vm1377_vm7, %v1886_v9  ;;  %3621 = vmatprep.mubr.bf16.mxu0 %v3260_v12  ;;  %v11578_v12 = vpack.c.bf16 %v2337_v37, %v2336_v10  ;;  %v11583_v24 = vpack.c.bf16 %v2339_v23, %v2338_v0  ;;  %v2483_v37 = vld [vmem:[#allocation2 + $0x330] sm:$0xff] }
 0x208   : > { %2386 = vrot.lane.b32.xlu1 %v11543_v43, %s10253_s12  ;;  %v1888_v36 = vpop.permute.xlu0 %1887 }
 0x209   : > { %1921 = vst.msk [vmem:[#allocation4 + $0x160] sm:$0xff] %vm1377_vm7, %v1888_v36  ;;  %v3262_v36 = vld [vmem:[#allocation4 + $0xc0] sm:$0xff] }
 0x20a   : > { %v1890_v38 = vpop.permute.xlu1 %1889  ;;  %2388 = vrot.lane.b32.xlu0 %v11548_v11, %s10253_s12 }
 0x20b   : > { %1922 = vst.msk [vmem:[#allocation4 + $0x178] sm:$0xff] %vm1377_vm7, %v1890_v38 }
 0x20c   : > { %2390 = vrot.lane.b32.xlu1 %v11553_v33, %s10253_s12  ;;  %v1988_v26 = vpop.permute.xlu0 %1987 }
 0x20d   : > { %2035 = vst.msk [vmem:[#allocation4 + $0x10] sm:$0xff] %vm972_vm3, %v1988_v26  ;;  %v3265_v26 = vld [vmem:[#allocation4 + $0xd8] sm:$0xff] }
 0x20e   : > { %v1990_v3 = vpop.permute.xlu1 %1989  ;;  %2392 = vrot.lane.b32.xlu0 %v11558_v59, %s10253_s12  ;;  %3622 = vmatmul.mubr.bf16.gmra.mrb[28].mxu0 %v3259_v63  ;;  %v3268_v63 = vld [vmem:[#allocation4 + $0xf0] sm:$0xff] }
 0x20f   : > { %2036 = vst.msk [vmem:[#allocation4 + $0x28] sm:$0xff] %vm972_vm3, %v1990_v3  ;;  %3629 = vmatprep.mubr.bf16.mxu0 %v3263_v2  ;;  %v3271_v2 = vld [vmem:[#allocation4 + $0x108] sm:$0xff] }
 0x210   : > { %2394 = vrot.lane.b32.xlu1 %v11563_v46, %s10253_s12  ;;  %v1992_v49 = vpop.permute.xlu0 %1991 }
 0x211   : > { %2037 = vst.msk [vmem:[#allocation4 + $0x40] sm:$0xff] %vm972_vm3, %v1992_v49  ;;  %v2484_v49 = vld [vmem:[#allocation2 + $0x338] sm:$0xff] }
 0x212   : > { %v1994_v9 = vpop.permute.xlu1 %1993  ;;  %2396 = vrot.lane.b32.xlu0 %v11568_v7, %s10253_s12 }
 0x213   : > { %2038 = vst.msk [vmem:[#allocation4 + $0x58] sm:$0xff] %vm972_vm3, %v1994_v9  ;;  %v3278_v9 = vld [vmem:[#allocation4 + $0x140] sm:$0xff] }
 0x214   : > { %2398 = vrot.lane.b32.xlu1 %v11573_v19, %s10253_s12  ;;  %v1996_v22 = vpop.permute.xlu0 %1995 }
 0x215   : > { %2039 = vst.msk [vmem:[#allocation4 + $0x70] sm:$0xff] %vm972_vm3, %v1996_v22  ;;  %v3277_v22 = vld [vmem:[#allocation4 + $0x138] sm:$0xff] }
 0x216   : > { %v1998_v60 = vpop.permute.xlu1 %1997  ;;  %2400 = vrot.lane.b32.xlu0 %v11578_v12, %s10253_s12  ;;  %3630 = vmatmul.mubr.bf16.gmra.mrb[32].mxu0 %v3262_v36 }
 0x217   : > { %2040 = vst.msk [vmem:[#allocation4 + $0x88] sm:$0xff] %vm972_vm3, %v1998_v60  ;;  %3637 = vmatprep.mubr.bf16.mxu0 %v3266_v15  ;;  %v3281_v60 = vld [vmem:[#allocation4 + $0x158] sm:$0xff]  ;;  %v3280_v15 = vld [vmem:[#allocation4 + $0x150] sm:$0xff] }
 0x218   : > { %2402 = vrot.lane.b32.xlu1 %v11583_v24, %s10253_s12  ;;  %v2000_v38 = vpop.permute.xlu0 %1999 }
 0x219   : > { %2041 = vst.msk [vmem:[#allocation4 + $0xa0] sm:$0xff] %vm972_vm3, %v2000_v38 }
 0x21a   : > { %v2002_v5 = vpop.permute.xlu1 %2001  ;;  %2517 = vrot.lane.b32.xlu0 %v11322_v45, %s10254_s13 }
 0x21b   : > { %2042 = vst.msk [vmem:[#allocation4 + $0xb8] sm:$0xff] %vm972_vm3, %v2002_v5  ;;  %v3283_v5 = vld [vmem:[#allocation4 + $0x168] sm:$0xff] }
 0x21c   : > { %2519 = vrot.lane.b32.xlu1 %v11328_v27, %s10254_s13  ;;  %v2004_v13 = vpop.permute.xlu0 %2003 }
 0x21d   : > { %2043 = vst.msk [vmem:[#allocation4 + $0xd0] sm:$0xff] %vm972_vm3, %v2004_v13 }
 0x21e   : > { %v2006_v41 = vpop.permute.xlu1 %2005  ;;  %2521 = vrot.lane.b32.xlu0 %v11335_v1, %s10254_s13  ;;  %3638 = vmatmul.mubr.bf16.gmra.mrb[36].mxu0 %v3265_v26  ;;  %v2612_v26 = vld [vmem:[#allocation2 + $0x339] sm:$0xff] }
 0x21f   : > { %2044 = vst.msk [vmem:[#allocation4 + $0xe8] sm:$0xff] %vm972_vm3, %v2006_v41  ;;  %3645 = vmatprep.mubr.bf16.mxu0 %v3269_v53 }
 0x220   : > { %2523 = vrot.lane.b32.xlu1 %v11342_v16, %s10254_s13  ;;  %v2008_v45 = vpop.permute.xlu0 %2007  ;;  %v3272_v16 = vld [vmem:[#allocation4 + $0x110] sm:$0xff] }
 0x221   : > { %2045 = vst.msk [vmem:[#allocation4 + $0x100] sm:$0xff] %vm972_vm3, %v2008_v45 }
 0x222   : > { %v2010_v27 = vpop.permute.xlu1 %2009  ;;  %2525 = vrot.lane.b32.xlu0 %v11349_v50, %s10254_s13 }
 0x223   : > { %2046 = vst.msk [vmem:[#allocation4 + $0x118] sm:$0xff] %vm972_vm3, %v2010_v27  ;;  %v2740_v27 = vld [vmem:[#allocation2 + $0x33a] sm:$0xff] }
 0x224   : > { %2527 = vrot.lane.b32.xlu1 %v11356_v56, %s10254_s13  ;;  %v2012_v1 = vpop.permute.xlu0 %2011 }
 0x225   : > { %2047 = vst.msk [vmem:[#allocation4 + $0x130] sm:$0xff] %vm972_vm3, %v2012_v1 }
 0x226   : > { %v2014_v3 = vpop.permute.xlu1 %2013  ;;  %2529 = vrot.lane.b32.xlu0 %v11363_v62, %s10254_s13  ;;  %3646 = vmatmul.mubr.bf16.gmra.mrb[40].mxu0 %v3268_v63 }
 0x227   : > { %2048 = vst.msk [vmem:[#allocation4 + $0x148] sm:$0xff] %vm972_vm3, %v2014_v3  ;;  %3653 = vmatprep.mubr.bf16.mxu0 %v3272_v16  ;;  %v2840_v3 = vld [vmem:[#allocation2 + $0x1f8] sm:$0xff]  ;;  %v2841_v16 = vld [vmem:[#allocation2 + $0x200] sm:$0xff] }
 0x228   : > { %2531 = vrot.lane.b32.xlu1 %v11370_v14, %s10254_s13  ;;  %v2016_v50 = vpop.permute.xlu0 %2015  ;;  %v3275_v14 = vld [vmem:[#allocation4 + $0x128] sm:$0xff] }
 0x229   : > { %2049 = vst.msk [vmem:[#allocation4 + $0x160] sm:$0xff] %vm972_vm3, %v2016_v50 }
 0x22a   : > { %v2018_v56 = vpop.permute.xlu1 %2017  ;;  %2533 = vrot.lane.b32.xlu0 %v11377_v17, %s10254_s13 }
 0x22b   : > { %2050 = vst.msk [vmem:[#allocation4 + $0x178] sm:$0xff] %vm972_vm3, %v2018_v56  ;;  %v2843_v56 = vld [vmem:[#allocation2 + $0x218] sm:$0xff] }
 0x22c   : > { %2535 = vrot.lane.b32.xlu1 %v11384_v54, %s10254_s13  ;;  %v2117_v62 = vpop.permute.xlu0 %2116 }
 0x22d   : > { %2164 = vst.msk [vmem:[#allocation4 + $0x180] sm:$0xff] %vm972_vm3, %v2117_v62  ;;  %v2871_v62 = vpack.c.bf16 %v2841_v16, %v2840_v3  ;;  %v2984_v3 = vld [vmem:[#allocation2 + $0x1f9] sm:$0xff]  ;;  %v2985_v16 = vld [vmem:[#allocation2 + $0x201] sm:$0xff] }
 0x22e   : > { %v2119_v10 = vpop.permute.xlu1 %2118  ;;  %2537 = vrot.lane.b32.xlu0 %v11390_v28, %s10254_s13  ;;  %3654 = vmatmul.mubr.bf16.gmra.mrb[44].mxu0 %v3271_v2  ;;  %v11633_v28 = vpack.c.bf16 %v2484_v49, %v2483_v37  ;;  %v2846_v37 = vld [vmem:[#allocation2 + $0x240] sm:$0xff]  ;;  %v2847_v49 = vld [vmem:[#allocation2 + $0x248] sm:$0xff] }
 0x22f   : > { %2165 = vst.msk [vmem:[#allocation4 + $0x198] sm:$0xff] %vm972_vm3, %v2119_v10  ;;  %3661 = vmatprep.mubr.bf16.mxu0 %v3275_v14  ;;  %v2844_v10 = vld [vmem:[#allocation2 + $0x228] sm:$0xff]  ;;  %v2845_v14 = vld [vmem:[#allocation2 + $0x230] sm:$0xff] }
 0x230   : > { %2539 = vrot.lane.b32.xlu1 %v11397_v18, %s10254_s13  ;;  %v2121_v17 = vpop.permute.xlu0 %2120  ;;  %v3274_v18 = vld [vmem:[#allocation4 + $0x120] sm:$0xff] }
 0x231   : > { %2166 = vst.msk [vmem:[#allocation4 + $0x1b0] sm:$0xff] %vm972_vm3, %v2121_v17 }
 0x232   : > { %v2123_v54 = vpop.permute.xlu1 %2122  ;;  %2541 = vrot.lane.b32.xlu0 %v11404_v30, %s10254_s13 }
 0x233   : > { %2167 = vst.msk [vmem:[#allocation4 + $0x1c8] sm:$0xff] %vm972_vm3, %v2123_v54  ;;  %v2873_v54 = vpack.c.bf16 %v2845_v14, %v2844_v10  ;;  %v2988_v10 = vld [vmem:[#allocation2 + $0x229] sm:$0xff]  ;;  %v2989_v14 = vld [vmem:[#allocation2 + $0x231] sm:$0xff] }
 0x234   : > { %2543 = vrot.lane.b32.xlu1 %v11411_v42, %s10254_s13  ;;  %v2125_v0 = vpop.permute.xlu0 %2124 }
 0x235   : > { %2168 = vst.msk [vmem:[#allocation4 + $0x1e0] sm:$0xff] %vm972_vm3, %v2125_v0 }
 0x236   : > { %v2127_v23 = vpop.permute.xlu1 %2126  ;;  %2545 = vrot.lane.b32.xlu0 %v11417_v34, %s10254_s13  ;;  %3662 = vmatmul.mubr.bf16.gmra.mrb[48].mxu0 %v3274_v18  ;;  %v2848_v18 = vld [vmem:[#allocation2 + $0x258] sm:$0xff] }
 0x237   : > { %2169 = vst.msk [vmem:[#allocation4 + $0x1f8] sm:$0xff] %vm972_vm3, %v2127_v23  ;;  %3669 = vmatprep.mubr.bf16.mxu0 %v3278_v9  ;;  %v2849_v23 = vld [vmem:[#allocation2 + $0x260] sm:$0xff] }
 0x238   : > { %2547 = vrot.lane.b32.xlu1 %v11633_v28, %s10254_s13  ;;  %v2129_v30 = vpop.permute.xlu0 %2128 }
 0x239   : > { %2170 = vst.msk [vmem:[#allocation4 + $0x210] sm:$0xff] %vm972_vm3, %v2129_v30  ;;  %v2874_v30 = vpack.c.bf16 %v2847_v49, %v2846_v37  ;;  %v2990_v37 = vld [vmem:[#allocation2 + $0x241] sm:$0xff]  ;;  %v2991_v49 = vld [vmem:[#allocation2 + $0x249] sm:$0xff] }
 0x23a   : > { %v2131_v42 = vpop.permute.xlu1 %2130  ;;  %2645 = vrot.lane.b32.xlu0 %v11427_v47, %s10251_s10 }
 0x23b   : > { %2171 = vst.msk [vmem:[#allocation4 + $0x228] sm:$0xff] %vm972_vm3, %v2131_v42  ;;  %v2850_v42 = vld [vmem:[#allocation2 + $0x270] sm:$0xff] }
 0x23c   : > { %2647 = vrot.lane.b32.xlu1 %v11432_v52, %s10251_s10  ;;  %v2133_v34 = vpop.permute.xlu0 %2132 }
 0x23d   : > { %2172 = vst.msk [vmem:[#allocation4 + $0x240] sm:$0xff] %vm972_vm3, %v2133_v34  ;;  %v2851_v34 = vld [vmem:[#allocation2 + $0x278] sm:$0xff] }
 0x23e   : > { %v2135_v36 = vpop.permute.xlu1 %2134  ;;  %2649 = vrot.lane.b32.xlu0 %v11438_v61, %s10251_s10  ;;  %3670 = vmatmul.mubr.bf16.gmra.mrb[52].mxu0 %v3277_v22  ;;  %v2875_v22 = vpack.c.bf16 %v2849_v23, %v2848_v18  ;;  %v2993_v18 = vld [vmem:[#allocation2 + $0x261] sm:$0xff] }
 0x23f   : > { %2173 = vst.msk [vmem:[#allocation4 + $0x258] sm:$0xff] %vm972_vm3, %v2135_v36  ;;  %3677 = vmatprep.mubr.bf16.mxu0 %v3281_v60  ;;  %v2852_v60 = vld [vmem:[#allocation2 + $0x288] sm:$0xff] }
 0x240   : > { %2651 = vrot.lane.b32.xlu1 %v11444_v20, %s10251_s10  ;;  %v2137_v47 = vpop.permute.xlu0 %2136  ;;  %v3284_v20 = vld [vmem:[#allocation4 + $0x170] sm:$0xff] }
 0x241   : > { %2174 = vst.msk [vmem:[#allocation4 + $0x270] sm:$0xff] %vm972_vm3, %v2137_v47  ;;  %v2853_v47 = vld [vmem:[#allocation2 + $0x290] sm:$0xff] }
 0x242   : > { %v2139_v52 = vpop.permute.xlu1 %2138  ;;  %2653 = vrot.lane.b32.xlu0 %v11450_v31, %s10251_s10 }
 0x243   : > { %2175 = vst.msk [vmem:[#allocation4 + $0x288] sm:$0xff] %vm972_vm3, %v2139_v52 }
 0x244   : > { %2655 = vrot.lane.b32.xlu1 %v11456_v58, %s10251_s10  ;;  %v2141_v61 = vpop.permute.xlu0 %2140 }
 0x245   : > { %2176 = vst.msk [vmem:[#allocation4 + $0x2a0] sm:$0xff] %vm972_vm3, %v2141_v61  ;;  %v2876_v61 = vpack.c.bf16 %v2851_v34, %v2850_v42  ;;  %v2994_v42 = vld [vmem:[#allocation2 + $0x271] sm:$0xff]  ;;  %v2995_v34 = vld [vmem:[#allocation2 + $0x279] sm:$0xff] }
 0x246   : > { %v2143_v38 = vpop.permute.xlu1 %2142  ;;  %2657 = vrot.lane.b32.xlu0 %v11462_v6, %s10251_s10  ;;  %3678 = vmatmul.mubr.bf16.gmra.mrb[56].mxu0 %v3280_v15  ;;  %v2854_v15 = vld [vmem:[#allocation2 + $0x2a0] sm:$0xff] }
 0x247   : > { %2177 = vst.msk [vmem:[#allocation4 + $0x2b8] sm:$0xff] %vm972_vm3, %v2143_v38  ;;  %3685 = vmatprep.mubr.bf16.mxu0 %v3284_v20  ;;  %v2855_v38 = vld [vmem:[#allocation2 + $0x2a8] sm:$0xff]  ;;  %v2877_v20 = vpack.c.bf16 %v2853_v47, %v2852_v60  ;;  %v2997_v60 = vld [vmem:[#allocation2 + $0x291] sm:$0xff] }
 0x248   : > { %2659 = vrot.lane.b32.xlu1 %v11468_v29, %s10251_s10  ;;  %v2145_v31 = vpop.permute.xlu0 %2144 }
 0x249   : > { %2178 = vst.msk [vmem:[#allocation4 + $0x2d0] sm:$0xff] %vm972_vm3, %v2145_v31 }
 0x24a   : > { %v2147_v58 = vpop.permute.xlu1 %2146  ;;  %2661 = vrot.lane.b32.xlu0 %v11474_v39, %s10251_s10  ;;  %v2611_v39 = vld [vmem:[#allocation2 + $0x331] sm:$0xff] }
 0x24b   : > { %2179 = vst.msk [vmem:[#allocation4 + $0x2e8] sm:$0xff] %vm972_vm3, %v2147_v58  ;;  %v2856_v58 = vld [vmem:[#allocation2 + $0x2b8] sm:$0xff] }
 0x24c   : > { %2663 = vrot.lane.b32.xlu1 %v11480_v35, %s10251_s10  ;;  %v2245_v6 = vpop.permute.xlu0 %2244 }
 0x24d   : > { %2292 = vst.msk [vmem:[#allocation4 + $0x180] sm:$0xff] %vm1101_vm4, %v2245_v6  ;;  %v2857_v6 = vld [vmem:[#allocation2 + $0x2c0] sm:$0xff] }
 0x24e   : > { %v2247_v13 = vpop.permute.xlu1 %2246  ;;  %2665 = vrot.lane.b32.xlu0 %v11486_v40, %s10251_s10  ;;  %3686 = vmatmul.mubr.bf16.gmra.mrb[60].mxu0 %v3283_v5  ;;  %v11683_v40 = vpack.c.bf16 %v2612_v26, %v2611_v39  ;;  %v2879_v39 = vpack.c.bf16 %v2857_v6, %v2856_v58  ;;  %v2858_v26 = vld [vmem:[#allocation2 + $0x2d0] sm:$0xff]  ;;  %v3001_v58 = vld [vmem:[#allocation2 + $0x2c1] sm:$0xff] }
 0x24f   : > { %2293 = vst.msk [vmem:[#allocation4 + $0x198] sm:$0xff] %vm1101_vm4, %v2247_v13  ;;  %v11767_v13 = vld [vmem:[%s15324_s1 + $0x80] sm:$0xff]  }
 0x250   : > { %2667 = vrot.lane.b32.xlu1 %v11491_v44, %s10251_s10  ;;  %v2249_v29 = vpop.permute.xlu0 %2248  ;;  %8927 = vmatprep.subr.bf16.mxu1 %v11767_v13 }
 0x251   : > { %2294 = vst.msk [vmem:[#allocation4 + $0x1b0] sm:$0xff] %vm1101_vm4, %v2249_v29  ;;  %v2878_v29 = vpack.c.bf16 %v2855_v38, %v2854_v15  ;;  %v2998_v15 = vld [vmem:[#allocation2 + $0x2a1] sm:$0xff]  ;;  %v2999_v38 = vld [vmem:[#allocation2 + $0x2a9] sm:$0xff] }
 0x252   : > { %v2251_v35 = vpop.permute.xlu1 %2250  ;;  %2669 = vrot.lane.b32.xlu0 %v11496_v57, %s10251_s10 }
 0x253   : > { %2295 = vst.msk [vmem:[#allocation4 + $0x1c8] sm:$0xff] %vm1101_vm4, %v2251_v35  ;;  %v2859_v35 = vld [vmem:[#allocation2 + $0x2d8] sm:$0xff] }
 0x254   : > { %2671 = vrot.lane.b32.xlu1 %v11501_v4, %s10251_s10  ;;  %v2253_v41 = vpop.permute.xlu0 %2252 }
 0x255   : > { %2296 = vst.msk [vmem:[#allocation4 + $0x1e0] sm:$0xff] %vm1101_vm4, %v2253_v41 }
 0x256   : > { %v2255_v44 = vpop.permute.xlu1 %2254  ;;  %2673 = vrot.lane.b32.xlu0 %v11506_v25, %s10251_s10 }
 0x257   : > { %2297 = vst.msk [vmem:[#allocation4 + $0x1f8] sm:$0xff] %vm1101_vm4, %v2255_v44  ;;  %v2860_v44 = vld [vmem:[#allocation2 + $0x2e8] sm:$0xff] }
 0x258   : > { %2675 = vrot.lane.b32.xlu1 %v11683_v40, %s10251_s10  ;;  %v2257_v57 = vpop.permute.xlu0 %2256 }
 0x259   : > { %2298 = vst.msk [vmem:[#allocation4 + $0x210] sm:$0xff] %vm1101_vm4, %v2257_v57  ;;  %v2861_v57 = vld [vmem:[#allocation2 + $0x2f0] sm:$0xff] }
 0x25a   : > { %v2259_v53 = vpop.permute.xlu1 %2258  ;;  %2773 = vrot.lane.b32.xlu0 %v11514_v21, %s10252_s11 }
 0x25b   : > { %2299 = vst.msk [vmem:[#allocation4 + $0x228] sm:$0xff] %vm1101_vm4, %v2259_v53 }
 0x25c   : > { %2775 = vrot.lane.b32.xlu1 %v11518_v48, %s10252_s11  ;;  %v2261_v4 = vpop.permute.xlu0 %2260 }
 0x25d   : > { %2300 = vst.msk [vmem:[#allocation4 + $0x240] sm:$0xff] %vm1101_vm4, %v2261_v4  ;;  %v2880_v4 = vpack.c.bf16 %v2859_v35, %v2858_v26  ;;  %v3003_v26 = vld [vmem:[#allocation2 + $0x2d9] sm:$0xff] }
 0x25e   : > { %v2263_v25 = vpop.permute.xlu1 %2262  ;;  %2777 = vrot.lane.b32.xlu0 %v11523_v51, %s10252_s11 }
 0x25f   : > { %2301 = vst.msk [vmem:[#allocation4 + $0x258] sm:$0xff] %vm1101_vm4, %v2263_v25  ;;  %v2881_v25 = vpack.c.bf16 %v2861_v57, %v2860_v44  ;;  %v3005_v44 = vld [vmem:[#allocation2 + $0x2f1] sm:$0xff] }
 0x260   : > { %2779 = vrot.lane.b32.xlu1 %v11528_v32, %s10252_s11  ;;  %v2265_v45 = vpop.permute.xlu0 %2264 }
 0x261   : > { %2302 = vst.msk [vmem:[#allocation4 + $0x270] sm:$0xff] %vm1101_vm4, %v2265_v45  ;;  %v2862_v45 = vld [vmem:[#allocation2 + $0x300] sm:$0xff] }
 0x262   : > { %v2267_v21 = vpop.permute.xlu1 %2266  ;;  %2781 = vrot.lane.b32.xlu0 %v11533_v55, %s10252_s11 }
 0x263   : > { %2303 = vst.msk [vmem:[#allocation4 + $0x288] sm:$0xff] %vm1101_vm4, %v2267_v21  ;;  %v2863_v21 = vld [vmem:[#allocation2 + $0x308] sm:$0xff] }
 0x264   : > { %2783 = vrot.lane.b32.xlu1 %v11538_v8, %s10252_s11  ;;  %v2269_v48 = vpop.permute.xlu0 %2268 }
 0x265   : > { %2304 = vst.msk [vmem:[#allocation4 + $0x2a0] sm:$0xff] %vm1101_vm4, %v2269_v48 }
 0x266   : > { %v2271_v51 = vpop.permute.xlu1 %2270  ;;  %2785 = vrot.lane.b32.xlu0 %v11543_v43, %s10252_s11 }
 0x267   : > { %2305 = vst.msk [vmem:[#allocation4 + $0x2b8] sm:$0xff] %vm1101_vm4, %v2271_v51  ;;  %v2864_v51 = vld [vmem:[#allocation2 + $0x318] sm:$0xff] }
 0x268   : > { %2787 = vrot.lane.b32.xlu1 %v11548_v11, %s10252_s11  ;;  %v2273_v32 = vpop.permute.xlu0 %2272 }
 0x269   : > { %2306 = vst.msk [vmem:[#allocation4 + $0x2d0] sm:$0xff] %vm1101_vm4, %v2273_v32  ;;  %v2865_v32 = vld [vmem:[#allocation2 + $0x320] sm:$0xff] }
 0x26a   : > { %v2275_v55 = vpop.permute.xlu1 %2274  ;;  %2789 = vrot.lane.b32.xlu0 %v11553_v33, %s10252_s11  ;;  %v2739_v33 = vld [vmem:[#allocation2 + $0x332] sm:$0xff] }
 0x26b   : > { %2307 = vst.msk [vmem:[#allocation4 + $0x2e8] sm:$0xff] %vm1101_vm4, %v2275_v55  ;;  %v2756_v1 = vpack.c.bf16 %v2740_v27, %v2739_v33  ;;  %v2868_v33 = vld [vmem:[#allocation2 + $0x348] sm:$0xff]  ;;  %v2869_v27 = vld [vmem:[#allocation2 + $0x350] sm:$0xff] }
 0x26c   : > { %2791 = vrot.lane.b32.xlu1 %v11558_v59, %s10252_s11  ;;  %v2373_v8 = vpop.permute.xlu0 %2372 }
 0x26d   : > { %2420 = vst.msk [vmem:[#allocation4 + $0x180] sm:$0xff] %vm1230_vm5, %v2373_v8 }
 0x26e   : > { %2421 = vst.msk [vmem:[#allocation4 + $0x188] sm:$0xff] %vm1232_vm6, %v2373_v8  ;;  %v2375_v43 = vpop.permute.xlu1 %2374  ;;  %2793 = vrot.lane.b32.xlu0 %v11563_v46, %s10252_s11  ;;  %v2838_v46 = vld [vmem:[#allocation2 + $0x1e0] sm:$0xff]  ;;  %v2882_v8 = vpack.c.bf16 %v2863_v21, %v2862_v45 }
 0x26f   : > { %2422 = vst.msk [vmem:[#allocation4 + $0x198] sm:$0xff] %vm1230_vm5, %v2375_v43 }
 0x270   : > { %2423 = vst.msk [vmem:[#allocation4 + $0x1a0] sm:$0xff] %vm1232_vm6, %v2375_v43  ;;  %2795 = vrot.lane.b32.xlu1 %v11568_v7, %s10252_s11  ;;  %v2377_v11 = vpop.permute.xlu0 %2376  ;;  %v2839_v7 = vld [vmem:[#allocation2 + $0x1e8] sm:$0xff]  ;;  %v2883_v43 = vpack.c.bf16 %v2865_v32, %v2864_v51 }
 0x271   : > { %2424 = vst.msk [vmem:[#allocation4 + $0x1b0] sm:$0xff] %vm1230_vm5, %v2377_v11  ;;  %v3007_v51 = vld [vmem:[#allocation2 + $0x309] sm:$0xff] }
 0x272   : > { %2425 = vst.msk [vmem:[#allocation4 + $0x1b8] sm:$0xff] %vm1232_vm6, %v2377_v11  ;;  %v2379_v59 = vpop.permute.xlu1 %2378  ;;  %2797 = vrot.lane.b32.xlu0 %v11573_v19, %s10252_s11  ;;  %v2870_v19 = vpack.c.bf16 %v2839_v7, %v2838_v46  ;;  %v2885_v46 = vpack.c.bf16 %v2869_v27, %v2868_v33  ;;  %v2982_v7 = vld [vmem:[#allocation2 + $0x1e1] sm:$0xff] }
 0x273   : > { %2426 = vst.msk [vmem:[#allocation4 + $0x1c8] sm:$0xff] %vm1230_vm5, %v2379_v59 }
 0x274   : > { %2427 = vst.msk [vmem:[#allocation4 + $0x1d0] sm:$0xff] %vm1232_vm6, %v2379_v59  ;;  %2799 = vrot.lane.b32.xlu1 %v11578_v12, %s10252_s11  ;;  %v2381_v63 = vpop.permute.xlu0 %2380  ;;  %v2842_v12 = vld [vmem:[#allocation2 + $0x210] sm:$0xff] }
 0x275   : > { %2428 = vst.msk [vmem:[#allocation4 + $0x1e0] sm:$0xff] %vm1230_vm5, %v2381_v63 }
 0x276   : > { %2429 = vst.msk [vmem:[#allocation4 + $0x1e8] sm:$0xff] %vm1232_vm6, %v2381_v63  ;;  %v2383_v50 = vpop.permute.xlu1 %2382  ;;  %2801 = vrot.lane.b32.xlu0 %v11583_v24, %s10252_s11  ;;  %v2872_v24 = vpack.c.bf16 %v2843_v56, %v2842_v12  ;;  %v3015_v12 = vpack.c.bf16 %v2985_v16, %v2984_v3  ;;  %v2986_v56 = vld [vmem:[#allocation2 + $0x211] sm:$0xff] }
 0x277   : > { %2430 = vst.msk [vmem:[#allocation4 + $0x1f8] sm:$0xff] %vm1230_vm5, %v2383_v50 }
 0x278   : > { %2431 = vst.msk [vmem:[#allocation4 + $0x200] sm:$0xff] %vm1232_vm6, %v2383_v50  ;;  %2803 = vrot.lane.b32.xlu1 %v2756_v1, %s10252_s11  ;;  %v2385_v2 = vpop.permute.xlu0 %2384  ;;  %v2983_v1 = vld [vmem:[#allocation2 + $0x1e9] sm:$0xff] }
 0x279   : > { %2432 = vst.msk [vmem:[#allocation4 + $0x210] sm:$0xff] %vm1230_vm5, %v2385_v2 }
 0x27a   : > { %2433 = vst.msk [vmem:[#allocation4 + $0x218] sm:$0xff] %vm1232_vm6, %v2385_v2  ;;  %v2387_v17 = vpop.permute.xlu1 %2386  ;;  %2902 = vrot.lane.b32.xlu0 %v2870_v19, %s10253_s12  ;;  %v3014_v19 = vpack.c.bf16 %v2983_v1, %v2982_v7  ;;  %v3013_v7 = vld [vmem:[#allocation2 + $0x351] sm:$0xff] }
 0x27b   : > { %2434 = vst.msk [vmem:[#allocation4 + $0x228] sm:$0xff] %vm1230_vm5, %v2387_v17 }
 0x27c   : > { %2435 = vst.msk [vmem:[#allocation4 + $0x230] sm:$0xff] %vm1232_vm6, %v2387_v17  ;;  %2904 = vrot.lane.b32.xlu1 %v2871_v62, %s10253_s12  ;;  %v2389_v0 = vpop.permute.xlu0 %2388  ;;  %v2987_v62 = vld [vmem:[#allocation2 + $0x219] sm:$0xff] }
 0x27d   : > { %2436 = vst.msk [vmem:[#allocation4 + $0x240] sm:$0xff] %vm1230_vm5, %v2389_v0 }
 0x27e   : > { %2437 = vst.msk [vmem:[#allocation4 + $0x248] sm:$0xff] %vm1232_vm6, %v2389_v0  ;;  %v2391_v9 = vpop.permute.xlu1 %2390  ;;  %2906 = vrot.lane.b32.xlu0 %v2872_v24, %s10253_s12  ;;  %v3016_v24 = vpack.c.bf16 %v2987_v62, %v2986_v56  ;;  %v2992_v0 = vld [vmem:[#allocation2 + $0x259] sm:$0xff] }
 0x27f   : > { %2438 = vst.msk [vmem:[#allocation4 + $0x258] sm:$0xff] %vm1230_vm5, %v2391_v9 }
 0x280   : > { %2439 = vst.msk [vmem:[#allocation4 + $0x260] sm:$0xff] %vm1232_vm6, %v2391_v9  ;;  %2908 = vrot.lane.b32.xlu1 %v2873_v54, %s10253_s12  ;;  %v2393_v36 = vpop.permute.xlu0 %2392  ;;  %v3018_v9 = vpack.c.bf16 %v2991_v49, %v2990_v37  ;;  %v3115_v37 = vld [vmem:[#allocation2 + $0x21a] sm:$0xff] }
 0x281   : > { %2440 = vst.msk [vmem:[#allocation4 + $0x270] sm:$0xff] %vm1230_vm5, %v2393_v36 }
 0x282   : > { %2441 = vst.msk [vmem:[#allocation4 + $0x278] sm:$0xff] %vm1232_vm6, %v2393_v36  ;;  %v2395_v52 = vpop.permute.xlu1 %2394  ;;  %2910 = vrot.lane.b32.xlu0 %v2874_v30, %s10253_s12  ;;  %v3019_v30 = vpack.c.bf16 %v2993_v18, %v2992_v0  ;;  %v2996_v36 = vld [vmem:[#allocation2 + $0x289] sm:$0xff]  ;;  %v3117_v0 = vld [vmem:[#allocation2 + $0x232] sm:$0xff] }
 0x283   : > { %2442 = vst.msk [vmem:[#allocation4 + $0x288] sm:$0xff] %vm1230_vm5, %v2395_v52 }
 0x284   : > { %2443 = vst.msk [vmem:[#allocation4 + $0x290] sm:$0xff] %vm1232_vm6, %v2395_v52  ;;  %2912 = vrot.lane.b32.xlu1 %v2875_v22, %s10253_s12  ;;  %v2397_v31 = vpop.permute.xlu0 %2396  ;;  %v3020_v52 = vpack.c.bf16 %v2995_v34, %v2994_v42  ;;  %v3118_v34 = vld [vmem:[#allocation2 + $0x242] sm:$0xff] }
 0x285   : > { %2444 = vst.msk [vmem:[#allocation4 + $0x2a0] sm:$0xff] %vm1230_vm5, %v2397_v31 }
 0x286   : > { %2445 = vst.msk [vmem:[#allocation4 + $0x2a8] sm:$0xff] %vm1232_vm6, %v2397_v31  ;;  %v2399_v5 = vpop.permute.xlu1 %2398  ;;  %2914 = vrot.lane.b32.xlu0 %v2876_v61, %s10253_s12  ;;  %v3021_v61 = vpack.c.bf16 %v2997_v60, %v2996_v36  ;;  %v3000_v31 = vld [vmem:[#allocation2 + $0x2b9] sm:$0xff] }
 0x287   : > { %2446 = vst.msk [vmem:[#allocation4 + $0x2b8] sm:$0xff] %vm1230_vm5, %v2399_v5 }
 0x288   : > { %2447 = vst.msk [vmem:[#allocation4 + $0x2c0] sm:$0xff] %vm1232_vm6, %v2399_v5  ;;  %2916 = vrot.lane.b32.xlu1 %v2877_v20, %s10253_s12  ;;  %v2401_v41 = vpop.permute.xlu0 %2400  ;;  %v3022_v5 = vpack.c.bf16 %v2999_v38, %v2998_v15 }
 0x289   : > { %2448 = vst.msk [vmem:[#allocation4 + $0x2d0] sm:$0xff] %vm1230_vm5, %v2401_v41 }
 0x28a   : > { %2449 = vst.msk [vmem:[#allocation4 + $0x2d8] sm:$0xff] %vm1232_vm6, %v2401_v41  ;;  %v2403_v53 = vpop.permute.xlu1 %2402  ;;  %2918 = vrot.lane.b32.xlu0 %v2878_v29, %s10253_s12  ;;  %v3023_v29 = vpack.c.bf16 %v3001_v58, %v3000_v31  ;;  %v3004_v41 = vld [vmem:[#allocation2 + $0x2e9] sm:$0xff]  ;;  %v3123_v31 = vld [vmem:[#allocation2 + $0x27a] sm:$0xff] }
 0x28b   : > { %2450 = vst.msk [vmem:[#allocation4 + $0x2e8] sm:$0xff] %vm1230_vm5, %v2403_v53  ;;  %v3025_v21 = vpack.c.bf16 %v3005_v44, %v3004_v41 }
 0x28c   : > { %2451 = vst.msk [vmem:[#allocation4 + $0x2f0] sm:$0xff] %vm1232_vm6, %v2403_v53  ;;  %2920 = vrot.lane.b32.xlu1 %v2879_v39, %s10253_s12  ;;  %v2518_v48 = vpop.permute.xlu0 %2517  ;;  %v3002_v39 = vld [vmem:[#allocation2 + $0x2d1] sm:$0xff] }
 0x28d   : > { %2565 = vst.msk [vmem:[#allocation4 + $0x188] sm:$0xff] %vm1377_vm7, %v2518_v48  ;;  %v3006_v48 = vld [vmem:[#allocation2 + $0x301] sm:$0xff] }
 0x28e   : > { %v2520_v55 = vpop.permute.xlu1 %2519  ;;  %2922 = vrot.lane.b32.xlu0 %v2880_v4, %s10253_s12  ;;  %v3026_v33 = vpack.c.bf16 %v3007_v51, %v3006_v48  ;;  %v3128_v48 = vld [vmem:[#allocation2 + $0x2ba] sm:$0xff]  ;;  %v3129_v51 = vld [vmem:[#allocation2 + $0x2c2] sm:$0xff] }
 0x28f   : > { %2566 = vst.msk [vmem:[#allocation4 + $0x1a0] sm:$0xff] %vm1377_vm7, %v2520_v55 }
 0x290   : > { %2924 = vrot.lane.b32.xlu1 %v2881_v25, %s10253_s12  ;;  %v2522_v11 = vpop.permute.xlu0 %2521  ;;  %v3024_v25 = vpack.c.bf16 %v3003_v26, %v3002_v39 }
 0x291   : > { %2567 = vst.msk [vmem:[#allocation4 + $0x1b8] sm:$0xff] %vm1377_vm7, %v2522_v11 }
 0x292   : > { %v2524_v59 = vpop.permute.xlu1 %2523  ;;  %2926 = vrot.lane.b32.xlu0 %v2882_v8, %s10253_s12  ;;  %v3008_v8 = vld [vmem:[#allocation2 + $0x319] sm:$0xff] }
 0x293   : > { %2568 = vst.msk [vmem:[#allocation4 + $0x1d0] sm:$0xff] %vm1377_vm7, %v2524_v59 }
 0x294   : > { %2928 = vrot.lane.b32.xlu1 %v2883_v43, %s10253_s12  ;;  %v2526_v63 = vpop.permute.xlu0 %2525  ;;  %v3009_v43 = vld [vmem:[#allocation2 + $0x321] sm:$0xff] }
 0x295   : > { %2569 = vst.msk [vmem:[#allocation4 + $0x1e8] sm:$0xff] %vm1377_vm7, %v2526_v63  ;;  %v3027_v27 = vpack.c.bf16 %v3009_v43, %v3008_v8  ;;  %v3151_v8 = vpack.c.bf16 %v3129_v51, %v3128_v48  ;;  %v3130_v43 = vld [vmem:[#allocation2 + $0x2d2] sm:$0xff]  ;;  %v4115_v51 = vld [vmem:[#allocation3 + $0x20] sm:$0xff] }
 0x296   : > { %v2528_v50 = vpop.permute.xlu1 %2527  ;;  %2930 = vrot.lane.b32.xlu0 %v11633_v28, %s10253_s12  ;;  %v3017_v28 = vpack.c.bf16 %v2989_v14, %v2988_v10  ;;  %v3113_v10 = vld [vmem:[#allocation2 + $0x202] sm:$0xff] }
 0x297   : > { %2570 = vst.msk [vmem:[#allocation4 + $0x200] sm:$0xff] %vm1377_vm7, %v2528_v50 }
 0x298   : > { %2932 = vrot.lane.b32.xlu1 %v2885_v46, %s10253_s12  ;;  %v2530_v2 = vpop.permute.xlu0 %2529  ;;  %v3012_v46 = vld [vmem:[#allocation2 + $0x349] sm:$0xff] }
 0x299   : > { %2571 = vst.msk [vmem:[#allocation4 + $0x218] sm:$0xff] %vm1377_vm7, %v2530_v2  ;;  %v3029_v50 = vpack.c.bf16 %v3013_v7, %v3012_v46  ;;  %v3112_v2 = vld [vmem:[#allocation2 + $0x1fa] sm:$0xff] }
 0x29a   : > { %v2532_v17 = vpop.permute.xlu1 %2531  ;;  %3046 = vrot.lane.b32.xlu0 %v3014_v19, %s10254_s13  ;;  %v3110_v19 = vld [vmem:[#allocation2 + $0x1e2] sm:$0xff] }
 0x29b   : > { %2572 = vst.msk [vmem:[#allocation4 + $0x230] sm:$0xff] %vm1377_vm7, %v2532_v17 }
 0x29c   : > { %3048 = vrot.lane.b32.xlu1 %v3015_v12, %s10254_s13  ;;  %v2534_v54 = vpop.permute.xlu0 %2533  ;;  %v3111_v12 = vld [vmem:[#allocation2 + $0x1ea] sm:$0xff] }
 0x29d   : > { %2573 = vst.msk [vmem:[#allocation4 + $0x248] sm:$0xff] %vm1377_vm7, %v2534_v54  ;;  %v3142_v17 = vpack.c.bf16 %v3111_v12, %v3110_v19  ;;  %v3116_v54 = vld [vmem:[#allocation2 + $0x22a] sm:$0xff]  ;;  %v3134_v12 = vld [vmem:[#allocation2 + $0x302] sm:$0xff] }
 0x29e   : > { %v2536_v23 = vpop.permute.xlu1 %2535  ;;  %3050 = vrot.lane.b32.xlu0 %v3016_v24, %s10254_s13  ;;  %v3143_v24 = vpack.c.bf16 %v3113_v10, %v3112_v2  ;;  %v3145_v42 = vpack.c.bf16 %v3117_v0, %v3116_v54  ;;  %v3136_v10 = vld [vmem:[#allocation2 + $0x31a] sm:$0xff]  ;;  %v3140_v0 = vld [vmem:[#allocation2 + $0x34a] sm:$0xff] }
 0x29f   : > { %2574 = vst.msk [vmem:[#allocation4 + $0x260] sm:$0xff] %vm1377_vm7, %v2536_v23 }
 0x2a0   : > { %3052 = vrot.lane.b32.xlu1 %v3017_v28, %s10254_s13  ;;  %v2538_v22 = vpop.permute.xlu0 %2537  ;;  %v3114_v28 = vld [vmem:[#allocation2 + $0x212] sm:$0xff] }
 0x2a1   : > { %2575 = vst.msk [vmem:[#allocation4 + $0x278] sm:$0xff] %vm1377_vm7, %v2538_v22  ;;  %v3119_v22 = vld [vmem:[#allocation2 + $0x24a] sm:$0xff] }
 0x2a2   : > { %v2540_v47 = vpop.permute.xlu1 %2539  ;;  %3054 = vrot.lane.b32.xlu0 %v3018_v9, %s10254_s13  ;;  %v3146_v15 = vpack.c.bf16 %v3119_v22, %v3118_v34 }
 0x2a3   : > { %2576 = vst.msk [vmem:[#allocation4 + $0x290] sm:$0xff] %vm1377_vm7, %v2540_v47  ;;  %v3120_v47 = vld [vmem:[#allocation2 + $0x25a] sm:$0xff] }
 0x2a4   : > { %3056 = vrot.lane.b32.xlu1 %v3019_v30, %s10254_s13  ;;  %v2542_v20 = vpop.permute.xlu0 %2541 }
 0x2a5   : > { %2577 = vst.msk [vmem:[#allocation4 + $0x2a8] sm:$0xff] %vm1377_vm7, %v2542_v20  ;;  %v3122_v20 = vld [vmem:[#allocation2 + $0x272] sm:$0xff] }
 0x2a6   : > { %v2544_v6 = vpop.permute.xlu1 %2543  ;;  %3058 = vrot.lane.b32.xlu0 %v3020_v52, %s10254_s13  ;;  %v3121_v52 = vld [vmem:[#allocation2 + $0x262] sm:$0xff] }
 0x2a7   : > { %2578 = vst.msk [vmem:[#allocation4 + $0x2c0] sm:$0xff] %vm1377_vm7, %v2544_v6  ;;  %v3147_v38 = vpack.c.bf16 %v3121_v52, %v3120_v47  ;;  %v3124_v6 = vld [vmem:[#allocation2 + $0x28a] sm:$0xff]  ;;  %v4751_v47 = vld [vmem:[%s15327_s4] sm:$0xff] }
 0x2a8   : > { %3060 = vrot.lane.b32.xlu1 %v3021_v61, %s10254_s13  ;;  %v2546_v35 = vpop.permute.xlu0 %2545 }
 0x2a9   : > { %2579 = vst.msk [vmem:[#allocation4 + $0x2d8] sm:$0xff] %vm1377_vm7, %v2546_v35  ;;  %v11810_v57 = vpop.f32.mrb[0].mxu0  ;;  %v3148_v35 = vpack.c.bf16 %v3123_v31, %v3122_v20 }
 0x2aa   : > { %15482 = vst [vmem:[#allocation5_spill] sm:$0xff] %v11810_v57  ;;  %v2548_v53 = vpop.permute.xlu1 %2547  ;;  %v3569_v4 = vpop.f32.mrb[1].mxu0  ;;  %3062 = vrot.lane.b32.xlu0 %v3022_v5, %s10254_s13  ;;  %v3125_v5 = vld [vmem:[#allocation2 + $0x292] sm:$0xff]  ;;  %v12412_v57 = vld [vmem:[#allocation3 + $0x1e0] sm:$0xff] }
 0x2ab   : > { %2580 = vst.msk [vmem:[#allocation4 + $0x2f0] sm:$0xff] %vm1377_vm7, %v2548_v53  ;;  %v11814_v45 = vpop.f32.mrb[2].mxu0  ;;  %v3149_v44 = vpack.c.bf16 %v3125_v5, %v3124_v6  ;;  %v3126_v53 = vld [vmem:[#allocation2 + $0x2a2] sm:$0xff]  ;;  %v3127_v4 = vld [vmem:[#allocation2 + $0x2aa] sm:$0xff]  ;;  %15517 = vst [vmem:[#allocation40_spill] sm:$0xff] %v12412_v57 }
 0x2ac   : > { %15483 = vst [vmem:[#allocation6_spill] sm:$0xff] %v11814_v45  ;;  %3064 = vrot.lane.b32.xlu1 %v3023_v29, %s10254_s13  ;;  %v2646_v32 = vpop.permute.xlu0 %2645  ;;  %v3572_v55 = vpop.f32.mrb[3].mxu0  ;;  %v4113_v6 = vld [vmem:[#allocation3 + $0x10] sm:$0xff] }
 0x2ad   : > { %2693 = vst.msk [vmem:[#allocation4 + $0x188] sm:$0xff] %vm972_vm3, %v2646_v32  ;;  %v3150_v55 = vpack.c.bf16 %v3127_v4, %v3126_v53  ;;  %v4753_v5 = vld [vmem:[%s15327_s4 + $0x10] sm:$0xff] }
 0x2ae   : > { %v2648_v11 = vpop.permute.xlu1 %2647  ;;  %3066 = vrot.lane.b32.xlu0 %v3024_v25, %s10254_s13  ;;  %v3252_v45 = vld [vmem:[#allocation4 + $0x70] sm:$0xff] }
 0x2af   : > { %2694 = vst.msk [vmem:[#allocation4 + $0x1a0] sm:$0xff] %vm972_vm3, %v2648_v11  ;;  %v3131_v11 = vld [vmem:[#allocation2 + $0x2da] sm:$0xff] }
 0x2b0   : > { %3068 = vrot.lane.b32.xlu1 %v3025_v21, %s10254_s13  ;;  %v2650_v59 = vpop.permute.xlu0 %2649 }
 0x2b1   : > { %2695 = vst.msk [vmem:[#allocation4 + $0x1b8] sm:$0xff] %vm972_vm3, %v2650_v59  ;;  %v11822_v1 = vpop.f32.mrb[4].mxu0  ;;  %v3133_v59 = vld [vmem:[#allocation2 + $0x2f2] sm:$0xff] }
 0x2b2   : > { %15484 = vst [vmem:[#allocation7_spill] sm:$0xff] %v11822_v1  ;;  %v2652_v63 = vpop.permute.xlu1 %2651  ;;  %v3577_v3 = vpop.f32.mrb[5].mxu0  ;;  %3070 = vrot.lane.b32.xlu0 %v3026_v33, %s10254_s13 }
 0x2b3   : > { %2696 = vst.msk [vmem:[#allocation4 + $0x1d0] sm:$0xff] %vm972_vm3, %v2652_v63  ;;  %v11826_v16 = vpop.f32.mrb[6].mxu0  ;;  %v3152_v3 = vpack.c.bf16 %v3131_v11, %v3130_v43  ;;  %v4116_v43 = vld [vmem:[#allocation3 + $0x28] sm:$0xff] }
 0x2b4   : > { %15485 = vst [vmem:[#allocation8_spill] sm:$0xff] %v11826_v16  ;;  %3072 = vrot.lane.b32.xlu1 %v3027_v27, %s10254_s13  ;;  %v2654_v56 = vpop.permute.xlu0 %2653  ;;  %v3580_v62 = vpop.f32.mrb[7].mxu0  ;;  %v3132_v27 = vld [vmem:[#allocation2 + $0x2ea] sm:$0xff] }
 0x2b5   : > { %2697 = vst.msk [vmem:[#allocation4 + $0x1e8] sm:$0xff] %vm972_vm3, %v2654_v56  ;;  %v3153_v19 = vpack.c.bf16 %v3133_v59, %v3132_v27  ;;  %v3135_v56 = vld [vmem:[#allocation2 + $0x30a] sm:$0xff] }
 0x2b6   : > { %v2656_v14 = vpop.permute.xlu1 %2655  ;;  %3074 = vrot.lane.b32.xlu0 %v11683_v40, %s10254_s13  ;;  %v3144_v40 = vpack.c.bf16 %v3115_v37, %v3114_v28  ;;  %v3138_v37 = vld [vmem:[#allocation2 + $0x332] sm:$0xff]  ;;  %v4756_v11 = vld [vmem:[%s15327_s4 + $0x28] sm:$0xff] }
 0x2b7   : > { %2698 = vst.msk [vmem:[#allocation4 + $0x200] sm:$0xff] %vm972_vm3, %v2656_v14  ;;  %v3137_v14 = vld [vmem:[#allocation2 + $0x322] sm:$0xff]  ;;  %v4820_v59 = vmul.f32 %v4756_v11, %v4116_v43  ;;  %v4766_v43 = vld [vmem:[%s15327_s4 + $0x78] sm:$0xff] }
 0x2b8   : > { %3076 = vrot.lane.b32.xlu1 %v3029_v50, %s10254_s13  ;;  %v2658_v49 = vpop.permute.xlu0 %2657  ;;  %v3155_v28 = vpack.c.bf16 %v3137_v14, %v3136_v10 }
 0x2b9   : > { %2699 = vst.msk [vmem:[#allocation4 + $0x218] sm:$0xff] %vm972_vm3, %v2658_v49  ;;  %v11835_v18 = vpop.f32.mrb[8].mxu0  ;;  %v3139_v49 = vld [vmem:[#allocation2 + $0x33a] sm:$0xff] }
 0x2ba   : > { %15486 = vst [vmem:[#allocation9_spill] sm:$0xff] %v11835_v18  ;;  %v2660_v23 = vpop.permute.xlu1 %2659  ;;  %v3585_v9 = vpop.f32.mrb[9].mxu0  ;;  %3174 = vrot.lane.b32.xlu0 %v3142_v17, %s10251_s10  ;;  %v3156_v34 = vpack.c.bf16 %v3139_v49, %v3138_v37  ;;  %v3246_v18 = vld [vmem:[#allocation4 + $0x40] sm:$0xff] }
 0x2bb   : > { %2700 = vst.msk [vmem:[#allocation4 + $0x230] sm:$0xff] %vm972_vm3, %v2660_v23  ;;  %v11839_v30 = vpop.f32.mrb[10].mxu0  ;;  %v3141_v23 = vld [vmem:[#allocation2 + $0x352] sm:$0xff] }
 0x2bc   : > { %15487 = vst [vmem:[#allocation10_spill] sm:$0xff] %v11839_v30  ;;  %3176 = vrot.lane.b32.xlu1 %v3143_v24, %s10251_s10  ;;  %v2662_v36 = vpop.permute.xlu0 %2661  ;;  %v3588_v60 = vpop.f32.mrb[11].mxu0  ;;  %v3154_v24 = vpack.c.bf16 %v3135_v56, %v3134_v12  ;;  %v4758_v12 = vld [vmem:[%s15327_s4 + $0x38] sm:$0xff] }
 0x2bd   : > { %2701 = vst.msk [vmem:[#allocation4 + $0x248] sm:$0xff] %vm972_vm3, %v2662_v36  ;;  %v3157_v36 = vpack.c.bf16 %v3141_v23, %v3140_v0  ;;  %v4111_v60 = vld [vmem:[#allocation3] sm:$0xff]  ;;  %v4760_v0 = vld [vmem:[%s15327_s4 + $0x48] sm:$0xff] }
 0x2be   : > { %v2664_v61 = vpop.permute.xlu1 %2663  ;;  %3178 = vrot.lane.b32.xlu0 %v3144_v40, %s10251_s10  ;;  %v4815_v31 = vmul.f32 %v4751_v47, %v4111_v60  ;;  %v11947_v47 = vld [vmem:[#allocation3 + $0x58] sm:$0xff] }
 0x2bf   : > { %2702 = vst.msk [vmem:[#allocation4 + $0x260] sm:$0xff] %vm972_vm3, %v2664_v61 }
 0x2c0   : > { %3180 = vrot.lane.b32.xlu1 %v3145_v42, %s10251_s10  ;;  %v2666_v58 = vpop.permute.xlu0 %2665 }
 0x2c1   : > { %2703 = vst.msk [vmem:[#allocation4 + $0x278] sm:$0xff] %vm972_vm3, %v2666_v58  ;;  %v11847_v29 = vpop.f32.mrb[12].mxu0 }
 0x2c2   : > { %15488 = vst [vmem:[#allocation11_spill] sm:$0xff] %v11847_v29  ;;  %v2668_v39 = vpop.permute.xlu1 %2667  ;;  %v3593_v26 = vpop.f32.mrb[13].mxu0  ;;  %3182 = vrot.lane.b32.xlu0 %v3146_v15, %s10251_s10  ;;  %v4112_v15 = vld [vmem:[#allocation3 + $0x8] sm:$0xff] }
 0x2c3   : > { %2704 = vst.msk [vmem:[#allocation4 + $0x290] sm:$0xff] %vm972_vm3, %v2668_v39  ;;  %v11851_v41 = vpop.f32.mrb[14].mxu0  ;;  %v4114_v26 = vld [vmem:[#allocation3 + $0x18] sm:$0xff]  ;;  %v4808_v29 = vld [vmem:[%s15327_s4 + $0x1c8] sm:$0xff] }
 0x2c4   : > { %15489 = vst [vmem:[#allocation12_spill] sm:$0xff] %v11851_v41  ;;  %3184 = vrot.lane.b32.xlu1 %v3147_v38, %s10251_s10  ;;  %v2670_v25 = vpop.permute.xlu0 %2669  ;;  %v3596_v21 = vpop.f32.mrb[15].mxu0  ;;  %v4752_v38 = vld [vmem:[%s15327_s4 + $0x8] sm:$0xff]  ;;  %v4806_v41 = vld [vmem:[%s15327_s4 + $0x1b8] sm:$0xff] }
 0x2c5   : > { %2705 = vst.msk [vmem:[#allocation4 + $0x2a8] sm:$0xff] %vm972_vm3, %v2670_v25  ;;  %v4816_v58 = vmul.f32 %v4752_v38, %v4112_v15  ;;  %v4817_v25 = vmul.f32 %v4753_v5, %v4113_v6  ;;  %v11962_v6 = vld [vmem:[#allocation3 + $0x60] sm:$0xff] }
 0x2c6   : > { %v2672_v32 = vpop.permute.xlu1 %2671  ;;  %3186 = vrot.lane.b32.xlu0 %v3148_v35, %s10251_s10  ;;  %v4754_v35 = vld [vmem:[%s15327_s4 + $0x18] sm:$0xff]  ;;  %v4763_v5 = vld [vmem:[%s15327_s4 + $0x60] sm:$0xff] }
 0x2c7   : > { %2706 = vst.msk [vmem:[#allocation4 + $0x2c0] sm:$0xff] %vm972_vm3, %v2672_v32  ;;  %v4818_v48 = vmul.f32 %v4754_v35, %v4114_v26  ;;  %v4755_v32 = vld [vmem:[%s15327_s4 + $0x20] sm:$0xff]  ;;  %v11967_v35 = vld [vmem:[#allocation3 + $0x68] sm:$0xff] }
 0x2c8   : > { %3188 = vrot.lane.b32.xlu1 %v3149_v44, %s10251_s10  ;;  %v2674_v33 = vpop.permute.xlu0 %2673  ;;  %v4819_v27 = vmul.f32 %v4755_v32, %v4115_v51  ;;  %v11980_v51 = vld [vmem:[#allocation3 + $0x70] sm:$0xff] }
 0x2c9   : > { %2707 = vst.msk [vmem:[#allocation4 + $0x2d8] sm:$0xff] %vm972_vm3, %v2674_v33  ;;  %v11859_v46 = vpop.f32.mrb[16].mxu0  ;;  %v4765_v32 = vld [vmem:[%s15327_s4 + $0x70] sm:$0xff] }
 0x2ca   : > { %15490 = vst [vmem:[#allocation13_spill] sm:$0xff] %v11859_v46  ;;  %v2676_v7 = vpop.permute.xlu1 %2675  ;;  %v3601_v63 = vpop.f32.mrb[17].mxu0  ;;  %3190 = vrot.lane.b32.xlu0 %v3150_v55, %s10251_s10  ;;  %v3240_v46 = vld [vmem:[#allocation4 + $0x10] sm:$0xff] }
 0x2cb   : > { %2708 = vst.msk [vmem:[#allocation4 + $0x2f0] sm:$0xff] %vm972_vm3, %v2676_v7  ;;  %v11863_v50 = vpop.f32.mrb[18].mxu0  ;;  %v4117_v7 = vld [vmem:[#allocation3 + $0x30] sm:$0xff] }
 0x2cc   : > { %15491 = vst [vmem:[#allocation14_spill] sm:$0xff] %v11863_v50  ;;  %3192 = vrot.lane.b32.xlu1 %v3151_v8, %s10251_s10  ;;  %v2774_v62 = vpop.permute.xlu0 %2773  ;;  %v3604_v2 = vpop.f32.mrb[19].mxu0  ;;  %v4757_v63 = vld [vmem:[%s15327_s4 + $0x30] sm:$0xff]  ;;  %v4802_v50 = vld [vmem:[%s15327_s4 + $0x198] sm:$0xff] }
 0x2cd   : > { %2821 = vst.msk [vmem:[#allocation4 + $0x188] sm:$0xff] %vm1101_vm4, %v2774_v62  ;;  %v4821_v10 = vmul.f32 %v4757_v63, %v4117_v7 }
 0x2ce   : > { %v2776_v17 = vpop.permute.xlu1 %2775  ;;  %3194 = vrot.lane.b32.xlu0 %v3152_v3, %s10251_s10 }
 0x2cf   : > { %2822 = vst.msk [vmem:[#allocation4 + $0x1a0] sm:$0xff] %vm1101_vm4, %v2776_v17 }
 0x2d0   : > { %3196 = vrot.lane.b32.xlu1 %v3153_v19, %s10251_s10  ;;  %v2778_v54 = vpop.permute.xlu0 %2777  ;;  %v4118_v19 = vld [vmem:[#allocation3 + $0x38] sm:$0xff] }
 0x2d1   : > { %2823 = vst.msk [vmem:[#allocation4 + $0x1b8] sm:$0xff] %vm1101_vm4, %v2778_v54  ;;  %v11871_v9 = vpop.f32.mrb[20].mxu0  ;;  %v4822_v17 = vmul.f32 %v4758_v12, %v4118_v19  ;;  %v11931_v54 = vld [vmem:[#allocation3 + $0x48] sm:$0xff]  ;;  %v4767_v19 = vld [vmem:[%s15327_s4 + $0x80] sm:$0xff] }
 0x2d2   : > { %15492 = vst [vmem:[#allocation15_spill] sm:$0xff] %v11871_v9  ;;  %v2780_v40 = vpop.permute.xlu1 %2779  ;;  %v3609_v42 = vpop.f32.mrb[21].mxu0  ;;  %3198 = vrot.lane.b32.xlu0 %v3154_v24, %s10251_s10  ;;  %v11926_v24 = vld [vmem:[#allocation3 + $0x40] sm:$0xff]  ;;  %v4804_v9 = vld [vmem:[%s15327_s4 + $0x1a8] sm:$0xff] }
 0x2d3   : > { %2824 = vst.msk [vmem:[#allocation4 + $0x1d0] sm:$0xff] %vm1101_vm4, %v2780_v40  ;;  %v11875_v22 = vpop.f32.mrb[22].mxu0  ;;  %v4824_v42 = vmul.f32 %v4760_v0, %v11931_v54 }
 0x2d4   : > { %15493 = vst [vmem:[#allocation16_spill] sm:$0xff] %v11875_v22  ;;  %3200 = vrot.lane.b32.xlu1 %v3155_v28, %s10251_s10  ;;  %v2782_v52 = vpop.permute.xlu0 %2781  ;;  %v3612_v61 = vpop.f32.mrb[23].mxu0  ;;  %v4759_v28 = vld [vmem:[%s15327_s4 + $0x40] sm:$0xff] }
 0x2d5   : > { %2825 = vst.msk [vmem:[#allocation4 + $0x1e8] sm:$0xff] %vm1101_vm4, %v2782_v52  ;;  %v4823_v40 = vmul.f32 %v4759_v28, %v11926_v24  ;;  %v4762_v52 = vld [vmem:[%s15327_s4 + $0x58] sm:$0xff]  ;;  %v3286_v28 = vld [vmem:[#allocation4 + $0x180] sm:$0xff] }
 0x2d6   : > { %v2784_v20 = vpop.permute.xlu1 %2783  ;;  %3202 = vrot.lane.b32.xlu0 %v3156_v34, %s10251_s10  ;;  %v11942_v34 = vld [vmem:[#allocation3 + $0x50] sm:$0xff] }
 0x2d7   : > { %2826 = vst.msk [vmem:[#allocation4 + $0x200] sm:$0xff] %vm1101_vm4, %v2784_v20 }
 0x2d8   : > { %3204 = vrot.lane.b32.xlu1 %v3157_v36, %s10251_s10  ;;  %v2786_v39 = vpop.permute.xlu0 %2785  ;;  %s10256_s10 = smov 32   ;;  %v4761_v36 = vld [vmem:[%s15327_s4 + $0x50] sm:$0xff] }
 0x2d9   : > { %2827 = vst.msk [vmem:[#allocation4 + $0x218] sm:$0xff] %vm1101_vm4, %v2786_v39  ;;  %v11895_v44 = vpop.f32.mrb[24].mxu0  ;;  %v4825_v20 = vmul.f32 %v4761_v36, %v11942_v34 }
 0x2da   : > { %15494 = vst [vmem:[#allocation17_spill] sm:$0xff] %v11895_v44  ;;  %v2788_v53 = vpop.permute.xlu1 %2787  ;;  %v3617_v4 = vpop.f32.mrb[25].mxu0  ;;  %4943 = vrot.lane.b32.xlu0 %v4815_v31, %s10256_s10  ;;  %v4798_v44 = vld [vmem:[%s15327_s4 + $0x178] sm:$0xff] }
 0x2db   : > { %2828 = vst.msk [vmem:[#allocation4 + $0x230] sm:$0xff] %vm1101_vm4, %v2788_v53  ;;  %v11899_v21 = vpop.f32.mrb[26].mxu0  ;;  %v4764_v53 = vld [vmem:[%s15327_s4 + $0x68] sm:$0xff] }
 0x2dc   : > { %15495 = vst [vmem:[#allocation18_spill] sm:$0xff] %v11899_v21  ;;  %4945 = vrot.lane.b32.xlu1 %v4816_v58, %s10256_s10  ;;  %v2790_v55 = vpop.permute.xlu0 %2789  ;;  %v3620_v8 = vpop.f32.mrb[27].mxu0  ;;  %v4826_v58 = vmul.f32 %v4762_v52, %v11947_v47  ;;  %v4770_v52 = vld [vmem:[%s15327_s4 + $0x98] sm:$0xff] }
 0x2dd   : > { %2829 = vst.msk [vmem:[#allocation4 + $0x248] sm:$0xff] %vm1101_vm4, %v2790_v55  ;;  %v11985_v8 = vld [vmem:[#allocation3 + $0x78] sm:$0xff] }
 0x2de   : > { %v2792_v33 = vpop.permute.xlu1 %2791  ;;  %4947 = vrot.lane.b32.xlu0 %v4817_v25, %s10256_s10  ;;  %v4827_v25 = vmul.f32 %v4763_v5, %v11962_v6  ;;  %v4830_v63 = vmul.f32 %v4766_v43, %v11985_v8  ;;  %v12310_v21 = vld [vmem:[#allocation3 + $0x178] sm:$0xff] }
 0x2df   : > { %2830 = vst.msk [vmem:[#allocation4 + $0x260] sm:$0xff] %vm1101_vm4, %v2792_v33 }
 0x2e0   : > { %4949 = vrot.lane.b32.xlu1 %v4818_v48, %s10256_s10  ;;  %v2794_v3 = vpop.permute.xlu0 %2793  ;;  %v4828_v48 = vmul.f32 %v4764_v53, %v11967_v35  ;;  %v4771_v53 = vld [vmem:[%s15327_s4 + $0xa0] sm:$0xff] }
 0x2e1   : > { %2831 = vst.msk [vmem:[#allocation4 + $0x278] sm:$0xff] %vm1101_vm4, %v2794_v3  ;;  %v11919_v56 = vpop.f32.mrb[28].mxu0  ;;  %v12002_v3 = vld [vmem:[#allocation3 + $0x80] sm:$0xff] }
 0x2e2   : > { %15496 = vst [vmem:[#allocation19_spill] sm:$0xff] %v11919_v56  ;;  %v2796_v62 = vpop.permute.xlu1 %2795  ;;  %v3625_v2 = vpop.f32.mrb[29].mxu0  ;;  %4951 = vrot.lane.b32.xlu0 %v4819_v27, %s10256_s10  ;;  %v4831_v0 = vmul.f32 %v4767_v19, %v12002_v3  ;;  %v4800_v56 = vld [vmem:[%s15327_s4 + $0x188] sm:$0xff] }
 0x2e3   : > { %2832 = vst.msk [vmem:[#allocation4 + $0x290] sm:$0xff] %vm1101_vm4, %v2796_v62  ;;  %v11923_v14 = vpop.f32.mrb[30].mxu0 }
 0x2e4   : > { %15497 = vst [vmem:[#allocation20_spill] sm:$0xff] %v11923_v14  ;;  %4953 = vrot.lane.b32.xlu1 %v4820_v59, %s10256_s10  ;;  %v2798_v37 = vpop.permute.xlu0 %2797  ;;  %v3628_v49 = vpop.f32.mrb[31].mxu0  ;;  %v4829_v59 = vmul.f32 %v4765_v32, %v11980_v51  ;;  %v4772_v32 = vld [vmem:[%s15327_s4 + $0xa8] sm:$0xff] }
 0x2e5   : > { %2833 = vst.msk [vmem:[#allocation4 + $0x2a8] sm:$0xff] %vm1101_vm4, %v2798_v37 }
 0x2e6   : > { %v2800_v23 = vpop.permute.xlu1 %2799  ;;  %4955 = vrot.lane.b32.xlu0 %v4821_v10, %s10256_s10  ;;  %v12007_v10 = vld [vmem:[#allocation3 + $0x88] sm:$0xff] }
 0x2e7   : > { %2834 = vst.msk [vmem:[#allocation4 + $0x2c0] sm:$0xff] %vm1101_vm4, %v2800_v23 }
 0x2e8   : > { %4957 = vrot.lane.b32.xlu1 %v4822_v17, %s10256_s10  ;;  %v2802_v60 = vpop.permute.xlu0 %2801  ;;  %v4768_v17 = vld [vmem:[%s15327_s4 + $0x88] sm:$0xff] }
 0x2e9   : > { %2835 = vst.msk [vmem:[#allocation4 + $0x2d8] sm:$0xff] %vm1101_vm4, %v2802_v60  ;;  %v11953_v61 = vpop.f32.mrb[32].mxu0  ;;  %v4832_v23 = vmul.f32 %v4768_v17, %v12007_v10  ;;  %v12025_v60 = vld [vmem:[#allocation3 + $0x98] sm:$0xff]  ;;  %v4773_v17 = vld [vmem:[%s15327_s4 + $0xb0] sm:$0xff] }
 0x2ea   : > { %15498 = vst [vmem:[#allocation21_spill] sm:$0xff] %v11953_v61  ;;  %v2804_v15 = vpop.permute.xlu1 %2803  ;;  %v3633_v38 = vpop.f32.mrb[33].mxu0  ;;  %4959 = vrot.lane.b32.xlu0 %v4823_v40, %s10256_s10  ;;  %v12020_v40 = vld [vmem:[#allocation3 + $0x90] sm:$0xff]  ;;  %v4794_v61 = vld [vmem:[%s15327_s4 + $0x158] sm:$0xff] }
 0x2eb   : > { %2836 = vst.msk [vmem:[#allocation4 + $0x2f0] sm:$0xff] %vm1101_vm4, %v2804_v15  ;;  %v11958_v31 = vpop.f32.mrb[34].mxu0 }
 0x2ec   : > { %15499 = vst [vmem:[#allocation22_spill] sm:$0xff] %v11958_v31  ;;  %4961 = vrot.lane.b32.xlu1 %v4824_v42, %s10256_s10  ;;  %v2903_v39 = vpop.permute.xlu0 %2902  ;;  %v3636_v26 = vpop.f32.mrb[35].mxu0  ;;  %v4769_v42 = vld [vmem:[%s15327_s4 + $0x90] sm:$0xff]  ;;  %v12246_v31 = vld [vmem:[#allocation3 + $0x138] sm:$0xff] }
 0x2ed   : > { %2950 = vst.msk [vmem:[#allocation4 + $0x188] sm:$0xff] %vm1230_vm5, %v2903_v39  ;;  %v12042_v26 = vld [vmem:[#allocation3 + $0xa0] sm:$0xff] }
 0x2ee   : > { %2951 = vst.msk [vmem:[#allocation4 + $0x190] sm:$0xff] %vm1232_vm6, %v2903_v39  ;;  %v2905_v4 = vpop.permute.xlu1 %2904  ;;  %4963 = vrot.lane.b32.xlu0 %v4825_v20, %s10256_s10  ;;  %v4834_v39 = vmul.f32 %v4770_v52, %v12025_v60  ;;  %v9122_v52 = vld [vmem:[%s15324_s1 + $0x88] sm:$0xff]  }
 0x2ef   : > { %2952 = vst.msk [vmem:[#allocation4 + $0x1a0] sm:$0xff] %vm1230_vm5, %v2905_v4 }
 0x2f0   : > { %2953 = vst.msk [vmem:[#allocation4 + $0x1a8] sm:$0xff] %vm1232_vm6, %v2905_v4  ;;  %4965 = vrot.lane.b32.xlu1 %v4826_v58, %s10256_s10  ;;  %v2907_v55 = vpop.permute.xlu0 %2906  ;;  %v4833_v58 = vmul.f32 %v4769_v42, %v12020_v40 }
 0x2f1   : > { %2954 = vst.msk [vmem:[#allocation4 + $0x1b8] sm:$0xff] %vm1230_vm5, %v2907_v55  ;;  %v11992_v11 = vpop.f32.mrb[36].mxu0 }
 0x2f2   : > { %2955 = vst.msk [vmem:[#allocation4 + $0x1c0] sm:$0xff] %vm1232_vm6, %v2907_v55  ;;  %15500 = vst [vmem:[#allocation23_spill] sm:$0xff] %v11992_v11  ;;  %v2909_v33 = vpop.permute.xlu1 %2908  ;;  %v3641_v27 = vpop.f32.mrb[37].mxu0  ;;  %4967 = vrot.lane.b32.xlu0 %v4827_v25, %s10256_s10  ;;  %v3289_v55 = vld [vmem:[#allocation4 + $0x198] sm:$0xff] }
 0x2f3   : > { %2956 = vst.msk [vmem:[#allocation4 + $0x1d0] sm:$0xff] %vm1230_vm5, %v2909_v33  ;;  %v11998_v7 = vpop.f32.mrb[38].mxu0  ;;  %v4835_v27 = vmul.f32 %v4771_v53, %v12042_v26  ;;  %v12278_v11 = vld [vmem:[#allocation3 + $0x158] sm:$0xff] }
 0x2f4   : > { %2957 = vst.msk [vmem:[#allocation4 + $0x1d8] sm:$0xff] %vm1232_vm6, %v2909_v33  ;;  %15501 = vst [vmem:[#allocation24_spill] sm:$0xff] %v11998_v7  ;;  %4969 = vrot.lane.b32.xlu1 %v4828_v48, %s10256_s10  ;;  %v2911_v12 = vpop.permute.xlu0 %2910  ;;  %v3644_v62 = vpop.f32.mrb[39].mxu0  ;;  %v3287_v2 = vld [vmem:[#allocation4 + $0x188] sm:$0xff] }
 0x2f5   : > { %2958 = vst.msk [vmem:[#allocation4 + $0x1e8] sm:$0xff] %vm1230_vm5, %v2911_v12  ;;  %3693 = vmatprep.mubr.bf16.mxu0 %v3287_v2  ;;  %v12047_v48 = vld [vmem:[#allocation3 + $0xa8] sm:$0xff]  ;;  %v12064_v62 = vld [vmem:[#allocation3 + $0xb0] sm:$0xff] }
 0x2f6   : > { %2959 = vst.msk [vmem:[#allocation4 + $0x1f0] sm:$0xff] %vm1232_vm6, %v2911_v12  ;;  %v2913_v37 = vpop.permute.xlu1 %2912  ;;  %v3290_v49 = vld [vmem:[#allocation4 + $0x1a0] sm:$0xff]  ;;  %3694 = vmatmul.mubr.bf16.gmra.mrb[64].mxu0 %v3286_v28  ;;  %4971 = vrot.lane.b32.xlu0 %v4829_v59, %s10256_s10  ;;  %v4836_v59 = vmul.f32 %v4772_v32, %v12047_v48  ;;  %v12072_v28 = vld [vmem:[#allocation3 + $0xb8] sm:$0xff] }
 0x2f7   : > { %2960 = vst.msk [vmem:[#allocation4 + $0x200] sm:$0xff] %vm1230_vm5, %v2913_v37  ;;  %3701 = vmatprep.mubr.bf16.mxu0 %v3290_v49 }
 0x2f8   : > { %2961 = vst.msk [vmem:[#allocation4 + $0x208] sm:$0xff] %vm1232_vm6, %v2913_v37  ;;  %4973 = vrot.lane.b32.xlu1 %v4830_v63, %s10256_s10  ;;  %v2915_v36 = vpop.permute.xlu0 %2914  ;;  %v3293_v33 = vld [vmem:[#allocation4 + $0x1b8] sm:$0xff] }
 0x2f9   : > { %2962 = vst.msk [vmem:[#allocation4 + $0x218] sm:$0xff] %vm1230_vm5, %v2915_v36  ;;  %v12032_v15 = vpop.f32.mrb[40].mxu0  ;;  %v4774_v37 = vld [vmem:[%s15327_s4 + $0xb8] sm:$0xff] }
 0x2fa   : > { %2963 = vst.msk [vmem:[#allocation4 + $0x220] sm:$0xff] %vm1232_vm6, %v2915_v36  ;;  %15502 = vst [vmem:[#allocation25_spill] sm:$0xff] %v12032_v15  ;;  %v2917_v38 = vpop.permute.xlu1 %2916  ;;  %v3649_v20 = vpop.f32.mrb[41].mxu0  ;;  %4975 = vrot.lane.b32.xlu0 %v4831_v0, %s10256_s10  ;;  %v3292_v0 = vld [vmem:[#allocation4 + $0x1b0] sm:$0xff]  ;;  %v3310_v36 = vld [vmem:[#allocation4 + $0x240] sm:$0xff]  ;;  %v4838_v53 = vmul.f32 %v4774_v37, %v12072_v28 }
 0x2fb   : > { %2964 = vst.msk [vmem:[#allocation4 + $0x230] sm:$0xff] %vm1230_vm5, %v2917_v38  ;;  %v12038_v5 = vpop.f32.mrb[42].mxu0  ;;  %v3296_v32 = vld [vmem:[#allocation4 + $0x1d0] sm:$0xff] }
 0x2fc   : > { %2965 = vst.msk [vmem:[#allocation4 + $0x238] sm:$0xff] %vm1232_vm6, %v2917_v38  ;;  %15503 = vst [vmem:[#allocation26_spill] sm:$0xff] %v12038_v5  ;;  %4977 = vrot.lane.b32.xlu1 %v4832_v23, %s10256_s10  ;;  %v2919_v4 = vpop.permute.xlu0 %2918  ;;  %v3652_v25 = vpop.f32.mrb[43].mxu0  ;;  %v4777_v37 = vld [vmem:[%s15327_s4 + $0xd0] sm:$0xff] }
 0x2fd   : > { %2966 = vst.msk [vmem:[#allocation4 + $0x248] sm:$0xff] %vm1230_vm5, %v2919_v4  ;;  %v4775_v25 = vld [vmem:[%s15327_s4 + $0xc0] sm:$0xff] }
 0x2fe   : > { %2967 = vst.msk [vmem:[#allocation4 + $0x250] sm:$0xff] %vm1232_vm6, %v2919_v4  ;;  %v2921_v43 = vpop.permute.xlu1 %2920  ;;  %3702 = vmatmul.mubr.bf16.gmra.mrb[68].mxu0 %v3289_v55  ;;  %4979 = vrot.lane.b32.xlu0 %v4833_v58, %s10256_s10  ;;  %v12087_v4 = vld [vmem:[#allocation3 + $0xc0] sm:$0xff]  ;;  %v12094_v55 = vld [vmem:[#allocation3 + $0xc8] sm:$0xff] }
 0x2ff   : > { %2968 = vst.msk [vmem:[#allocation4 + $0x260] sm:$0xff] %vm1230_vm5, %v2921_v43  ;;  %3709 = vmatprep.mubr.bf16.mxu0 %v3293_v33  ;;  %v9123_v33 = vld [vmem:[%s15324_s1 + $0x90] sm:$0xff]  }
 0x300   : > { %2969 = vst.msk [vmem:[#allocation4 + $0x268] sm:$0xff] %vm1232_vm6, %v2921_v43  ;;  %4981 = vrot.lane.b32.xlu1 %v4834_v39, %s10256_s10  ;;  %v2923_v63 = vpop.permute.xlu0 %2922  ;;  %v4837_v39 = vmul.f32 %v4773_v17, %v12064_v62  ;;  %v4776_v43 = vld [vmem:[%s15327_s4 + $0xc8] sm:$0xff]  ;;  %v12113_v17 = vld [vmem:[#allocation3 + $0xd0] sm:$0xff] }
 0x301   : > { %v12060_v19 = vpop.f32.mrb[44].mxu0  ;;  %2970 = vst.msk [vmem:[#allocation4 + $0x278] sm:$0xff] %vm1230_vm5, %v2923_v63 }
 0x302   : > { %15504 = vst [vmem:[#allocation27_spill] sm:$0xff] %v12060_v19  ;;  %2971 = vst.msk [vmem:[#allocation4 + $0x280] sm:$0xff] %vm1232_vm6, %v2923_v63  ;;  %v2925_v12 = vpop.permute.xlu1 %2924  ;;  %v3657_v2 = vpop.f32.mrb[45].mxu0  ;;  %4983 = vrot.lane.b32.xlu0 %v4835_v27, %s10256_s10 }
 0x303   : > { %2972 = vst.msk [vmem:[#allocation4 + $0x290] sm:$0xff] %vm1230_vm5, %v2925_v12  ;;  %v12077_v49 = vpop.f32.mrb[46].mxu0 }
 0x304   : > { %2973 = vst.msk [vmem:[#allocation4 + $0x298] sm:$0xff] %vm1232_vm6, %v2925_v12  ;;  %15505 = vst [vmem:[#allocation28_spill] sm:$0xff] %v12077_v49  ;;  %4985 = vrot.lane.b32.xlu1 %v4836_v59, %s10256_s10  ;;  %v3660_v23 = vpop.f32.mrb[47].mxu0  ;;  %v3311_v42 = vld [vmem:[#allocation4 + $0x248] sm:$0xff]  ;;  %v2927_v38 = vpop.permute.xlu0 %2926  ;;  %v4840_v12 = vmul.f32 %v4776_v43, %v12094_v55  ;;  %v12210_v49 = vld [vmem:[#allocation3 + $0x118] sm:$0xff] }
 0x305   : > { %3757 = vmatprep.mubr.bf16.mxu1 %v3311_v42  ;;  %2974 = vst.msk [vmem:[#allocation4 + $0x2a8] sm:$0xff] %vm1230_vm5, %v2927_v38  ;;  %v12120_v23 = vld [vmem:[#allocation3 + $0xd8] sm:$0xff] }
 0x306   : > { %v3314_v20 = vld [vmem:[#allocation4 + $0x260] sm:$0xff]  ;;  %2975 = vst.msk [vmem:[#allocation4 + $0x2b0] sm:$0xff] %vm1232_vm6, %v2927_v38  ;;  %v2929_v58 = vpop.permute.xlu1 %2928  ;;  %3710 = vmatmul.mubr.bf16.gmra.mrb[72].mxu0 %v3292_v0  ;;  %3758 = vmatmul.mubr.bf16.vlgmr.msra.gmra.mrb[0].mxu1 %v3310_v36  ;;  %v4778_v42 = vld [vmem:[%s15327_s4 + $0xd8] sm:$0xff] }
 0x307   : > { %2976 = vst.msk [vmem:[#allocation4 + $0x2c0] sm:$0xff] %vm1230_vm5, %v2929_v58  ;;  %8928 = vmatpush3.bf16.msra.mxu1 %v11767_v13  ;;  %3717 = vmatprep.mubr.bf16.mxu0 %v3296_v32  ;;  %v4839_v13 = vmul.f32 %v4775_v25, %v12087_v4  ;;  %v4841_v25 = vmul.f32 %v4777_v37, %v12113_v17  ;;  %v3299_v32 = vld [vmem:[#allocation4 + $0x1e8] sm:$0xff] }
 0x308   : > { %2977 = vst.msk [vmem:[#allocation4 + $0x2c8] sm:$0xff] %vm1232_vm6, %v2929_v58  ;;  %3765 = vmatprep.mubr.bf16.mxu1 %v3314_v20  ;;  %8929 = vmatprep.subr.bf16.mxu1 %v9122_v52  ;;  %v2931_v27 = vpop.permute.xlu0 %2930  ;;  %v3317_v38 = vld [vmem:[#allocation4 + $0x278] sm:$0xff]  ;;  %v3295_v58 = vld [vmem:[#allocation4 + $0x1c8] sm:$0xff]  ;;  %v4842_v43 = vmul.f32 %v4778_v42, %v12120_v23 }
 0x309   : > { %v12103_v59 = vpop.f32.mrb[48].mxu0  ;;  %2978 = vst.msk [vmem:[#allocation4 + $0x2d8] sm:$0xff] %vm1230_vm5, %v2931_v27  ;;  %4987 = vrot.lane.b32.xlu0 %v4837_v39, %s10256_s10  ;;  %4989 = vrot.lane.b32.xlu1 %v4838_v53, %s10256_s10  ;;  %v3313_v39 = vld [vmem:[#allocation4 + $0x258] sm:$0xff] }
 0x30a   : > { %15506 = vst [vmem:[#allocation29_spill] sm:$0xff] %v12103_v59  ;;  %2979 = vst.msk [vmem:[#allocation4 + $0x2e0] sm:$0xff] %vm1232_vm6, %v2931_v27  ;;  %v2933_v63 = vpop.permute.xlu1 %2932  ;;  %v3665_v2 = vpop.f32.mrb[49].mxu0  ;;  %v9124_v53 = vld [vmem:[%s15324_s1 + $0x98] sm:$0xff]   ;;  %v12134_v27 = vld [vmem:[#allocation3 + $0xe0] sm:$0xff] }
 0x30b   : > { %2980 = vst.msk [vmem:[#allocation4 + $0x2f0] sm:$0xff] %vm1230_vm5, %v2933_v63  ;;  %v12118_v0 = vpop.f32.mrb[50].mxu0  ;;  %8930 = vmatpush3.bf16.msra.mxu1 %v9122_v52  ;;  %v9125_v2 = vld [vmem:[%s15324_s1 + $0xa0] sm:$0xff]  }
 0x30c   : > { %2981 = vst.msk [vmem:[#allocation4 + $0x2f8] sm:$0xff] %vm1232_vm6, %v2933_v63  ;;  %15507 = vst [vmem:[#allocation30_spill] sm:$0xff] %v12118_v0  ;;  %v3668_v36 = vpop.f32.mrb[51].mxu0  ;;  %8931 = vmatprep.subr.bf16.mxu1 %v9123_v33  ;;  %v3047_v20 = vpop.permute.xlu0 %3046  ;;  %v4779_v63 = vld [vmem:[%s15327_s4 + $0xe0] sm:$0xff] }
 0x30d   : > { %4991 = vrot.lane.b32.xlu0 %v4839_v13, %s10256_s10  ;;  %4993 = vrot.lane.b32.xlu1 %v4840_v12, %s10256_s10  ;;  %3094 = vst.msk [vmem:[#allocation4 + $0x190] sm:$0xff] %vm1377_vm7, %v3047_v20  ;;  %v4843_v42 = vmul.f32 %v4779_v63, %v12134_v27  ;;  %v12147_v36 = vld [vmem:[#allocation3 + $0xe8] sm:$0xff]  ;;  %v12154_v20 = vld [vmem:[#allocation3 + $0xf0] sm:$0xff]  ;;  %v12174_v0 = vld [vmem:[#allocation3 + $0x100] sm:$0xff] }
 0x30e   : > { %v3049_v52 = vpop.permute.xlu1 %3048  ;;  %3718 = vmatmul.mubr.bf16.gmra.mrb[76].mxu0 %v3295_v58  ;;  %3766 = vmatmul.mubr.bf16.gmra.mrb[4].mxu1 %v3313_v39  ;;  %v4781_v58 = vld [vmem:[%s15327_s4 + $0xf0] sm:$0xff] }
 0x30f   : > { %3095 = vst.msk [vmem:[#allocation4 + $0x1a8] sm:$0xff] %vm1377_vm7, %v3049_v52  ;;  %3725 = vmatprep.mubr.bf16.mxu0 %v3299_v32  ;;  %3773 = vmatprep.mubr.bf16.mxu1 %v3317_v38  ;;  %v3316_v32 = vld [vmem:[#allocation4 + $0x270] sm:$0xff] }
 0x310   : > { %8932 = vmatpush3.bf16.msra.mxu1 %v9123_v33  ;;  %v3051_v13 = vpop.permute.xlu0 %3050  ;;  %v4780_v33 = vld [vmem:[%s15327_s4 + $0xe8] sm:$0xff]  ;;  %v3320_v63 = vld [vmem:[#allocation4 + $0x290] sm:$0xff] }
 0x311   : > { %v12139_v12 = vpop.f32.mrb[52].mxu0  ;;  %8933 = vmatprep.subr.bf16.mxu1 %v9124_v53  ;;  %4995 = vrot.lane.b32.xlu0 %v4841_v25, %s10256_s10  ;;  %3096 = vst.msk [vmem:[#allocation4 + $0x1c0] sm:$0xff] %vm1377_vm7, %v3051_v13  ;;  %v3298_v25 = vld [vmem:[#allocation4 + $0x1e0] sm:$0xff]  ;;  %v4844_v13 = vmul.f32 %v4780_v33, %v12147_v36 }
 0x312   : > { %15508 = vst [vmem:[#allocation31_spill] sm:$0xff] %v12139_v12  ;;  %v3053_v37 = vpop.permute.xlu1 %3052  ;;  %v3673_v38 = vpop.f32.mrb[53].mxu0  ;;  %4997 = vrot.lane.b32.xlu1 %v4842_v43, %s10256_s10  ;;  %v9126_v43 = vld [vmem:[%s15324_s1 + $0xa8] sm:$0xff]   ;;  %v3302_v33 = vld [vmem:[#allocation4 + $0x200] sm:$0xff] }
 0x313   : > { %3097 = vst.msk [vmem:[#allocation4 + $0x1d8] sm:$0xff] %vm1377_vm7, %v3053_v37  ;;  %v12159_v39 = vpop.f32.mrb[54].mxu0  ;;  %v3323_v12 = vld [vmem:[#allocation4 + $0x2a8] sm:$0xff] }
 0x314   : > { %15509 = vst [vmem:[#allocation32_spill] sm:$0xff] %v12159_v39  ;;  %v3676_v52 = vpop.f32.mrb[55].mxu0  ;;  %8934 = vmatpush3.bf16.msra.mxu1 %v9124_v53  ;;  %v3055_v38 = vpop.permute.xlu0 %3054  ;;  %v4845_v39 = vmul.f32 %v4781_v58, %v12154_v20  ;;  %v4782_v53 = vld [vmem:[%s15327_s4 + $0xf8] sm:$0xff] }
 0x315   : > { %8935 = vmatprep.subr.bf16.mxu1 %v9125_v2  ;;  %4999 = vrot.lane.b32.xlu0 %v4843_v42, %s10256_s10  ;;  %3098 = vst.msk [vmem:[#allocation4 + $0x1f0] sm:$0xff] %vm1377_vm7, %v3055_v38  ;;  %v12168_v52 = vld [vmem:[#allocation3 + $0xf8] sm:$0xff]  ;;  %v4783_v42 = vld [vmem:[%s15327_s4 + $0x100] sm:$0xff] }
 0x316   : > { %v3057_v37 = vpop.permute.xlu1 %3056  ;;  %3726 = vmatmul.mubr.bf16.gmra.mrb[80].mxu0 %v3298_v25  ;;  %3774 = vmatmul.mubr.bf16.gmra.mrb[8].mxu1 %v3316_v32  ;;  %v4846_v58 = vmul.f32 %v4782_v53, %v12168_v52  ;;  %v9127_v25 = vld [vmem:[%s15324_s1 + $0xb0] sm:$0xff]  }
 0x317   : > { %3099 = vst.msk [vmem:[#allocation4 + $0x208] sm:$0xff] %vm1377_vm7, %v3057_v37  ;;  %3733 = vmatprep.mubr.bf16.mxu0 %v3302_v33  ;;  %3781 = vmatprep.mubr.bf16.mxu1 %v3320_v63  ;;  %v4847_v63 = vmul.f32 %v4783_v42, %v12174_v0  ;;  %v12195_v53 = vld [vmem:[#allocation3 + $0x110] sm:$0xff]  ;;  %v3319_v42 = vld [vmem:[#allocation4 + $0x288] sm:$0xff] }
 0x318   : > { %8936 = vmatpush3.bf16.msra.mxu1 %v9125_v2  ;;  %5001 = vrot.lane.b32.xlu1 %v4844_v13, %s10256_s10  ;;  %v3059_v38 = vpop.permute.xlu0 %3058  ;;  %v12189_v2 = vld [vmem:[#allocation3 + $0x108] sm:$0xff] }
 0x319   : > { %v12181_v59 = vpop.f32.mrb[56].mxu0  ;;  %8937 = vmatprep.subr.bf16.mxu1 %v9126_v43  ;;  %5003 = vrot.lane.b32.xlu0 %v4845_v39, %s10256_s10  ;;  %3100 = vst.msk [vmem:[#allocation4 + $0x220] sm:$0xff] %vm1377_vm7, %v3059_v38  ;;  %v4784_v13 = vld [vmem:[%s15327_s4 + $0x108] sm:$0xff]  ;;  %v4785_v39 = vld [vmem:[%s15327_s4 + $0x110] sm:$0xff] }
 0x31a   : > { %15510 = vst [vmem:[#allocation33_spill] sm:$0xff] %v12181_v59  ;;  %v3061_v32 = vpop.permute.xlu1 %3060  ;;  %v3681_v37 = vpop.f32.mrb[57].mxu0  ;;  %v3301_v59 = vld [vmem:[#allocation4 + $0x1f8] sm:$0xff]  ;;  %v4848_v5 = vmul.f32 %v4784_v13, %v12189_v2  ;;  %v12216_v13 = vld [vmem:[#allocation3 + $0x120] sm:$0xff] }
 0x31b   : > { %3101 = vst.msk [vmem:[#allocation4 + $0x238] sm:$0xff] %vm1377_vm7, %v3061_v32  ;;  %v12200_v33 = vpop.f32.mrb[58].mxu0  ;;  %v9128_v32 = vld [vmem:[%s15324_s1 + $0xb8] sm:$0xff]  }
 0x31c   : > { %15511 = vst [vmem:[#allocation34_spill] sm:$0xff] %v12200_v33  ;;  %v3684_v38 = vpop.f32.mrb[59].mxu0  ;;  %8938 = vmatpush3.bf16.msra.mxu1 %v9126_v43  ;;  %5005 = vrot.lane.b32.xlu1 %v4846_v58, %s10256_s10  ;;  %v3063_v37 = vpop.permute.xlu0 %3062  ;;  %v4786_v43 = vld [vmem:[%s15327_s4 + $0x118] sm:$0xff] }
 0x31d   : > { %8939 = vmatprep.subr.bf16.mxu1 %v9127_v25  ;;  %5007 = vrot.lane.b32.xlu0 %v4847_v63, %s10256_s10  ;;  %3102 = vst.msk [vmem:[#allocation4 + $0x250] sm:$0xff] %vm1377_vm7, %v3063_v37  ;;  %v4849_v38 = vmul.f32 %v4785_v39, %v12195_v53  ;;  %v3305_v58 = vld [vmem:[#allocation4 + $0x218] sm:$0xff]  ;;  %v4787_v63 = vld [vmem:[%s15327_s4 + $0x120] sm:$0xff]  ;;  %v4850_v39 = vmul.f32 %v4786_v43, %v12210_v49 }
 0x31e   : > { %v3065_v33 = vpop.permute.xlu1 %3064  ;;  %3734 = vmatmul.mubr.bf16.gmra.mrb[84].mxu0 %v3301_v59  ;;  %3782 = vmatmul.mubr.bf16.gmra.mrb[12].mxu1 %v3319_v42  ;;  %v12228_v42 = vld [vmem:[#allocation3 + $0x128] sm:$0xff] }
 0x31f   : > { %3103 = vst.msk [vmem:[#allocation4 + $0x268] sm:$0xff] %vm1377_vm7, %v3065_v33  ;;  %3741 = vmatprep.mubr.bf16.mxu0 %v3305_v58  ;;  %3789 = vmatprep.mubr.bf16.mxu1 %v3323_v12  ;;  %v4851_v33 = vmul.f32 %v4787_v63, %v12216_v13  ;;  %v4788_v12 = vld [vmem:[%s15327_s4 + $0x128] sm:$0xff]  ;;  %v3326_v63 = vld [vmem:[#allocation4 + $0x2c0] sm:$0xff] }
 0x320   : > { %8940 = vmatpush3.bf16.msra.mxu1 %v9127_v25  ;;  %5009 = vrot.lane.b32.xlu1 %v4848_v5, %s10256_s10  ;;  %v3067_v37 = vpop.permute.xlu0 %3066  ;;  %v12234_v25 = vld [vmem:[#allocation3 + $0x130] sm:$0xff] }
 0x321   : > { %v12223_v19 = vpop.f32.mrb[60].mxu0  ;;  %8941 = vmatprep.subr.bf16.mxu1 %v9128_v32  ;;  %5011 = vrot.lane.b32.xlu0 %v4849_v38, %s10256_s10  ;;  %3104 = vst.msk [vmem:[#allocation4 + $0x280] sm:$0xff] %vm1377_vm7, %v3067_v37  ;;  %v4789_v38 = vld [vmem:[%s15327_s4 + $0x130] sm:$0xff] }
 0x322   : > { %15512 = vst [vmem:[#allocation35_spill] sm:$0xff] %v12223_v19  ;;  %v3069_v59 = vpop.permute.xlu1 %3068  ;;  %v3689_v5 = vpop.f32.mrb[61].mxu0  ;;  %v3304_v37 = vld [vmem:[#allocation4 + $0x210] sm:$0xff]  ;;  %v4852_v19 = vmul.f32 %v4788_v12, %v12228_v42  ;;  %v4853_v7 = vmul.f32 %v4789_v38, %v12234_v25 }
 0x323   : > { %3105 = vst.msk [vmem:[#allocation4 + $0x298] sm:$0xff] %vm1377_vm7, %v3069_v59  ;;  %v12239_v43 = vpop.f32.mrb[62].mxu0  ;;  %v3322_v5 = vld [vmem:[#allocation4 + $0x2a0] sm:$0xff] }
 0x324   : > { %15513 = vst [vmem:[#allocation36_spill] sm:$0xff] %v12239_v43  ;;  %v3692_v58 = vpop.f32.mrb[63].mxu0  ;;  %8942 = vmatpush3.bf16.msra.mxu1 %v9128_v32  ;;  %5013 = vrot.lane.b32.xlu1 %v4850_v39, %s10256_s10  ;;  %v3071_v15 = vpop.permute.xlu0 %3070  ;;  %v3308_v32 = vld [vmem:[#allocation4 + $0x230] sm:$0xff]  ;;  %v12252_v39 = vld [vmem:[#allocation3 + $0x140] sm:$0xff] }
 0x325   : > { %5015 = vrot.lane.b32.xlu0 %v4851_v33, %s10256_s10  ;;  %3106 = vst.msk [vmem:[#allocation4 + $0x2b0] sm:$0xff] %vm1377_vm7, %v3071_v15  ;;  %v4790_v58 = vld [vmem:[%s15327_s4 + $0x138] sm:$0xff]  ;;  %v4791_v15 = vld [vmem:[%s15327_s4 + $0x140] sm:$0xff] }
 0x326   : > { %v3073_v59 = vpop.permute.xlu1 %3072  ;;  %3742 = vmatmul.mubr.bf16.gmra.mrb[88].mxu0 %v3304_v37  ;;  %3790 = vmatmul.mubr.bf16.gmra.mrb[16].mxu1 %v3322_v5  ;;  %v4854_v33 = vmul.f32 %v4790_v58, %v12246_v31  ;;  %v4855_v37 = vmul.f32 %v4791_v15, %v12252_v39  ;;  %v12262_v5 = vld [vmem:[#allocation3 + $0x148] sm:$0xff]  ;;  %v3329_v58 = vld [vmem:[#allocation4 + $0x2d8] sm:$0xff] }
 0x327   : > { %3107 = vst.msk [vmem:[#allocation4 + $0x2c8] sm:$0xff] %vm1377_vm7, %v3073_v59  ;;  %3749 = vmatprep.mubr.bf16.mxu0 %v3308_v32  ;;  %3797 = vmatprep.mubr.bf16.mxu1 %v3326_v63  ;;  %v4792_v59 = vld [vmem:[%s15327_s4 + $0x148] sm:$0xff]  ;;  %v12268_v63 = vld [vmem:[#allocation3 + $0x150] sm:$0xff] }
 0x328   : > { %5017 = vrot.lane.b32.xlu1 %v4852_v19, %s10256_s10  ;;  %v3075_v12 = vpop.permute.xlu0 %3074  ;;  %v4793_v19 = vld [vmem:[%s15327_s4 + $0x150] sm:$0xff]  ;;  %v4856_v32 = vmul.f32 %v4792_v59, %v12262_v5  ;;  %v4858_v59 = vmul.f32 %v4794_v61, %v12278_v11 }
 0x329   : > { %5019 = vrot.lane.b32.xlu0 %v4853_v7, %s10256_s10  ;;  %3108 = vst.msk [vmem:[#allocation4 + $0x2e0] sm:$0xff] %vm1377_vm7, %v3075_v12  ;;  %v3307_v7 = vld [vmem:[#allocation4 + $0x228] sm:$0xff]  ;;  %v3325_v12 = vld [vmem:[#allocation4 + $0x2b8] sm:$0xff]  ;;  %v4797_v61 = vld [vmem:[%s15327_s4 + $0x170] sm:$0xff] }
 0x32a   : > { %v3077_v38 = vpop.permute.xlu1 %3076 }
 0x32b   : > { %3109 = vst.msk [vmem:[#allocation4 + $0x2f8] sm:$0xff] %vm1377_vm7, %v3077_v38  ;;  %v4857_v38 = vmul.f32 %v4793_v19, %v12268_v63 }
 0x32c   : > { %5021 = vrot.lane.b32.xlu1 %v4854_v33, %s10256_s10  ;;  %v3175_v15 = vpop.permute.xlu0 %3174  ;;  %v12284_v33 = vld [vmem:[#allocation3 + $0x160] sm:$0xff] }
 0x32d   : > { %5023 = vrot.lane.b32.xlu0 %v4855_v37, %s10256_s10  ;;  %3222 = vst.msk [vmem:[#allocation4 + $0x190] sm:$0xff] %vm972_vm3, %v3175_v15  ;;  %v4795_v37 = vld [vmem:[%s15327_s4 + $0x160] sm:$0xff] }
 0x32e   : > { %v3177_v43 = vpop.permute.xlu1 %3176  ;;  %3750 = vmatmul.mubr.bf16.gmra.mrb[92].mxu0 %v3307_v7  ;;  %3798 = vmatmul.mubr.bf16.gmra.mrb[20].mxu1 %v3325_v12  ;;  %v4859_v15 = vmul.f32 %v4795_v37, %v12284_v33  ;;  %v4796_v12 = vld [vmem:[%s15327_s4 + $0x168] sm:$0xff] }
 0x32f   : > { %3223 = vst.msk [vmem:[#allocation4 + $0x1a8] sm:$0xff] %vm972_vm3, %v3177_v43  ;;  %3805 = vmatprep.mubr.bf16.mxu1 %v3329_v58  ;;  %v12294_v43 = vld [vmem:[#allocation3 + $0x168] sm:$0xff]  ;;  %v12300_v58 = vld [vmem:[#allocation3 + $0x170] sm:$0xff] }
 0x330   : > { %5025 = vrot.lane.b32.xlu1 %v4856_v32, %s10256_s10  ;;  %v3179_v19 = vpop.permute.xlu0 %3178  ;;  %v3332_v32 = vld [vmem:[#allocation4 + $0x2f0] sm:$0xff] }
 0x331   : > { %5027 = vrot.lane.b32.xlu0 %v4857_v38, %s10256_s10  ;;  %3224 = vst.msk [vmem:[#allocation4 + $0x1c0] sm:$0xff] %vm972_vm3, %v3179_v19  ;;  %v4860_v38 = vmul.f32 %v4796_v12, %v12294_v43  ;;  %v3328_v19 = vld [vmem:[#allocation4 + $0x2d0] sm:$0xff]  ;;  %v4862_v12 = vmul.f32 %v4798_v44, %v12310_v21 }
 0x332   : > { %v3181_v7 = vpop.permute.xlu1 %3180  ;;  %v4801_v44 = vld [vmem:[%s15327_s4 + $0x190] sm:$0xff] }
 0x333   : > { %3225 = vst.msk [vmem:[#allocation4 + $0x1d8] sm:$0xff] %vm972_vm3, %v3181_v7  ;;  %v4861_v7 = vmul.f32 %v4797_v61, %v12300_v58 }
 0x334   : > { %5029 = vrot.lane.b32.xlu1 %v4858_v59, %s10256_s10  ;;  %v3183_v37 = vpop.permute.xlu0 %3182  ;;  %v12316_v59 = vld [vmem:[#allocation3 + $0x180] sm:$0xff] }
 0x335   : > { %5031 = vrot.lane.b32.xlu0 %v4859_v15, %s10256_s10  ;;  %3226 = vst.msk [vmem:[#allocation4 + $0x1f0] sm:$0xff] %vm972_vm3, %v3183_v37  ;;  %v4799_v15 = vld [vmem:[%s15327_s4 + $0x180] sm:$0xff] }
 0x336   : > { %v3185_v14 = vpop.permute.xlu1 %3184  ;;  %3806 = vmatmul.mubr.bf16.gmra.mrb[24].mxu1 %v3328_v19  ;;  %v4863_v19 = vmul.f32 %v4799_v15, %v12316_v59  ;;  %v3331_v15 = vld [vmem:[#allocation4 + $0x2e8] sm:$0xff] }
 0x337   : > { %3227 = vst.msk [vmem:[#allocation4 + $0x208] sm:$0xff] %vm972_vm3, %v3185_v14  ;;  %3813 = vmatprep.mubr.bf16.mxu1 %v3332_v32  ;;  %v12326_v14 = vld [vmem:[#allocation3 + $0x188] sm:$0xff]  ;;  %v12332_v32 = vld [vmem:[#allocation3 + $0x190] sm:$0xff] }
 0x338   : > { %5033 = vrot.lane.b32.xlu1 %v4860_v38, %s10256_s10  ;;  %v3187_v61 = vpop.permute.xlu0 %3186  ;;  %v4864_v38 = vmul.f32 %v4800_v56, %v12326_v14  ;;  %v4865_v22 = vmul.f32 %v4801_v44, %v12332_v32  ;;  %v12348_v56 = vld [vmem:[#allocation3 + $0x1a0] sm:$0xff] }
 0x339   : > { %5035 = vrot.lane.b32.xlu0 %v4861_v7, %s10256_s10  ;;  %3228 = vst.msk [vmem:[#allocation4 + $0x220] sm:$0xff] %vm972_vm3, %v3187_v61 }
 0x33a   : > { %v3189_v37 = vpop.permute.xlu1 %3188 }
 0x33b   : > { %3229 = vst.msk [vmem:[#allocation4 + $0x238] sm:$0xff] %vm972_vm3, %v3189_v37  ;;  %v12342_v37 = vld [vmem:[#allocation3 + $0x198] sm:$0xff] }
 0x33c   : > { %5037 = vrot.lane.b32.xlu1 %v4862_v12, %s10256_s10  ;;  %v3191_v7 = vpop.permute.xlu0 %3190  ;;  %v4803_v12 = vld [vmem:[%s15327_s4 + $0x1a0] sm:$0xff] }
 0x33d   : > { %5039 = vrot.lane.b32.xlu0 %v4863_v19, %s10256_s10  ;;  %3230 = vst.msk [vmem:[#allocation4 + $0x250] sm:$0xff] %vm972_vm3, %v3191_v7  ;;  %v4866_v19 = vmul.f32 %v4802_v50, %v12342_v37  ;;  %v4805_v50 = vld [vmem:[%s15327_s4 + $0x1b0] sm:$0xff] }
 0x33e   : > { %v3193_v61 = vpop.permute.xlu1 %3192  ;;  %3814 = vmatmul.mubr.bf16.gmra.mrb[28].mxu1 %v3331_v15  ;;  %v4867_v15 = vmul.f32 %v4803_v12, %v12348_v56  ;;  %v3243_v12 = vld [vmem:[#allocation4 + $0x28] sm:$0xff] }
 0x33f   : > { %3231 = vst.msk [vmem:[#allocation4 + $0x268] sm:$0xff] %vm972_vm3, %v3193_v61  ;;  %8943 = vmatprep.mubr.bf16.mxu1 %v3240_v46  ;;  %v12358_v61 = vld [vmem:[#allocation3 + $0x1a8] sm:$0xff]  ;;  %v12364_v46 = vld [vmem:[#allocation3 + $0x1b0] sm:$0xff] }
 0x340   : > { %5041 = vrot.lane.b32.xlu1 %v4864_v38, %s10256_s10  ;;  %v3195_v44 = vpop.permute.xlu0 %3194  ;;  %v4869_v30 = vmul.f32 %v4805_v50, %v12364_v46 }
 0x341   : > { %5043 = vrot.lane.b32.xlu0 %v4865_v22, %s10256_s10  ;;  %3232 = vst.msk [vmem:[#allocation4 + $0x280] sm:$0xff] %vm972_vm3, %v3195_v44  ;;  %v4868_v22 = vmul.f32 %v4804_v9, %v12358_v61  ;;  %v12380_v9 = vld [vmem:[#allocation3 + $0x1c0] sm:$0xff] }
 0x342   : > { %v3197_v7 = vpop.permute.xlu1 %3196 }
 0x343   : > { %3233 = vst.msk [vmem:[#allocation4 + $0x298] sm:$0xff] %vm972_vm3, %v3197_v7  ;;  %v12374_v7 = vld [vmem:[#allocation3 + $0x1b8] sm:$0xff] }
 0x344   : > { %5045 = vrot.lane.b32.xlu1 %v4866_v19, %s10256_s10  ;;  %v3199_v38 = vpop.permute.xlu0 %3198  ;;  %v4807_v19 = vld [vmem:[%s15327_s4 + $0x1c0] sm:$0xff] }
 0x345   : > { %5047 = vrot.lane.b32.xlu0 %v4867_v15, %s10256_s10  ;;  %3234 = vst.msk [vmem:[#allocation4 + $0x2b0] sm:$0xff] %vm972_vm3, %v3199_v38  ;;  %v4870_v15 = vmul.f32 %v4806_v41, %v12374_v7  ;;  %v4809_v41 = vld [vmem:[%s15327_s4 + $0x1d0] sm:$0xff] }
 0x346   : > { %v3201_v44 = vpop.permute.xlu1 %3200  ;;  %8944 = vmatmul.mubr.bf16.vlgmr.msra.gmra.mrb[32].mxu1 %v3243_v12  ;;  %v4871_v12 = vmul.f32 %v4807_v19, %v12380_v9 }
 0x347   : > { %3235 = vst.msk [vmem:[#allocation4 + $0x2c8] sm:$0xff] %vm972_vm3, %v3201_v44  ;;  %8947 = vmatprep.mubr.bf16.mxu1 %v3246_v18  ;;  %v12390_v44 = vld [vmem:[#allocation3 + $0x1c8] sm:$0xff]  ;;  %v12396_v18 = vld [vmem:[#allocation3 + $0x1d0] sm:$0xff] }
 0x348   : > { %5049 = vrot.lane.b32.xlu1 %v4868_v22, %s10256_s10  ;;  %v3203_v50 = vpop.permute.xlu0 %3202  ;;  %15514 = vst [vmem:[#allocation37_spill] sm:$0xff] %v12396_v18  ;;  %v3249_v22 = vld [vmem:[#allocation4 + $0x58] sm:$0xff]  ;;  %v4873_v19 = vmul.f32 %v4809_v41, %v12396_v18  ;;  %v12421_v41 = vld [vmem:[#allocation3 + $0x1e8] sm:$0xff]  ;;  %v3258_v18 = vld [vmem:[#allocation4 + $0xa0] sm:$0xff] }
 0x349   : > { %5051 = vrot.lane.b32.xlu0 %v4869_v30, %s10256_s10  ;;  %3236 = vst.msk [vmem:[#allocation4 + $0x2e0] sm:$0xff] %vm972_vm3, %v3203_v50  ;;  %v4872_v30 = vmul.f32 %v4808_v29, %v12390_v44  ;;  %v12405_v50 = vld [vmem:[#allocation3 + $0x1d8] sm:$0xff]  ;;  %v4811_v29 = vld [vmem:[%s15327_s4 + $0x1e0] sm:$0xff] }
 0x34a   : > { %v3205_v38 = vpop.permute.xlu1 %3204  ;;  %15515 = vst [vmem:[#allocation38_spill] sm:$0xff] %v12405_v50 }
 0x34b   : > { %3237 = vst.msk [vmem:[#allocation4 + $0x2f8] sm:$0xff] %vm972_vm3, %v3205_v38  ;;  %v4810_v38 = vld [vmem:[%s15327_s4 + $0x1d8] sm:$0xff] }
 0x34c   : > { %5053 = vrot.lane.b32.xlu1 %v4870_v15, %s10256_s10  ;;  %v12410_v16 = vpop.permute.xlu0 %4943  ;;  %v4874_v15 = vmul.f32 %v4810_v38, %v12405_v50  ;;  %v3255_v38 = vld [vmem:[#allocation4 + $0x88] sm:$0xff]  ;;  %v4814_v50 = vld [vmem:[%s15327_s4 + $0x1f8] sm:$0xff] }
 0x34d   : > { %5055 = vrot.lane.b32.xlu0 %v4871_v12, %s10256_s10  ;;  %15516 = vst [vmem:[#allocation39_spill] sm:$0xff] %v12410_v16  ;;  %v4875_v12 = vmul.f32 %v4811_v29, %v12412_v57  ;;  %v12426_v16 = vld [vmem:[#allocation3 + $0x1f0] sm:$0xff]  ;;  %v12439_v57 = vld [vmem:[#allocation3 + $0x1f8] sm:$0xff] }
 0x34e   : > { %8948 = vmatmul.mubr.bf16.gmra.mrb[36].mxu1 %v3249_v22  ;;  %v4812_v22 = vld [vmem:[%s15327_s4 + $0x1e8] sm:$0xff]  ;;  %v12431_v1 = vpop.permute.xlu1 %4945 }
 0x34f   : > { %8951 = vmatprep.mubr.bf16.mxu1 %v3252_v45  ;;  %v4813_v45 = vld [vmem:[%s15327_s4 + $0x1f0] sm:$0xff]  ;;  %15518 = vst [vmem:[#allocation41_spill] sm:$0xff] %v12431_v1 }
 0x350   : > { %5057 = vrot.lane.b32.xlu1 %v4872_v30, %s10256_s10  ;;  %v12434_v30 = vpop.permute.xlu0 %4947  ;;  %v4877_v29 = vmul.f32 %v4813_v45, %v12426_v16  ;;  %v10153_v45 = vld [vmem:[#allocation3] sm:$0xff] }
 0x351   : > { %5059 = vrot.lane.b32.xlu0 %v4873_v19, %s10256_s10  ;;  %15519 = vst [vmem:[#allocation42_spill] sm:$0xff] %v12434_v30  ;;  %v4876_v19 = vmul.f32 %v4812_v22, %v12421_v41  ;;  %v3261_v22 = vld [vmem:[#allocation4 + $0xb8] sm:$0xff] }
 0x352   : > { %v12446_v1 = vpop.permute.xlu1 %4949 }
 0x353   : > { %15520 = vst [vmem:[#allocation43_spill] sm:$0xff] %v12446_v1  ;;  %v10155_v1 = vld [vmem:[#allocation3 + $0x10] sm:$0xff] }
 0x354   : > { %5061 = vrot.lane.b32.xlu1 %v4874_v15, %s10256_s10  ;;  %v4878_v15 = vmul.f32 %v4814_v50, %v12439_v57  ;;  %v10154_v50 = vld [vmem:[#allocation3 + $0x8] sm:$0xff] }
 0x355   : > { %5063 = vrot.lane.b32.xlu0 %v4875_v12, %s10256_s10  ;;  %v12449_v12 = vpop.permute.xlu0 %4951 }
 0x356   : > { %8952 = vmatmul.mubr.bf16.gmra.mrb[40].mxu1 %v3255_v38  ;;  %15521 = vst [vmem:[#allocation44_spill] sm:$0xff] %v12449_v12  ;;  %v3264_v38 = vld [vmem:[#allocation4 + $0xd0] sm:$0xff] }
 0x357   : > { %8955 = vmatprep.mubr.bf16.mxu1 %v3258_v18  ;;  %v12453_v18 = vpop.permute.xlu1 %4953 }
 0x358   : > { %5065 = vrot.lane.b32.xlu1 %v4876_v19, %s10256_s10  ;;  %15522 = vst [vmem:[#allocation45_spill] sm:$0xff] %v12453_v18  ;;  %v10158_v18 = vld [vmem:[#allocation3 + $0x28] sm:$0xff] }
 0x359   : > { %5067 = vrot.lane.b32.xlu0 %v4877_v29, %s10256_s10  ;;  %v12455_v19 = vpop.permute.xlu0 %4955  ;;  %v10156_v29 = vld [vmem:[#allocation3 + $0x18] sm:$0xff] }
 0x35a   : > { %15523 = vst [vmem:[#allocation46_spill] sm:$0xff] %v12455_v19  ;;  %v10160_v19 = vld [vmem:[#allocation3 + $0x38] sm:$0xff] }
 0x35b   : > { %v12460_v12 = vpop.permute.xlu1 %4957 }
 0x35c   : > { %5069 = vrot.lane.b32.xlu1 %v4878_v15, %s10256_s10  ;;  %v3267_v15 = vld [vmem:[#allocation4 + $0xe8] sm:$0xff]  ;;  %15524 = vst [vmem:[#allocation47_spill] sm:$0xff] %v12460_v12  ;;  %v3273_v12 = vld [vmem:[#allocation4 + $0x118] sm:$0xff] }
 0x35d   : > { %5647 = vrot.lane.b32.xlu0 %v10153_v45, %s10256_s10  ;;  %v10157_v45 = vld [vmem:[#allocation3 + $0x20] sm:$0xff] }
 0x35e   : > { %8956 = vmatmul.mubr.bf16.gmra.mrb[44].mxu1 %v3261_v22  ;;  %v3270_v22 = vld [vmem:[#allocation4 + $0x100] sm:$0xff] }
 0x35f   : > { %8959 = vmatprep.mubr.bf16.mxu1 %v3264_v38  ;;  %v12463_v38 = vpop.permute.xlu0 %4959 }
 0x360   : > { %5649 = vrot.lane.b32.xlu1 %v10154_v50, %s10256_s10  ;;  %15525 = vst [vmem:[#allocation48_spill] sm:$0xff] %v12463_v38  ;;  %v10159_v50 = vld [vmem:[#allocation3 + $0x30] sm:$0xff]  ;;  %v15630_v38 = vld [vmem:[#allocation24_spill] sm:$0xff] }
 0x361   : > { %5651 = vrot.lane.b32.xlu0 %v10155_v1, %s10256_s10  ;;  %v12467_v1 = vpop.permute.xlu1 %4961 }
 0x362   : > { %15526 = vst [vmem:[#allocation49_spill] sm:$0xff] %v12467_v1 }
 0x364   : > { %5653 = vrot.lane.b32.xlu1 %v10156_v29, %s10256_s10  ;;  %v12469_v29 = vpop.permute.xlu0 %4963 }
 0x365   : > { %5655 = vrot.lane.b32.xlu0 %v10157_v45, %s10256_s10  ;;  %15527 = vst [vmem:[#allocation50_spill] sm:$0xff] %v12469_v29 }
 0x366   : > { %8960 = vmatmul.mubr.bf16.gmra.mrb[48].mxu1 %v3267_v15  ;;  %v3276_v15 = vld [vmem:[#allocation4 + $0x130] sm:$0xff] }
 0x367   : > { %8963 = vmatprep.mubr.bf16.mxu1 %v3270_v22 }
 0x368   : > { %5657 = vrot.lane.b32.xlu1 %v10158_v18, %s10256_s10  ;;  %v12476_v18 = vpop.permute.xlu1 %4965  ;;  %v12480_v45 = vpop.permute.xlu0 %4967 }
 0x369   : > { %5659 = vrot.lane.b32.xlu0 %v10159_v50, %s10256_s10  ;;  %15528 = vst [vmem:[#allocation51_spill] sm:$0xff] %v12476_v18  ;;  %15529 = vst [vmem:[#allocation52_spill] sm:$0xff] %v12480_v45  ;;  %v15621_v45 = vld [vmem:[#allocation20_spill] sm:$0xff] }
 0x36c   : > { %5661 = vrot.lane.b32.xlu1 %v10160_v19, %s10256_s10  ;;  %v3279_v19 = vld [vmem:[#allocation4 + $0x148] sm:$0xff] }
 0x36d   : > { %5663 = vrot.lane.b32.xlu0 %v11926_v24, %s10256_s10  ;;  %v3282_v24 = vld [vmem:[#allocation4 + $0x160] sm:$0xff] }
 0x36e   : > { %8964 = vmatmul.mubr.bf16.gmra.mrb[52].mxu1 %v3273_v12  ;;  %v12486_v12 = vpop.permute.xlu1 %4969 }
 0x36f   : > { %8967 = vmatprep.mubr.bf16.mxu1 %v3276_v15  ;;  %15530 = vst [vmem:[#allocation53_spill] sm:$0xff] %v12486_v12 }
 0x370   : > { %5665 = vrot.lane.b32.xlu1 %v11931_v54, %s10256_s10  ;;  %v12488_v54 = vpop.permute.xlu0 %4971 }
 0x371   : > { %5667 = vrot.lane.b32.xlu0 %v11942_v34, %s10256_s10  ;;  %15531 = vst [vmem:[#allocation54_spill] sm:$0xff] %v12488_v54  ;;  %v3288_v34 = vld [vmem:[#allocation4 + $0x190] sm:$0xff]  ;;  %v15620_v54 = vld [vmem:[#allocation18_spill] sm:$0xff] }
 0x372   : > { %v12496_v22 = vpop.permute.xlu1 %4973 }
 0x373   : > { %15532 = vst [vmem:[#allocation55_spill] sm:$0xff] %v12496_v22 }
 0x374   : > { %5669 = vrot.lane.b32.xlu1 %v11947_v47, %s10256_s10  ;;  %v3285_v47 = vld [vmem:[#allocation4 + $0x178] sm:$0xff] }
 0x375   : > { %5671 = vrot.lane.b32.xlu0 %v11962_v6, %s10256_s10  ;;  %v12500_v6 = vpop.permute.xlu0 %4975 }
 0x376   : > { %8968 = vmatmul.mubr.bf16.gmra.mrb[56].mxu1 %v3279_v19  ;;  %15533 = vst [vmem:[#allocation56_spill] sm:$0xff] %v12500_v6  ;;  %v15612_v6 = vld [vmem:[#allocation16_spill] sm:$0xff] }
 0x377   : > { %8971 = vmatprep.mubr.bf16.mxu1 %v3282_v24 }
 0x378   : > { %5673 = vrot.lane.b32.xlu1 %v11967_v35, %s10256_s10  ;;  %v3291_v35 = vld [vmem:[#allocation4 + $0x1a8] sm:$0xff] }
 0x379   : > { %5675 = vrot.lane.b32.xlu0 %v11980_v51, %s10256_s10  ;;  %v12506_v51 = vpop.permute.xlu1 %4977  ;;  %v12508_v50 = vpop.permute.xlu0 %4979 }
 0x37a   : > { %15534 = vst [vmem:[#allocation57_spill] sm:$0xff] %v12506_v51  ;;  %15535 = vst [vmem:[#allocation58_spill] sm:$0xff] %v12508_v50 }
 0x37c   : > { %5677 = vrot.lane.b32.xlu1 %v11985_v8, %s10256_s10  ;;  %v3294_v8 = vld [vmem:[#allocation4 + $0x1c0] sm:$0xff] }
 0x37d   : > { %5679 = vrot.lane.b32.xlu0 %v12002_v3, %s10256_s10  ;;  %v12516_v3 = vpop.permute.xlu1 %4981 }
 0x37e   : > { %8972 = vmatmul.mubr.bf16.gmra.mrb[60].mxu1 %v3285_v47  ;;  %15536 = vst [vmem:[#allocation59_spill] sm:$0xff] %v12516_v3 }
 0x37f   : > { %8975 = vmatprep.mubr.bf16.mxu1 %v3288_v34 }
 0x380   : > { %5681 = vrot.lane.b32.xlu1 %v12007_v10, %s10256_s10  ;;  %v12520_v10 = vpop.permute.xlu0 %4983 }
 0x381   : > { %5683 = vrot.lane.b32.xlu0 %v12020_v40, %s10256_s10  ;;  %15537 = vst [vmem:[#allocation60_spill] sm:$0xff] %v12520_v10  ;;  %v3297_v40 = vld [vmem:[#allocation4 + $0x1d8] sm:$0xff]  ;;  %v15595_v10 = vld [vmem:[#allocation9_spill] sm:$0xff] }
 0x384   : > { %5685 = vrot.lane.b32.xlu1 %v12025_v60, %s10256_s10  ;;  %v3300_v60 = vld [vmem:[#allocation4 + $0x1f0] sm:$0xff] }
 0x385   : > { %5687 = vrot.lane.b32.xlu0 %v12042_v26, %s10256_s10  ;;  %v12526_v26 = vpop.permute.xlu1 %4985 }
 0x386   : > { %8976 = vmatmul.mubr.bf16.gmra.mrb[64].mxu1 %v3291_v35  ;;  %15538 = vst [vmem:[#allocation61_spill] sm:$0xff] %v12526_v26 }
 0x387   : > { %8979 = vmatprep.mubr.bf16.mxu1 %v3294_v8 }
 0x388   : > { %5689 = vrot.lane.b32.xlu1 %v12047_v48, %s10256_s10  ;;  %v12528_v48 = vpop.permute.xlu0 %4987 }
 0x389   : > { %5691 = vrot.lane.b32.xlu0 %v12064_v62, %s10256_s10  ;;  %15539 = vst [vmem:[#allocation62_spill] sm:$0xff] %v12528_v48  ;;  %v3303_v62 = vld [vmem:[#allocation4 + $0x208] sm:$0xff] }
 0x38c   : > { %5693 = vrot.lane.b32.xlu1 %v12072_v28, %s10256_s10  ;;  %v12536_v28 = vpop.permute.xlu1 %4989  ;;  %v12540_v15 = vpop.permute.xlu0 %4991 }
 0x38d   : > { %5695 = vrot.lane.b32.xlu0 %v12087_v4, %s10256_s10  ;;  %15540 = vst [vmem:[#allocation63_spill] sm:$0xff] %v12536_v28  ;;  %v3306_v4 = vld [vmem:[#allocation4 + $0x220] sm:$0xff]  ;;  %15541 = vst [vmem:[#allocation64_spill] sm:$0xff] %v12540_v15 }
 0x38e   : > { %8980 = vmatmul.mubr.bf16.gmra.mrb[68].mxu1 %v3297_v40 }
 0x38f   : > { %8983 = vmatprep.mubr.bf16.mxu1 %v3300_v60 }
 0x390   : > { %5697 = vrot.lane.b32.xlu1 %v12094_v55, %s10256_s10  ;;  %v12546_v55 = vpop.permute.xlu1 %4993 }
 0x391   : > { %5699 = vrot.lane.b32.xlu0 %v12113_v17, %s10256_s10  ;;  %15542 = vst [vmem:[#allocation65_spill] sm:$0xff] %v12546_v55  ;;  %v12548_v17 = vpop.permute.xlu0 %4995  ;;  %v15588_v55 = vld [vmem:[#allocation6_spill] sm:$0xff] }
 0x392   : > { %15543 = vst [vmem:[#allocation66_spill] sm:$0xff] %v12548_v17 }
 0x394   : > { %5701 = vrot.lane.b32.xlu1 %v12120_v23, %s10256_s10  ;;  %v3309_v23 = vld [vmem:[#allocation4 + $0x238] sm:$0xff] }
 0x395   : > { %5703 = vrot.lane.b32.xlu0 %v12134_v27, %s10256_s10  ;;  %v3312_v27 = vld [vmem:[#allocation4 + $0x250] sm:$0xff] }
 0x396   : > { %8984 = vmatmul.mubr.bf16.gmra.mrb[72].mxu1 %v3303_v62 }
 0x397   : > { %8987 = vmatprep.mubr.bf16.mxu1 %v3306_v4 }
 0x398   : > { %5705 = vrot.lane.b32.xlu1 %v12147_v36, %s10256_s10  ;;  %v12556_v36 = vpop.permute.xlu1 %4997 }
 0x399   : > { %5707 = vrot.lane.b32.xlu0 %v12154_v20, %s10256_s10  ;;  %15544 = vst [vmem:[#allocation67_spill] sm:$0xff] %v12556_v36  ;;  %v12560_v20 = vpop.permute.xlu0 %4999 }
 0x39a   : > { %15545 = vst [vmem:[#allocation68_spill] sm:$0xff] %v12560_v20 }
 0x39c   : > { %5709 = vrot.lane.b32.xlu1 %v12168_v52, %s10256_s10  ;;  %v3315_v52 = vld [vmem:[#allocation4 + $0x268] sm:$0xff]  ;;  %v12566_v19 = vpop.permute.xlu1 %5001 }
 0x39d   : > { %5711 = vrot.lane.b32.xlu0 %v12174_v0, %s10256_s10  ;;  %v3318_v0 = vld [vmem:[#allocation4 + $0x280] sm:$0xff]  ;;  %15546 = vst [vmem:[#allocation69_spill] sm:$0xff] %v12566_v19 }
 0x39e   : > { %8988 = vmatmul.mubr.bf16.gmra.mrb[76].mxu1 %v3309_v23 }
 0x39f   : > { %8991 = vmatprep.mubr.bf16.mxu1 %v3312_v27 }
 0x3a0   : > { %5713 = vrot.lane.b32.xlu1 %v12189_v2, %s10256_s10  ;;  %v12568_v2 = vpop.permute.xlu0 %5003 }
 0x3a1   : > { %5715 = vrot.lane.b32.xlu0 %v12195_v53, %s10256_s10  ;;  %15547 = vst [vmem:[#allocation70_spill] sm:$0xff] %v12568_v2  ;;  %v12576_v53 = vpop.permute.xlu1 %5005 }
 0x3a2   : > { %15548 = vst [vmem:[#allocation71_spill] sm:$0xff] %v12576_v53 }
 0x3a4   : > { %5717 = vrot.lane.b32.xlu1 %v12210_v49, %s10256_s10  ;;  %v3321_v49 = vld [vmem:[#allocation4 + $0x298] sm:$0xff]  ;;  %v12580_v24 = vpop.permute.xlu0 %5007 }
 0x3a5   : > { %5719 = vrot.lane.b32.xlu0 %v12216_v13, %s10256_s10  ;;  %v3324_v13 = vld [vmem:[#allocation4 + $0x2b0] sm:$0xff]  ;;  %15549 = vst [vmem:[#allocation72_spill] sm:$0xff] %v12580_v24 }
 0x3a6   : > { %8992 = vmatmul.mubr.bf16.gmra.mrb[80].mxu1 %v3315_v52 }
 0x3a7   : > { %8995 = vmatprep.mubr.bf16.mxu1 %v3318_v0 }
 0x3a8   : > { %5721 = vrot.lane.b32.xlu1 %v12228_v42, %s10256_s10  ;;  %v12586_v42 = vpop.permute.xlu1 %5009 }
 0x3a9   : > { %5723 = vrot.lane.b32.xlu0 %v12234_v25, %s10256_s10  ;;  %15550 = vst [vmem:[#allocation73_spill] sm:$0xff] %v12586_v42  ;;  %v3327_v25 = vld [vmem:[#allocation4 + $0x2c8] sm:$0xff] }
 0x3ac   : > { %5725 = vrot.lane.b32.xlu1 %v12246_v31, %s10256_s10  ;;  %v12588_v31 = vpop.permute.xlu0 %5011 }
 0x3ad   : > { %5727 = vrot.lane.b32.xlu0 %v12252_v39, %s10256_s10  ;;  %15551 = vst [vmem:[#allocation74_spill] sm:$0xff] %v12588_v31  ;;  %v3330_v39 = vld [vmem:[#allocation4 + $0x2e0] sm:$0xff] }
 0x3ae   : > { %8996 = vmatmul.mubr.bf16.gmra.mrb[84].mxu1 %v3321_v49 }
 0x3af   : > { %8999 = vmatprep.mubr.bf16.mxu1 %v3324_v13 }
 0x3b0   : > { %5729 = vrot.lane.b32.xlu1 %v12262_v5, %s10256_s10  ;;  %v12596_v5 = vpop.permute.xlu1 %5013 }
 0x3b1   : > { %5731 = vrot.lane.b32.xlu0 %v12268_v63, %s10256_s10  ;;  %15552 = vst [vmem:[#allocation75_spill] sm:$0xff] %v12596_v5  ;;  %v12600_v63 = vpop.permute.xlu0 %5015 }
 0x3b2   : > { %15553 = vst [vmem:[#allocation76_spill] sm:$0xff] %v12600_v63 }
 0x3b4   : > { %5733 = vrot.lane.b32.xlu1 %v12278_v11, %s10256_s10  ;;  %v3333_v11 = vld [vmem:[#allocation4 + $0x2f8] sm:$0xff] }
 0x3b5   : > { %5735 = vrot.lane.b32.xlu0 %v12284_v33, %s10256_s10  ;;  %v12606_v33 = vpop.permute.xlu1 %5017  ;;  %v12608_v34 = vpop.permute.xlu0 %5019 }
 0x3b6   : > { %9000 = vmatmul.mubr.bf16.gmra.mrb[88].mxu1 %v3327_v25  ;;  %15554 = vst [vmem:[#allocation77_spill] sm:$0xff] %v12606_v33  ;;  %15555 = vst [vmem:[#allocation78_spill] sm:$0xff] %v12608_v34 }
 0x3b7   : > { %9003 = vmatprep.mubr.bf16.mxu1 %v3330_v39 }
 0x3b8   : > { %5737 = vrot.lane.b32.xlu1 %v12294_v43, %s10256_s10 }
 0x3b9   : > { %5739 = vrot.lane.b32.xlu0 %v12300_v58, %s10256_s10  ;;  %v12616_v43 = vpop.permute.xlu1 %5021 }
 0x3ba   : > { %15556 = vst [vmem:[#allocation79_spill] sm:$0xff] %v12616_v43 }
 0x3bc   : > { %5741 = vrot.lane.b32.xlu1 %v12310_v21, %s10256_s10  ;;  %v12620_v21 = vpop.permute.xlu0 %5023 }
 0x3bd   : > { %5743 = vrot.lane.b32.xlu0 %v12316_v59, %s10256_s10  ;;  %15557 = vst [vmem:[#allocation80_spill] sm:$0xff] %v12620_v21 }
 0x3be   : > { %9004 = vmatmul.mubr.bf16.gmra.mrb[92].mxu1 %v3333_v11 }
 0x3c0   : > { %5745 = vrot.lane.b32.xlu1 %v12326_v14, %s10256_s10  ;;  %v12632_v47 = vpop.permute.xlu0 %5027 }
 0x3c1   : > { %5747 = vrot.lane.b32.xlu0 %v12332_v32, %s10256_s10  ;;  %v12630_v32 = vpop.permute.xlu1 %5025  ;;  %15559 = vst [vmem:[#allocation82_spill] sm:$0xff] %v12632_v47 }
 0x3c2   : > { %15558 = vst [vmem:[#allocation81_spill] sm:$0xff] %v12630_v32 }
 0x3c4   : > { %5749 = vrot.lane.b32.xlu1 %v12342_v37, %s10256_s10  ;;  %v12646_v8 = vpop.permute.xlu0 %5031 }
 0x3c5   : > { %5751 = vrot.lane.b32.xlu0 %v12348_v56, %s10256_s10 }
 0x3c8   : > { %5753 = vrot.lane.b32.xlu1 %v12358_v61, %s10256_s10  ;;  %v12642_v61 = vpop.permute.xlu1 %5029  ;;  %v12656_v62 = vpop.permute.xlu0 %5035 }
 0x3c9   : > { %v12624_v58 = vpop.f32.mrb[64].mxu0  ;;  %5755 = vrot.lane.b32.xlu0 %v12364_v46, %s10256_s10  ;;  %15560 = vst [vmem:[#allocation83_spill] sm:$0xff] %v12642_v61  ;;  %v15561_v46 = vld [vmem:[#allocation37_spill] sm:$0xff] }
 0x3ca   : > { %v3697_v59 = vpop.f32.mrb[65].mxu0  ;;  %15562 = vst [vmem:[#allocation37_spill] sm:$0xff] %v12646_v8 }
 0x3cb   : > { %v12628_v14 = vpop.f32.mrb[66].mxu0 }
 0x3cc   : > { %v3700_v37 = vpop.f32.mrb[67].mxu0  ;;  %5757 = vrot.lane.b32.xlu1 %v12374_v7, %s10256_s10  ;;  %v15563_v7 = vld [vmem:[#allocation38_spill] sm:$0xff] }
 0x3cd   : > { %5759 = vrot.lane.b32.xlu0 %v12380_v9, %s10256_s10  ;;  %v15564_v9 = vld [vmem:[#allocation40_spill] sm:$0xff] }
 0x3ce   : > { %15566 = vst [vmem:[#allocation40_spill] sm:$0xff] %v12656_v62 }
 0x3d0   : > { %5761 = vrot.lane.b32.xlu1 %v12390_v44, %s10256_s10  ;;  %v12654_v44 = vpop.permute.xlu1 %5033 }
 0x3d1   : > { %v12640_v56 = vpop.f32.mrb[68].mxu0  ;;  %5763 = vrot.lane.b32.xlu0 %v15561_v46, %s10256_s10  ;;  %15565 = vst [vmem:[#allocation38_spill] sm:$0xff] %v12654_v44 }
 0x3d2   : > { %v3705_v35 = vpop.f32.mrb[69].mxu0 }
 0x3d3   : > { %v12648_v40 = vpop.f32.mrb[70].mxu0 }
 0x3d4   : > { %v3708_v60 = vpop.f32.mrb[71].mxu0  ;;  %5765 = vrot.lane.b32.xlu1 %v15563_v7, %s10256_s10  ;;  %v12672_v39 = vpop.permute.xlu1 %5037 }
 0x3d5   : > { %5767 = vrot.lane.b32.xlu0 %v15564_v9, %s10256_s10  ;;  %15567 = vst [vmem:[#allocation84_spill] sm:$0xff] %v12672_v39 }
 0x3d8   : > { %5769 = vrot.lane.b32.xlu1 %v12421_v41, %s10256_s10  ;;  %v12674_v41 = vpop.permute.xlu0 %5039  ;;  %v12684_v9 = vpop.permute.xlu1 %5041 }
 0x3d9   : > { %v12660_v4 = vpop.f32.mrb[72].mxu0  ;;  %v12662_v23 = vpop.f32.mrb[0].mxu1  ;;  %5771 = vrot.lane.b32.xlu0 %v12426_v16, %s10256_s10  ;;  %15568 = vst [vmem:[#allocation85_spill] sm:$0xff] %v12674_v41  ;;  %15569 = vst [vmem:[#allocation86_spill] sm:$0xff] %v12684_v9 }
 0x3da   : > { %v3713_v27 = vpop.f32.mrb[73].mxu0  ;;  %v3761_v52 = vpop.f32.mrb[1].mxu1 }
 0x3db   : > { %v12666_v0 = vpop.f32.mrb[74].mxu0  ;;  %v12668_v49 = vpop.f32.mrb[2].mxu1 }
 0x3dc   : > { %v3716_v13 = vpop.f32.mrb[75].mxu0  ;;  %v3764_v25 = vpop.f32.mrb[3].mxu1  ;;  %5773 = vrot.lane.b32.xlu1 %v12439_v57, %s10256_s10 }
 0x3dd   : > { %v12686_v27 = vpop.permute.xlu0 %5043  ;;  %v12696_v44 = vpop.permute.xlu1 %5045 }
 0x3de   : > { %15570 = vst [vmem:[#allocation87_spill] sm:$0xff] %v12686_v27  ;;  %15571 = vst [vmem:[#allocation88_spill] sm:$0xff] %v12696_v44 }
 0x3e1   : > { %v12676_v11 = vpop.f32.mrb[76].mxu0  ;;  %v12678_v59 = vpop.f32.mrb[4].mxu1 }
 0x3e2   : > { %v3721_v16 = vpop.f32.mrb[77].mxu0  ;;  %v3769_v37 = vpop.f32.mrb[5].mxu1 }
 0x3e3   : > { %v12680_v46 = vpop.f32.mrb[78].mxu0  ;;  %v12682_v35 = vpop.f32.mrb[6].mxu1 }
 0x3e4   : > { %v3724_v60 = vpop.f32.mrb[79].mxu0  ;;  %v3772_v7 = vpop.f32.mrb[7].mxu1 }
 0x3e5   : > { %v12698_v60 = vpop.permute.xlu0 %5047  ;;  %v12708_v32 = vpop.permute.xlu1 %5049 }
 0x3e6   : > { %15572 = vst [vmem:[#allocation89_spill] sm:$0xff] %v12698_v60  ;;  %15573 = vst [vmem:[#allocation90_spill] sm:$0xff] %v12708_v32 }
 0x3e9   : > { %v12688_v57 = vpop.f32.mrb[80].mxu0  ;;  %v12690_v52 = vpop.f32.mrb[8].mxu1 }
 0x3ea   : > { %v3729_v13 = vpop.f32.mrb[81].mxu0  ;;  %v3777_v25 = vpop.f32.mrb[9].mxu1 }
 0x3eb   : > { %v12692_v41 = vpop.f32.mrb[82].mxu0  ;;  %v12694_v16 = vpop.f32.mrb[10].mxu1 }
 0x3ec   : > { %v3732_v37 = vpop.f32.mrb[83].mxu0  ;;  %v3780_v39 = vpop.f32.mrb[11].mxu1 }
 0x3ed   : > { %v12710_v37 = vpop.permute.xlu0 %5051  ;;  %v12720_v43 = vpop.permute.xlu1 %5053 }
 0x3ee   : > { %15574 = vst [vmem:[#allocation91_spill] sm:$0xff] %v12710_v37  ;;  %15575 = vst [vmem:[#allocation92_spill] sm:$0xff] %v12720_v43 }
 0x3f1   : > { %v12700_v7 = vpop.f32.mrb[84].mxu0  ;;  %v12702_v9 = vpop.f32.mrb[12].mxu1 }
 0x3f2   : > { %v3737_v27 = vpop.f32.mrb[85].mxu0  ;;  %v3785_v62 = vpop.f32.mrb[13].mxu1 }
 0x3f3   : > { %v12704_v8 = vpop.f32.mrb[86].mxu0  ;;  %v12706_v13 = vpop.f32.mrb[14].mxu1 }
 0x3f4   : > { %v3740_v25 = vpop.f32.mrb[87].mxu0  ;;  %v3788_v61 = vpop.f32.mrb[15].mxu1 }
 0x3f5   : > { %v12722_v25 = vpop.permute.xlu0 %5055 }
 0x3f6   : > { %15576 = vst [vmem:[#allocation93_spill] sm:$0xff] %v12722_v25 }
 0x3f9   : > { %v12712_v39 = vpop.f32.mrb[88].mxu0  ;;  %v12714_v44 = vpop.f32.mrb[16].mxu1 }
 0x3fa   : > { %v3745_v60 = vpop.f32.mrb[89].mxu0  ;;  %v3793_v47 = vpop.f32.mrb[17].mxu1 }
 0x3fb   : > { %v12716_v21 = vpop.f32.mrb[90].mxu0  ;;  %v12718_v27 = vpop.f32.mrb[18].mxu1 }
 0x3fc   : > { %v3748_v62 = vpop.f32.mrb[91].mxu0  ;;  %v3796_v33 = vpop.f32.mrb[19].mxu1 }
 0x3fd   : > { %v12732_v42 = vpop.permute.xlu0 %5059  ;;  %v12736_v33 = vpop.permute.xlu1 %5057 }
 0x3fe   : > { %15577 = vst [vmem:[#allocation94_spill] sm:$0xff] %v12732_v42  ;;  %15578 = vst [vmem:[#allocation95_spill] sm:$0xff] %v12736_v33  ;;  %v15584_v33 = vld [vmem:[#allocation5_spill] sm:$0xff] }
 0x401   : > { %v12724_v61 = vpop.f32.mrb[92].mxu0  ;;  %v12726_v32 = vpop.f32.mrb[20].mxu1 }
 0x402   : > { %v3753_v37 = vpop.f32.mrb[93].mxu0  ;;  %v3801_v63 = vpop.f32.mrb[21].mxu1 }
 0x403   : > { %v12728_v34 = vpop.f32.mrb[94].mxu0  ;;  %v12730_v60 = vpop.f32.mrb[22].mxu1 }
 0x404   : > { %v3756_v47 = vpop.f32.mrb[95].mxu0  ;;  %v3804_v5 = vpop.f32.mrb[23].mxu1 }
 0x405   : > { %v12740_v24 = vpop.permute.xlu0 %5063  ;;  %v12742_v37 = vpop.permute.xlu1 %5061 }
 0x406   : > { %15579 = vst [vmem:[#allocation96_spill] sm:$0xff] %v12740_v24  ;;  %15580 = vst [vmem:[#allocation97_spill] sm:$0xff] %v12742_v37 }
 0x409   : > { %v12734_v62 = vpop.f32.mrb[24].mxu1  ;;  %v12748_v47 = vpop.permute.xlu0 %5067 }
 0x40a   : > { %v3809_v43 = vpop.f32.mrb[25].mxu1  ;;  %15581 = vst [vmem:[#allocation98_spill] sm:$0xff] %v12748_v47  ;;  %v12750_v42 = vpop.permute.xlu1 %5065 }
 0x40b   : > { %v12738_v25 = vpop.f32.mrb[26].mxu1  ;;  %15582 = vst [vmem:[#allocation99_spill] sm:$0xff] %v12750_v42  ;;  %v12755_v43 = vld [vmem:[%s15325_s2] ss:$0 sm:$0xff] }
 0x40c   : > { %v3812_v31 = vpop.f32.mrb[27].mxu1  ;;  %v3568_v37 = vadd.f32 %v12755_v43, %v15584_v33  ;;  %v3571_v36 = vadd.f32 %v12755_v43, %v15588_v55  ;;  %v3584_v55 = vadd.f32 %v12755_v43, %v15595_v10 }
 0x40d   : > { %v15583_v31 = vld [vmem:[#allocation7_spill] sm:$0xff]  ;;  %v12765_v47 = vpop.permute.xlu0 %5647 }
 0x40e   : > { %v3576_v24 = vadd.f32 %v12755_v43, %v15583_v31  ;;  %15587 = vst [vmem:[#allocation5_spill] sm:$0xff] %v12765_v47  ;;  %v12769_v15 = vpop.permute.xlu1 %5069 }
 0x411   : > { %v12744_v63 = vpop.f32.mrb[28].mxu1 }
 0x412   : > { %v3817_v53 = vpop.f32.mrb[29].mxu1 }
 0x413   : > { %v12746_v19 = vpop.f32.mrb[30].mxu1  ;;  %v15585_v53 = vld [vmem:[#allocation8_spill] sm:$0xff] }
 0x414   : > { %v3820_v5 = vpop.f32.mrb[31].mxu1  ;;  %v3579_v20 = vadd.f32 %v12755_v43, %v15585_v53  ;;  %15589 = vst [vmem:[#allocation8_spill] sm:$0xff] %v12769_v15  ;;  %v12780_v53 = vpop.permute.xlu0 %5651 }
 0x418   : > { %v12799_v51 = vpop.permute.xlu0 %5655 }
 0x419   : > { %v8945_v2 = vpop.f32.mrb[32].mxu1  ;;  %15603 = vst [vmem:[#allocation104_spill] sm:$0xff] %v12799_v51 }
 0x41a   : > { %v12763_v5 = vadd.f32 %v8945_v2, %v3576_v24  ;;  %v3856_v42 = vpop.f32.mrb[33].mxu1  ;;  %v15593_v2 = vld [vmem:[#allocation11_spill] sm:$0xff] }
 0x41b   : > { %v12771_v17 = vadd.f32 %v3856_v42, %v3568_v37  ;;  %v8946_v31 = vpop.f32.mrb[34].mxu1  ;;  %v3592_v24 = vadd.f32 %v12755_v43, %v15593_v2  ;;  %15594 = vst [vmem:[#allocation11_spill] sm:$0xff] %v12780_v53  ;;  %v12785_v42 = vpop.permute.xlu1 %5649 }
 0x41c   : > { %15586 = vst [vmem:[#allocation7_spill] sm:$0xff] %v12763_v5  ;;  %v12773_v26 = vadd.f32 %v8946_v31, %v3579_v20  ;;  %v3859_v33 = vpop.f32.mrb[35].mxu1  ;;  %15596 = vst [vmem:[#allocation9_spill] sm:$0xff] %v12785_v42  ;;  %v15597_v20 = vld [vmem:[#allocation12_spill] sm:$0xff]  ;;  %v12814_v51 = vpop.permute.xlu0 %5659 }
 0x41d   : > { %15590 = vst [vmem:[#allocation6_spill] sm:$0xff] %v12771_v17  ;;  %9129 = vtanh.f32 %v12771_v17  ;;  %v12776_v28 = vadd.f32 %v3859_v33, %v3571_v36  ;;  %v3595_v31 = vadd.f32 %v12755_v43, %v15597_v20  ;;  %v15599_v33 = vld [vmem:[#allocation10_spill] sm:$0xff]  ;;  %v15605_v20 = vld [vmem:[#allocation15_spill] sm:$0xff]  ;;  %15609 = vst [vmem:[#allocation106_spill] sm:$0xff] %v12814_v51 }
 0x41e   : > { %15591 = vst [vmem:[#allocation100_spill] sm:$0xff] %v12773_v26  ;;  %9131 = vtanh.f32 %v12763_v5  ;;  %v3587_v47 = vadd.f32 %v12755_v43, %v15599_v33  ;;  %v15655_v17 = vld [vmem:[#allocation32_spill] sm:$0xff] }
 0x41f   : > { %15592 = vst [vmem:[#allocation101_spill] sm:$0xff] %v12776_v28  ;;  %v12801_v50 = vpop.permute.xlu1 %5653  ;;  %9133 = vtanh.f32 %v12776_v28 }
 0x420   : > { %15604 = vst [vmem:[#allocation105_spill] sm:$0xff] %v12801_v50  ;;  %9135 = vtanh.f32 %v12773_v26  ;;  %v15638_v26 = vld [vmem:[#allocation27_spill] sm:$0xff] }
 0x421   : > { %v8949_v37 = vpop.f32.mrb[36].mxu1 }
 0x422   : > { %v12789_v15 = vadd.f32 %v8949_v37, %v3592_v24  ;;  %v3872_v36 = vpop.f32.mrb[37].mxu1  ;;  %v3608_v24 = vadd.f32 %v12755_v43, %v15605_v20 }
 0x423   : > { %v12793_v2 = vadd.f32 %v3872_v36, %v3584_v55  ;;  %v8950_v53 = vpop.f32.mrb[38].mxu1  ;;  %v15606_v55 = vld [vmem:[#allocation13_spill] sm:$0xff]  ;;  %v12817_v50 = vpop.permute.xlu1 %5657 }
 0x424   : > { %15598 = vst [vmem:[#allocation12_spill] sm:$0xff] %v12789_v15  ;;  %v12795_v48 = vadd.f32 %v8950_v53, %v3595_v31  ;;  %v3875_v10 = vpop.f32.mrb[39].mxu1  ;;  %v3600_v53 = vadd.f32 %v12755_v43, %v15606_v55  ;;  %15610 = vst [vmem:[#allocation107_spill] sm:$0xff] %v12817_v50 }
 0x425   : > { %15600 = vst [vmem:[#allocation10_spill] sm:$0xff] %v12793_v2  ;;  %v12797_v3 = vadd.f32 %v3875_v10, %v3587_v47  ;;  %9137 = vtanh.f32 %v12793_v2 }
 0x426   : > { %15601 = vst [vmem:[#allocation102_spill] sm:$0xff] %v12795_v48  ;;  %9139 = vtanh.f32 %v12789_v15 }
 0x427   : > { %15602 = vst [vmem:[#allocation103_spill] sm:$0xff] %v12797_v3  ;;  %v9130_v42 = vpop.eup %9129  ;;  %9141 = vtanh.f32 %v12797_v3 }
 0x428   : > { %6031 = vrot.lane.b32.xlu0 %v9130_v42, %s10257_s28  ;;  %v9132_v36 = vpop.eup %9131  ;;  %v15611_v42 = vld [vmem:[#allocation14_spill] sm:$0xff]  ;;  %9143 = vtanh.f32 %v12795_v48 }
 0x429   : > { %v8953_v37 = vpop.f32.mrb[40].mxu1  ;;  %v3603_v55 = vadd.f32 %v12755_v43, %v15611_v42  ;;  %v9134_v12 = vpop.eup %9133 }
 0x42a   : > { %v12809_v31 = vadd.f32 %v8953_v37, %v3608_v24  ;;  %v3888_v47 = vpop.f32.mrb[41].mxu1  ;;  %v3611_v24 = vadd.f32 %v12755_v43, %v15612_v6  ;;  %v12833_v42 = vpop.permute.xlu1 %5661  ;;  %6033 = vrot.lane.b32.xlu1 %v9134_v12, %s10257_s28 }
 0x42b   : > { %v12811_v33 = vadd.f32 %v3888_v47, %v3600_v53  ;;  %v8954_v10 = vpop.f32.mrb[42].mxu1  ;;  %v15615_v47 = vld [vmem:[#allocation19_spill] sm:$0xff]  ;;  %15617 = vst [vmem:[#allocation108_spill] sm:$0xff] %v12833_v42  ;;  %v9136_v18 = vpop.eup %9135 }
 0x42c   : > { %15607 = vst [vmem:[#allocation15_spill] sm:$0xff] %v12809_v31  ;;  %v3891_v20 = vpop.f32.mrb[43].mxu1  ;;  %6035 = vrot.lane.b32.xlu0 %v9132_v36, %s10257_s28  ;;  %v12824_v53 = vadd.f32 %v8954_v10, %v3611_v24  ;;  %v3624_v51 = vadd.f32 %v12755_v43, %v15615_v47  ;;  %v12830_v36 = vpop.permute.xlu0 %5663  ;;  %v15619_v24 = vld [vmem:[#allocation17_spill] sm:$0xff]  ;;  %v3619_v47 = vadd.f32 %v12755_v43, %v15620_v54 }
 0x42d   : > { %15608 = vst [vmem:[#allocation13_spill] sm:$0xff] %v12811_v33  ;;  %v12826_v37 = vadd.f32 %v3891_v20, %v3603_v55  ;;  %15616 = vst [vmem:[#allocation19_spill] sm:$0xff] %v12830_v36  ;;  %v3616_v20 = vadd.f32 %v12755_v43, %v15619_v24  ;;  %v3627_v36 = vadd.f32 %v12755_v43, %v15621_v45  ;;  %9145 = vtanh.f32 %v12811_v33  ;;  %v15648_v33 = vld [vmem:[#allocation29_spill] sm:$0xff] }
 0x42e   : > { %15613 = vst [vmem:[#allocation14_spill] sm:$0xff] %v12824_v53  ;;  %6037 = vrot.lane.b32.xlu1 %v9136_v18, %s10257_s28  ;;  %v12854_v24 = vpop.permute.xlu1 %5665  ;;  %v15628_v18 = vld [vmem:[#allocation23_spill] sm:$0xff]  ;;  %9147 = vtanh.f32 %v12809_v31 }
 0x42f   : > { %15614 = vst [vmem:[#allocation16_spill] sm:$0xff] %v12826_v37  ;;  %15626 = vst [vmem:[#allocation111_spill] sm:$0xff] %v12854_v24  ;;  %v3643_v24 = vadd.f32 %v12755_v43, %v15630_v38  ;;  %v15637_v38 = vld [vmem:[#allocation25_spill] sm:$0xff]  ;;  %9149 = vtanh.f32 %v12826_v37 }
 0x430   : > { %9151 = vtanh.f32 %v12824_v53  ;;  %v3675_v53 = vadd.f32 %v12755_v43, %v15655_v17 }
 0x431   : > { %v8957_v22 = vpop.f32.mrb[44].mxu1 }
 0x432   : > { %v3904_v50 = vpop.f32.mrb[45].mxu1  ;;  %v12836_v6 = vadd.f32 %v8957_v22, %v3624_v51  ;;  %v12852_v22 = vpop.permute.xlu0 %5667 }
 0x433   : > { %v8958_v10 = vpop.f32.mrb[46].mxu1  ;;  %v12844_v1 = vadd.f32 %v3904_v50, %v3616_v20  ;;  %15625 = vst [vmem:[#allocation110_spill] sm:$0xff] %v12852_v22  ;;  %v9138_v51 = vpop.eup %9137  ;;  %v15627_v50 = vld [vmem:[#allocation21_spill] sm:$0xff] }
 0x434   : > { %15618 = vst [vmem:[#allocation109_spill] sm:$0xff] %v12836_v6  ;;  %v3907_v55 = vpop.f32.mrb[47].mxu1  ;;  %v12847_v42 = vadd.f32 %v8958_v10, %v3627_v36  ;;  %6039 = vrot.lane.b32.xlu0 %v9138_v51, %s10257_s28  ;;  %v3632_v20 = vadd.f32 %v12755_v43, %v15627_v50  ;;  %v3640_v36 = vadd.f32 %v12755_v43, %v15628_v18  ;;  %v12873_v2 = vpop.permute.xlu1 %5669 }
 0x435   : > { %15622 = vst [vmem:[#allocation17_spill] sm:$0xff] %v12844_v1  ;;  %v12849_v12 = vadd.f32 %v3907_v55, %v3619_v47  ;;  %v9140_v55 = vpop.eup %9139  ;;  %v15629_v47 = vld [vmem:[#allocation22_spill] sm:$0xff]  ;;  %15634 = vst [vmem:[#allocation24_spill] sm:$0xff] %v12873_v2  ;;  %9153 = vtanh.f32 %v12844_v1 }
 0x436   : > { %15623 = vst [vmem:[#allocation18_spill] sm:$0xff] %v12847_v42  ;;  %v3635_v22 = vadd.f32 %v12755_v43, %v15629_v47  ;;  %v12866_v3 = vpop.permute.xlu0 %5671  ;;  %v9142_v15 = vpop.eup %9141  ;;  %9155 = vtanh.f32 %v12836_v6 }
 0x437   : > { %15624 = vst [vmem:[#allocation20_spill] sm:$0xff] %v12849_v12  ;;  %15631 = vst [vmem:[#allocation21_spill] sm:$0xff] %v12866_v3  ;;  %v3648_v3 = vadd.f32 %v12755_v43, %v15637_v38  ;;  %6041 = vrot.lane.b32.xlu1 %v9142_v15, %s10257_s28  ;;  %9157 = vtanh.f32 %v12849_v12 }
 0x438   : > { %6043 = vrot.lane.b32.xlu0 %v9140_v55, %s10257_s28  ;;  %v15643_v55 = vld [vmem:[#allocation28_spill] sm:$0xff]  ;;  %9159 = vtanh.f32 %v12847_v42 }
 0x439   : > { %v8961_v54 = vpop.f32.mrb[48].mxu1  ;;  %v3659_v38 = vadd.f32 %v12755_v43, %v15643_v55  ;;  %v3664_v55 = vadd.f32 %v12755_v43, %v15648_v33  ;;  %v15654_v33 = vld [vmem:[#allocation30_spill] sm:$0xff] }
 0x43a   : > { %v3920_v45 = vpop.f32.mrb[49].mxu1  ;;  %v12869_v51 = vadd.f32 %v8961_v54, %v3640_v36  ;;  %v3656_v54 = vadd.f32 %v12755_v43, %v15638_v26 }
 0x43b   : > { %v8962_v29 = vpop.f32.mrb[50].mxu1  ;;  %v12871_v50 = vadd.f32 %v3920_v45, %v3632_v20  ;;  %v12885_v45 = vpop.permute.xlu0 %5675 }
 0x43c   : > { %v3923_v10 = vpop.f32.mrb[51].mxu1  ;;  %15632 = vst [vmem:[#allocation23_spill] sm:$0xff] %v12869_v51  ;;  %v12875_v18 = vadd.f32 %v8962_v29, %v3643_v24  ;;  %15639 = vst [vmem:[#allocation25_spill] sm:$0xff] %v12885_v45  ;;  %v12888_v29 = vpop.permute.xlu1 %5673  ;;  %v15645_v45 = vld [vmem:[#allocation26_spill] sm:$0xff] }
 0x43d   : > { %15633 = vst [vmem:[#allocation22_spill] sm:$0xff] %v12871_v50  ;;  %v12877_v48 = vadd.f32 %v3923_v10, %v3635_v22  ;;  %15640 = vst [vmem:[#allocation27_spill] sm:$0xff] %v12888_v29  ;;  %v9144_v10 = vpop.eup %9143  ;;  %v3651_v2 = vadd.f32 %v12755_v43, %v15645_v45  ;;  %v15646_v29 = vld [vmem:[#allocation31_spill] sm:$0xff]  ;;  %9161 = vtanh.f32 %v12871_v50 }
 0x43e   : > { %15635 = vst [vmem:[#allocation112_spill] sm:$0xff] %v12875_v18  ;;  %6045 = vrot.lane.b32.xlu1 %v9144_v10, %s10257_s28  ;;  %9163 = vtanh.f32 %v12869_v51 }
 0x43f   : > { %15636 = vst [vmem:[#allocation113_spill] sm:$0xff] %v12877_v48  ;;  %9165 = vtanh.f32 %v12877_v48 }
 0x440   : > { %v12908_v31 = vpop.permute.xlu1 %5677  ;;  %9167 = vtanh.f32 %v12875_v18 }
 0x441   : > { %v8965_v47 = vpop.f32.mrb[52].mxu1  ;;  %15649 = vst [vmem:[#allocation31_spill] sm:$0xff] %v12908_v31  ;;  %v3667_v31 = vadd.f32 %v12755_v43, %v15654_v33 }
 0x442   : > { %v3936_v28 = vpop.f32.mrb[53].mxu1  ;;  %v12890_v22 = vadd.f32 %v8965_v47, %v3656_v54  ;;  %v3672_v47 = vadd.f32 %v12755_v43, %v15646_v29  ;;  %v9146_v54 = vpop.eup %9145 }
 0x443   : > { %v8966_v20 = vpop.f32.mrb[54].mxu1  ;;  %v12892_v24 = vadd.f32 %v3936_v28, %v3648_v3  ;;  %v12904_v3 = vpop.permute.xlu0 %5679  ;;  %6047 = vrot.lane.b32.xlu0 %v9146_v54, %s10257_s28  ;;  %v15658_v54 = vld [vmem:[#allocation35_spill] sm:$0xff] }
 0x444   : > { %15641 = vst [vmem:[#allocation114_spill] sm:$0xff] %v12890_v22  ;;  %v3939_v36 = vpop.f32.mrb[55].mxu1  ;;  %v12898_v26 = vadd.f32 %v8966_v20, %v3659_v38  ;;  %15647 = vst [vmem:[#allocation26_spill] sm:$0xff] %v12904_v3  ;;  %v9148_v3 = vpop.eup %9147 }
 0x445   : > { %15642 = vst [vmem:[#allocation115_spill] sm:$0xff] %v12892_v24  ;;  %v12912_v20 = vadd.f32 %v3939_v36, %v3651_v2  ;;  %v12926_v2 = vpop.permute.xlu1 %5681  ;;  %9169 = vtanh.f32 %v12892_v24 }
 0x446   : > { %15644 = vst [vmem:[#allocation28_spill] sm:$0xff] %v12898_v26  ;;  %15656 = vst [vmem:[#allocation30_spill] sm:$0xff] %v12926_v2  ;;  %9171 = vtanh.f32 %v12890_v22 }
 0x447   : > { %15650 = vst [vmem:[#allocation29_spill] sm:$0xff] %v12912_v20  ;;  %6051 = vrot.lane.b32.xlu0 %v9148_v3, %s10257_s28  ;;  %v12919_v37 = vpop.permute.xlu0 %5683  ;;  %v3688_v3 = vadd.f32 %v12755_v43, %v15658_v54  ;;  %9173 = vtanh.f32 %v12912_v20 }
 0x448   : > { %15653 = vst [vmem:[#allocation118_spill] sm:$0xff] %v12919_v37  ;;  %9175 = vtanh.f32 %v12898_v26 }
 0x449   : > { %v8969_v15 = vpop.f32.mrb[56].mxu1  ;;  %v12945_v54 = vpop.permute.xlu1 %5685 }
 0x44a   : > { %v3952_v28 = vpop.f32.mrb[57].mxu1  ;;  %v12914_v45 = vadd.f32 %v8969_v15, %v3672_v47  ;;  %v9150_v15 = vpop.eup %9149  ;;  %v15657_v47 = vld [vmem:[#allocation33_spill] sm:$0xff]  ;;  %15664 = vst [vmem:[#allocation121_spill] sm:$0xff] %v12945_v54 }
 0x44b   : > { %v8970_v10 = vpop.f32.mrb[58].mxu1  ;;  %v12916_v29 = vadd.f32 %v3952_v28, %v3664_v55  ;;  %v3680_v28 = vadd.f32 %v12755_v43, %v15657_v47  ;;  %6049 = vrot.lane.b32.xlu1 %v9150_v15, %s10257_s28  ;;  %v9152_v5 = vpop.eup %9151  ;;  %v3704_v15 = vadd.f32 %v12755_v43, %v12640_v56  ;;  %v3696_v56 = vadd.f32 %v12755_v43, %v12624_v58 }
 0x44c   : > { %15651 = vst [vmem:[#allocation116_spill] sm:$0xff] %v12914_v45  ;;  %v3955_v38 = vpop.f32.mrb[59].mxu1  ;;  %v12933_v37 = vadd.f32 %v8970_v10, %v3675_v53  ;;  %v12942_v47 = vpop.permute.xlu0 %5687  ;;  %v15665_v53 = vld [vmem:[#allocation36_spill] sm:$0xff] }
 0x44d   : > { %15652 = vst [vmem:[#allocation117_spill] sm:$0xff] %v12916_v29  ;;  %v12935_v33 = vadd.f32 %v3955_v38, %v3667_v31  ;;  %15663 = vst [vmem:[#allocation120_spill] sm:$0xff] %v12942_v47  ;;  %v3691_v31 = vadd.f32 %v12755_v43, %v15665_v53  ;;  %v15666_v38 = vld [vmem:[#allocation34_spill] sm:$0xff]  ;;  %9177 = vtanh.f32 %v12916_v29 }
 0x44e   : > { %15659 = vst [vmem:[#allocation32_spill] sm:$0xff] %v12933_v37  ;;  %9179 = vtanh.f32 %v12914_v45  ;;  %v3784_v45 = vadd.f32 %v12755_v43, %v12702_v9  ;;  %v3787_v9 = vadd.f32 %v12755_v43, %v12706_v13 }
 0x44f   : > { %15660 = vst [vmem:[#allocation33_spill] sm:$0xff] %v12935_v33  ;;  %6053 = vrot.lane.b32.xlu1 %v9152_v5, %s10257_s28  ;;  %9181 = vtanh.f32 %v12935_v33 }
 0x450   : > { %v12958_v5 = vpop.permute.xlu0 %5691  ;;  %9183 = vtanh.f32 %v12933_v37 }
 0x451   : > { %v8973_v36 = vpop.f32.mrb[60].mxu1  ;;  %15668 = vst [vmem:[#allocation34_spill] sm:$0xff] %v12958_v5 }
 0x452   : > { %v3968_v55 = vpop.f32.mrb[61].mxu1  ;;  %v12937_v30 = vadd.f32 %v8973_v36, %v3688_v3  ;;  %v3683_v36 = vadd.f32 %v12755_v43, %v15666_v38  ;;  %v9154_v3 = vpop.eup %9153 }
 0x453   : > { %v8974_v17 = vpop.f32.mrb[62].mxu1  ;;  %v12939_v1 = vadd.f32 %v3968_v55, %v3680_v28  ;;  %6055 = vrot.lane.b32.xlu0 %v9154_v3, %s10257_s28  ;;  %v12964_v38 = vpop.permute.xlu1 %5689 }
 0x454   : > { %15661 = vst [vmem:[#allocation35_spill] sm:$0xff] %v12937_v30  ;;  %v3971_v2 = vpop.f32.mrb[63].mxu1  ;;  %v12954_v55 = vadd.f32 %v8974_v17, %v3691_v31  ;;  %15671 = vst [vmem:[#allocation124_spill] sm:$0xff] %v12964_v38  ;;  %v9156_v6 = vpop.eup %9155  ;;  %v3707_v17 = vadd.f32 %v12755_v43, %v12648_v40  ;;  %v3699_v31 = vadd.f32 %v12755_v43, %v12628_v14 }
 0x455   : > { %15662 = vst [vmem:[#allocation119_spill] sm:$0xff] %v12939_v1  ;;  %v12960_v54 = vadd.f32 %v3971_v2, %v3683_v36  ;;  %v9158_v36 = vpop.eup %9157  ;;  %v3720_v14 = vadd.f32 %v12755_v43, %v12676_v11  ;;  %9185 = vtanh.f32 %v12939_v1 }
 0x456   : > { %15667 = vst [vmem:[#allocation36_spill] sm:$0xff] %v12954_v55  ;;  %6057 = vrot.lane.b32.xlu1 %v9158_v36, %s10257_s28  ;;  %9187 = vtanh.f32 %v12937_v30 }
 0x457   : > { %15669 = vst [vmem:[#allocation122_spill] sm:$0xff] %v12960_v54  ;;  %6059 = vrot.lane.b32.xlu0 %v9156_v6, %s10257_s28  ;;  %v12981_v58 = vpop.permute.xlu1 %5693  ;;  %9189 = vtanh.f32 %v12960_v54 }
 0x458   : > { %15675 = vst [vmem:[#allocation128_spill] sm:$0xff] %v12981_v58 }
 0x459   : > { %v8977_v10 = vpop.f32.mrb[64].mxu1 }
 0x45a   : > { %v3984_v28 = vpop.f32.mrb[65].mxu1  ;;  %v12962_v53 = vadd.f32 %v8977_v10, %v3704_v15  ;;  %v12976_v15 = vpop.permute.xlu0 %5695 }
 0x45b   : > { %v8978_v47 = vpop.f32.mrb[66].mxu1  ;;  %v12974_v2 = vadd.f32 %v3984_v28, %v3696_v56  ;;  %15673 = vst [vmem:[#allocation126_spill] sm:$0xff] %v12976_v15  ;;  %v9160_v28 = vpop.eup %9159  ;;  %v3712_v56 = vadd.f32 %v12755_v43, %v12660_v4  ;;  %9191 = vtanh.f32 %v12954_v55 }
 0x45c   : > { %15670 = vst [vmem:[#allocation123_spill] sm:$0xff] %v12962_v53  ;;  %v3987_v12 = vpop.f32.mrb[67].mxu1  ;;  %v12978_v3 = vadd.f32 %v8978_v47, %v3707_v17  ;;  %v3715_v47 = vadd.f32 %v12755_v43, %v12666_v0  ;;  %v3723_v17 = vadd.f32 %v12755_v43, %v12680_v46  ;;  %6061 = vrot.lane.b32.xlu1 %v9160_v28, %s10257_s28  ;;  %v13006_v4 = vpop.permute.xlu1 %5697 }
 0x45d   : > { %15672 = vst [vmem:[#allocation125_spill] sm:$0xff] %v12974_v2  ;;  %v12983_v40 = vadd.f32 %v3987_v12, %v3699_v31  ;;  %15682 = vst [vmem:[#allocation135_spill] sm:$0xff] %v13006_v4  ;;  %v9162_v51 = vpop.eup %9161  ;;  %9193 = vtanh.f32 %v12974_v2 }
 0x45e   : > { %15674 = vst [vmem:[#allocation127_spill] sm:$0xff] %v12978_v3  ;;  %v12998_v31 = vpop.permute.xlu0 %5699  ;;  %6063 = vrot.lane.b32.xlu0 %v9162_v51, %s10257_s28  ;;  %v3739_v51 = vadd.f32 %v12755_v43, %v12704_v8 }
 0x45f   : > { %15676 = vst [vmem:[#allocation129_spill] sm:$0xff] %v12983_v40  ;;  %15678 = vst [vmem:[#allocation131_spill] sm:$0xff] %v12998_v31  ;;  %v3755_v31 = vadd.f32 %v12755_v43, %v12728_v34 }
 0x460   : > { %v13016_v28 = vpop.permute.xlu1 %5701 }
 0x461   : > { %v8981_v10 = vpop.f32.mrb[68].mxu1  ;;  %15684 = vst [vmem:[#allocation137_spill] sm:$0xff] %v13016_v28 }
 0x462   : > { %v4000_v38 = vpop.f32.mrb[69].mxu1  ;;  %v12995_v12 = vadd.f32 %v8981_v10, %v3720_v14  ;;  %v3736_v14 = vadd.f32 %v12755_v43, %v12700_v7 }
 0x463   : > { %v8982_v6 = vpop.f32.mrb[70].mxu1  ;;  %v13000_v11 = vadd.f32 %v4000_v38, %v3712_v56  ;;  %v3728_v38 = vadd.f32 %v12755_v43, %v12688_v57 }
 0x464   : > { %v4003_v5 = vpop.f32.mrb[71].mxu1  ;;  %15677 = vst [vmem:[#allocation130_spill] sm:$0xff] %v12995_v12  ;;  %v13002_v36 = vadd.f32 %v8982_v6, %v3723_v17  ;;  %v13014_v6 = vpop.permute.xlu0 %5703 }
 0x465   : > { %15679 = vst [vmem:[#allocation132_spill] sm:$0xff] %v13000_v11  ;;  %v13004_v15 = vadd.f32 %v4003_v5, %v3715_v47  ;;  %15683 = vst [vmem:[#allocation136_spill] sm:$0xff] %v13014_v6  ;;  %v9164_v5 = vpop.eup %9163  ;;  %9195 = vtanh.f32 %v12962_v53 }
 0x466   : > { %15680 = vst [vmem:[#allocation133_spill] sm:$0xff] %v13002_v36  ;;  %6067 = vrot.lane.b32.xlu0 %v9164_v5, %s10257_s28  ;;  %v9166_v17 = vpop.eup %9165  ;;  %9197 = vtanh.f32 %v12983_v40 }
 0x467   : > { %15681 = vst [vmem:[#allocation134_spill] sm:$0xff] %v13004_v15  ;;  %6065 = vrot.lane.b32.xlu1 %v9166_v17, %s10257_s28  ;;  %v9168_v8 = vpop.eup %9167  ;;  %9199 = vtanh.f32 %v12978_v3 }
 0x468   : > { %v13029_v28 = vpop.permute.xlu0 %5707 }
 0x469   : > { %v8985_v0 = vpop.f32.mrb[72].mxu1  ;;  %15688 = vst [vmem:[#allocation141_spill] sm:$0xff] %v13029_v28 }
 0x46a   : > { %v4016_v58 = vpop.f32.mrb[73].mxu1  ;;  %v13018_v56 = vadd.f32 %v8985_v0, %v3736_v14  ;;  %v13034_v14 = vpop.permute.xlu1 %5705 }
 0x46b   : > { %v8986_v46 = vpop.f32.mrb[74].mxu1  ;;  %v13021_v47 = vadd.f32 %v4016_v58, %v3728_v38  ;;  %v3731_v58 = vadd.f32 %v12755_v43, %v12692_v41  ;;  %15689 = vst [vmem:[#allocation142_spill] sm:$0xff] %v13034_v14  ;;  %v3752_v38 = vadd.f32 %v12755_v43, %v12724_v61  ;;  %6069 = vrot.lane.b32.xlu1 %v9168_v8, %s10257_s28  ;;  %v9170_v14 = vpop.eup %9169  ;;  %9201 = vtanh.f32 %v13000_v11 }
 0x46c   : > { %v4019_v10 = vpop.f32.mrb[75].mxu1  ;;  %15685 = vst [vmem:[#allocation138_spill] sm:$0xff] %v13018_v56  ;;  %v13027_v57 = vadd.f32 %v8986_v46, %v3739_v51  ;;  %v3744_v41 = vadd.f32 %v12755_v43, %v12712_v39  ;;  %v13046_v17 = vpop.permute.xlu0 %5711  ;;  %6071 = vrot.lane.b32.xlu0 %v9170_v14, %s10257_s28  ;;  %v3747_v39 = vadd.f32 %v12755_v43, %v12716_v21 }
 0x46d   : > { %15686 = vst [vmem:[#allocation139_spill] sm:$0xff] %v13021_v47  ;;  %v13039_v5 = vadd.f32 %v4019_v10, %v3731_v58  ;;  %15692 = vst [vmem:[#allocation145_spill] sm:$0xff] %v13046_v17 }
 0x46e   : > { %15687 = vst [vmem:[#allocation140_spill] sm:$0xff] %v13027_v57  ;;  %v13050_v61 = vpop.permute.xlu1 %5709 }
 0x46f   : > { %15690 = vst [vmem:[#allocation143_spill] sm:$0xff] %v13039_v5  ;;  %15693 = vst [vmem:[#allocation146_spill] sm:$0xff] %v13050_v61  ;;  %v3768_v61 = vadd.f32 %v12755_v43, %v12678_v59 }
 0x470   : > { %v13061_v17 = vpop.permute.xlu0 %5715 }
 0x471   : > { %v8989_v7 = vpop.f32.mrb[76].mxu1  ;;  %15696 = vst [vmem:[#allocation149_spill] sm:$0xff] %v13061_v17 }
 0x472   : > { %v4032_v4 = vpop.f32.mrb[77].mxu1  ;;  %v13042_v46 = vadd.f32 %v8989_v7, %v3752_v38  ;;  %v9172_v38 = vpop.eup %9171  ;;  %9203 = vtanh.f32 %v12995_v12 }
 0x473   : > { %v8990_v6 = vpop.f32.mrb[78].mxu1  ;;  %v13054_v10 = vadd.f32 %v4032_v4, %v3744_v41  ;;  %6075 = vrot.lane.b32.xlu0 %v9172_v38, %s10257_s28  ;;  %v13068_v4 = vpop.permute.xlu1 %5713 }
 0x474   : > { %v4035_v0 = vpop.f32.mrb[79].mxu1  ;;  %15691 = vst [vmem:[#allocation144_spill] sm:$0xff] %v13042_v46  ;;  %v13056_v58 = vadd.f32 %v8990_v6, %v3755_v31  ;;  %15698 = vst [vmem:[#allocation151_spill] sm:$0xff] %v13068_v4  ;;  %v9174_v31 = vpop.eup %9173  ;;  %9205 = vtanh.f32 %v13004_v15  ;;  %v10171_v15 = vld [vmem:[#allocation3 + $0x48] sm:$0xff] }
 0x475   : > { %15694 = vst [vmem:[#allocation147_spill] sm:$0xff] %v13054_v10  ;;  %v13063_v34 = vadd.f32 %v4035_v0, %v3747_v39  ;;  %6073 = vrot.lane.b32.xlu1 %v9174_v31, %s10257_s28  ;;  %v3760_v0 = vadd.f32 %v12755_v43, %v12662_v23  ;;  %v3771_v39 = vadd.f32 %v12755_v43, %v12682_v35  ;;  %v9176_v59 = vpop.eup %9175  ;;  %v13078_v17 = vpop.permute.xlu0 %5719  ;;  %9207 = vtanh.f32 %v13002_v36 }
 0x476   : > { %15695 = vst [vmem:[#allocation148_spill] sm:$0xff] %v13056_v58  ;;  %15700 = vst [vmem:[#allocation153_spill] sm:$0xff] %v13078_v17  ;;  %v3763_v23 = vadd.f32 %v12755_v43, %v12668_v49  ;;  %v9178_v29 = vpop.eup %9177  ;;  %9209 = vtanh.f32 %v13021_v47  ;;  %v15750_v47 = vld [vmem:[#allocation43_spill] sm:$0xff] }
 0x477   : > { %15697 = vst [vmem:[#allocation150_spill] sm:$0xff] %v13063_v34  ;;  %v13081_v4 = vpop.permute.xlu1 %5717  ;;  %6079 = vrot.lane.b32.xlu0 %v9178_v29, %s10257_s28 }
 0x478   : > { %15701 = vst [vmem:[#allocation154_spill] sm:$0xff] %v13081_v4  ;;  %v9180_v4 = vpop.eup %9179  ;;  %9211 = vtanh.f32 %v13018_v56 }
 0x479   : > { %v8993_v51 = vpop.f32.mrb[80].mxu1  ;;  %6077 = vrot.lane.b32.xlu1 %v9176_v59, %s10257_s28 }
 0x47a   : > { %v4048_v28 = vpop.f32.mrb[81].mxu1  ;;  %v13071_v21 = vadd.f32 %v8993_v51, %v3768_v61 }
 0x47b   : > { %v8994_v8 = vpop.f32.mrb[82].mxu1  ;;  %v13083_v31 = vadd.f32 %v4048_v28, %v3760_v0  ;;  %v13094_v28 = vpop.permute.xlu0 %5723  ;;  %6083 = vrot.lane.b32.xlu0 %v9180_v4, %s10257_s28 }
 0x47c   : > { %v4051_v7 = vpop.f32.mrb[83].mxu1  ;;  %15699 = vst [vmem:[#allocation152_spill] sm:$0xff] %v13071_v21  ;;  %v13085_v51 = vadd.f32 %v8994_v8, %v3771_v39  ;;  %15704 = vst [vmem:[#allocation157_spill] sm:$0xff] %v13094_v28  ;;  %v3776_v39 = vadd.f32 %v12755_v43, %v12690_v52  ;;  %v13100_v59 = vpop.permute.xlu1 %5721 }
 0x47d   : > { %15702 = vst [vmem:[#allocation155_spill] sm:$0xff] %v13083_v31  ;;  %v13096_v8 = vadd.f32 %v4051_v7, %v3763_v23  ;;  %15706 = vst [vmem:[#allocation159_spill] sm:$0xff] %v13100_v59  ;;  %v9182_v7 = vpop.eup %9181  ;;  %v3779_v23 = vadd.f32 %v12755_v43, %v12694_v16  ;;  %9213 = vtanh.f32 %v13039_v5 }
 0x47e   : > { %15703 = vst [vmem:[#allocation156_spill] sm:$0xff] %v13085_v51  ;;  %6081 = vrot.lane.b32.xlu1 %v9182_v7, %s10257_s28  ;;  %v9184_v28 = vpop.eup %9183  ;;  %9215 = vtanh.f32 %v13027_v57  ;;  %v10165_v57 = vld [vmem:[#allocation3 + $0x30] sm:$0xff] }
 0x47f   : > { %15705 = vst [vmem:[#allocation158_spill] sm:$0xff] %v13096_v8  ;;  %v13112_v52 = vpop.permute.xlu0 %5727 }
 0x480   : > { %15709 = vst [vmem:[#allocation162_spill] sm:$0xff] %v13112_v52  ;;  %v10162_v52 = vld [vmem:[#allocation3] sm:$0xff] }
 0x481   : > { %v8997_v14 = vpop.f32.mrb[84].mxu1 }
 0x482   : > { %v4064_v6 = vpop.f32.mrb[85].mxu1  ;;  %v13102_v49 = vadd.f32 %v8997_v14, %v3784_v45  ;;  %v13115_v45 = vpop.permute.xlu1 %5725  ;;  %6085 = vrot.lane.b32.xlu1 %v9184_v28, %s10257_s28  ;;  %v3795_v28 = vadd.f32 %v12755_v43, %v12718_v27 }
 0x483   : > { %v8998_v41 = vpop.f32.mrb[86].mxu1  ;;  %v13104_v33 = vadd.f32 %v4064_v6, %v3776_v39  ;;  %15710 = vst [vmem:[#allocation163_spill] sm:$0xff] %v13115_v45  ;;  %v3800_v39 = vadd.f32 %v12755_v43, %v12726_v32  ;;  %v13128_v7 = vpop.permute.xlu0 %5731 }
 0x484   : > { %v4067_v38 = vpop.f32.mrb[87].mxu1  ;;  %15707 = vst [vmem:[#allocation160_spill] sm:$0xff] %v13102_v49  ;;  %v13117_v14 = vadd.f32 %v8998_v41, %v3787_v9  ;;  %15714 = vst [vmem:[#allocation167_spill] sm:$0xff] %v13128_v7  ;;  %v3792_v41 = vadd.f32 %v12755_v43, %v12714_v44  ;;  %v3803_v9 = vadd.f32 %v12755_v43, %v12730_v60  ;;  %v9186_v32 = vpop.eup %9185  ;;  %9217 = vtanh.f32 %v13054_v10 }
 0x485   : > { %15708 = vst [vmem:[#allocation161_spill] sm:$0xff] %v13104_v33  ;;  %v13119_v6 = vadd.f32 %v4067_v38, %v3779_v23  ;;  %6087 = vrot.lane.b32.xlu0 %v9186_v32, %s10257_s28  ;;  %v9188_v44 = vpop.eup %9187  ;;  %v3816_v60 = vadd.f32 %v12755_v43, %v12744_v63  ;;  %9219 = vtanh.f32 %v13042_v46 }
 0x486   : > { %15711 = vst [vmem:[#allocation164_spill] sm:$0xff] %v13117_v14  ;;  %v13132_v38 = vpop.permute.xlu1 %5729 }
 0x487   : > { %15712 = vst [vmem:[#allocation165_spill] sm:$0xff] %v13119_v6  ;;  %15715 = vst [vmem:[#allocation168_spill] sm:$0xff] %v13132_v38 }
 0x489   : > { %v9001_v61 = vpop.f32.mrb[88].mxu1  ;;  %6091 = vrot.lane.b32.xlu0 %v9188_v44, %s10257_s28 }
 0x48a   : > { %v4080_v35 = vpop.f32.mrb[89].mxu1  ;;  %v13125_v16 = vadd.f32 %v9001_v61, %v3800_v39  ;;  %v13144_v39 = vpop.permute.xlu0 %5735 }
 0x48b   : > { %v9002_v17 = vpop.f32.mrb[90].mxu1  ;;  %v13136_v23 = vadd.f32 %v4080_v35, %v3792_v41  ;;  %15718 = vst [vmem:[#allocation171_spill] sm:$0xff] %v13144_v39  ;;  %v13146_v7 = vpop.permute.xlu1 %5733  ;;  %v3808_v35 = vadd.f32 %v12755_v43, %v12734_v62  ;;  %v3811_v62 = vadd.f32 %v12755_v43, %v12738_v25 }
 0x48c   : > { %v4083_v0 = vpop.f32.mrb[91].mxu1  ;;  %15713 = vst [vmem:[#allocation166_spill] sm:$0xff] %v13125_v16  ;;  %v13140_v61 = vadd.f32 %v9002_v17, %v3803_v9  ;;  %15719 = vst [vmem:[#allocation172_spill] sm:$0xff] %v13146_v7  ;;  %v9190_v17 = vpop.eup %9189  ;;  %9221 = vtanh.f32 %v13063_v34 }
 0x48d   : > { %15716 = vst [vmem:[#allocation169_spill] sm:$0xff] %v13136_v23  ;;  %v13148_v38 = vadd.f32 %v4083_v0, %v3795_v28  ;;  %6089 = vrot.lane.b32.xlu1 %v9190_v17, %s10257_s28  ;;  %v3819_v0 = vadd.f32 %v12755_v43, %v12746_v19  ;;  %v9192_v32 = vpop.eup %9191  ;;  %9223 = vtanh.f32 %v13056_v58  ;;  %v10164_v58 = vld [vmem:[#allocation3 + $0x8] sm:$0xff] }
 0x48e   : > { %15717 = vst [vmem:[#allocation170_spill] sm:$0xff] %v13140_v61  ;;  %v13161_v9 = vpop.permute.xlu0 %5739  ;;  %v9194_v44 = vpop.eup %9193  ;;  %9225 = vtanh.f32 %v13083_v31 }
 0x48f   : > { %15720 = vst [vmem:[#allocation173_spill] sm:$0xff] %v13148_v38  ;;  %15723 = vst [vmem:[#allocation176_spill] sm:$0xff] %v13161_v9  ;;  %v13166_v63 = vpop.permute.xlu1 %5737  ;;  %6095 = vrot.lane.b32.xlu0 %v9194_v44, %s10257_s28  ;;  %v4175_v9 = vld [vmem:[%s15326_s3] sm:$0xff] }
 0x490   : > { %15724 = vst [vmem:[#allocation177_spill] sm:$0xff] %v13166_v63  ;;  %v10161_v63 = vld [vmem:[#allocation3 + $0x10] sm:$0xff]  ;;  %v4239_v45 = vmul.f32 %v10162_v52, %v4175_v9 }
 0x491   : > { %v9005_v29 = vpop.f32.mrb[92].mxu1  ;;  %6093 = vrot.lane.b32.xlu1 %v9192_v32, %s10257_s28 }
 0x492   : > { %v4096_v59 = vpop.f32.mrb[93].mxu1  ;;  %v13156_v41 = vadd.f32 %v9005_v29, %v3816_v60  ;;  %v13176_v28 = vpop.permute.xlu0 %5743 }
 0x493   : > { %v9006_v4 = vpop.f32.mrb[94].mxu1  ;;  %v13159_v27 = vadd.f32 %v4096_v59, %v3808_v35  ;;  %15727 = vst [vmem:[#allocation180_spill] sm:$0xff] %v13176_v28  ;;  %v13178_v19 = vpop.permute.xlu1 %5741 }
 0x494   : > { %v4099_v13 = vpop.f32.mrb[95].mxu1  ;;  %15721 = vst [vmem:[#allocation174_spill] sm:$0xff] %v13156_v41  ;;  %v13171_v29 = vadd.f32 %v9006_v4, %v3819_v0  ;;  %15728 = vst [vmem:[#allocation181_spill] sm:$0xff] %v13178_v19  ;;  %v9196_v60 = vpop.eup %9195  ;;  %9227 = vtanh.f32 %v13071_v21  ;;  %v15746_v21 = vld [vmem:[#allocation6_spill] sm:$0xff] }
 0x495   : > { %15722 = vst [vmem:[#allocation175_spill] sm:$0xff] %v13159_v27  ;;  %v13174_v59 = vadd.f32 %v4099_v13, %v3811_v62  ;;  %6099 = vrot.lane.b32.xlu0 %v9196_v60, %s10257_s28  ;;  %v9198_v4 = vpop.eup %9197  ;;  %9229 = vtanh.f32 %v13096_v8  ;;  %v4303_v31 = vadd.f32 %v4239_v45, %v15746_v21  ;;  %v15748_v45 = vld [vmem:[#allocation100_spill] sm:$0xff] }
 0x496   : > { %15725 = vst [vmem:[#allocation178_spill] sm:$0xff] %v13171_v29  ;;  %v13183_v25 = vpop.permute.xlu0 %5747  ;;  %6097 = vrot.lane.b32.xlu1 %v9198_v4, %s10257_s28  ;;  %v9200_v13 = vpop.eup %9199  ;;  %9231 = vtanh.f32 %v13085_v51  ;;  %v10163_v51 = vld [vmem:[#allocation3 + $0x18] sm:$0xff] }
 0x497   : > { %15726 = vst [vmem:[#allocation179_spill] sm:$0xff] %v13174_v59  ;;  %15729 = vst [vmem:[#allocation182_spill] sm:$0xff] %v13183_v25  ;;  %v13186_v43 = vpop.permute.xlu1 %5745  ;;  %v9202_v0 = vpop.eup %9201  ;;  %9233 = vtanh.f32 %v13104_v33 }
 0x498   : > { %15730 = vst [vmem:[#allocation183_spill] sm:$0xff] %v13186_v43  ;;  %v9204_v44 = vpop.eup %9203  ;;  %9235 = vtanh.f32 %v13102_v49  ;;  %v4178_v49 = vld [vmem:[%s15326_s3 + $0x18] sm:$0xff] }
 0x499   : > { %6103 = vrot.lane.b32.xlu0 %v9202_v0, %s10257_s28  ;;  %v9206_v60 = vpop.eup %9205  ;;  %9237 = vtanh.f32 %v13119_v6  ;;  %v4242_v8 = vmul.f32 %v10163_v51, %v4178_v49  ;;  %v4179_v51 = vld [vmem:[%s15326_s3 + $0x20] sm:$0xff] }
 0x49a   : > { %v13190_v35 = vpop.permute.xlu0 %5751  ;;  %6101 = vrot.lane.b32.xlu1 %v9200_v13, %s10257_s28 }
 0x49b   : > { %15731 = vst [vmem:[#allocation184_spill] sm:$0xff] %v13190_v35  ;;  %v13193_v17 = vpop.permute.xlu1 %5749  ;;  %v9208_v35 = vpop.eup %9207  ;;  %9239 = vtanh.f32 %v13117_v14  ;;  %v4181_v14 = vld [vmem:[%s15326_s3 + $0x30] sm:$0xff] }
 0x49c   : > { %15732 = vst [vmem:[#allocation185_spill] sm:$0xff] %v13193_v17  ;;  %v4245_v5 = vmul.f32 %v10165_v57, %v4181_v14 }
 0x49d   : > { %6107 = vrot.lane.b32.xlu0 %v9204_v44, %s10257_s28  ;;  %v9210_v44 = vpop.eup %9209  ;;  %9241 = vtanh.f32 %v13136_v23  ;;  %v5138_v23 = vadd.f32 %v15750_v47, %v15748_v45  ;;  %v4182_v47 = vld [vmem:[%s15326_s3 + $0x38] sm:$0xff] }
 0x49e   : > { %v13198_v32 = vpop.permute.xlu0 %5755  ;;  %6105 = vrot.lane.b32.xlu1 %v9206_v60, %s10257_s28  ;;  %v9212_v60 = vpop.eup %9211 }
 0x49f   : > { %15733 = vst [vmem:[#allocation186_spill] sm:$0xff] %v13198_v32  ;;  %v13200_v62 = vpop.permute.xlu1 %5753 }
 0x4a0   : > { %15734 = vst [vmem:[#allocation187_spill] sm:$0xff] %v13200_v62 }
 0x4a1   : > { %6111 = vrot.lane.b32.xlu0 %v9210_v44, %s10257_s28 }
 0x4a2   : > { %v13204_v4 = vpop.permute.xlu0 %5759  ;;  %6109 = vrot.lane.b32.xlu1 %v9208_v35, %s10257_s28  ;;  %v9214_v35 = vpop.eup %9213 }
 0x4a3   : > { %15735 = vst [vmem:[#allocation188_spill] sm:$0xff] %v13204_v4  ;;  %v13207_v13 = vpop.permute.xlu1 %5757  ;;  %v9216_v32 = vpop.eup %9215 }
 0x4a4   : > { %15736 = vst [vmem:[#allocation189_spill] sm:$0xff] %v13207_v13 }
 0x4a5   : > { %6115 = vrot.lane.b32.xlu0 %v9212_v60, %s10257_s28 }
 0x4a6   : > { %v13212_v0 = vpop.permute.xlu0 %5763  ;;  %6113 = vrot.lane.b32.xlu1 %v9214_v35, %s10257_s28 }
 0x4a7   : > { %15737 = vst [vmem:[#allocation190_spill] sm:$0xff] %v13212_v0  ;;  %v13214_v62 = vpop.permute.xlu1 %5761 }
 0x4a8   : > { %15738 = vst [vmem:[#allocation191_spill] sm:$0xff] %v13214_v62 }
 0x4aa   : > { %v13218_v4 = vpop.permute.xlu0 %5767  ;;  %6117 = vrot.lane.b32.xlu1 %v9216_v32, %s10257_s28 }
 0x4ab   : > { %15739 = vst [vmem:[#allocation192_spill] sm:$0xff] %v13218_v4  ;;  %v13220_v13 = vpop.permute.xlu1 %5765  ;;  %v9218_v4 = vpop.eup %9217 }
 0x4ac   : > { %15740 = vst [vmem:[#allocation193_spill] sm:$0xff] %v13220_v13  ;;  %6119 = vrot.lane.b32.xlu0 %v9218_v4, %s10257_s28  ;;  %v9220_v35 = vpop.eup %9219 }
 0x4ad   : > { %v9222_v32 = vpop.eup %9221 }
 0x4ae   : > { %v13225_v0 = vpop.permute.xlu0 %5771  ;;  %6121 = vrot.lane.b32.xlu1 %v9222_v32, %s10257_s28  ;;  %v9224_v13 = vpop.eup %9223 }
 0x4af   : > { %15741 = vst [vmem:[#allocation194_spill] sm:$0xff] %v13225_v0  ;;  %v13228_v62 = vpop.permute.xlu1 %5769 }
 0x4b0   : > { %15742 = vst [vmem:[#allocation195_spill] sm:$0xff] %v13228_v62  ;;  %6123 = vrot.lane.b32.xlu0 %v9220_v35, %s10257_s28  ;;  %v9226_v35 = vpop.eup %9225 }
 0x4b1   : > { %v9228_v32 = vpop.eup %9227 }
 0x4b2   : > { %v13232_v44 = vpop.permute.xlu0 %6031  ;;  %6125 = vrot.lane.b32.xlu1 %v9224_v13, %s10257_s28  ;;  %v9230_v25 = vpop.eup %9229 }
 0x4b3   : > { %v13234_v60 = vpop.permute.xlu1 %5773  ;;  %v9232_v19 = vpop.eup %9231 }
 0x4b4   : > { %15743 = vst [vmem:[#allocation196_spill] sm:$0xff] %v13234_v60  ;;  %6127 = vrot.lane.b32.xlu0 %v9226_v35, %s10257_s28  ;;  %v4177_v35 = vld [vmem:[%s15326_s3 + $0x10] sm:$0xff]  ;;  %v9234_v7 = vpop.eup %9233 }
 0x4b5   : > { %v9236_v9 = vpop.eup %9235 }
 0x4b6   : > { %v13239_v0 = vpop.permute.xlu0 %6035  ;;  %6129 = vrot.lane.b32.xlu1 %v9230_v25, %s10257_s28  ;;  %v9238_v49 = vpop.eup %9237 }
 0x4b7   : > { %v13242_v62 = vpop.permute.xlu1 %6033  ;;  %v9240_v57 = vpop.eup %9239 }
 0x4b8   : > { %6131 = vrot.lane.b32.xlu0 %v9228_v32, %s10257_s28  ;;  %v4241_v32 = vmul.f32 %v10161_v63, %v4177_v35  ;;  %v4176_v63 = vld [vmem:[%s15326_s3 + $0x8] sm:$0xff] }
 0x4b9   : > { %v15745_v35 = vld [vmem:[#allocation42_spill] sm:$0xff] }
 0x4ba   : > { %v13246_v60 = vpop.permute.xlu0 %6039  ;;  %6133 = vrot.lane.b32.xlu1 %v9232_v19, %s10257_s28  ;;  %v15744_v19 = vld [vmem:[#allocation7_spill] sm:$0xff] }
 0x4bb   : > { %v13249_v4 = vpop.permute.xlu1 %6037  ;;  %v4305_v33 = vadd.f32 %v4241_v32, %v15744_v19  ;;  %v5137_v6 = vadd.f32 %v15745_v35, %v15744_v19  ;;  %v4240_v32 = vmul.f32 %v10164_v58, %v4176_v63  ;;  %v4306_v63 = vadd.f32 %v4242_v8, %v15748_v45  ;;  %v15749_v19 = vld [vmem:[#allocation101_spill] sm:$0xff]  ;;  %v4180_v8 = vld [vmem:[%s15326_s3 + $0x28] sm:$0xff] }
 0x4bc   : > { %6135 = vrot.lane.b32.xlu0 %v9234_v7, %s10257_s28  ;;  %v15747_v7 = vld [vmem:[#allocation39_spill] sm:$0xff]  ;;  %v10167_v45 = vld [vmem:[#allocation3 + $0x28] sm:$0xff] }
 0x4bd   : > { %v8693_v46 = vmul.f32 -1.442695, %v4305_v33  ;;  %v5135_v35 = vadd.f32 %v15747_v7, %v15746_v21  ;;  %v8757_v58 = vmul.f32 -1.442695, %v5137_v6  ;;  %v8691_v33 = vmul.f32 -1.442695, %v4303_v31 }
 0x4be   : > { %v13254_v17 = vpop.permute.xlu0 %6043  ;;  %v4304_v10 = vadd.f32 %v4240_v32, %v15749_v19  ;;  %6137 = vrot.lane.b32.xlu1 %v9238_v49, %s10257_s28  ;;  %v8694_v14 = vmul.f32 -1.442695, %v4306_v63  ;;  %v15753_v49 = vld [vmem:[#allocation10_spill] sm:$0xff] }
 0x4bf   : > { %v13256_v43 = vpop.permute.xlu1 %6041  ;;  %9243 = vpow2.f32 %v8693_v46  ;;  %v8755_v56 = vmul.f32 -1.442695, %v5135_v35  ;;  %v15751_v46 = vld [vmem:[#allocation41_spill] sm:$0xff]  ;;  %v15752_v35 = vld [vmem:[#allocation12_spill] sm:$0xff]  ;;  %v15754_v63 = vld [vmem:[#allocation46_spill] sm:$0xff] }
 0x4c0   : > { %6139 = vrot.lane.b32.xlu0 %v9236_v9, %s10257_s28  ;;  %v10166_v9 = vld [vmem:[#allocation3 + $0x20] sm:$0xff]  ;;  %9245 = vtanh.f32 %v13125_v16  ;;  %v5136_v6 = vadd.f32 %v15751_v46, %v15749_v19  ;;  %v8692_v32 = vmul.f32 -1.442695, %v4304_v10  ;;  %v4244_v16 = vmul.f32 %v10167_v45, %v4180_v8  ;;  %v10168_v46 = vld [vmem:[#allocation3 + $0x38] sm:$0xff]  ;;  %v9242_v8 = vpop.eup %9241 }
 0x4c1   : > { %v4243_v7 = vmul.f32 %v10166_v9, %v4179_v51  ;;  %9247 = vpow2.f32 %v8757_v58  ;;  %v4309_v51 = vadd.f32 %v4245_v5, %v15752_v35  ;;  %v4185_v58 = vld [vmem:[%s15326_s3 + $0x50] sm:$0xff]  ;;  %v8758_v10 = vmul.f32 -1.442695, %v5138_v23 }
 0x4c2   : > { %v13260_v13 = vpop.permute.xlu0 %6047  ;;  %9249 = vpow2.f32 %v8691_v33  ;;  %6141 = vrot.lane.b32.xlu1 %v9240_v57, %s10257_s28  ;;  %v8756_v5 = vmul.f32 -1.442695, %v5136_v6  ;;  %v5141_v33 = vadd.f32 %v15754_v63, %v15752_v35  ;;  %v4246_v19 = vmul.f32 %v10168_v46, %v4182_v47  ;;  %v10169_v23 = vld [vmem:[#allocation3 + $0x50] sm:$0xff]  ;;  %v4184_v47 = vld [vmem:[%s15326_s3 + $0x48] sm:$0xff] }
 0x4c3   : > { %v13263_v28 = vpop.permute.xlu1 %6045  ;;  %v4307_v9 = vadd.f32 %v4243_v7, %v15753_v49  ;;  %9251 = vtanh.f32 %v13148_v38  ;;  %v4183_v7 = vld [vmem:[%s15326_s3 + $0x40] sm:$0xff]  ;;  %v8697_v57 = vmul.f32 -1.442695, %v4309_v51  ;;  %v15755_v38 = vld [vmem:[#allocation44_spill] sm:$0xff]  ;;  %v15756_v63 = vld [vmem:[#allocation103_spill] sm:$0xff]  ;;  %v4248_v12 = vmul.f32 %v10171_v15, %v4184_v47 }
 0x4c4   : > { %9253 = vpow2.f32 %v8755_v56  ;;  %v5139_v56 = vadd.f32 %v15755_v38, %v15753_v49  ;;  %v4308_v35 = vadd.f32 %v4244_v16, %v15756_v63  ;;  %6143 = vrot.lane.b32.xlu0 %v9242_v8, %s10257_s28  ;;  %v8761_v38 = vmul.f32 -1.442695, %v5141_v33  ;;  %v15758_v16 = vld [vmem:[#allocation15_spill] sm:$0xff]  ;;  %v15760_v33 = vld [vmem:[#allocation13_spill] sm:$0xff]  ;;  %v15762_v47 = vld [vmem:[#allocation16_spill] sm:$0xff] }
 0x4c5   : > { %9255 = vpow2.f32 %v8694_v14  ;;  %v4249_v14 = vmul.f32 %v10169_v23, %v4185_v58  ;;  %v8695_v36 = vmul.f32 -1.442695, %v4307_v9  ;;  %v15757_v58 = vld [vmem:[#allocation102_spill] sm:$0xff]  ;;  %v4187_v8 = vld [vmem:[%s15326_s3 + $0x60] sm:$0xff] }
 0x4c6   : > { %v13274_v25 = vpop.permute.xlu0 %6051  ;;  %9257 = vpow2.f32 %v8692_v32  ;;  %v10170_v32 = vld [vmem:[#allocation3 + $0x40] sm:$0xff]  ;;  %v4310_v23 = vadd.f32 %v4246_v19, %v15757_v58  ;;  %v8759_v9 = vmul.f32 -1.442695, %v5139_v56  ;;  %v10172_v56 = vld [vmem:[#allocation3 + $0x58] sm:$0xff] }
 0x4c7   : > { %v13276_v39 = vpop.permute.xlu1 %6049  ;;  %9259 = vtanh.f32 %v13140_v61  ;;  %v4247_v51 = vmul.f32 %v10170_v32, %v4183_v7  ;;  %v4313_v63 = vadd.f32 %v4249_v14, %v15758_v16  ;;  %v8696_v61 = vmul.f32 -1.442695, %v4308_v35  ;;  %v4189_v16 = vld [vmem:[%s15326_s3 + $0x70] sm:$0xff] }
 0x4c8   : > { %9261 = vpow2.f32 %v8758_v10  ;;  %v4186_v10 = vld [vmem:[%s15326_s3 + $0x58] sm:$0xff]  ;;  %v8698_v35 = vmul.f32 -1.442695, %v4310_v23  ;;  %v4312_v32 = vadd.f32 %v4248_v12, %v15762_v47 }
 0x4c9   : > { %v9244_v46 = vpop.eup %9243  ;;  %9263 = vpow2.f32 %v8756_v5  ;;  %v4311_v7 = vadd.f32 %v4247_v51, %v15760_v33  ;;  %v4250_v14 = vmul.f32 %v10172_v56, %v4186_v10  ;;  %v10173_v33 = vld [vmem:[#allocation3 + $0x60] sm:$0xff] }
 0x4ca   : > { %v13289_v52 = vpop.permute.xlu0 %6055  ;;  %v9246_v49 = vpop.eup %9245  ;;  %9265 = vpow2.f32 %v8697_v57  ;;  %v4251_v58 = vmul.f32 %v10173_v33, %v4187_v8  ;;  %v8700_v47 = vmul.f32 -1.442695, %v4312_v32  ;;  %v10174_v33 = vld [vmem:[#allocation3 + $0x70] sm:$0xff] }
 0x4cb   : > { %v13292_v34 = vpop.permute.xlu1 %6053  ;;  %v13348_v11 = vpop.eup %9247  ;;  %9267 = vpow2.f32 %v8695_v36  ;;  %6147 = vrot.lane.b32.xlu0 %v9246_v49, %s10257_s28  ;;  %v8701_v49 = vmul.f32 -1.442695, %v4313_v63  ;;  %v8699_v23 = vmul.f32 -1.442695, %v4311_v7  ;;  %v4188_v63 = vld [vmem:[%s15326_s3 + $0x68] sm:$0xff]  ;;  %v4253_v8 = vmul.f32 %v10174_v33, %v4189_v16  ;;  %v4191_v16 = vld [vmem:[%s15326_s3 + $0x80] sm:$0xff] }
 0x4cc   : > { %15759 = vst [vmem:[#allocation42_spill] sm:$0xff] %v13348_v11  ;;  %v9250_v19 = vpop.eup %9249  ;;  %9269 = vtanh.f32 %v13159_v27  ;;  %v15768_v11 = vld [vmem:[#allocation17_spill] sm:$0xff] }
 0x4cd   : > { %v9252_v36 = vpop.eup %9251  ;;  %9271 = vpow2.f32 %v8761_v38  ;;  %v4559_v12 = vadd.f32 1.0, %v9250_v19  ;;  %v4190_v19 = vld [vmem:[%s15326_s3 + $0x78] sm:$0xff] }
 0x4ce   : > { %v13307_v21 = vpop.permute.xlu0 %6059  ;;  %v13363_v57 = vpop.eup %9253  ;;  %9273 = vpow2.f32 %v8759_v9  ;;  %6145 = vrot.lane.b32.xlu1 %v9252_v36, %s10257_s28  ;;  %v15765_v36 = vld [vmem:[#allocation14_spill] sm:$0xff] }
 0x4cf   : > { %v13315_v31 = vpop.permute.xlu1 %6057  ;;  %15761 = vst [vmem:[#allocation39_spill] sm:$0xff] %v13363_v57  ;;  %v9256_v51 = vpop.eup %9255  ;;  %9275 = vpow2.f32 %v8696_v61  ;;  %v4314_v56 = vadd.f32 %v4250_v14, %v15765_v36  ;;  %v10176_v36 = vld [vmem:[#allocation3 + $0x78] sm:$0xff] }
 0x4d0   : > { %v9258_v38 = vpop.eup %9257  ;;  %9277 = vtanh.f32 %v13156_v41  ;;  %v4315_v41 = vadd.f32 %v4251_v58, %v15768_v11  ;;  %v15769_v11 = vld [vmem:[#allocation109_spill] sm:$0xff]  ;;  %v4254_v27 = vmul.f32 %v10176_v36, %v4190_v19 }
 0x4d1   : > { %v9260_v9 = vpop.eup %9259  ;;  %9279 = vpow2.f32 %v8698_v35  ;;  %v10175_v35 = vld [vmem:[#allocation3 + $0x68] sm:$0xff]  ;;  %v4560_v14 = vadd.f32 1.0, %v9258_v38  ;;  %v8702_v58 = vmul.f32 -1.442695, %v4314_v56 }
 0x4d2   : > { %v13334_v45 = vpop.permute.xlu0 %6063  ;;  %v13376_v61 = vpop.eup %9261  ;;  %9281 = vpow2.f32 %v8701_v49  ;;  %6149 = vrot.lane.b32.xlu1 %v9260_v9, %s10257_s28  ;;  %v4561_v9 = vadd.f32 1.0, %v9244_v46  ;;  %v4318_v19 = vadd.f32 %v4254_v27, %v12847_v42  ;;  %v4195_v27 = vld [vmem:[%s15326_s3 + $0xa0] sm:$0xff] }
 0x4d3   : > { %v13338_v6 = vpop.permute.xlu1 %6061  ;;  %15764 = vst [vmem:[#allocation41_spill] sm:$0xff] %v13376_v61  ;;  %v13382_v57 = vpop.eup %9263  ;;  %v4252_v61 = vmul.f32 %v10175_v35, %v4188_v63  ;;  %9283 = vtanh.f32 %v13174_v59  ;;  %v8703_v35 = vmul.f32 -1.442695, %v4315_v41  ;;  %v15771_v59 = vld [vmem:[#allocation20_spill] sm:$0xff]  ;;  %v4192_v41 = vld [vmem:[%s15326_s3 + $0x88] sm:$0xff] }
 0x4d4   : > { %15767 = vst [vmem:[#allocation44_spill] sm:$0xff] %v13382_v57  ;;  %v9266_v49 = vpop.eup %9265  ;;  %9285 = vpow2.f32 %v8699_v23  ;;  %v4317_v57 = vadd.f32 %v4253_v8, %v15769_v11  ;;  %v4193_v23 = vld [vmem:[%s15326_s3 + $0x90] sm:$0xff] }
 0x4d5   : > { %v9268_v32 = vpop.eup %9267  ;;  %9287 = vrcp.f32 %v4559_v12  ;;  %v4316_v38 = vadd.f32 %v4252_v61, %v15771_v59  ;;  %v4562_v12 = vadd.f32 1.0, %v9256_v51 }
 0x4d6   : > { %v9270_v33 = vpop.eup %9269  ;;  %9289 = vpow2.f32 %v8700_v47  ;;  %v4563_v56 = vadd.f32 1.0, %v9268_v32  ;;  %v8705_v8 = vmul.f32 -1.442695, %v4317_v57 }
 0x4d7   : > { %v13393_v63 = vpop.eup %9271  ;;  %9291 = vtanh.f32 %v13171_v29  ;;  %6151 = vrot.lane.b32.xlu0 %v9270_v33, %s10257_s28  ;;  %v8704_v51 = vmul.f32 -1.442695, %v4316_v38  ;;  %v8706_v38 = vmul.f32 -1.442695, %v4318_v19 }
 0x4d8   : > { %v13354_v5 = vpop.permute.xlu0 %6067  ;;  %15770 = vst [vmem:[#allocation197_spill] sm:$0xff] %v13393_v63  ;;  %v13403_v47 = vpop.eup %9273  ;;  %9293 = vrcp.f32 %v4560_v14  ;;  %v4194_v14 = vld [vmem:[%s15326_s3 + $0x98] sm:$0xff]  ;;  %v10179_v63 = vld [vmem:[#allocation3 + $0x88] sm:$0xff] }
 0x4d9   : > { %v13361_v15 = vpop.permute.xlu1 %6065  ;;  %15772 = vst [vmem:[#allocation198_spill] sm:$0xff] %v13403_v47  ;;  %v9276_v36 = vpop.eup %9275  ;;  %9295 = vrcp.f32 %v4561_v9  ;;  %v4256_v11 = vmul.f32 %v10179_v63, %v4192_v41  ;;  %v10180_v63 = vld [vmem:[#allocation3 + $0x98] sm:$0xff] }
 0x4da   : > { %9297 = vpow2.f32 %v8702_v58  ;;  %v4564_v9 = vadd.f32 1.0, %v9276_v36  ;;  %v4565_v58 = vadd.f32 1.0, %v9266_v49  ;;  %v4258_v41 = vmul.f32 %v10180_v63, %v4194_v14  ;;  %v4197_v49 = vld [vmem:[%s15326_s3 + $0xb0] sm:$0xff] }
 0x4db   : > { %9299 = vpow2.f32 %v8703_v35 }
 0x4dc   : > { %9301 = vrcp.f32 %v4562_v12  ;;  %v4320_v12 = vadd.f32 %v4256_v11, %v12877_v48  ;;  %v4322_v63 = vadd.f32 %v4258_v41, %v12875_v18  ;;  %v10182_v48 = vld [vmem:[#allocation3 + $0xb0] sm:$0xff] }
 0x4dd   : > { %v13380_v7 = vpop.permute.xlu1 %6069  ;;  %9303 = vrcp.f32 %v4563_v56  ;;  %v10181_v56 = vld [vmem:[#allocation3 + $0xa0] sm:$0xff] }
 0x4de   : > { %v13374_v10 = vpop.permute.xlu0 %6071  ;;  %15766 = vst [vmem:[#allocation46_spill] sm:$0xff] %v13380_v7  ;;  %9305 = vpow2.f32 %v8705_v8  ;;  %v4259_v8 = vmul.f32 %v10181_v56, %v4195_v27  ;;  %v8708_v27 = vmul.f32 -1.442695, %v4320_v12 }
 0x4df   : > { %15763 = vst [vmem:[#allocation43_spill] sm:$0xff] %v13374_v10  ;;  %v10177_v10 = vld [vmem:[#allocation3 + $0x80] sm:$0xff]  ;;  %9307 = vpow2.f32 %v8704_v51 }
 0x4e0   : > { %v4255_v7 = vmul.f32 %v10177_v10, %v4191_v16  ;;  %v9278_v10 = vpop.eup %9277  ;;  %v10178_v16 = vld [vmem:[#allocation3 + $0x90] sm:$0xff]  ;;  %9309 = vrcp.f32 %v4564_v9  ;;  %v4198_v9 = vld [vmem:[%s15326_s3 + $0xb8] sm:$0xff] }
 0x4e1   : > { %v4257_v33 = vmul.f32 %v10178_v16, %v4193_v23  ;;  %v9280_v59 = vpop.eup %9279  ;;  %6155 = vrot.lane.b32.xlu0 %v9278_v10, %s10257_s28  ;;  %v15773_v23 = vld [vmem:[#allocation23_spill] sm:$0xff]  ;;  %9311 = vrcp.f32 %v4565_v58  ;;  %v10183_v58 = vld [vmem:[#allocation3 + $0xa8] sm:$0xff] }
 0x4e2   : > { %v4319_v47 = vadd.f32 %v4255_v7, %v12871_v50  ;;  %v9282_v32 = vpop.eup %9281  ;;  %v4566_v42 = vadd.f32 1.0, %v9280_v59  ;;  %9313 = vpow2.f32 %v8706_v38 }
 0x4e3   : > { %v9284_v57 = vpop.eup %9283  ;;  %v4321_v16 = vadd.f32 %v4257_v33, %v15773_v23  ;;  %v4196_v33 = vld [vmem:[%s15326_s3 + $0xa8] sm:$0xff]  ;;  %v4261_v23 = vmul.f32 %v10182_v48, %v4197_v49  ;;  %v4199_v48 = vld [vmem:[%s15326_s3 + $0xc0] sm:$0xff]  ;;  %v4569_v56 = vadd.f32 1.0, %v9282_v32  ;;  %v4201_v32 = vld [vmem:[%s15326_s3 + $0xd0] sm:$0xff] }
 0x4e4   : > { %v9286_v7 = vpop.eup %9285  ;;  %6153 = vrot.lane.b32.xlu1 %v9284_v57, %s10257_s28  ;;  %v8707_v50 = vmul.f32 -1.442695, %v4319_v47 }
 0x4e5   : > { %v13401_v46 = vpop.permute.xlu0 %6075  ;;  %v9288_v10 = vpop.eup %9287  ;;  %v4567_v51 = vadd.f32 1.0, %v9286_v7  ;;  %v8709_v11 = vmul.f32 -1.442695, %v4321_v16  ;;  %v4260_v7 = vmul.f32 %v10183_v58, %v4196_v33  ;;  %v8710_v33 = vmul.f32 -1.442695, %v4322_v63 }
 0x4e6   : > { %v9290_v19 = vpop.eup %9289  ;;  %v6223_v14 = vmul.f32 %v9288_v10, %v13232_v44  ;;  %9315 = vpow2.f32 %v8707_v50  ;;  %v4323_v44 = vadd.f32 %v4259_v8, %v12892_v24 }
 0x4e7   : > { %v13408_v61 = vpop.permute.xlu1 %6073  ;;  %v9292_v57 = vpop.eup %9291  ;;  %v4568_v41 = vadd.f32 1.0, %v9290_v19  ;;  %9317 = vrcp.f32 %v4566_v42  ;;  %v10184_v19 = vld [vmem:[#allocation3 + $0xb8] sm:$0xff]  ;;  %v4324_v42 = vadd.f32 %v4260_v7, %v12912_v20 }
 0x4e8   : > { %v9294_v47 = vpop.eup %9293  ;;  %6157 = vrot.lane.b32.xlu1 %v9292_v57, %s10257_s28  ;;  %6351 = vrot.lane.b32.xlu0 %v6223_v14, %s10256_s10  ;;  %9319 = vrcp.f32 %v4567_v51  ;;  %v4325_v14 = vadd.f32 %v4261_v23, %v12890_v22  ;;  %v4262_v57 = vmul.f32 %v10184_v19, %v4198_v9  ;;  %v10185_v51 = vld [vmem:[#allocation3 + $0xc0] sm:$0xff]  ;;  %v4200_v23 = vld [vmem:[%s15326_s3 + $0xc8] sm:$0xff] }
 0x4e9   : > { %v13419_v35 = vpop.permute.xlu0 %6079  ;;  %v9296_v59 = vpop.eup %9295  ;;  %v6224_v10 = vmul.f32 %v9294_v47, %v13242_v62  ;;  %9321 = vpow2.f32 %v8709_v11  ;;  %v4263_v47 = vmul.f32 %v10185_v51, %v4199_v48 }
 0x4ea   : > { %v9298_v16 = vpop.eup %9297  ;;  %v6225_v50 = vmul.f32 %v9296_v59, %v13239_v0  ;;  %9323 = vpow2.f32 %v8708_v27  ;;  %v8711_v0 = vmul.f32 -1.442695, %v4323_v44  ;;  %v4326_v48 = vadd.f32 %v4262_v57, %v12898_v26 }
 0x4eb   : > { %v13423_v36 = vpop.permute.xlu1 %6077  ;;  %v9300_v49 = vpop.eup %9299  ;;  %v4570_v63 = vadd.f32 1.0, %v9298_v16  ;;  %9325 = vrcp.f32 %v4568_v41  ;;  %v10186_v16 = vld [vmem:[#allocation3 + $0xd0] sm:$0xff]  ;;  %v8712_v41 = vmul.f32 -1.442695, %v4324_v42 }
 0x4ec   : > { %v9302_v8 = vpop.eup %9301  ;;  %6353 = vrot.lane.b32.xlu1 %v6224_v10, %s10256_s10  ;;  %6355 = vrot.lane.b32.xlu0 %v6225_v50, %s10256_s10  ;;  %v4571_v44 = vadd.f32 1.0, %v9300_v49  ;;  %9327 = vrcp.f32 %v4569_v56  ;;  %v8713_v10 = vmul.f32 -1.442695, %v4325_v14  ;;  %v4265_v50 = vmul.f32 %v10186_v16, %v4201_v32  ;;  %v15774_v49 = vld [vmem:[#allocation117_spill] sm:$0xff] }
 0x4ed   : > { %v13440_v38 = vpop.permute.xlu0 %6083  ;;  %v9304_v62 = vpop.eup %9303  ;;  %v6226_v59 = vmul.f32 %v9302_v8, %v13249_v4  ;;  %9329 = vpow2.f32 %v8710_v33  ;;  %v4327_v56 = vadd.f32 %v4263_v47, %v15774_v49  ;;  %v4202_v8 = vld [vmem:[%s15326_s3 + $0xd8] sm:$0xff]  ;;  %v10187_v33 = vld [vmem:[#allocation3 + $0xc8] sm:$0xff] }
 0x4ee   : > { %v9306_v11 = vpop.eup %9305  ;;  %v6227_v9 = vmul.f32 %v9304_v62, %v13246_v60  ;;  %9331 = vpow2.f32 %v8711_v0  ;;  %v4264_v14 = vmul.f32 %v10187_v33, %v4200_v23  ;;  %v4203_v62 = vld [vmem:[%s15326_s3 + $0xe0] sm:$0xff]  ;;  %v10188_v23 = vld [vmem:[#allocation3 + $0xd8] sm:$0xff] }
 0x4ef   : > { %v9308_v27 = vpop.eup %9307  ;;  %9333 = vrcp.f32 %v4570_v63  ;;  %v4573_v42 = vadd.f32 1.0, %v9306_v11  ;;  %v4266_v33 = vmul.f32 %v10188_v23, %v4202_v8  ;;  %v4205_v11 = vld [vmem:[%s15326_s3 + $0xf0] sm:$0xff]  ;;  %v10189_v63 = vld [vmem:[#allocation3 + $0xe0] sm:$0xff] }
 0x4f0   : > { %v13447_v12 = vpop.permute.xlu1 %6081  ;;  %v9310_v7 = vpop.eup %9309  ;;  %6357 = vrot.lane.b32.xlu1 %v6226_v59, %s10256_s10  ;;  %6359 = vrot.lane.b32.xlu0 %v6227_v9, %s10256_s10  ;;  %v4572_v57 = vadd.f32 1.0, %v9308_v27  ;;  %9335 = vrcp.f32 %v4571_v44  ;;  %v8714_v59 = vmul.f32 -1.442695, %v4326_v48  ;;  %v15775_v9 = vld [vmem:[#allocation116_spill] sm:$0xff]  ;;  %v4267_v44 = vmul.f32 %v10189_v63, %v4203_v62 }
 0x4f1   : > { %v9312_v60 = vpop.eup %9311  ;;  %v6228_v32 = vmul.f32 %v9310_v7, %v13256_v43  ;;  %9337 = vpow2.f32 %v8713_v10  ;;  %v4329_v16 = vadd.f32 %v4265_v50, %v15775_v9  ;;  %v8715_v43 = vmul.f32 -1.442695, %v4327_v56  ;;  %v15776_v7 = vld [vmem:[#allocation33_spill] sm:$0xff] }
 0x4f2   : > { %v9314_v19 = vpop.eup %9313  ;;  %v6229_v51 = vmul.f32 %v9312_v60, %v13254_v17  ;;  %9339 = vpow2.f32 %v8712_v41  ;;  %v4328_v17 = vadd.f32 %v4264_v14, %v15776_v7  ;;  %v4204_v60 = vld [vmem:[%s15326_s3 + $0xe8] sm:$0xff]  ;;  %v4330_v23 = vadd.f32 %v4266_v33, %v12933_v37  ;;  %v4207_v33 = vld [vmem:[%s15326_s3 + $0x100] sm:$0xff] }
 0x4f3   : > { %v9316_v0 = vpop.eup %9315  ;;  %v4574_v50 = vadd.f32 1.0, %v9314_v19  ;;  %9341 = vrcp.f32 %v4572_v57  ;;  %v8717_v62 = vmul.f32 -1.442695, %v4329_v16  ;;  %v10190_v19 = vld [vmem:[#allocation3 + $0xf0] sm:$0xff]  ;;  %v4331_v57 = vadd.f32 %v4267_v44, %v12939_v1 }
 0x4f4   : > { %v13466_v4 = vpop.permute.xlu1 %6085  ;;  %v9318_v47 = vpop.eup %9317  ;;  %6361 = vrot.lane.b32.xlu1 %v6228_v32, %s10256_s10  ;;  %6363 = vrot.lane.b32.xlu0 %v6229_v51, %s10256_s10  ;;  %v4575_v32 = vadd.f32 1.0, %v9316_v0  ;;  %9343 = vrcp.f32 %v4573_v42  ;;  %v4269_v63 = vmul.f32 %v10190_v19, %v4205_v11  ;;  %v4206_v0 = vld [vmem:[%s15326_s3 + $0xf8] sm:$0xff]  ;;  %v10191_v42 = vld [vmem:[#allocation3 + $0xe8] sm:$0xff] }
 0x4f5   : > { %v9320_v27 = vpop.eup %9319  ;;  %v6230_v8 = vmul.f32 %v9318_v47, %v13263_v28  ;;  %9345 = vpow2.f32 %v8714_v59  ;;  %v4268_v47 = vmul.f32 %v10191_v42, %v4204_v60 }
 0x4f6   : > { %v9322_v48 = vpop.eup %9321  ;;  %v6231_v41 = vmul.f32 %v9320_v27, %v13260_v13  ;;  %9347 = vpow2.f32 %v8715_v43  ;;  %v8716_v13 = vmul.f32 -1.442695, %v4328_v17  ;;  %v4333_v60 = vadd.f32 %v4269_v63, %v12937_v30 }
 0x4f7   : > { %v13461_v58 = vpop.permute.xlu0 %6087  ;;  %v9324_v14 = vpop.eup %9323  ;;  %9349 = vrcp.f32 %v4574_v50  ;;  %v4577_v17 = vadd.f32 1.0, %v9322_v48  ;;  %v8719_v50 = vmul.f32 -1.442695, %v4331_v57  ;;  %v4332_v48 = vadd.f32 %v4268_v47, %v12960_v54 }
 0x4f8   : > { %v9326_v51 = vpop.eup %9325  ;;  %6365 = vrot.lane.b32.xlu1 %v6230_v8, %s10256_s10  ;;  %6367 = vrot.lane.b32.xlu0 %v6231_v41, %s10256_s10  ;;  %v4576_v16 = vadd.f32 1.0, %v9324_v14  ;;  %9351 = vrcp.f32 %v4575_v32  ;;  %v8718_v41 = vmul.f32 -1.442695, %v4330_v23  ;;  %v10192_v14 = vld [vmem:[#allocation3 + $0xf8] sm:$0xff]  ;;  %v4209_v32 = vld [vmem:[%s15326_s3 + $0x110] sm:$0xff] }
 0x4f9   : > { %v9328_v28 = vpop.eup %9327  ;;  %v6232_v27 = vmul.f32 %v9326_v51, %v13276_v39  ;;  %9353 = vpow2.f32 %v8717_v62  ;;  %v4270_v19 = vmul.f32 %v10192_v14, %v4206_v0  ;;  %v10193_v51 = vld [vmem:[#allocation3 + $0x100] sm:$0xff] }
 0x4fa   : > { %v9330_v59 = vpop.eup %9329  ;;  %v6233_v11 = vmul.f32 %v9328_v28, %v13274_v25  ;;  %9355 = vpow2.f32 %v8716_v13  ;;  %v4271_v62 = vmul.f32 %v10193_v51, %v4207_v33  ;;  %v4208_v28 = vld [vmem:[%s15326_s3 + $0x108] sm:$0xff]  ;;  %v10194_v33 = vld [vmem:[#allocation3 + $0x110] sm:$0xff] }
 0x4fb   : > { %v13484_v10 = vpop.permute.xlu0 %6091  ;;  %v9332_v43 = vpop.eup %9331  ;;  %v4578_v63 = vadd.f32 1.0, %v9330_v59  ;;  %9357 = vrcp.f32 %v4576_v16  ;;  %v4273_v14 = vmul.f32 %v10194_v33, %v4209_v32  ;;  %v4210_v16 = vld [vmem:[%s15326_s3 + $0x118] sm:$0xff]  ;;  %v4212_v33 = vld [vmem:[%s15326_s3 + $0x128] sm:$0xff] }
 0x4fc   : > { %v9334_v8 = vpop.eup %9333  ;;  %6369 = vrot.lane.b32.xlu1 %v6232_v27, %s10256_s10  ;;  %6371 = vrot.lane.b32.xlu0 %v6233_v11, %s10256_s10  ;;  %v4579_v57 = vadd.f32 1.0, %v9332_v43  ;;  %9359 = vrcp.f32 %v4577_v17  ;;  %v8721_v27 = vmul.f32 -1.442695, %v4333_v60  ;;  %v4334_v11 = vadd.f32 %v4270_v19, %v12954_v55  ;;  %v10195_v43 = vld [vmem:[#allocation3 + $0x108] sm:$0xff]  ;;  %v4211_v19 = vld [vmem:[%s15326_s3 + $0x120] sm:$0xff] }
 0x4fd   : > { %v9336_v25 = vpop.eup %9335  ;;  %v6234_v0 = vmul.f32 %v9334_v8, %v13292_v34  ;;  %9361 = vpow2.f32 %v8718_v41  ;;  %v8720_v34 = vmul.f32 -1.442695, %v4332_v48  ;;  %v4272_v17 = vmul.f32 %v10195_v43, %v4208_v28 }
 0x4fe   : > { %v9338_v23 = vpop.eup %9337  ;;  %v6235_v42 = vmul.f32 %v9336_v25, %v13289_v52  ;;  %9363 = vpow2.f32 %v8719_v50  ;;  %v4335_v52 = vadd.f32 %v4271_v62, %v12974_v2  ;;  %v8722_v28 = vmul.f32 -1.442695, %v4334_v11 }
 0x4ff   : > { %v13491_v56 = vpop.permute.xlu1 %6089  ;;  %v9340_v13 = vpop.eup %9339  ;;  %9365 = vrcp.f32 %v4578_v63  ;;  %v4581_v51 = vadd.f32 1.0, %v9338_v23  ;;  %v4336_v63 = vadd.f32 %v4272_v17, %v12983_v40  ;;  %v4213_v23 = vld [vmem:[%s15326_s3 + $0x130] sm:$0xff] }
 0x500   : > { %v9342_v47 = vpop.eup %9341  ;;  %6373 = vrot.lane.b32.xlu1 %v6234_v0, %s10256_s10  ;;  %6375 = vrot.lane.b32.xlu0 %v6235_v42, %s10256_s10  ;;  %v4580_v60 = vadd.f32 1.0, %v9340_v13  ;;  %9367 = vrcp.f32 %v4579_v57  ;;  %v4337_v0 = vadd.f32 %v4273_v14, %v12962_v53  ;;  %v10196_v42 = vld [vmem:[#allocation3 + $0x118] sm:$0xff]  ;;  %v10197_v57 = vld [vmem:[#allocation3 + $0x120] sm:$0xff] }
 0x501   : > { %v13505_v44 = vpop.permute.xlu0 %6095  ;;  %v9344_v59 = vpop.eup %9343  ;;  %v6236_v25 = vmul.f32 %v9342_v47, %v13315_v31  ;;  %9369 = vpow2.f32 %v8721_v27  ;;  %v4274_v13 = vmul.f32 %v10196_v42, %v4210_v16  ;;  %v4275_v47 = vmul.f32 %v10197_v57, %v4211_v19 }
 0x502   : > { %v9346_v41 = vpop.eup %9345  ;;  %v6237_v50 = vmul.f32 %v9344_v59, %v13307_v21  ;;  %9371 = vpow2.f32 %v8720_v34  ;;  %v8723_v21 = vmul.f32 -1.442695, %v4335_v52  ;;  %v8725_v17 = vmul.f32 -1.442695, %v4337_v0 }
 0x503   : > { %v13510_v39 = vpop.permute.xlu1 %6093  ;;  %v9348_v32 = vpop.eup %9347  ;;  %v4582_v11 = vadd.f32 1.0, %v9346_v41  ;;  %9373 = vrcp.f32 %v4580_v60  ;;  %v4338_v19 = vadd.f32 %v4274_v13, %v12978_v3  ;;  %v10198_v41 = vld [vmem:[#allocation3 + $0x130] sm:$0xff]  ;;  %v8724_v60 = vmul.f32 -1.442695, %v4336_v63  ;;  %v4215_v13 = vld [vmem:[%s15326_s3 + $0x140] sm:$0xff] }
 0x504   : > { %v9350_v62 = vpop.eup %9349  ;;  %6377 = vrot.lane.b32.xlu1 %v6236_v25, %s10256_s10  ;;  %6379 = vrot.lane.b32.xlu0 %v6237_v50, %s10256_s10  ;;  %v4583_v52 = vadd.f32 1.0, %v9348_v32  ;;  %9375 = vrcp.f32 %v4581_v51  ;;  %v4277_v25 = vmul.f32 %v10198_v41, %v4213_v23  ;;  %v15777_v50 = vld [vmem:[#allocation132_spill] sm:$0xff] }
 0x505   : > { %v9352_v31 = vpop.eup %9351  ;;  %v6238_v14 = vmul.f32 %v9350_v62, %v13338_v6  ;;  %9377 = vpow2.f32 %v8722_v28  ;;  %v4339_v32 = vadd.f32 %v4275_v47, %v15777_v50  ;;  %v4214_v51 = vld [vmem:[%s15326_s3 + $0x138] sm:$0xff]  ;;  %v10199_v62 = vld [vmem:[#allocation3 + $0x128] sm:$0xff]  ;;  %v8726_v47 = vmul.f32 -1.442695, %v4338_v19 }
 0x506   : > { %v9354_v27 = vpop.eup %9353  ;;  %v6239_v59 = vmul.f32 %v9352_v31, %v13334_v45  ;;  %9379 = vpow2.f32 %v8723_v21  ;;  %v4276_v28 = vmul.f32 %v10199_v62, %v4212_v33  ;;  %v10200_v33 = vld [vmem:[#allocation3 + $0x138] sm:$0xff] }
 0x507   : > { %v13528_v8 = vpop.permute.xlu0 %6099  ;;  %v9356_v34 = vpop.eup %9355  ;;  %9381 = vrcp.f32 %v4582_v11  ;;  %v4585_v63 = vadd.f32 1.0, %v9354_v27  ;;  %v4278_v41 = vmul.f32 %v10200_v33, %v4214_v51  ;;  %v4217_v27 = vld [vmem:[%s15326_s3 + $0x150] sm:$0xff]  ;;  %v10201_v11 = vld [vmem:[#allocation3 + $0x140] sm:$0xff]  ;;  %v15780_v51 = vld [vmem:[#allocation46_spill] sm:$0xff] }
 0x508   : > { %v13535_v48 = vpop.permute.xlu1 %6097  ;;  %v9358_v43 = vpop.eup %9357  ;;  %6381 = vrot.lane.b32.xlu1 %v6238_v14, %s10256_s10  ;;  %6383 = vrot.lane.b32.xlu0 %v6239_v59, %s10256_s10  ;;  %v4584_v42 = vadd.f32 1.0, %v9356_v34  ;;  %9383 = vrcp.f32 %v4583_v52  ;;  %v15778_v14 = vld [vmem:[#allocation130_spill] sm:$0xff]  ;;  %v4279_v52 = vmul.f32 %v10201_v11, %v4215_v13  ;;  %v15782_v11 = vld [vmem:[#allocation133_spill] sm:$0xff] }
 0x509   : > { %v9360_v45 = vpop.eup %9359  ;;  %v6240_v31 = vmul.f32 %v9358_v43, %v13361_v15  ;;  %9385 = vpow2.f32 %v8725_v17  ;;  %v4341_v59 = vadd.f32 %v4277_v25, %v15778_v14  ;;  %v8727_v15 = vmul.f32 -1.442695, %v4339_v32  ;;  %v15779_v43 = vld [vmem:[#allocation134_spill] sm:$0xff] }
 0x50a   : > { %v9362_v0 = vpop.eup %9361  ;;  %v6241_v23 = vmul.f32 %v9360_v45, %v13354_v5  ;;  %9387 = vpow2.f32 %v8724_v60  ;;  %v4340_v5 = vadd.f32 %v4276_v28, %v15779_v43  ;;  %v4216_v45 = vld [vmem:[%s15326_s3 + $0x148] sm:$0xff]  ;;  %v15781_v60 = vld [vmem:[#allocation43_spill] sm:$0xff]  ;;  %v4342_v43 = vadd.f32 %v4278_v41, %v15782_v11  ;;  %v4219_v41 = vld [vmem:[%s15326_s3 + $0x160] sm:$0xff] }
 0x50b   : > { %v13549_v16 = vpop.permute.xlu0 %6103  ;;  %v9364_v21 = vpop.eup %9363  ;;  %v4586_v25 = vadd.f32 1.0, %v9362_v0  ;;  %9389 = vrcp.f32 %v4584_v42  ;;  %v8729_v13 = vmul.f32 -1.442695, %v4341_v59  ;;  %v10202_v0 = vld [vmem:[#allocation3 + $0x150] sm:$0xff] }
 0x50c   : > { %v13554_v6 = vpop.permute.xlu1 %6101  ;;  %v9366_v57 = vpop.eup %9365  ;;  %6385 = vrot.lane.b32.xlu1 %v6240_v31, %s10256_s10  ;;  %6387 = vrot.lane.b32.xlu0 %v6241_v23, %s10256_s10  ;;  %v4587_v23 = vadd.f32 1.0, %v9364_v21  ;;  %9391 = vrcp.f32 %v4585_v63  ;;  %v4281_v50 = vmul.f32 %v10202_v0, %v4217_v27  ;;  %v15783_v42 = vld [vmem:[#allocation139_spill] sm:$0xff]  ;;  %v4218_v21 = vld [vmem:[%s15326_s3 + $0x158] sm:$0xff]  ;;  %v10203_v63 = vld [vmem:[#allocation3 + $0x148] sm:$0xff]  ;;  %v8730_v0 = vmul.f32 -1.442695, %v4342_v43 }
 0x50d   : > { %v9368_v34 = vpop.eup %9367  ;;  %v6242_v62 = vmul.f32 %v9366_v57, %v15780_v51  ;;  %9393 = vpow2.f32 %v8726_v47  ;;  %v4343_v51 = vadd.f32 %v4279_v52, %v15783_v42  ;;  %v4280_v47 = vmul.f32 %v10203_v63, %v4216_v45  ;;  %v15784_v45 = vld [vmem:[#allocation138_spill] sm:$0xff]  ;;  %v10205_v43 = vld [vmem:[#allocation3 + $0x160] sm:$0xff] }
 0x50e   : > { %v9370_v19 = vpop.eup %9369  ;;  %v6243_v32 = vmul.f32 %v9368_v34, %v15781_v60  ;;  %9395 = vpow2.f32 %v8727_v15  ;;  %v8728_v34 = vmul.f32 -1.442695, %v4340_v5  ;;  %v4345_v63 = vadd.f32 %v4281_v50, %v15784_v45 }
 0x50f   : > { %v13572_v17 = vpop.permute.xlu0 %6107  ;;  %v9372_v31 = vpop.eup %9371  ;;  %9397 = vrcp.f32 %v4586_v25  ;;  %v4589_v5 = vadd.f32 1.0, %v9370_v19  ;;  %v8731_v25 = vmul.f32 -1.442695, %v4343_v51  ;;  %v15785_v19 = vld [vmem:[#allocation143_spill] sm:$0xff] }
 0x510   : > { %v13579_v28 = vpop.permute.xlu1 %6105  ;;  %v9374_v33 = vpop.eup %9373  ;;  %6389 = vrot.lane.b32.xlu1 %v6242_v62, %s10256_s10  ;;  %6391 = vrot.lane.b32.xlu0 %v6243_v32, %s10256_s10  ;;  %v4588_v60 = vadd.f32 1.0, %v9372_v31  ;;  %9399 = vrcp.f32 %v4587_v23  ;;  %v10204_v31 = vld [vmem:[#allocation3 + $0x158] sm:$0xff]  ;;  %v4344_v23 = vadd.f32 %v4280_v47, %v15785_v19 }
 0x511   : > { %v9376_v57 = vpop.eup %9375  ;;  %v6244_v27 = vmul.f32 %v9374_v33, %v13408_v61  ;;  %9401 = vpow2.f32 %v8729_v13  ;;  %v4282_v42 = vmul.f32 %v10204_v31, %v4218_v21  ;;  %v4221_v33 = vld [vmem:[%s15326_s3 + $0x170] sm:$0xff]  ;;  %v4283_v13 = vmul.f32 %v10205_v43, %v4219_v41  ;;  %v4220_v21 = vld [vmem:[%s15326_s3 + $0x168] sm:$0xff]  ;;  %v15786_v19 = vld [vmem:[#allocation140_spill] sm:$0xff] }
 0x512   : > { %v9378_v59 = vpop.eup %9377  ;;  %v6245_v62 = vmul.f32 %v9376_v57, %v13401_v46  ;;  %9403 = vpow2.f32 %v8728_v34  ;;  %v8733_v31 = vmul.f32 -1.442695, %v4345_v63  ;;  %v10206_v41 = vld [vmem:[#allocation3 + $0x170] sm:$0xff] }
 0x513   : > { %v9380_v15 = vpop.eup %9379  ;;  %v13593_v52 = vpop.permute.xlu0 %6111  ;;  %v4590_v57 = vadd.f32 1.0, %v9378_v59  ;;  %9405 = vrcp.f32 %v4588_v60  ;;  %v4346_v45 = vadd.f32 %v4282_v42, %v15786_v19  ;;  %v4285_v43 = vmul.f32 %v10206_v41, %v4221_v33  ;;  %v4222_v60 = vld [vmem:[%s15326_s3 + $0x178] sm:$0xff] }
 0x514   : > { %v9382_v32 = vpop.eup %9381  ;;  %6393 = vrot.lane.b32.xlu1 %v6244_v27, %s10256_s10  ;;  %6395 = vrot.lane.b32.xlu0 %v6245_v62, %s10256_s10  ;;  %v13598_v61 = vpop.permute.xlu1 %6109  ;;  %v4591_v51 = vadd.f32 1.0, %v9380_v15  ;;  %9407 = vrcp.f32 %v4589_v5  ;;  %v10207_v15 = vld [vmem:[#allocation3 + $0x168] sm:$0xff]  ;;  %v15788_v41 = vld [vmem:[#allocation144_spill] sm:$0xff] }
 0x515   : > { %v9384_v46 = vpop.eup %9383  ;;  %v6246_v27 = vmul.f32 %v9382_v32, %v13423_v36  ;;  %9409 = vpow2.f32 %v8730_v0  ;;  %v8732_v36 = vmul.f32 -1.442695, %v4344_v23  ;;  %v15787_v32 = vld [vmem:[#allocation147_spill] sm:$0xff]  ;;  %v4284_v5 = vmul.f32 %v10207_v15, %v4220_v21 }
 0x516   : > { %v9386_v50 = vpop.eup %9385  ;;  %v6247_v62 = vmul.f32 %v9384_v46, %v13419_v35  ;;  %9411 = vpow2.f32 %v8731_v25  ;;  %v4347_v35 = vadd.f32 %v4283_v13, %v15787_v32  ;;  %v4223_v46 = vld [vmem:[%s15326_s3 + $0x180] sm:$0xff]  ;;  %v8734_v21 = vmul.f32 -1.442695, %v4346_v45 }
 0x517   : > { %v9388_v34 = vpop.eup %9387  ;;  %v13616_v0 = vpop.permute.xlu0 %6115  ;;  %9413 = vrcp.f32 %v4590_v57  ;;  %v4349_v15 = vadd.f32 %v4285_v43, %v15788_v41  ;;  %v15789_v57 = vld [vmem:[#allocation150_spill] sm:$0xff] }
 0x518   : > { %v9390_v47 = vpop.eup %9389  ;;  %6397 = vrot.lane.b32.xlu1 %v6246_v27, %s10256_s10  ;;  %6399 = vrot.lane.b32.xlu0 %v6247_v62, %s10256_s10  ;;  %v4592_v63 = vadd.f32 1.0, %v9388_v34  ;;  %v13623_v23 = vpop.permute.xlu1 %6113  ;;  %v4593_v27 = vadd.f32 1.0, %v9386_v50  ;;  %9415 = vrcp.f32 %v4591_v51  ;;  %v10208_v34 = vld [vmem:[#allocation3 + $0x178] sm:$0xff]  ;;  %v4225_v50 = vld [vmem:[%s15326_s3 + $0x190] sm:$0xff]  ;;  %v10209_v51 = vld [vmem:[#allocation3 + $0x180] sm:$0xff] }
 0x519   : > { %v9392_v59 = vpop.eup %9391  ;;  %v6248_v33 = vmul.f32 %v9390_v47, %v13447_v12  ;;  %9417 = vpow2.f32 %v8733_v31  ;;  %v4286_v32 = vmul.f32 %v10208_v34, %v4222_v60  ;;  %v4348_v47 = vadd.f32 %v4284_v5, %v15789_v57  ;;  %v4224_v43 = vld [vmem:[%s15326_s3 + $0x188] sm:$0xff] }
 0x51a   : > { %v9394_v42 = vpop.eup %9393  ;;  %v6249_v25 = vmul.f32 %v9392_v59, %v13440_v38  ;;  %9419 = vpow2.f32 %v8732_v36  ;;  %v8735_v38 = vmul.f32 -1.442695, %v4347_v35  ;;  %v4287_v31 = vmul.f32 %v10209_v51, %v4223_v46  ;;  %v15790_v46 = vld [vmem:[#allocation148_spill] sm:$0xff] }
 0x51b   : > { %v9396_v13 = vpop.eup %9395  ;;  %v4594_v59 = vadd.f32 1.0, %v9394_v42  ;;  %9421 = vrcp.f32 %v4592_v63  ;;  %v8737_v34 = vmul.f32 -1.442695, %v4349_v15  ;;  %v4350_v51 = vadd.f32 %v4286_v32, %v15790_v46  ;;  %v10210_v42 = vld [vmem:[#allocation3 + $0x190] sm:$0xff] }
 0x51c   : > { %v9398_v62 = vpop.eup %9397  ;;  %6401 = vrot.lane.b32.xlu1 %v6248_v33, %s10256_s10  ;;  %6403 = vrot.lane.b32.xlu0 %v6249_v25, %s10256_s10  ;;  %v4595_v35 = vadd.f32 1.0, %v9396_v13  ;;  %9423 = vrcp.f32 %v4593_v27  ;;  %v4289_v57 = vmul.f32 %v10210_v42, %v4225_v50  ;;  %v8736_v63 = vmul.f32 -1.442695, %v4348_v47  ;;  %v15791_v13 = vld [vmem:[#allocation155_spill] sm:$0xff]  ;;  %v4227_v50 = vld [vmem:[%s15326_s3 + $0x1a0] sm:$0xff] }
 0x51d   : > { %v9400_v12 = vpop.eup %9399  ;;  %v6250_v60 = vmul.f32 %v9398_v62, %v13466_v4  ;;  %9425 = vpow2.f32 %v8734_v21  ;;  %v13642_v4 = vpop.permute.xlu1 %6117  ;;  %v4351_v27 = vadd.f32 %v4287_v31, %v15791_v13  ;;  %v4226_v62 = vld [vmem:[%s15326_s3 + $0x198] sm:$0xff]  ;;  %v10211_v21 = vld [vmem:[#allocation3 + $0x188] sm:$0xff]  ;;  %v8738_v42 = vmul.f32 -1.442695, %v4350_v51 }
 0x51e   : > { %v9402_v45 = vpop.eup %9401  ;;  %v6251_v33 = vmul.f32 %v9400_v12, %v13461_v58  ;;  %v13637_v5 = vpop.permute.xlu0 %6119  ;;  %9427 = vpow2.f32 %v8735_v38  ;;  %v4288_v15 = vmul.f32 %v10211_v21, %v4224_v43  ;;  %v15792_v13 = vld [vmem:[#allocation152_spill] sm:$0xff] }
 0x51f   : > { %v9404_v36 = vpop.eup %9403  ;;  %9429 = vrcp.f32 %v4594_v59  ;;  %v4597_v47 = vadd.f32 1.0, %v9402_v45  ;;  %v4353_v46 = vadd.f32 %v4289_v57, %v15792_v13  ;;  %v10212_v43 = vld [vmem:[#allocation3 + $0x198] sm:$0xff]  ;;  %v4229_v45 = vld [vmem:[%s15326_s3 + $0x1b0] sm:$0xff]  ;;  %v10213_v59 = vld [vmem:[#allocation3 + $0x1a0] sm:$0xff] }
 0x520   : > { %v9406_v25 = vpop.eup %9405  ;;  %6405 = vrot.lane.b32.xlu1 %v6250_v60, %s10256_s10  ;;  %6407 = vrot.lane.b32.xlu0 %v6251_v33, %s10256_s10  ;;  %v4596_v12 = vadd.f32 1.0, %v9404_v36  ;;  %9431 = vrcp.f32 %v4595_v35  ;;  %v4290_v21 = vmul.f32 %v10212_v43, %v4226_v62  ;;  %v4291_v35 = vmul.f32 %v10213_v59, %v4227_v50  ;;  %v15794_v43 = vld [vmem:[#allocation156_spill] sm:$0xff] }
 0x521   : > { %v9408_v58 = vpop.eup %9407  ;;  %v6252_v60 = vmul.f32 %v9406_v25, %v13491_v56  ;;  %9433 = vpow2.f32 %v8737_v34  ;;  %v8739_v56 = vmul.f32 -1.442695, %v4351_v27  ;;  %v15793_v25 = vld [vmem:[#allocation158_spill] sm:$0xff]  ;;  %v13667_v27 = vpop.permute.xlu1 %6121  ;;  %v8741_v50 = vmul.f32 -1.442695, %v4353_v46 }
 0x522   : > { %v9410_v32 = vpop.eup %9409  ;;  %v6253_v33 = vmul.f32 %v9408_v58, %v13484_v10  ;;  %9435 = vpow2.f32 %v8736_v63  ;;  %v4352_v10 = vadd.f32 %v4288_v15, %v15793_v25  ;;  %v13660_v34 = vpop.permute.xlu0 %6123  ;;  %v4228_v58 = vld [vmem:[%s15326_s3 + $0x1a8] sm:$0xff]  ;;  %v4354_v59 = vadd.f32 %v4290_v21, %v15794_v43  ;;  %v4231_v21 = vld [vmem:[%s15326_s3 + $0x1c0] sm:$0xff] }
 0x523   : > { %v9412_v38 = vpop.eup %9411  ;;  %v4598_v51 = vadd.f32 1.0, %v9410_v32  ;;  %9437 = vrcp.f32 %v4596_v12  ;;  %v10214_v32 = vld [vmem:[#allocation3 + $0x1b0] sm:$0xff]  ;;  %v15795_v12 = vld [vmem:[#allocation161_spill] sm:$0xff] }
 0x524   : > { %v9414_v31 = vpop.eup %9413  ;;  %6409 = vrot.lane.b32.xlu1 %v6252_v60, %s10256_s10  ;;  %6411 = vrot.lane.b32.xlu0 %v6253_v33, %s10256_s10  ;;  %v4599_v60 = vadd.f32 1.0, %v9412_v38  ;;  %9439 = vrcp.f32 %v4597_v47  ;;  %v4293_v25 = vmul.f32 %v10214_v32, %v4229_v45  ;;  %v4230_v38 = vld [vmem:[%s15326_s3 + $0x1b8] sm:$0xff]  ;;  %v10215_v47 = vld [vmem:[#allocation3 + $0x1a8] sm:$0xff]  ;;  %v8742_v32 = vmul.f32 -1.442695, %v4354_v59 }
 0x525   : > { %v9416_v36 = vpop.eup %9415  ;;  %v6254_v62 = vmul.f32 %v9414_v31, %v13510_v39  ;;  %9441 = vpow2.f32 %v8738_v42  ;;  %v4355_v31 = vadd.f32 %v4291_v35, %v15795_v12  ;;  %v4292_v42 = vmul.f32 %v10215_v47, %v4228_v58  ;;  %v15796_v58 = vld [vmem:[#allocation160_spill] sm:$0xff] }
 0x526   : > { %v9418_v57 = vpop.eup %9417  ;;  %v6255_v63 = vmul.f32 %v9416_v36, %v13505_v44  ;;  %9443 = vpow2.f32 %v8739_v56  ;;  %v8740_v44 = vmul.f32 -1.442695, %v4352_v10  ;;  %v13681_v35 = vpop.permute.xlu0 %6127  ;;  %v4357_v47 = vadd.f32 %v4293_v25, %v15796_v58 }
 0x527   : > { %v9420_v15 = vpop.eup %9419  ;;  %9445 = vrcp.f32 %v4598_v51  ;;  %v4601_v10 = vadd.f32 1.0, %v9418_v57  ;;  %v8743_v51 = vmul.f32 -1.442695, %v4355_v31  ;;  %v15797_v57 = vld [vmem:[#allocation165_spill] sm:$0xff] }
 0x528   : > { %v9422_v33 = vpop.eup %9421  ;;  %6413 = vrot.lane.b32.xlu1 %v6254_v62, %s10256_s10  ;;  %6415 = vrot.lane.b32.xlu0 %v6255_v63, %s10256_s10  ;;  %v4600_v36 = vadd.f32 1.0, %v9420_v15  ;;  %9447 = vrcp.f32 %v4599_v60  ;;  %v10216_v15 = vld [vmem:[#allocation3 + $0x1b8] sm:$0xff]  ;;  %v4356_v60 = vadd.f32 %v4292_v42, %v15797_v57 }
 0x529   : > { %v9424_v39 = vpop.eup %9423  ;;  %v6256_v45 = vmul.f32 %v9422_v33, %v13535_v48  ;;  %9449 = vpow2.f32 %v8741_v50  ;;  %v4294_v12 = vmul.f32 %v10216_v15, %v4230_v38  ;;  %v13686_v48 = vpop.permute.xlu1 %6125  ;;  %v4233_v33 = vld [vmem:[%s15326_s3 + $0x1d0] sm:$0xff]  ;;  %v10217_v50 = vld [vmem:[#allocation3 + $0x1c0] sm:$0xff]  ;;  %v4232_v38 = vld [vmem:[%s15326_s3 + $0x1c8] sm:$0xff]  ;;  %v8745_v15 = vmul.f32 -1.442695, %v4357_v47 }
 0x52a   : > { %v9426_v46 = vpop.eup %9425  ;;  %v6257_v62 = vmul.f32 %v9424_v39, %v13528_v8  ;;  %9451 = vpow2.f32 %v8740_v44  ;;  %v4295_v59 = vmul.f32 %v10217_v50, %v4231_v21  ;;  %v15798_v57 = vld [vmem:[#allocation164_spill] sm:$0xff]  ;;  %v10218_v21 = vld [vmem:[#allocation3 + $0x1d0] sm:$0xff] }
 0x52b   : > { %v9428_v56 = vpop.eup %9427  ;;  %v4602_v39 = vadd.f32 1.0, %v9426_v46  ;;  %9453 = vrcp.f32 %v4600_v36  ;;  %v4358_v58 = vadd.f32 %v4294_v12, %v15798_v57  ;;  %v4297_v50 = vmul.f32 %v10218_v21, %v4233_v33  ;;  %v4234_v36 = vld [vmem:[%s15326_s3 + $0x1d8] sm:$0xff]  ;;  %v15800_v21 = vld [vmem:[#allocation166_spill] sm:$0xff] }
 0x52c   : > { %v9430_v63 = vpop.eup %9429  ;;  %6417 = vrot.lane.b32.xlu1 %v6256_v45, %s10256_s10  ;;  %6419 = vrot.lane.b32.xlu0 %v6257_v62, %s10256_s10  ;;  %v4603_v31 = vadd.f32 1.0, %v9428_v56  ;;  %9455 = vrcp.f32 %v4601_v10  ;;  %v10219_v56 = vld [vmem:[#allocation3 + $0x1c8] sm:$0xff] }
 0x52d   : > { %v9432_v8 = vpop.eup %9431  ;;  %v6258_v45 = vmul.f32 %v9430_v63, %v13554_v6  ;;  %9457 = vpow2.f32 %v8742_v32  ;;  %v8744_v6 = vmul.f32 -1.442695, %v4356_v60  ;;  %v15799_v63 = vld [vmem:[#allocation169_spill] sm:$0xff]  ;;  %v4296_v10 = vmul.f32 %v10219_v56, %v4232_v38  ;;  %v13704_v32 = vpop.permute.xlu0 %6131 }
 0x52e   : > { %v9434_v25 = vpop.eup %9433  ;;  %v6259_v62 = vmul.f32 %v9432_v8, %v13549_v16  ;;  %9459 = vpow2.f32 %v8743_v51  ;;  %v4359_v16 = vadd.f32 %v4295_v59, %v15799_v63  ;;  %v4235_v8 = vld [vmem:[%s15326_s3 + $0x1e0] sm:$0xff]  ;;  %v13711_v60 = vpop.permute.xlu1 %6129  ;;  %v8746_v38 = vmul.f32 -1.442695, %v4358_v58 }
 0x52f   : > { %v9436_v44 = vpop.eup %9435  ;;  %9461 = vrcp.f32 %v4602_v39  ;;  %v4361_v56 = vadd.f32 %v4297_v50, %v15800_v21  ;;  %v15801_v39 = vld [vmem:[#allocation173_spill] sm:$0xff]  ;;  %v4236_v50 = vld [vmem:[%s15326_s3 + $0x1e8] sm:$0xff] }
 0x530   : > { %v9438_v42 = vpop.eup %9437  ;;  %6421 = vrot.lane.b32.xlu1 %v6258_v45, %s10256_s10  ;;  %6423 = vrot.lane.b32.xlu0 %v6259_v62, %s10256_s10  ;;  %v4604_v47 = vadd.f32 1.0, %v9436_v44  ;;  %v4605_v45 = vadd.f32 1.0, %v9434_v25  ;;  %9463 = vrcp.f32 %v4603_v31  ;;  %v10220_v44 = vld [vmem:[#allocation3 + $0x1d8] sm:$0xff]  ;;  %v4237_v25 = vld [vmem:[%s15326_s3 + $0x1f0] sm:$0xff]  ;;  %v10221_v31 = vld [vmem:[#allocation3 + $0x1e0] sm:$0xff] }
 0x531   : > { %v9440_v46 = vpop.eup %9439  ;;  %v6260_v33 = vmul.f32 %v9438_v42, %v13579_v28  ;;  %9465 = vpow2.f32 %v8745_v15  ;;  %v4298_v63 = vmul.f32 %v10220_v44, %v4234_v36  ;;  %v4360_v42 = vadd.f32 %v4296_v10, %v15801_v39  ;;  %v13725_v10 = vpop.permute.xlu0 %6135 }
 0x532   : > { %v9442_v12 = vpop.eup %9441  ;;  %v6261_v51 = vmul.f32 %v9440_v46, %v13572_v17  ;;  %9467 = vpow2.f32 %v8744_v6  ;;  %v8747_v17 = vmul.f32 -1.442695, %v4359_v16  ;;  %v4299_v15 = vmul.f32 %v10221_v31, %v4235_v8  ;;  %v15802_v8 = vld [vmem:[#allocation170_spill] sm:$0xff] }
 0x533   : > { %v9444_v59 = vpop.eup %9443  ;;  %v4606_v46 = vadd.f32 1.0, %v9442_v12  ;;  %9469 = vrcp.f32 %v4604_v47  ;;  %v8749_v44 = vmul.f32 -1.442695, %v4361_v56  ;;  %v4362_v31 = vadd.f32 %v4298_v63, %v15802_v8  ;;  %v10222_v12 = vld [vmem:[#allocation3 + $0x1f0] sm:$0xff]  ;;  %v4238_v63 = vld [vmem:[%s15326_s3 + $0x1f8] sm:$0xff] }
 0x534   : > { %v9446_v62 = vpop.eup %9445  ;;  %6425 = vrot.lane.b32.xlu1 %v6260_v33, %s10256_s10  ;;  %6427 = vrot.lane.b32.xlu0 %v6261_v51, %s10256_s10  ;;  %v4607_v16 = vadd.f32 1.0, %v9444_v59  ;;  %9471 = vrcp.f32 %v4605_v45  ;;  %v4301_v39 = vmul.f32 %v10222_v12, %v4237_v25  ;;  %v8748_v47 = vmul.f32 -1.442695, %v4360_v42  ;;  %v15803_v59 = vld [vmem:[#allocation175_spill] sm:$0xff] }
 0x535   : > { %v9448_v28 = vpop.eup %9447  ;;  %v6262_v36 = vmul.f32 %v9446_v62, %v13598_v61  ;;  %9473 = vpow2.f32 %v8746_v38  ;;  %v13730_v61 = vpop.permute.xlu1 %6133  ;;  %v4363_v45 = vadd.f32 %v4299_v15, %v15803_v59  ;;  %v10223_v62 = vld [vmem:[#allocation3 + $0x1e8] sm:$0xff]  ;;  %v8750_v42 = vmul.f32 -1.442695, %v4362_v31 }
 0x536   : > { %v9450_v58 = vpop.eup %9449  ;;  %v6263_v33 = vmul.f32 %v9448_v28, %v13593_v52  ;;  %9475 = vpow2.f32 %v8747_v17  ;;  %v4300_v28 = vmul.f32 %v10223_v62, %v4236_v50  ;;  %v15804_v15 = vld [vmem:[#allocation174_spill] sm:$0xff]  ;;  %v10224_v62 = vld [vmem:[#allocation3 + $0x1f8] sm:$0xff] }
 0x537   : > { %v9452_v6 = vpop.eup %9451  ;;  %9477 = vrcp.f32 %v4606_v46  ;;  %v4365_v12 = vadd.f32 %v4301_v39, %v15804_v15  ;;  %v13742_v46 = vpop.permute.xlu0 %6139 }
 0x538   : > { %v9454_v51 = vpop.eup %9453  ;;  %6429 = vrot.lane.b32.xlu1 %v6262_v36, %s10256_s10  ;;  %6431 = vrot.lane.b32.xlu0 %v6263_v33, %s10256_s10  ;;  %v4608_v38 = vadd.f32 1.0, %v9452_v6  ;;  %v4609_v33 = vadd.f32 1.0, %v9450_v58  ;;  %9479 = vrcp.f32 %v4607_v16  ;;  %v8751_v6 = vmul.f32 -1.442695, %v4363_v45 }
 0x539   : > { %v9456_v52 = vpop.eup %9455  ;;  %v6264_v56 = vmul.f32 %v9454_v51, %v13623_v23  ;;  %9481 = vpow2.f32 %v8749_v44  ;;  %v4302_v23 = vmul.f32 %v10224_v62, %v4238_v63  ;;  %v15805_v51 = vld [vmem:[#allocation179_spill] sm:$0xff]  ;;  %v13746_v39 = vpop.permute.xlu1 %6137  ;;  %v8753_v45 = vmul.f32 -1.442695, %v4365_v12  ;;  %v15806_v12 = vld [vmem:[#allocation42_spill] sm:$0xff] }
 0x53a   : > { %v9458_v21 = vpop.eup %9457  ;;  %v6265_v25 = vmul.f32 %v9456_v52, %v13616_v0  ;;  %9483 = vpow2.f32 %v8748_v47  ;;  %v4364_v0 = vadd.f32 %v4300_v28, %v15805_v51 }
 0x53b   : > { %v9460_v36 = vpop.eup %9459  ;;  %v4610_v16 = vadd.f32 1.0, %v9458_v21  ;;  %9485 = vrcp.f32 %v4608_v38  ;;  %v4366_v21 = vadd.f32 %v4302_v23, %v13171_v29 }
 0x53c   : > { %v9462_v17 = vpop.eup %9461  ;;  %6433 = vrot.lane.b32.xlu1 %v6264_v56, %s10256_s10  ;;  %6435 = vrot.lane.b32.xlu0 %v6265_v25, %s10256_s10  ;;  %v4611_v56 = vadd.f32 1.0, %v9460_v36  ;;  %9487 = vrcp.f32 %v4609_v33 }
 0x53d   : > { %v9464_v50 = vpop.eup %9463  ;;  %v6266_v44 = vmul.f32 %v9462_v17, %v13642_v4  ;;  %9489 = vpow2.f32 %v8750_v42  ;;  %v8752_v4 = vmul.f32 -1.442695, %v4364_v0  ;;  %v13753_v17 = vpop.permute.xlu0 %6143 }
 0x53e   : > { %v9466_v58 = vpop.eup %9465  ;;  %v6267_v31 = vmul.f32 %v9464_v50, %v13637_v5  ;;  %9491 = vpow2.f32 %v8751_v6  ;;  %v5393_v50 = vadd.f32 1.0, %v15806_v12  ;;  %v13758_v6 = vpop.permute.xlu1 %6141 }
 0x53f   : > { %v9468_v52 = vpop.eup %9467  ;;  %9493 = vrcp.f32 %v4610_v16  ;;  %v4613_v33 = vadd.f32 1.0, %v9466_v58 }
 0x540   : > { %v9470_v47 = vpop.eup %9469  ;;  %6437 = vrot.lane.b32.xlu1 %v6266_v44, %s10256_s10  ;;  %6439 = vrot.lane.b32.xlu0 %v6267_v31, %s10256_s10  ;;  %v4612_v5 = vadd.f32 1.0, %v9468_v52  ;;  %9495 = vrcp.f32 %v4611_v56  ;;  %v15807_v52 = vld [vmem:[#allocation39_spill] sm:$0xff] }
 0x541   : > { %v9472_v28 = vpop.eup %9471  ;;  %v6268_v38 = vmul.f32 %v9470_v47, %v13667_v27  ;;  %9497 = vpow2.f32 %v8753_v45  ;;  %v8754_v27 = vmul.f32 -1.442695, %v4366_v21  ;;  %v5391_v56 = vadd.f32 1.0, %v15807_v52  ;;  %v15808_v47 = vld [vmem:[#allocation103_spill] sm:$0xff]  ;;  %v15809_v45 = vld [vmem:[#allocation45_spill] sm:$0xff] }
 0x542   : > { %v9474_v63 = vpop.eup %9473  ;;  %v6269_v25 = vmul.f32 %v9472_v28, %v13660_v34  ;;  %9499 = vpow2.f32 %v8752_v4  ;;  %v5140_v28 = vadd.f32 %v15809_v45, %v15808_v47  ;;  %v15810_v4 = vld [vmem:[#allocation41_spill] sm:$0xff]  ;;  %v13774_v12 = vpop.permute.xlu1 %6145  ;;  %v15814_v45 = vld [vmem:[#allocation48_spill] sm:$0xff] }
 0x543   : > { %v9476_v36 = vpop.eup %9475  ;;  %v4614_v23 = vadd.f32 1.0, %v9474_v63  ;;  %9501 = vrcp.f32 %v4612_v5  ;;  %v15811_v63 = vld [vmem:[#allocation102_spill] sm:$0xff]  ;;  %v15813_v52 = vld [vmem:[#allocation13_spill] sm:$0xff] }
 0x544   : > { %v9478_v42 = vpop.eup %9477  ;;  %6441 = vrot.lane.b32.xlu1 %v6268_v38, %s10256_s10  ;;  %6443 = vrot.lane.b32.xlu0 %v6269_v25, %s10256_s10  ;;  %v4615_v44 = vadd.f32 1.0, %v9476_v36  ;;  %9503 = vrcp.f32 %v4613_v33  ;;  %v13770_v38 = vpop.permute.xlu0 %6147  ;;  %v15903_v47 = vld [vmem:[#allocation137_spill] sm:$0xff] }
 0x545   : > { %v9480_v62 = vpop.eup %9479  ;;  %v6270_v0 = vmul.f32 %v9478_v42, %v13686_v48  ;;  %9505 = vrcp.f32 %v5393_v50  ;;  %v5394_v48 = vadd.f32 1.0, %v15810_v4 }
 0x546   : > { %v9482_v34 = vpop.eup %9481  ;;  %v6271_v58 = vmul.f32 %v9480_v62, %v13681_v35  ;;  %v15812_v35 = vld [vmem:[#allocation47_spill] sm:$0xff]  ;;  %9507 = vpow2.f32 %v8754_v27  ;;  %v5143_v27 = vadd.f32 %v15814_v45, %v15813_v52 }
 0x547   : > { %v9484_v16 = vpop.eup %9483  ;;  %v5142_v5 = vadd.f32 %v15812_v35, %v15811_v63  ;;  %9509 = vrcp.f32 %v4614_v23  ;;  %v4617_v62 = vadd.f32 1.0, %v9482_v34  ;;  %v15816_v23 = vld [vmem:[#allocation50_spill] sm:$0xff] }
 0x548   : > { %v9486_v31 = vpop.eup %9485  ;;  %6445 = vrot.lane.b32.xlu1 %v6270_v0, %s10256_s10  ;;  %6447 = vrot.lane.b32.xlu0 %v6271_v58, %s10256_s10  ;;  %v4616_v36 = vadd.f32 1.0, %v9484_v16  ;;  %9511 = vrcp.f32 %v4615_v44  ;;  %v8760_v58 = vmul.f32 -1.442695, %v5140_v28 }
 0x549   : > { %v9488_v21 = vpop.eup %9487  ;;  %v6272_v33 = vmul.f32 %v9486_v31, %v13711_v60  ;;  %9513 = vrcp.f32 %v5391_v56  ;;  %v8762_v60 = vmul.f32 -1.442695, %v5142_v5  ;;  %v13784_v35 = vpop.permute.xlu0 %6151  ;;  %v15818_v5 = vld [vmem:[#allocation49_spill] sm:$0xff] }
 0x54a   : > { %v9490_v25 = vpop.eup %9489  ;;  %v6273_v42 = vmul.f32 %v9488_v21, %v13704_v32  ;;  %9515 = vrcp.f32 %v5394_v48  ;;  %v15815_v32 = vld [vmem:[#allocation15_spill] sm:$0xff]  ;;  %v15817_v48 = vld [vmem:[#allocation16_spill] sm:$0xff] }
 0x54b   : > { %v9492_v50 = vpop.eup %9491  ;;  %v5145_v31 = vadd.f32 %v15816_v23, %v15815_v32  ;;  %v4618_v4 = vadd.f32 1.0, %v9490_v25  ;;  %9517 = vrcp.f32 %v4616_v36  ;;  %v5144_v45 = vadd.f32 %v15818_v5, %v15817_v48  ;;  %v13789_v23 = vpop.permute.xlu1 %6149  ;;  %v15830_v48 = vld [vmem:[#allocation18_spill] sm:$0xff] }
 0x54c   : > { %v9494_v0 = vpop.eup %9493  ;;  %6449 = vrot.lane.b32.xlu1 %v6272_v33, %s10256_s10  ;;  %6451 = vrot.lane.b32.xlu0 %v6273_v42, %s10256_s10  ;;  %v4619_v28 = vadd.f32 1.0, %v9492_v50  ;;  %9519 = vrcp.f32 %v4617_v62  ;;  %v8763_v42 = vmul.f32 -1.442695, %v5143_v27 }
 0x54d   : > { %v9496_v16 = vpop.eup %9495  ;;  %v6274_v34 = vmul.f32 %v9494_v0, %v13730_v61  ;;  %9521 = vpow2.f32 %v8760_v58 }
 0x54e   : > { %v9498_v21 = vpop.eup %9497  ;;  %v6275_v44 = vmul.f32 %v9496_v16, %v13725_v10  ;;  %9523 = vpow2.f32 %v8762_v60  ;;  %v8765_v10 = vmul.f32 -1.442695, %v5145_v31  ;;  %v15819_v16 = vld [vmem:[#allocation14_spill] sm:$0xff] }
 0x54f   : > { %v9500_v56 = vpop.eup %9499  ;;  %9525 = vrcp.f32 %v4618_v4  ;;  %v4621_v58 = vadd.f32 1.0, %v9498_v21  ;;  %v15822_v21 = vld [vmem:[#allocation17_spill] sm:$0xff]  ;;  %v15823_v4 = vld [vmem:[#allocation52_spill] sm:$0xff] }
 0x550   : > { %v9502_v33 = vpop.eup %9501  ;;  %6453 = vrot.lane.b32.xlu1 %v6274_v34, %s10256_s10  ;;  %6455 = vrot.lane.b32.xlu0 %v6275_v44, %s10256_s10  ;;  %v4620_v36 = vadd.f32 1.0, %v9500_v56  ;;  %9527 = vrcp.f32 %v4619_v28  ;;  %v15820_v34 = vld [vmem:[#allocation51_spill] sm:$0xff]  ;;  %v8764_v44 = vmul.f32 -1.442695, %v5144_v45  ;;  %v5147_v28 = vadd.f32 %v15823_v4, %v15822_v21  ;;  %v15828_v21 = vld [vmem:[#allocation53_spill] sm:$0xff] }
 0x551   : > { %v9504_v61 = vpop.eup %9503  ;;  %v6276_v50 = vmul.f32 %v9502_v33, %v13746_v39  ;;  %9529 = vpow2.f32 %v8763_v42  ;;  %v5146_v5 = vadd.f32 %v15820_v34, %v15819_v16  ;;  %v15821_v39 = vld [vmem:[#allocation44_spill] sm:$0xff] }
 0x552   : > { %v13792_v25 = vpop.eup %9505  ;;  %v6277_v62 = vmul.f32 %v9504_v61, %v13742_v46  ;;  %v5392_v56 = vadd.f32 1.0, %v15821_v39  ;;  %9531 = vpow2.f32 %v8765_v10  ;;  %v15824_v39 = vld [vmem:[#allocation109_spill] sm:$0xff]  ;;  %v15825_v10 = vld [vmem:[#allocation54_spill] sm:$0xff] }
 0x553   : > { %v9508_v0 = vpop.eup %9507  ;;  %v13800_v60 = vpop.permute.xlu0 %6155  ;;  %9533 = vrcp.f32 %v4620_v36  ;;  %v8766_v34 = vmul.f32 -1.442695, %v5146_v5  ;;  %v5149_v16 = vadd.f32 %v15825_v10, %v15824_v39  ;;  %v15829_v39 = vld [vmem:[#allocation198_spill] sm:$0xff] }
 0x554   : > { %v9510_v27 = vpop.eup %9509  ;;  %6457 = vrot.lane.b32.xlu1 %v6276_v50, %s10256_s10  ;;  %6459 = vrot.lane.b32.xlu0 %v6277_v62, %s10256_s10  ;;  %v4622_v50 = vadd.f32 1.0, %v9508_v0  ;;  %9535 = vrcp.f32 %v4621_v58 }
 0x555   : > { %v9512_v31 = vpop.eup %9511  ;;  %v6278_v33 = vmul.f32 %v9510_v27, %v13758_v6  ;;  %9537 = vpow2.f32 %v8764_v44  ;;  %v15826_v6 = vld [vmem:[#allocation197_spill] sm:$0xff]  ;;  %v8767_v27 = vmul.f32 -1.442695, %v5147_v28  ;;  %v15833_v28 = vld [vmem:[#allocation56_spill] sm:$0xff] }
 0x556   : > { %v13803_v46 = vpop.eup %9513  ;;  %v6279_v42 = vmul.f32 %v9512_v31, %v13753_v17  ;;  %v6154_v45 = vpop.permute.xlu1 %6153  ;;  %9539 = vrcp.f32 %v5392_v56  ;;  %v5397_v17 = vadd.f32 1.0, %v15826_v6  ;;  %v15827_v31 = vld [vmem:[#allocation20_spill] sm:$0xff]  ;;  %v8769_v6 = vmul.f32 -1.442695, %v5149_v16 }
 0x557   : > { %v13809_v61 = vpop.eup %9515  ;;  %v5148_v0 = vadd.f32 %v15828_v21, %v15827_v31  ;;  %9541 = vrcp.f32 %v4622_v50 }
 0x558   : > { %v9518_v62 = vpop.eup %9517  ;;  %6461 = vrot.lane.b32.xlu1 %v6278_v33, %s10256_s10  ;;  %6463 = vrot.lane.b32.xlu0 %v6279_v42, %s10256_s10  ;;  %v5395_v33 = vadd.f32 1.0, %v15829_v39  ;;  %v15831_v42 = vld [vmem:[#allocation55_spill] sm:$0xff]  ;;  %9543 = vpow2.f32 %v8766_v34 }
 0x559   : > { %v9520_v4 = vpop.eup %9519  ;;  %v6280_v58 = vmul.f32 %v9518_v62, %v13774_v12  ;;  %v5150_v52 = vadd.f32 %v15831_v42, %v15830_v48  ;;  %9545 = vrcp.f32 %v5397_v17  ;;  %v8768_v39 = vmul.f32 -1.442695, %v5148_v0  ;;  %v15834_v48 = vld [vmem:[#allocation23_spill] sm:$0xff] }
 0x55a   : > { %v9522_v36 = vpop.eup %9521  ;;  %v6281_v5 = vmul.f32 %v9520_v4, %v13770_v38  ;;  %v6158_v44 = vpop.permute.xlu1 %6157  ;;  %v15832_v38 = vld [vmem:[#allocation22_spill] sm:$0xff]  ;;  %9547 = vpow2.f32 %v8767_v27 }
 0x55b   : > { %v6352_v32 = vpop.permute.xlu0 %6351  ;;  %v9524_v10 = vpop.eup %9523  ;;  %v5396_v12 = vadd.f32 1.0, %v9522_v36  ;;  %v5151_v62 = vadd.f32 %v15833_v28, %v15832_v38  ;;  %9549 = vrcp.f32 %v5395_v33 }
 0x55c   : > { %v9526_v56 = vpop.eup %9525  ;;  %6465 = vrot.lane.b32.xlu1 %v6280_v58, %s10256_s10  ;;  %6467 = vrot.lane.b32.xlu0 %v6281_v5, %s10256_s10  ;;  %v8770_v58 = vmul.f32 -1.442695, %v5150_v52  ;;  %v15835_v5 = vld [vmem:[#allocation58_spill] sm:$0xff]  ;;  %v5398_v17 = vadd.f32 1.0, %v9524_v10  ;;  %9551 = vpow2.f32 %v8769_v6 }
 0x55d   : > { %v9528_v21 = vpop.eup %9527  ;;  %v6282_v31 = vmul.f32 %v9526_v56, %v13789_v23  ;;  %v5153_v63 = vadd.f32 %v15835_v5, %v15834_v48  ;;  %9553 = vrcp.f32 %v5396_v12  ;;  %v8771_v0 = vmul.f32 -1.442695, %v5151_v62  ;;  %v15836_v56 = vld [vmem:[#allocation113_spill] sm:$0xff] }
 0x55e   : > { %v9530_v4 = vpop.eup %9529  ;;  %v6283_v50 = vmul.f32 %v9528_v21, %v13784_v35  ;;  %v6354_v42 = vpop.permute.xlu1 %6353  ;;  %9555 = vpow2.f32 %v8768_v39  ;;  %v15837_v21 = vld [vmem:[#allocation57_spill] sm:$0xff] }
 0x55f   : > { %v6356_v34 = vpop.permute.xlu0 %6355  ;;  %v9532_v16 = vpop.eup %9531  ;;  %v5399_v23 = vadd.f32 1.0, %v9530_v4  ;;  %v5152_v33 = vadd.f32 %v15837_v21, %v15836_v56  ;;  %9557 = vpow2.f32 %v8770_v58  ;;  %v15839_v4 = vld [vmem:[#allocation62_spill] sm:$0xff]  ;;  %v15840_v48 = vld [vmem:[#allocation5_spill] sm:$0xff] }
 0x560   : > { %v9534_v36 = vpop.eup %9533  ;;  %6469 = vrot.lane.b32.xlu1 %v6282_v31, %s10256_s10  ;;  %6471 = vrot.lane.b32.xlu0 %v6283_v50, %s10256_s10  ;;  %v8773_v31 = vmul.f32 -1.442695, %v5153_v63  ;;  %v15838_v50 = vld [vmem:[#allocation59_spill] sm:$0xff]  ;;  %9559 = vrcp.f32 %v5398_v17  ;;  %v5401_v62 = vadd.f32 1.0, %v9532_v16  ;;  %v5157_v39 = vadd.f32 %v15839_v4, %v12890_v22  ;;  %v15841_v63 = vld [vmem:[#allocation60_spill] sm:$0xff] }
 0x561   : > { %v9536_v27 = vpop.eup %9535  ;;  %v6284_v52 = vmul.f32 %v9534_v36, %v6154_v45  ;;  %v5154_v12 = vadd.f32 %v15838_v50, %v12875_v18  ;;  %v5839_v45 = vmul.f32 %v13803_v46, %v15840_v48  ;;  %9561 = vrcp.f32 %v5399_v23  ;;  %v15842_v46 = vld [vmem:[#allocation11_spill] sm:$0xff]  ;;  %v15888_v18 = vld [vmem:[#allocation34_spill] sm:$0xff] }
 0x562   : > { %v9538_v35 = vpop.eup %9537  ;;  %v6285_v28 = vmul.f32 %v9536_v27, %v13800_v60  ;;  %v13836_v5 = vpop.permute.xlu1 %6357  ;;  %v5155_v58 = vadd.f32 %v15841_v63, %v12892_v24  ;;  %9563 = vpow2.f32 %v8771_v0  ;;  %v8772_v17 = vmul.f32 -1.442695, %v5152_v33  ;;  %v15843_v63 = vld [vmem:[#allocation63_spill] sm:$0xff]  ;;  %v15844_v33 = vld [vmem:[#allocation9_spill] sm:$0xff] }
 0x563   : > { %v13838_v10 = vpop.permute.xlu0 %6359  ;;  %v9540_v6 = vpop.eup %9539  ;;  %v5400_v36 = vadd.f32 1.0, %v9538_v35  ;;  %v13850_v21 = vadd.f32 %v6352_v32, %v5839_v45  ;;  %9565 = vpow2.f32 %v8773_v31  ;;  %v8774_v23 = vmul.f32 -1.442695, %v5154_v12  ;;  %v15845_v12 = vld [vmem:[#allocation61_spill] sm:$0xff] }
 0x564   : > { %6473 = vrot.lane.b32.xlu1 %v6284_v52, %s10256_s10  ;;  %6475 = vrot.lane.b32.xlu0 %v6285_v28, %s10256_s10  ;;  %v9542_v60 = vpop.eup %9541  ;;  %v5841_v52 = vmul.f32 %v13792_v25, %v15842_v46  ;;  %9567 = vrcp.f32 %v5401_v62  ;;  %v8777_v28 = vmul.f32 -1.442695, %v5157_v39  ;;  %v5158_v0 = vadd.f32 %v15843_v63, %v12898_v26  ;;  %v15887_v24 = vld [vmem:[#allocation81_spill] sm:$0xff] }
 0x565   : > { %v9544_v27 = vpop.eup %9543  ;;  %v6286_v16 = vmul.f32 %v9542_v60, %v6158_v44  ;;  %v5840_v44 = vmul.f32 %v9540_v6, %v15844_v33  ;;  %9569 = vrcp.f32 %v5400_v36  ;;  %v8775_v25 = vmul.f32 -1.442695, %v5155_v58 }
 0x566   : > { %v13852_v50 = vpop.permute.xlu1 %6361  ;;  %v9546_v48 = vpop.eup %9545  ;;  %v5402_v45 = vadd.f32 1.0, %v9544_v27  ;;  %9571 = vpow2.f32 %v8772_v17  ;;  %v5156_v62 = vadd.f32 %v15845_v12, %v12912_v20  ;;  %v13868_v60 = vadd.f32 %v6356_v34, %v5841_v52  ;;  %v15846_v27 = vld [vmem:[#allocation105_spill] sm:$0xff]  ;;  %v15847_v17 = vld [vmem:[#allocation104_spill] sm:$0xff]  ;;  %v15848_v52 = vld [vmem:[#allocation66_spill] sm:$0xff] }
 0x567   : > { %v13854_v4 = vpop.permute.xlu0 %6363  ;;  %v9548_v35 = vpop.eup %9547  ;;  %v13866_v39 = vadd.f32 %v6354_v42, %v5840_v44  ;;  %9573 = vpow2.f32 %v8774_v23  ;;  %v5842_v36 = vmul.f32 %v13809_v61, %v15846_v27  ;;  %v8778_v58 = vmul.f32 -1.442695, %v5158_v0  ;;  %v15881_v20 = vld [vmem:[#allocation139_spill] sm:$0xff] }
 0x568   : > { %6477 = vrot.lane.b32.xlu1 %v6286_v16, %s10256_s10  ;;  %6735 = vrot.lane.b32.xlu0 %v13850_v21, %s10258_s8  ;;  %v9550_v32 = vpop.eup %9549  ;;  %v5403_v63 = vadd.f32 1.0, %v9548_v35  ;;  %9575 = vpow2.f32 %v8777_v28  ;;  %v5161_v23 = vadd.f32 %v15848_v52, %v15775_v9  ;;  %v15849_v35 = vld [vmem:[#allocation64_spill] sm:$0xff]  ;;  %v8776_v28 = vmul.f32 -1.442695, %v5156_v62  ;;  %v15850_v52 = vld [vmem:[#allocation106_spill] sm:$0xff] }
 0x569   : > { %v9552_v31 = vpop.eup %9551  ;;  %v5843_v26 = vmul.f32 %v9550_v32, %v15847_v17  ;;  %9577 = vrcp.f32 %v5402_v45  ;;  %v5159_v44 = vadd.f32 %v15849_v35, %v15774_v49  ;;  %v13886_v0 = vadd.f32 %v13836_v5, %v5842_v36  ;;  %v15855_v49 = vld [vmem:[#allocation19_spill] sm:$0xff] }
 0x56a   : > { %v13870_v6 = vpop.permute.xlu1 %6365  ;;  %v9554_v46 = vpop.eup %9553  ;;  %v5405_v34 = vadd.f32 1.0, %v9552_v31  ;;  %9579 = vpow2.f32 %v8775_v25  ;;  %v5845_v9 = vmul.f32 %v9546_v48, %v15850_v52  ;;  %v15851_v25 = vld [vmem:[#allocation107_spill] sm:$0xff]  ;;  %v8781_v5 = vmul.f32 -1.442695, %v5161_v23  ;;  %v15853_v48 = vld [vmem:[#allocation65_spill] sm:$0xff] }
 0x56b   : > { %v13872_v16 = vpop.permute.xlu0 %6367  ;;  %v9556_v33 = vpop.eup %9555  ;;  %v13889_v32 = vadd.f32 %v13838_v10, %v5843_v26  ;;  %9581 = vrcp.f32 %v5403_v63  ;;  %v5844_v62 = vmul.f32 %v9554_v46, %v15851_v25  ;;  %v8779_v10 = vmul.f32 -1.442695, %v5159_v44  ;;  %v15852_v63 = vld [vmem:[#allocation67_spill] sm:$0xff] }
 0x56c   : > { %6737 = vrot.lane.b32.xlu1 %v13866_v39, %s10258_s8  ;;  %6739 = vrot.lane.b32.xlu0 %v13868_v60, %s10258_s8  ;;  %v9558_v42 = vpop.eup %9557  ;;  %v5404_v31 = vadd.f32 1.0, %v9556_v33  ;;  %9583 = vpow2.f32 %v8778_v58  ;;  %v5162_v33 = vadd.f32 %v15852_v63, %v12933_v37  ;;  %v5160_v58 = vadd.f32 %v15853_v48, %v15776_v7  ;;  %v15854_v63 = vld [vmem:[#allocation108_spill] sm:$0xff]  ;;  %v15869_v7 = vld [vmem:[#allocation31_spill] sm:$0xff] }
 0x56d   : > { %v9560_v61 = vpop.eup %9559  ;;  %v5406_v35 = vadd.f32 1.0, %v9558_v42  ;;  %9585 = vrcp.f32 %v5405_v34  ;;  %v13906_v46 = vadd.f32 %v13852_v50, %v5844_v62  ;;  %v13909_v42 = vadd.f32 %v13854_v4, %v5845_v9  ;;  %v15856_v4 = vld [vmem:[#allocation68_spill] sm:$0xff] }
 0x56e   : > { %v13891_v12 = vpop.permute.xlu1 %6369  ;;  %v9562_v45 = vpop.eup %9561  ;;  %9587 = vpow2.f32 %v8776_v28  ;;  %v5846_v37 = vmul.f32 %v9560_v61, %v15854_v63  ;;  %v8782_v50 = vmul.f32 -1.442695, %v5162_v33  ;;  %v8780_v62 = vmul.f32 -1.442695, %v5160_v58  ;;  %v15857_v33 = vld [vmem:[#allocation70_spill] sm:$0xff] }
 0x56f   : > { %v13893_v27 = vpop.permute.xlu0 %6371  ;;  %v9564_v17 = vpop.eup %9563  ;;  %9589 = vrcp.f32 %v5404_v31  ;;  %v5847_v48 = vmul.f32 %v9562_v45, %v15855_v49  ;;  %v5163_v31 = vadd.f32 %v15856_v4, %v12939_v1  ;;  %v5165_v63 = vadd.f32 %v15857_v33, %v12937_v30  ;;  %v15858_v1 = vld [vmem:[#allocation110_spill] sm:$0xff]  ;;  %v15860_v33 = vld [vmem:[#allocation69_spill] sm:$0xff] }
 0x570   : > { %6741 = vrot.lane.b32.xlu1 %v13886_v0, %s10258_s8  ;;  %6743 = vrot.lane.b32.xlu0 %v13889_v32, %s10258_s8  ;;  %v9566_v26 = vpop.eup %9565  ;;  %v5407_v23 = vadd.f32 1.0, %v9564_v17  ;;  %9591 = vrcp.f32 %v5406_v35  ;;  %v13924_v61 = vadd.f32 %v13870_v6, %v5846_v37  ;;  %v15859_v37 = vld [vmem:[#allocation111_spill] sm:$0xff]  ;;  %v5164_v30 = vadd.f32 %v15860_v33, %v12960_v54 }
 0x571   : > { %v9568_v36 = vpop.eup %9567  ;;  %v5409_v28 = vadd.f32 1.0, %v9566_v26  ;;  %9593 = vpow2.f32 %v8781_v5  ;;  %v13927_v49 = vadd.f32 %v13872_v16, %v5847_v48  ;;  %v15862_v33 = vld [vmem:[#allocation71_spill] sm:$0xff] }
 0x572   : > { %v13911_v52 = vpop.permute.xlu1 %6373  ;;  %v9570_v34 = vpop.eup %9569  ;;  %9595 = vpow2.f32 %v8779_v10  ;;  %v5849_v10 = vmul.f32 %v9568_v36, %v15858_v1  ;;  %v5166_v54 = vadd.f32 %v15862_v33, %v12954_v55 }
 0x573   : > { %v13913_v25 = vpop.permute.xlu0 %6375  ;;  %v9572_v44 = vpop.eup %9571  ;;  %9597 = vrcp.f32 %v5407_v23  ;;  %v5848_v6 = vmul.f32 %v9570_v34, %v15859_v37  ;;  %v8783_v23 = vmul.f32 -1.442695, %v5163_v31  ;;  %v15861_v37 = vld [vmem:[#allocation24_spill] sm:$0xff] }
 0x574   : > { %6745 = vrot.lane.b32.xlu1 %v13906_v46, %s10258_s8  ;;  %6747 = vrot.lane.b32.xlu0 %v13909_v42, %s10258_s8  ;;  %v9574_v9 = vpop.eup %9573  ;;  %v5408_v5 = vadd.f32 1.0, %v9572_v44  ;;  %9599 = vrcp.f32 %v5409_v28  ;;  %v13947_v36 = vadd.f32 %v13893_v27, %v5849_v10 }
 0x575   : > { %v9576_v17 = vpop.eup %9575  ;;  %v5410_v58 = vadd.f32 1.0, %v9574_v9  ;;  %9601 = vpow2.f32 %v8782_v50  ;;  %v13944_v1 = vadd.f32 %v13891_v12, %v5848_v6  ;;  %v8785_v50 = vmul.f32 -1.442695, %v5165_v63  ;;  %v15863_v12 = vld [vmem:[#allocation21_spill] sm:$0xff] }
 0x576   : > { %v13929_v45 = vpop.permute.xlu1 %6377  ;;  %v9578_v26 = vpop.eup %9577  ;;  %v5413_v48 = vadd.f32 1.0, %v9576_v17  ;;  %9603 = vpow2.f32 %v8780_v62 }
 0x577   : > { %v13931_v35 = vpop.permute.xlu0 %6379  ;;  %v9580_v4 = vpop.eup %9579  ;;  %9605 = vrcp.f32 %v5408_v5  ;;  %v5850_v62 = vmul.f32 %v9578_v26, %v15861_v37  ;;  %v15864_v5 = vld [vmem:[#allocation72_spill] sm:$0xff]  ;;  %v8784_v26 = vmul.f32 -1.442695, %v5164_v30  ;;  %v8786_v30 = vmul.f32 -1.442695, %v5166_v54 }
 0x578   : > { %6749 = vrot.lane.b32.xlu1 %v13924_v61, %s10258_s8  ;;  %6751 = vrot.lane.b32.xlu0 %v13927_v49, %s10258_s8  ;;  %v9582_v16 = vpop.eup %9581  ;;  %v5411_v17 = vadd.f32 1.0, %v9580_v4  ;;  %9607 = vrcp.f32 %v5410_v58  ;;  %v5167_v63 = vadd.f32 %v15864_v5, %v12974_v2  ;;  %v15866_v2 = vld [vmem:[#allocation25_spill] sm:$0xff] }
 0x579   : > { %v9584_v44 = vpop.eup %9583  ;;  %v5851_v6 = vmul.f32 %v9582_v16, %v15863_v12  ;;  %9609 = vrcp.f32 %v5413_v48  ;;  %v13964_v58 = vadd.f32 %v13911_v52, %v5850_v62  ;;  %v15865_v48 = vld [vmem:[#allocation74_spill] sm:$0xff]  ;;  %v15867_v52 = vld [vmem:[#allocation27_spill] sm:$0xff] }
 0x57a   : > { %v13949_v34 = vpop.permute.xlu1 %6381  ;;  %v9586_v9 = vpop.eup %9585  ;;  %v5414_v10 = vadd.f32 1.0, %v9584_v44  ;;  %9611 = vpow2.f32 %v8783_v23  ;;  %v5169_v55 = vadd.f32 %v15865_v48, %v12962_v53 }
 0x57b   : > { %v13951_v28 = vpop.permute.xlu0 %6383  ;;  %v9588_v31 = vpop.eup %9587  ;;  %v13967_v16 = vadd.f32 %v13913_v25, %v5851_v6  ;;  %9613 = vrcp.f32 %v5411_v17  ;;  %v5853_v23 = vmul.f32 %v9586_v9, %v15866_v2  ;;  %v8787_v17 = vmul.f32 -1.442695, %v5167_v63 }
 0x57c   : > { %6753 = vrot.lane.b32.xlu1 %v13944_v1, %s10258_s8  ;;  %6755 = vrot.lane.b32.xlu0 %v13947_v36, %s10258_s8  ;;  %v9590_v27 = vpop.eup %9589  ;;  %v5412_v44 = vadd.f32 1.0, %v9588_v31  ;;  %9615 = vpow2.f32 %v8785_v50  ;;  %v15868_v31 = vld [vmem:[#allocation73_spill] sm:$0xff]  ;;  %v8789_v63 = vmul.f32 -1.442695, %v5169_v55  ;;  %v15872_v55 = vld [vmem:[#allocation78_spill] sm:$0xff] }
 0x57d   : > { %v9592_v4 = vpop.eup %9591  ;;  %v5852_v62 = vmul.f32 %v9590_v27, %v15867_v52  ;;  %9617 = vrcp.f32 %v5414_v10  ;;  %v5168_v6 = vadd.f32 %v15868_v31, %v12983_v40  ;;  %v13987_v54 = vadd.f32 %v13931_v35, %v5853_v23  ;;  %v15873_v23 = vld [vmem:[#allocation132_spill] sm:$0xff] }
 0x57e   : > { %v13969_v37 = vpop.permute.xlu1 %6385  ;;  %v9594_v12 = vpop.eup %9593  ;;  %9619 = vpow2.f32 %v8784_v26  ;;  %v5854_v31 = vmul.f32 %v9592_v4, %v15869_v7  ;;  %v15870_v26 = vld [vmem:[#allocation75_spill] sm:$0xff]  ;;  %v15874_v7 = vld [vmem:[#allocation76_spill] sm:$0xff] }
 0x57f   : > { %v13971_v33 = vpop.permute.xlu0 %6387  ;;  %v9596_v5 = vpop.eup %9595  ;;  %v5417_v53 = vadd.f32 1.0, %v9594_v12  ;;  %v13984_v2 = vadd.f32 %v13929_v45, %v5852_v62  ;;  %9621 = vrcp.f32 %v5412_v44  ;;  %v5170_v12 = vadd.f32 %v15870_v26, %v12978_v3  ;;  %v15871_v45 = vld [vmem:[#allocation26_spill] sm:$0xff] }
 0x580   : > { %6757 = vrot.lane.b32.xlu1 %v13964_v58, %s10258_s8  ;;  %6759 = vrot.lane.b32.xlu0 %v13967_v16, %s10258_s8  ;;  %v9598_v25 = vpop.eup %9597  ;;  %v5415_v10 = vadd.f32 1.0, %v9596_v5  ;;  %9623 = vpow2.f32 %v8786_v30  ;;  %v8788_v44 = vmul.f32 -1.442695, %v5168_v6  ;;  %v5173_v5 = vadd.f32 %v15872_v55, %v15778_v14  ;;  %v15875_v55 = vld [vmem:[#allocation79_spill] sm:$0xff] }
 0x581   : > { %v9600_v48 = vpop.eup %9599  ;;  %v5855_v62 = vmul.f32 %v9598_v25, %v15871_v45  ;;  %9625 = vpow2.f32 %v8787_v17  ;;  %v5171_v4 = vadd.f32 %v15874_v7, %v15873_v23  ;;  %v14006_v25 = vadd.f32 %v13949_v34, %v5854_v31  ;;  %v15876_v23 = vld [vmem:[#allocation118_spill] sm:$0xff] }
 0x582   : > { %v13989_v9 = vpop.permute.xlu1 %6389  ;;  %v9602_v27 = vpop.eup %9601  ;;  %9627 = vrcp.f32 %v5417_v53  ;;  %v5174_v14 = vadd.f32 %v15875_v55, %v15782_v11  ;;  %v8790_v53 = vmul.f32 -1.442695, %v5170_v12  ;;  %v15877_v34 = vld [vmem:[#allocation30_spill] sm:$0xff]  ;;  %v15879_v11 = vld [vmem:[#allocation77_spill] sm:$0xff] }
 0x583   : > { %v13991_v50 = vpop.permute.xlu0 %6391  ;;  %v9604_v52 = vpop.eup %9603  ;;  %v5418_v40 = vadd.f32 1.0, %v9602_v27  ;;  %v14009_v26 = vadd.f32 %v13951_v28, %v5855_v62  ;;  %9629 = vrcp.f32 %v5415_v10  ;;  %v5857_v27 = vmul.f32 %v9600_v48, %v15876_v23  ;;  %v15878_v55 = vld [vmem:[#allocation134_spill] sm:$0xff] }
 0x584   : > { %6761 = vrot.lane.b32.xlu1 %v13984_v2, %s10258_s8  ;;  %6763 = vrot.lane.b32.xlu0 %v13987_v54, %s10258_s8  ;;  %v9606_v35 = vpop.eup %9605  ;;  %v5416_v6 = vadd.f32 1.0, %v9604_v52  ;;  %9631 = vpow2.f32 %v8789_v63  ;;  %v8793_v10 = vmul.f32 -1.442695, %v5173_v5  ;;  %v8791_v52 = vmul.f32 -1.442695, %v5171_v4 }
 0x585   : > { %v9608_v30 = vpop.eup %9607  ;;  %v5856_v31 = vmul.f32 %v9606_v35, %v15877_v34  ;;  %9633 = vpow2.f32 %v8788_v44  ;;  %v5172_v22 = vadd.f32 %v15879_v11, %v15878_v55  ;;  %v14029_v63 = vadd.f32 %v13971_v33, %v5857_v27  ;;  %v15880_v34 = vld [vmem:[#allocation121_spill] sm:$0xff]  ;;  %v15882_v11 = vld [vmem:[#allocation80_spill] sm:$0xff] }
 0x586   : > { %v14011_v45 = vpop.permute.xlu1 %6393  ;;  %v9610_v17 = vpop.eup %9609  ;;  %9635 = vrcp.f32 %v5418_v40  ;;  %v8794_v5 = vmul.f32 -1.442695, %v5174_v14  ;;  %v5858_v40 = vmul.f32 %v9608_v30, %v15880_v34  ;;  %v5175_v55 = vadd.f32 %v15882_v11, %v15881_v20  ;;  %v15885_v20 = vld [vmem:[#allocation82_spill] sm:$0xff] }
 0x587   : > { %v14013_v3 = vpop.permute.xlu0 %6395  ;;  %v9612_v7 = vpop.eup %9611  ;;  %v14026_v48 = vadd.f32 %v13969_v37, %v5856_v31  ;;  %9637 = vrcp.f32 %v5416_v6  ;;  %v15883_v37 = vld [vmem:[#allocation120_spill] sm:$0xff]  ;;  %v8792_v14 = vmul.f32 -1.442695, %v5172_v22 }
 0x588   : > { %6765 = vrot.lane.b32.xlu1 %v14006_v25, %s10258_s8  ;;  %6767 = vrot.lane.b32.xlu0 %v14009_v26, %s10258_s8  ;;  %v9614_v28 = vpop.eup %9613  ;;  %v5419_v44 = vadd.f32 1.0, %v9612_v7  ;;  %9639 = vpow2.f32 %v8790_v53  ;;  %v14044_v30 = vadd.f32 %v13989_v9, %v5858_v40  ;;  %v5861_v9 = vmul.f32 %v9610_v17, %v15888_v18 }
 0x589   : > { %v9616_v62 = vpop.eup %9615  ;;  %v5859_v31 = vmul.f32 %v9614_v28, %v15883_v37  ;;  %9641 = vpow2.f32 %v8793_v10  ;;  %v15884_v37 = vld [vmem:[#allocation138_spill] sm:$0xff]  ;;  %v15886_v10 = vld [vmem:[#allocation143_spill] sm:$0xff]  ;;  %v8795_v40 = vmul.f32 -1.442695, %v5175_v55 }
 0x58a   : > { %v14031_v12 = vpop.permute.xlu1 %6397  ;;  %v9618_v23 = vpop.eup %9617  ;;  %v5421_v27 = vadd.f32 1.0, %v9616_v62  ;;  %9643 = vpow2.f32 %v8791_v52  ;;  %v5177_v62 = vadd.f32 %v15885_v20, %v15884_v37  ;;  %v5176_v52 = vadd.f32 %v15887_v24, %v15886_v10 }
 0x58b   : > { %v14033_v35 = vpop.permute.xlu0 %6399  ;;  %v9620_v4 = vpop.eup %9619  ;;  %v14047_v7 = vadd.f32 %v13991_v50, %v5859_v31  ;;  %9645 = vrcp.f32 %v5419_v44  ;;  %v15889_v50 = vld [vmem:[#allocation124_spill] sm:$0xff]  ;;  %v14067_v18 = vadd.f32 %v14013_v3, %v5861_v9  ;;  %v15894_v3 = vld [vmem:[#allocation126_spill] sm:$0xff] }
 0x58c   : > { %6769 = vrot.lane.b32.xlu1 %v14026_v48, %s10258_s8  ;;  %6771 = vrot.lane.b32.xlu0 %v14029_v63, %s10258_s8  ;;  %v9622_v33 = vpop.eup %9621  ;;  %v5420_v11 = vadd.f32 1.0, %v9620_v4  ;;  %9647 = vpow2.f32 %v8794_v5 }
 0x58d   : > { %v9624_v6 = vpop.eup %9623  ;;  %v5860_v31 = vmul.f32 %v9622_v33, %v15889_v50  ;;  %9649 = vrcp.f32 %v5421_v27  ;;  %v8797_v33 = vmul.f32 -1.442695, %v5177_v62  ;;  %v15890_v50 = vld [vmem:[#allocation83_spill] sm:$0xff]  ;;  %v8796_v27 = vmul.f32 -1.442695, %v5176_v52 }
 0x58e   : > { %v14049_v53 = vpop.permute.xlu1 %6401  ;;  %v9626_v34 = vpop.eup %9625  ;;  %v5422_v4 = vadd.f32 1.0, %v9624_v6  ;;  %9651 = vpow2.f32 %v8792_v14  ;;  %v5178_v6 = vadd.f32 %v15890_v50, %v15786_v19  ;;  %v15897_v19 = vld [vmem:[#allocation131_spill] sm:$0xff] }
 0x58f   : > { %v14051_v28 = vpop.permute.xlu0 %6403  ;;  %v9628_v22 = vpop.eup %9627  ;;  %v5423_v37 = vadd.f32 1.0, %v9626_v34  ;;  %v14064_v24 = vadd.f32 %v14011_v45, %v5860_v31  ;;  %9653 = vrcp.f32 %v5420_v11  ;;  %v15891_v34 = vld [vmem:[#allocation128_spill] sm:$0xff]  ;;  %v15892_v45 = vld [vmem:[#allocation147_spill] sm:$0xff]  ;;  %v15893_v31 = vld [vmem:[#allocation37_spill] sm:$0xff] }
 0x590   : > { %6773 = vrot.lane.b32.xlu1 %v14044_v30, %s10258_s8  ;;  %6775 = vrot.lane.b32.xlu0 %v14047_v7, %s10258_s8  ;;  %v9630_v44 = vpop.eup %9629  ;;  %v5862_v14 = vmul.f32 %v9618_v23, %v15891_v34  ;;  %9655 = vpow2.f32 %v8795_v40  ;;  %v5179_v56 = vadd.f32 %v15893_v31, %v15892_v45  ;;  %v15896_v45 = vld [vmem:[#allocation40_spill] sm:$0xff] }
 0x591   : > { %v9632_v20 = vpop.eup %9631  ;;  %v5863_v9 = vmul.f32 %v9630_v44, %v15894_v3  ;;  %9657 = vrcp.f32 %v5422_v4  ;;  %v8798_v3 = vmul.f32 -1.442695, %v5178_v6  ;;  %v5181_v4 = vadd.f32 %v15896_v45, %v15788_v41  ;;  %v15900_v6 = vld [vmem:[#allocation38_spill] sm:$0xff] }
 0x592   : > { %v14069_v17 = vpop.permute.xlu1 %6405  ;;  %v9634_v5 = vpop.eup %9633  ;;  %v5425_v62 = vadd.f32 1.0, %v9632_v20  ;;  %9659 = vrcp.f32 %v5423_v37  ;;  %v14084_v23 = vadd.f32 %v14031_v12, %v5862_v14  ;;  %v5865_v37 = vmul.f32 %v9628_v22, %v15897_v19  ;;  %v15898_v12 = vld [vmem:[#allocation135_spill] sm:$0xff] }
 0x593   : > { %v14071_v55 = vpop.permute.xlu0 %6407  ;;  %v9636_v10 = vpop.eup %9635  ;;  %v5424_v52 = vadd.f32 1.0, %v9634_v5  ;;  %v14087_v40 = vadd.f32 %v14033_v35, %v5863_v9  ;;  %9661 = vpow2.f32 %v8797_v33  ;;  %v8799_v5 = vmul.f32 -1.442695, %v5179_v56  ;;  %v15899_v33 = vld [vmem:[#allocation150_spill] sm:$0xff] }
 0x594   : > { %6777 = vrot.lane.b32.xlu1 %v14064_v24, %s10258_s8  ;;  %6779 = vrot.lane.b32.xlu0 %v14067_v18, %s10258_s8  ;;  %v9638_v11 = vpop.eup %9637  ;;  %9663 = vpow2.f32 %v8796_v27  ;;  %v5180_v38 = vadd.f32 %v15900_v6, %v15899_v33  ;;  %v14107_v56 = vadd.f32 %v14051_v28, %v5865_v37  ;;  %v5866_v6 = vmul.f32 %v9636_v10, %v15903_v47 }
 0x595   : > { %v9640_v50 = vpop.eup %9639  ;;  %15895 = vst [vmem:[#allocation46_spill] sm:$0xff] %v14087_v40  ;;  %v5864_v14 = vmul.f32 %v9638_v11, %v15898_v12  ;;  %9665 = vrcp.f32 %v5425_v62  ;;  %v8801_v62 = vmul.f32 -1.442695, %v5181_v4  ;;  %v15908_v4 = vld [vmem:[#allocation85_spill] sm:$0xff] }
 0x596   : > { %v14089_v34 = vpop.permute.xlu1 %6409  ;;  %v9642_v31 = vpop.eup %9641  ;;  %v5426_v9 = vadd.f32 1.0, %v9640_v50  ;;  %9667 = vrcp.f32 %v5424_v52  ;;  %15902 = vst [vmem:[#allocation42_spill] sm:$0xff] %v14107_v56  ;;  %v15904_v52 = vld [vmem:[#allocation148_spill] sm:$0xff]  ;;  %v8800_v47 = vmul.f32 -1.442695, %v5180_v38  ;;  %v14124_v10 = vadd.f32 %v14069_v17, %v5866_v6  ;;  %v15913_v17 = vld [vmem:[#allocation142_spill] sm:$0xff] }
 0x597   : > { %v14091_v44 = vpop.permute.xlu0 %6411  ;;  %v9644_v20 = vpop.eup %9643  ;;  %v5429_v41 = vadd.f32 1.0, %v9642_v31  ;;  %v14104_v19 = vadd.f32 %v14049_v53, %v5864_v14  ;;  %9669 = vpow2.f32 %v8798_v3  ;;  %v15905_v31 = vld [vmem:[#allocation84_spill] sm:$0xff]  ;;  %v15907_v3 = vld [vmem:[#allocation155_spill] sm:$0xff] }
 0x598   : > { %6781 = vrot.lane.b32.xlu1 %v14084_v23, %s10258_s8  ;;  %6783 = vrot.lane.b32.xlu0 %v14087_v40, %s10258_s8  ;;  %v9646_v35 = vpop.eup %9645  ;;  %v5427_v12 = vadd.f32 1.0, %v9644_v20  ;;  %9671 = vpow2.f32 %v8799_v5  ;;  %v5182_v33 = vadd.f32 %v15905_v31, %v15904_v52  ;;  %v15906_v53 = vld [vmem:[#allocation136_spill] sm:$0xff]  ;;  %v5183_v37 = vadd.f32 %v15908_v4, %v15907_v3  ;;  %15909 = vst [vmem:[#allocation39_spill] sm:$0xff] %v14124_v10  ;;  %v15912_v3 = vld [vmem:[#allocation141_spill] sm:$0xff] }
 0x599   : > { %v9648_v45 = vpop.eup %9647  ;;  %15901 = vst [vmem:[#allocation43_spill] sm:$0xff] %v14104_v19  ;;  %v5867_v14 = vmul.f32 %v9646_v35, %v15906_v53  ;;  %9673 = vrcp.f32 %v5426_v9 }
 0x59a   : > { %v14109_v22 = vpop.permute.xlu1 %6413  ;;  %v9650_v11 = vpop.eup %9649  ;;  %v5430_v20 = vadd.f32 1.0, %v9648_v45  ;;  %9675 = vrcp.f32 %v5429_v41  ;;  %v15911_v45 = vld [vmem:[#allocation87_spill] sm:$0xff]  ;;  %v8802_v38 = vmul.f32 -1.442695, %v5182_v33 }
 0x59b   : > { %v14111_v27 = vpop.permute.xlu0 %6415  ;;  %v9652_v50 = vpop.eup %9651  ;;  %v14127_v5 = vadd.f32 %v14071_v55, %v5867_v14  ;;  %9677 = vrcp.f32 %v5427_v12  ;;  %v5185_v52 = vadd.f32 %v15911_v45, %v15792_v13  ;;  %v5869_v41 = vmul.f32 %v9650_v11, %v15912_v3  ;;  %v15914_v45 = vld [vmem:[#allocation158_spill] sm:$0xff] }
 0x59c   : > { %6785 = vrot.lane.b32.xlu1 %v14104_v19, %s10258_s8  ;;  %6787 = vrot.lane.b32.xlu0 %v14107_v56, %s10258_s8  ;;  %v9654_v28 = vpop.eup %9653  ;;  %v5428_v9 = vadd.f32 1.0, %v9652_v50  ;;  %9679 = vpow2.f32 %v8801_v62  ;;  %v8803_v50 = vmul.f32 -1.442695, %v5183_v37  ;;  %v15915_v13 = vld [vmem:[#allocation86_spill] sm:$0xff] }
 0x59d   : > { %v9656_v40 = vpop.eup %9655  ;;  %15910 = vst [vmem:[#allocation45_spill] sm:$0xff] %v14127_v5  ;;  %v5868_v6 = vmul.f32 %v9654_v28, %v15913_v17  ;;  %9681 = vrcp.f32 %v5430_v20  ;;  %v5184_v56 = vadd.f32 %v15915_v13, %v15914_v45  ;;  %v14147_v33 = vadd.f32 %v14091_v44, %v5869_v41  ;;  %v15919_v17 = vld [vmem:[#allocation146_spill] sm:$0xff]  ;;  %v15922_v41 = vld [vmem:[#allocation89_spill] sm:$0xff] }
 0x59e   : > { %v14129_v35 = vpop.permute.xlu1 %6417  ;;  %v9658_v53 = vpop.eup %9657  ;;  %v5431_v12 = vadd.f32 1.0, %v9656_v40  ;;  %9683 = vpow2.f32 %v8800_v47  ;;  %v8805_v20 = vmul.f32 -1.442695, %v5185_v52  ;;  %v15918_v40 = vld [vmem:[#allocation88_spill] sm:$0xff]  ;;  %v15921_v52 = vld [vmem:[#allocation161_spill] sm:$0xff] }
 0x59f   : > { %v14131_v31 = vpop.permute.xlu0 %6419  ;;  %v9660_v4 = vpop.eup %9659  ;;  %v14144_v11 = vadd.f32 %v14089_v34, %v5868_v6  ;;  %15917 = vst [vmem:[#allocation47_spill] sm:$0xff] %v14147_v33  ;;  %9685 = vrcp.f32 %v5428_v9  ;;  %v5186_v37 = vadd.f32 %v15918_v40, %v15794_v43  ;;  %v15920_v34 = vld [vmem:[#allocation145_spill] sm:$0xff]  ;;  %v5187_v45 = vadd.f32 %v15922_v41, %v15921_v52 }
 0x5a0   : > { %6789 = vrot.lane.b32.xlu1 %v14124_v10, %s10258_s8  ;;  %6791 = vrot.lane.b32.xlu0 %v14127_v5, %s10258_s8  ;;  %v9662_v55 = vpop.eup %9661  ;;  %v5870_v5 = vmul.f32 %v9658_v53, %v15919_v17  ;;  %9687 = vpow2.f32 %v8802_v38  ;;  %v5871_v6 = vmul.f32 %v9660_v4, %v15920_v34  ;;  %v8804_v43 = vmul.f32 -1.442695, %v5184_v56  ;;  %v15927_v10 = vld [vmem:[#allocation149_spill] sm:$0xff]  ;;  %v15928_v56 = vld [vmem:[#allocation151_spill] sm:$0xff] }
 0x5a1   : > { %v9664_v14 = vpop.eup %9663  ;;  %15916 = vst [vmem:[#allocation41_spill] sm:$0xff] %v14144_v11  ;;  %v5433_v13 = vadd.f32 1.0, %v9662_v55  ;;  %9689 = vrcp.f32 %v5431_v12  ;;  %v8806_v34 = vmul.f32 -1.442695, %v5186_v37  ;;  %v15926_v12 = vld [vmem:[#allocation91_spill] sm:$0xff]  ;;  %v15929_v37 = vld [vmem:[#allocation165_spill] sm:$0xff] }
 0x5a2   : > { %v14149_v62 = vpop.permute.xlu1 %6421  ;;  %v9666_v3 = vpop.eup %9665  ;;  %v5432_v9 = vadd.f32 1.0, %v9664_v14  ;;  %9691 = vpow2.f32 %v8803_v50  ;;  %v14164_v53 = vadd.f32 %v14109_v22, %v5870_v5  ;;  %v14167_v4 = vadd.f32 %v14111_v27, %v5871_v6  ;;  %v15930_v6 = vld [vmem:[#allocation90_spill] sm:$0xff] }
 0x5a3   : > { %v14151_v28 = vpop.permute.xlu0 %6423  ;;  %v9668_v47 = vpop.eup %9667  ;;  %9693 = vpow2.f32 %v8805_v20  ;;  %v5873_v41 = vmul.f32 %v9666_v3, %v15927_v10  ;;  %v8807_v5 = vmul.f32 -1.442695, %v5187_v45 }
 0x5a4   : > { %6793 = vrot.lane.b32.xlu1 %v14144_v11, %s10258_s8  ;;  %6795 = vrot.lane.b32.xlu0 %v14147_v33, %s10258_s8  ;;  %v9670_v44 = vpop.eup %9669  ;;  %15923 = vst [vmem:[#allocation48_spill] sm:$0xff] %v14164_v53  ;;  %15924 = vst [vmem:[#allocation50_spill] sm:$0xff] %v14167_v4  ;;  %v15925_v33 = vld [vmem:[#allocation160_spill] sm:$0xff]  ;;  %9695 = vrcp.f32 %v5433_v13  ;;  %v5872_v50 = vmul.f32 %v9668_v47, %v15928_v56 }
 0x5a5   : > { %v9672_v40 = vpop.eup %9671  ;;  %v5189_v14 = vadd.f32 %v15926_v12, %v15925_v33  ;;  %v5434_v52 = vadd.f32 1.0, %v9670_v44  ;;  %9697 = vrcp.f32 %v5432_v9  ;;  %v5188_v12 = vadd.f32 %v15930_v6, %v15929_v37  ;;  %v15933_v9 = vld [vmem:[#allocation154_spill] sm:$0xff] }
 0x5a6   : > { %v6426_v38 = vpop.permute.xlu1 %6425  ;;  %v9674_v17 = vpop.eup %9673  ;;  %v5435_v27 = vadd.f32 1.0, %v9672_v40  ;;  %9699 = vpow2.f32 %v8804_v43  ;;  %v14180_v10 = vadd.f32 %v14129_v35, %v5872_v50  ;;  %v14183_v3 = vadd.f32 %v14131_v31, %v5873_v41  ;;  %v15934_v43 = vld [vmem:[#allocation92_spill] sm:$0xff] }
 0x5a7   : > { %v6428_v55 = vpop.permute.xlu0 %6427  ;;  %v9676_v11 = vpop.eup %9675  ;;  %9701 = vpow2.f32 %v8806_v34  ;;  %v8809_v56 = vmul.f32 -1.442695, %v5189_v14  ;;  %v5874_v40 = vmul.f32 %v9674_v17, %v15933_v9  ;;  %v5190_v45 = vadd.f32 %v15934_v43, %v15798_v57  ;;  %v15936_v34 = vld [vmem:[#allocation169_spill] sm:$0xff] }
 0x5a8   : > { %6797 = vrot.lane.b32.xlu1 %v14164_v53, %s10258_s8  ;;  %6799 = vrot.lane.b32.xlu0 %v14167_v4, %s10258_s8  ;;  %v9678_v22 = vpop.eup %9677  ;;  %15931 = vst [vmem:[#allocation49_spill] sm:$0xff] %v14180_v10  ;;  %15932 = vst [vmem:[#allocation51_spill] sm:$0xff] %v14183_v3  ;;  %9703 = vrcp.f32 %v5434_v52  ;;  %v15935_v4 = vld [vmem:[#allocation153_spill] sm:$0xff]  ;;  %v8808_v52 = vmul.f32 -1.442695, %v5188_v12  ;;  %v15943_v12 = vld [vmem:[#allocation94_spill] sm:$0xff] }
 0x5a9   : > { %v9680_v20 = vpop.eup %9679  ;;  %v5875_v6 = vmul.f32 %v9678_v22, %v15935_v4  ;;  %9705 = vrcp.f32 %v5435_v27  ;;  %v15937_v14 = vld [vmem:[#allocation93_spill] sm:$0xff]  ;;  %v14196_v17 = vadd.f32 %v14149_v62, %v5874_v40 }
 0x5aa   : > { %v6430_v47 = vpop.permute.xlu1 %6429  ;;  %v9682_v44 = vpop.eup %9681  ;;  %v5437_v31 = vadd.f32 1.0, %v9680_v20  ;;  %v5191_v41 = vadd.f32 %v15937_v14, %v15936_v34  ;;  %9707 = vpow2.f32 %v8807_v5  ;;  %v15940_v20 = vld [vmem:[#allocation157_spill] sm:$0xff]  ;;  %v15942_v5 = vld [vmem:[#allocation166_spill] sm:$0xff] }
 0x5ab   : > { %v6432_v13 = vpop.permute.xlu0 %6431  ;;  %v9684_v33 = vpop.eup %9683  ;;  %15938 = vst [vmem:[#allocation44_spill] sm:$0xff] %v14196_v17  ;;  %v14199_v4 = vadd.f32 %v14151_v28, %v5875_v6  ;;  %9709 = vpow2.f32 %v8809_v56  ;;  %v5877_v27 = vmul.f32 %v9676_v11, %v15940_v20  ;;  %v5193_v40 = vadd.f32 %v15943_v12, %v15942_v5  ;;  %v15944_v6 = vld [vmem:[#allocation173_spill] sm:$0xff]  ;;  %v15945_v11 = vld [vmem:[#allocation95_spill] sm:$0xff] }
 0x5ac   : > { %6801 = vrot.lane.b32.xlu1 %v14180_v10, %s10258_s8  ;;  %6803 = vrot.lane.b32.xlu0 %v14183_v3, %s10258_s8  ;;  %v9686_v35 = vpop.eup %9685  ;;  %v5436_v57 = vadd.f32 1.0, %v9684_v33  ;;  %v8810_v3 = vmul.f32 -1.442695, %v5190_v45  ;;  %v15941_v10 = vld [vmem:[#allocation159_spill] sm:$0xff]  ;;  %9711 = vrcp.f32 %v5437_v31  ;;  %v8811_v33 = vmul.f32 -1.442695, %v5191_v41 }
 0x5ad   : > { %v9688_v50 = vpop.eup %9687  ;;  %15939 = vst [vmem:[#allocation52_spill] sm:$0xff] %v14199_v4  ;;  %v5876_v14 = vmul.f32 %v9686_v35, %v15941_v10  ;;  %9713 = vpow2.f32 %v8808_v52  ;;  %v5192_v45 = vadd.f32 %v15945_v11, %v15944_v6  ;;  %v14213_v10 = vadd.f32 %v6428_v55, %v5877_v27  ;;  %v15946_v31 = vld [vmem:[#allocation163_spill] sm:$0xff]  ;;  %v15947_v41 = vld [vmem:[#allocation162_spill] sm:$0xff]  ;;  %v15948_v52 = vld [vmem:[#allocation97_spill] sm:$0xff] }
 0x5ae   : > { %v6434_v22 = vpop.permute.xlu1 %6433  ;;  %v9690_v43 = vpop.eup %9689  ;;  %v5438_v28 = vadd.f32 1.0, %v9688_v50  ;;  %9715 = vrcp.f32 %v5436_v57  ;;  %v5878_v53 = vmul.f32 %v9682_v44, %v15946_v31  ;;  %v8813_v55 = vmul.f32 -1.442695, %v5193_v40  ;;  %v15950_v40 = vld [vmem:[#allocation167_spill] sm:$0xff] }
 0x5af   : > { %v6436_v9 = vpop.permute.xlu0 %6435  ;;  %v9692_v37 = vpop.eup %9691  ;;  %v14211_v20 = vadd.f32 %v6426_v38, %v5876_v14  ;;  %9717 = vpow2.f32 %v8810_v3  ;;  %v5879_v12 = vmul.f32 %v9690_v43, %v15947_v41  ;;  %v5194_v57 = vadd.f32 %v15948_v52, %v15802_v8  ;;  %v15951_v52 = vld [vmem:[#allocation168_spill] sm:$0xff] }
 0x5b0   : > { %6805 = vrot.lane.b32.xlu1 %v14196_v17, %s10258_s8  ;;  %6807 = vrot.lane.b32.xlu0 %v14199_v4, %s10258_s8  ;;  %v9694_v62 = vpop.eup %9693  ;;  %v5439_v4 = vadd.f32 1.0, %v9692_v37  ;;  %9719 = vrcp.f32 %v5438_v28  ;;  %v15949_v37 = vld [vmem:[#allocation96_spill] sm:$0xff]  ;;  %v8812_v3 = vmul.f32 -1.442695, %v5192_v45  ;;  %v14225_v14 = vadd.f32 %v6430_v47, %v5878_v53 }
 0x5b1   : > { %v9696_v56 = vpop.eup %9695  ;;  %v5441_v19 = vadd.f32 1.0, %v9694_v62  ;;  %v5195_v27 = vadd.f32 %v15949_v37, %v15803_v59  ;;  %9721 = vpow2.f32 %v8811_v33  ;;  %v14227_v43 = vadd.f32 %v6432_v13, %v5879_v12  ;;  %v15952_v13 = vld [vmem:[#allocation98_spill] sm:$0xff] }
 0x5b2   : > { %v6438_v35 = vpop.permute.xlu1 %6437  ;;  %v9698_v17 = vpop.eup %9697  ;;  %9723 = vrcp.f32 %v5439_v4  ;;  %v5881_v5 = vmul.f32 %v9696_v56, %v15950_v40  ;;  %v8814_v47 = vmul.f32 -1.442695, %v5194_v57  ;;  %v5197_v4 = vadd.f32 %v15952_v13, %v15804_v15  ;;  %v15953_v56 = vld [vmem:[#allocation99_spill] sm:$0xff] }
 0x5b3   : > { %v6440_v34 = vpop.permute.xlu0 %6439  ;;  %v9700_v50 = vpop.eup %9699  ;;  %9725 = vrcp.f32 %v5441_v19  ;;  %v5880_v8 = vmul.f32 %v9698_v17, %v15951_v52  ;;  %v8815_v33 = vmul.f32 -1.442695, %v5195_v27  ;;  %v5196_v45 = vadd.f32 %v15953_v56, %v15805_v51  ;;  %v15955_v13 = vld [vmem:[#allocation171_spill] sm:$0xff] }
 0x5b4   : > { %6809 = vrot.lane.b32.xlu1 %v14211_v20, %s10258_s8  ;;  %6811 = vrot.lane.b32.xlu0 %v14213_v10, %s10258_s8  ;;  %v9702_v38 = vpop.eup %9701  ;;  %v5440_v41 = vadd.f32 1.0, %v9700_v50  ;;  %9727 = vpow2.f32 %v8813_v55  ;;  %v14241_v17 = vadd.f32 %v6436_v9, %v5881_v5  ;;  %v15954_v55 = vld [vmem:[#allocation172_spill] sm:$0xff] }
 0x5b5   : > { %v9704_v44 = vpop.eup %9703  ;;  %v5442_v6 = vadd.f32 1.0, %v9702_v38  ;;  %9729 = vpow2.f32 %v8812_v3  ;;  %v14239_v19 = vadd.f32 %v6434_v22, %v5880_v8  ;;  %v8817_v22 = vmul.f32 -1.442695, %v5197_v4  ;;  %v15956_v9 = vld [vmem:[#allocation8_spill] sm:$0xff] }
 0x5b6   : > { %v6442_v62 = vpop.permute.xlu1 %6441  ;;  %v9706_v31 = vpop.eup %9705  ;;  %9731 = vrcp.f32 %v5440_v41  ;;  %v5882_v57 = vmul.f32 %v9704_v44, %v15954_v55  ;;  %v5198_v5 = vadd.f32 %v15956_v9, %v13171_v29  ;;  %v8816_v41 = vmul.f32 -1.442695, %v5196_v45  ;;  %v15959_v9 = vld [vmem:[#allocation181_spill] sm:$0xff] }
 0x5b7   : > { %v6444_v11 = vpop.permute.xlu0 %6443  ;;  %v9708_v28 = vpop.eup %9707  ;;  %9733 = vrcp.f32 %v5442_v6  ;;  %v5883_v27 = vmul.f32 %v9706_v31, %v15955_v13  ;;  %v15957_v13 = vld [vmem:[#allocation176_spill] sm:$0xff] }
 0x5b8   : > { %6813 = vrot.lane.b32.xlu1 %v14225_v14, %s10258_s8  ;;  %6815 = vrot.lane.b32.xlu0 %v14227_v43, %s10258_s8  ;;  %v9710_v53 = vpop.eup %9709  ;;  %v5443_v37 = vadd.f32 1.0, %v9708_v28  ;;  %9735 = vpow2.f32 %v8814_v47  ;;  %v14251_v44 = vadd.f32 %v6438_v35, %v5882_v57  ;;  %v15958_v47 = vld [vmem:[#allocation177_spill] sm:$0xff]  ;;  %v8818_v45 = vmul.f32 -1.442695, %v5198_v5 }
 0x5b9   : > { %v9712_v38 = vpop.eup %9711  ;;  %v5445_v52 = vadd.f32 1.0, %v9710_v53  ;;  %9737 = vpow2.f32 %v8815_v33  ;;  %v14253_v6 = vadd.f32 %v6440_v34, %v5883_v27 }
 0x5ba   : > { %v6446_v50 = vpop.permute.xlu1 %6445  ;;  %v9714_v40 = vpop.eup %9713  ;;  %9739 = vrcp.f32 %v5443_v37  ;;  %v5885_v15 = vmul.f32 %v9712_v38, %v15957_v13 }
 0x5bb   : > { %v6448_v12 = vpop.permute.xlu0 %6447  ;;  %v9716_v8 = vpop.eup %9715  ;;  %v5444_v56 = vadd.f32 1.0, %v9714_v40  ;;  %9741 = vrcp.f32 %v5445_v52 }
 0x5bc   : > { %6817 = vrot.lane.b32.xlu1 %v14239_v19, %s10258_s8  ;;  %6819 = vrot.lane.b32.xlu0 %v14241_v17, %s10258_s8  ;;  %v9718_v3 = vpop.eup %9717  ;;  %v5884_v4 = vmul.f32 %v9716_v8, %v15958_v47  ;;  %9743 = vpow2.f32 %v8817_v22  ;;  %v14263_v40 = vadd.f32 %v6444_v11, %v5885_v15  ;;  %v15960_v47 = vld [vmem:[#allocation180_spill] sm:$0xff] }
 0x5bd   : > { %v9720_v53 = vpop.eup %9719  ;;  %v5446_v34 = vadd.f32 1.0, %v9718_v3  ;;  %9745 = vpow2.f32 %v8816_v41 }
 0x5be   : > { %v6450_v31 = vpop.permute.xlu1 %6449  ;;  %v9722_v55 = vpop.eup %9721  ;;  %v14261_v37 = vadd.f32 %v6442_v62, %v5884_v4  ;;  %9747 = vrcp.f32 %v5444_v56  ;;  %v5886_v13 = vmul.f32 %v9720_v53, %v15959_v9  ;;  %v15961_v4 = vld [vmem:[#allocation182_spill] sm:$0xff]  ;;  %v15962_v9 = vld [vmem:[#allocation183_spill] sm:$0xff] }
 0x5bf   : > { %v6452_v28 = vpop.permute.xlu0 %6451  ;;  %v9724_v35 = vpop.eup %9723  ;;  %v5447_v27 = vadd.f32 1.0, %v9722_v55  ;;  %9749 = vrcp.f32 %v5446_v34 }
 0x5c0   : > { %6821 = vrot.lane.b32.xlu1 %v14251_v44, %s10258_s8  ;;  %6823 = vrot.lane.b32.xlu0 %v14253_v6, %s10258_s8  ;;  %v9726_v33 = vpop.eup %9725  ;;  %v5887_v29 = vmul.f32 %v9724_v35, %v15960_v47  ;;  %9751 = vpow2.f32 %v8818_v45  ;;  %v14271_v22 = vadd.f32 %v6446_v50, %v5886_v13 }
 0x5c1   : > { %v9728_v52 = vpop.eup %9727  ;;  %9753 = vrcp.f32 %v5447_v27  ;;  %v5889_v35 = vmul.f32 %v9726_v33, %v15961_v4 }
 0x5c2   : > { %v6454_v38 = vpop.permute.xlu1 %6453  ;;  %v9730_v8 = vpop.eup %9729  ;;  %v5449_v11 = vadd.f32 1.0, %v9728_v52  ;;  %v14273_v5 = vadd.f32 %v6448_v12, %v5887_v29 }
 0x5c3   : > { %v6456_v57 = vpop.permute.xlu0 %6455  ;;  %v9732_v62 = vpop.eup %9731  ;;  %v5448_v56 = vadd.f32 1.0, %v9730_v8  ;;  %v14283_v45 = vadd.f32 %v6452_v28, %v5889_v35 }
 0x5c4   : > { %6825 = vrot.lane.b32.xlu1 %v14261_v37, %s10258_s8  ;;  %6827 = vrot.lane.b32.xlu0 %v14263_v40, %s10258_s8  ;;  %v9734_v15 = vpop.eup %9733  ;;  %v5888_v47 = vmul.f32 %v9732_v62, %v15962_v9  ;;  %9755 = vrcp.f32 %v5449_v11  ;;  %v15963_v62 = vld [vmem:[#allocation185_spill] sm:$0xff]  ;;  %v15964_v9 = vld [vmem:[#allocation184_spill] sm:$0xff] }
 0x5c5   : > { %v9736_v53 = vpop.eup %9735  ;;  %9757 = vrcp.f32 %v5448_v56  ;;  %v5890_v4 = vmul.f32 %v9734_v15, %v15963_v62 }
 0x5c6   : > { %v6458_v3 = vpop.permute.xlu1 %6457  ;;  %v9738_v55 = vpop.eup %9737  ;;  %v5450_v29 = vadd.f32 1.0, %v9736_v53  ;;  %v14281_v12 = vadd.f32 %v6450_v31, %v5888_v47 }
 0x5c7   : > { %v6460_v41 = vpop.permute.xlu0 %6459  ;;  %v9740_v50 = vpop.eup %9739  ;;  %v5451_v33 = vadd.f32 1.0, %v9738_v55  ;;  %v14291_v11 = vadd.f32 %v6454_v38, %v5890_v4 }
 0x5c8   : > { %6829 = vrot.lane.b32.xlu1 %v14271_v22, %s10258_s8  ;;  %6831 = vrot.lane.b32.xlu0 %v14273_v5, %s10258_s8  ;;  %v9742_v34 = vpop.eup %9741  ;;  %v5891_v51 = vmul.f32 %v9740_v50, %v15964_v9  ;;  %9759 = vrcp.f32 %v5450_v29  ;;  %v15965_v50 = vld [vmem:[#allocation186_spill] sm:$0xff]  ;;  %v15966_v9 = vld [vmem:[#allocation187_spill] sm:$0xff] }
 0x5c9   : > { %v9744_v8 = vpop.eup %9743  ;;  %9761 = vrcp.f32 %v5451_v33  ;;  %v5893_v62 = vmul.f32 %v9742_v34, %v15965_v50  ;;  %v15967_v34 = vld [vmem:[#allocation189_spill] sm:$0xff] }
 0x5ca   : > { %v6462_v52 = vpop.permute.xlu1 %6461  ;;  %v9746_v13 = vpop.eup %9745  ;;  %v5453_v28 = vadd.f32 1.0, %v9744_v8  ;;  %v14293_v53 = vadd.f32 %v6456_v57, %v5891_v51 }
 0x5cb   : > { %v6464_v27 = vpop.permute.xlu0 %6463  ;;  %v9748_v31 = vpop.eup %9747  ;;  %v5452_v15 = vadd.f32 1.0, %v9746_v13  ;;  %v14303_v57 = vadd.f32 %v6460_v41, %v5893_v62 }
 0x5cc   : > { %6833 = vrot.lane.b32.xlu1 %v14281_v12, %s10258_s8  ;;  %6835 = vrot.lane.b32.xlu0 %v14283_v45, %s10258_s8  ;;  %v9750_v35 = vpop.eup %9749  ;;  %v5892_v59 = vmul.f32 %v9748_v31, %v15966_v9  ;;  %9763 = vrcp.f32 %v5453_v28  ;;  %v15968_v31 = vld [vmem:[#allocation188_spill] sm:$0xff] }
 0x5cd   : > { %v9752_v47 = vpop.eup %9751  ;;  %9765 = vrcp.f32 %v5452_v15  ;;  %v5894_v4 = vmul.f32 %v9750_v35, %v15967_v34  ;;  %v15970_v35 = vld [vmem:[#allocation191_spill] sm:$0xff] }
 0x5ce   : > { %v6466_v56 = vpop.permute.xlu1 %6465  ;;  %v9754_v38 = vpop.eup %9753  ;;  %v14301_v51 = vadd.f32 %v6458_v3, %v5892_v59  ;;  %v5454_v33 = vadd.f32 1.0, %v9752_v47  ;;  %v15969_v47 = vld [vmem:[#allocation190_spill] sm:$0xff] }
 0x5cf   : > { %v6468_v55 = vpop.permute.xlu0 %6467  ;;  %v9756_v13 = vpop.eup %9755  ;;  %v5895_v50 = vmul.f32 %v9754_v38, %v15968_v31  ;;  %v14311_v59 = vadd.f32 %v6462_v52, %v5894_v4 }
 0x5d0   : > { %6837 = vrot.lane.b32.xlu1 %v14291_v11, %s10258_s8  ;;  %6839 = vrot.lane.b32.xlu0 %v14293_v53, %s10258_s8  ;;  %v9758_v28 = vpop.eup %9757  ;;  %9767 = vrcp.f32 %v5454_v33  ;;  %v5897_v9 = vmul.f32 %v9756_v13, %v15969_v47  ;;  %v15973_v13 = vld [vmem:[#allocation193_spill] sm:$0xff] }
 0x5d1   : > { %v14313_v3 = vadd.f32 %v6464_v27, %v5895_v50  ;;  %v5896_v34 = vmul.f32 %v9758_v28, %v15970_v35  ;;  %v15974_v28 = vld [vmem:[#allocation192_spill] sm:$0xff]  ;;  %9769 = vtanh.f32 %v13850_v21 }
 0x5d2   : > { %v6470_v29 = vpop.permute.xlu1 %6469  ;;  %v9760_v15 = vpop.eup %9759  ;;  %v14323_v27 = vadd.f32 %v6468_v55, %v5897_v9  ;;  %9771 = vtanh.f32 %v13866_v39 }
 0x5d3   : > { %v6472_v8 = vpop.permute.xlu0 %6471  ;;  %v9762_v38 = vpop.eup %9761  ;;  %v14321_v52 = vadd.f32 %v6466_v56, %v5896_v34  ;;  %v5898_v50 = vmul.f32 %v9760_v15, %v15973_v13  ;;  %v15975_v15 = vld [vmem:[#allocation194_spill] sm:$0xff]  ;;  %9773 = vtanh.f32 %v13868_v60 }
 0x5d4   : > { %6841 = vrot.lane.b32.xlu1 %v14301_v51, %s10258_s8  ;;  %6843 = vrot.lane.b32.xlu0 %v14303_v57, %s10258_s8  ;;  %15972 = vst [vmem:[#allocation197_spill] sm:$0xff] %v14323_v27  ;;  %v5899_v47 = vmul.f32 %v9762_v38, %v15974_v28  ;;  %v15976_v38 = vld [vmem:[#allocation195_spill] sm:$0xff]  ;;  %9775 = vtanh.f32 %v13886_v0 }
 0x5d5   : > { %15971 = vst [vmem:[#allocation54_spill] sm:$0xff] %v14321_v52  ;;  %v14332_v56 = vadd.f32 %v6470_v29, %v5898_v50  ;;  %9777 = vtanh.f32 %v13889_v32 }
 0x5d6   : > { %v6474_v41 = vpop.permute.xlu1 %6473  ;;  %v9764_v33 = vpop.eup %9763  ;;  %v14334_v55 = vadd.f32 %v6472_v8, %v5899_v47  ;;  %9779 = vtanh.f32 %v13906_v46 }
 0x5d7   : > { %v6476_v62 = vpop.permute.xlu0 %6475  ;;  %v9766_v35 = vpop.eup %9765  ;;  %v5901_v13 = vmul.f32 %v9764_v33, %v15975_v15  ;;  %v15977_v33 = vld [vmem:[#allocation196_spill] sm:$0xff]  ;;  %9781 = vtanh.f32 %v13909_v42 }
 0x5d8   : > { %6845 = vrot.lane.b32.xlu1 %v14311_v59, %s10258_s8  ;;  %6847 = vrot.lane.b32.xlu0 %v14313_v3, %s10258_s8  ;;  %v5900_v28 = vmul.f32 %v9766_v35, %v15976_v38  ;;  %v6608_v38 = vld [vmem:[%s15328_s5 + $0x8] sm:$0xff]  ;;  %9783 = vtanh.f32 %v13924_v61 }
 0x5d9   : > { %v14346_v8 = vadd.f32 %v6476_v62, %v5901_v13  ;;  %9785 = vtanh.f32 %v13927_v49 }
 0x5da   : > { %v6478_v4 = vpop.permute.xlu1 %6477  ;;  %v9768_v29 = vpop.eup %9767  ;;  %v14344_v50 = vadd.f32 %v6474_v41, %v5900_v28  ;;  %v6609_v28 = vld [vmem:[%s15328_s5 + $0x10] sm:$0xff]  ;;  %9787 = vtanh.f32 %v13944_v1 }
 0x5db   : > { %v6736_v31 = vpop.permute.xlu0 %6735  ;;  %v5902_v35 = vmul.f32 %v9768_v29, %v15977_v33  ;;  %v6610_v33 = vld [vmem:[%s15328_s5 + $0x18] sm:$0xff]  ;;  %9789 = vtanh.f32 %v13947_v36 }
 0x5dc   : > { %8080 = vst.msk [vmem:[#allocation3] sm:$0xff] %vm8079_vm8, %v6736_v31  ;;  %6849 = vrot.lane.b32.xlu1 %v14321_v52, %s10258_s8  ;;  %6851 = vrot.lane.b32.xlu0 %v14323_v27, %s10258_s8  ;;  %v6607_v52 = vld [vmem:[%s15328_s5] sm:$0xff]  ;;  %9791 = vtanh.f32 %v13964_v58 }
 0x5dd   : > { %v14358_v41 = vadd.f32 %v6478_v4, %v5902_v35  ;;  %v6927_v62 = vmul.f32 %v6736_v31, %v6607_v52  ;;  %v6611_v35 = vld [vmem:[%s15328_s5 + $0x20] sm:$0xff]  ;;  %9793 = vtanh.f32 %v13967_v16 }
 0x5de   : > { %v6738_v9 = vpop.permute.xlu1 %6737  ;;  %9795 = vtanh.f32 %v13984_v2 }
 0x5df   : > { %v6740_v34 = vpop.permute.xlu0 %6739  ;;  %8081 = vst.msk [vmem:[#allocation3 + $0x8] sm:$0xff] %vm8079_vm8, %v6738_v9  ;;  %15978 = vst [vmem:[#allocation53_spill] sm:$0xff] %v14358_v41  ;;  %v6928_v52 = vmul.f32 %v6738_v9, %v6608_v38  ;;  %9797 = vtanh.f32 %v13987_v54 }
 0x5e0   : > { %8082 = vst.msk [vmem:[#allocation3 + $0x10] sm:$0xff] %vm8079_vm8, %v6740_v34  ;;  %6853 = vrot.lane.b32.xlu1 %v14332_v56, %s10258_s8  ;;  %6855 = vrot.lane.b32.xlu0 %v14334_v55, %s10258_s8  ;;  %v6929_v4 = vmul.f32 %v6740_v34, %v6609_v28  ;;  %v6612_v28 = vld [vmem:[%s15328_s5 + $0x28] sm:$0xff]  ;;  %9799 = vtanh.f32 %v14006_v25 }
 0x5e2   : > { %v6742_v47 = vpop.permute.xlu1 %6741 }
 0x5e3   : > { %v6744_v27 = vpop.permute.xlu0 %6743  ;;  %8083 = vst.msk [vmem:[#allocation3 + $0x18] sm:$0xff] %vm8079_vm8, %v6742_v47  ;;  %v6930_v9 = vmul.f32 %v6742_v47, %v6610_v33  ;;  %v6614_v33 = vld [vmem:[%s15328_s5 + $0x38] sm:$0xff] }
 0x5e4   : > { %8084 = vst.msk [vmem:[#allocation3 + $0x20] sm:$0xff] %vm8079_vm8, %v6744_v27  ;;  %6857 = vrot.lane.b32.xlu1 %v14344_v50, %s10258_s8  ;;  %6859 = vrot.lane.b32.xlu0 %v14346_v8, %s10258_s8  ;;  %v6931_v34 = vmul.f32 %v6744_v27, %v6611_v35  ;;  %v6615_v35 = vld [vmem:[%s15328_s5 + $0x40] sm:$0xff] }
 0x5e6   : > { %v6746_v15 = vpop.permute.xlu1 %6745 }
 0x5e7   : > { %v6748_v13 = vpop.permute.xlu0 %6747  ;;  %8085 = vst.msk [vmem:[#allocation3 + $0x28] sm:$0xff] %vm8079_vm8, %v6746_v15  ;;  %v6932_v47 = vmul.f32 %v6746_v15, %v6612_v28  ;;  %v6617_v28 = vld [vmem:[%s15328_s5 + $0x50] sm:$0xff] }
 0x5e8   : > { %8086 = vst.msk [vmem:[#allocation3 + $0x30] sm:$0xff] %vm8079_vm8, %v6748_v13  ;;  %6861 = vrot.lane.b32.xlu1 %v14358_v41, %s10258_s8  ;;  %7055 = vrot.lane.b32.xlu0 %v6927_v62, %s10258_s8  ;;  %v6613_v41 = vld [vmem:[%s15328_s5 + $0x30] sm:$0xff] }
 0x5e9   : > { %v6933_v27 = vmul.f32 %v6748_v13, %v6613_v41 }
 0x5ea   : > { %v6750_v31 = vpop.permute.xlu1 %6749 }
 0x5eb   : > { %v6752_v29 = vpop.permute.xlu0 %6751  ;;  %8087 = vst.msk [vmem:[#allocation3 + $0x38] sm:$0xff] %vm8079_vm8, %v6750_v31  ;;  %v6934_v15 = vmul.f32 %v6750_v31, %v6614_v33  ;;  %v6618_v33 = vld [vmem:[%s15328_s5 + $0x58] sm:$0xff] }
 0x5ec   : > { %8088 = vst.msk [vmem:[#allocation3 + $0x40] sm:$0xff] %vm8079_vm8, %v6752_v29  ;;  %7057 = vrot.lane.b32.xlu1 %v6928_v52, %s10258_s8  ;;  %7059 = vrot.lane.b32.xlu0 %v6929_v4, %s10258_s8  ;;  %v6935_v41 = vmul.f32 %v6752_v29, %v6615_v35  ;;  %v6619_v35 = vld [vmem:[%s15328_s5 + $0x60] sm:$0xff] }
 0x5ee   : > { %v6754_v62 = vpop.permute.xlu1 %6753 }
 0x5ef   : > { %v6756_v38 = vpop.permute.xlu0 %6755  ;;  %8089 = vst.msk [vmem:[#allocation3 + $0x48] sm:$0xff] %vm8079_vm8, %v6754_v62 }
 0x5f0   : > { %8090 = vst.msk [vmem:[#allocation3 + $0x50] sm:$0xff] %vm8079_vm8, %v6756_v38  ;;  %7061 = vrot.lane.b32.xlu1 %v6930_v9, %s10258_s8  ;;  %7063 = vrot.lane.b32.xlu0 %v6931_v34, %s10258_s8  ;;  %v6616_v34 = vld [vmem:[%s15328_s5 + $0x48] sm:$0xff]  ;;  %v6937_v29 = vmul.f32 %v6756_v38, %v6617_v28  ;;  %v6621_v28 = vld [vmem:[%s15328_s5 + $0x70] sm:$0xff] }
 0x5f1   : > { %v6936_v31 = vmul.f32 %v6754_v62, %v6616_v34  ;;  %v6620_v34 = vld [vmem:[%s15328_s5 + $0x68] sm:$0xff] }
 0x5f2   : > { %v6758_v52 = vpop.permute.xlu1 %6757 }
 0x5f3   : > { %v6760_v4 = vpop.permute.xlu0 %6759  ;;  %8091 = vst.msk [vmem:[#allocation3 + $0x58] sm:$0xff] %vm8079_vm8, %v6758_v52  ;;  %v6938_v62 = vmul.f32 %v6758_v52, %v6618_v33  ;;  %v6622_v33 = vld [vmem:[%s15328_s5 + $0x78] sm:$0xff] }
 0x5f4   : > { %8092 = vst.msk [vmem:[#allocation3 + $0x60] sm:$0xff] %vm8079_vm8, %v6760_v4  ;;  %7065 = vrot.lane.b32.xlu1 %v6932_v47, %s10258_s8  ;;  %7067 = vrot.lane.b32.xlu0 %v6933_v27, %s10258_s8  ;;  %v6939_v38 = vmul.f32 %v6760_v4, %v6619_v35  ;;  %v6623_v35 = vld [vmem:[%s15328_s5 + $0x80] sm:$0xff] }
 0x5f6   : > { %v6762_v13 = vpop.permute.xlu1 %6761 }
 0x5f7   : > { %v6764_v9 = vpop.permute.xlu0 %6763  ;;  %8093 = vst.msk [vmem:[#allocation3 + $0x68] sm:$0xff] %vm8079_vm8, %v6762_v13  ;;  %v6940_v52 = vmul.f32 %v6762_v13, %v6620_v34  ;;  %v6624_v34 = vld [vmem:[%s15328_s5 + $0x88] sm:$0xff] }
 0x5f8   : > { %8094 = vst.msk [vmem:[#allocation3 + $0x70] sm:$0xff] %vm8079_vm8, %v6764_v9  ;;  %7069 = vrot.lane.b32.xlu1 %v6934_v15, %s10258_s8  ;;  %7071 = vrot.lane.b32.xlu0 %v6935_v41, %s10258_s8  ;;  %v6941_v4 = vmul.f32 %v6764_v9, %v6621_v28  ;;  %v6625_v28 = vld [vmem:[%s15328_s5 + $0x90] sm:$0xff] }
 0x5fa   : > { %v6766_v47 = vpop.permute.xlu1 %6765 }
 0x5fb   : > { %v6768_v27 = vpop.permute.xlu0 %6767  ;;  %8095 = vst.msk [vmem:[#allocation3 + $0x78] sm:$0xff] %vm8079_vm8, %v6766_v47  ;;  %v6942_v13 = vmul.f32 %v6766_v47, %v6622_v33  ;;  %v6626_v33 = vld [vmem:[%s15328_s5 + $0x98] sm:$0xff] }
 0x5fc   : > { %8096 = vst.msk [vmem:[#allocation3 + $0x80] sm:$0xff] %vm8079_vm8, %v6768_v27  ;;  %7073 = vrot.lane.b32.xlu1 %v6936_v31, %s10258_s8  ;;  %7075 = vrot.lane.b32.xlu0 %v6937_v29, %s10258_s8  ;;  %v6943_v9 = vmul.f32 %v6768_v27, %v6623_v35  ;;  %v6627_v35 = vld [vmem:[%s15328_s5 + $0xa0] sm:$0xff] }
 0x5fe   : > { %v6770_v15 = vpop.permute.xlu1 %6769 }
 0x5ff   : > { %v6772_v41 = vpop.permute.xlu0 %6771  ;;  %8097 = vst.msk [vmem:[#allocation3 + $0x88] sm:$0xff] %vm8079_vm8, %v6770_v15  ;;  %v6944_v47 = vmul.f32 %v6770_v15, %v6624_v34  ;;  %v6628_v34 = vld [vmem:[%s15328_s5 + $0xa8] sm:$0xff] }
 0x600   : > { %8098 = vst.msk [vmem:[#allocation3 + $0x90] sm:$0xff] %vm8079_vm8, %v6772_v41  ;;  %7077 = vrot.lane.b32.xlu1 %v6938_v62, %s10258_s8  ;;  %7079 = vrot.lane.b32.xlu0 %v6939_v38, %s10258_s8  ;;  %v6945_v27 = vmul.f32 %v6772_v41, %v6625_v28  ;;  %v6629_v28 = vld [vmem:[%s15328_s5 + $0xb0] sm:$0xff] }
 0x602   : > { %v6774_v31 = vpop.permute.xlu1 %6773 }
 0x603   : > { %v6776_v29 = vpop.permute.xlu0 %6775  ;;  %8099 = vst.msk [vmem:[#allocation3 + $0x98] sm:$0xff] %vm8079_vm8, %v6774_v31  ;;  %v6946_v15 = vmul.f32 %v6774_v31, %v6626_v33  ;;  %v6630_v33 = vld [vmem:[%s15328_s5 + $0xb8] sm:$0xff] }
 0x604   : > { %8100 = vst.msk [vmem:[#allocation3 + $0xa0] sm:$0xff] %vm8079_vm8, %v6776_v29  ;;  %7081 = vrot.lane.b32.xlu1 %v6940_v52, %s10258_s8  ;;  %7083 = vrot.lane.b32.xlu0 %v6941_v4, %s10258_s8  ;;  %v6947_v41 = vmul.f32 %v6776_v29, %v6627_v35  ;;  %v6631_v35 = vld [vmem:[%s15328_s5 + $0xc0] sm:$0xff] }
 0x606   : > { %v6778_v62 = vpop.permute.xlu1 %6777 }
 0x607   : > { %v6780_v38 = vpop.permute.xlu0 %6779  ;;  %8101 = vst.msk [vmem:[#allocation3 + $0xa8] sm:$0xff] %vm8079_vm8, %v6778_v62  ;;  %v6948_v31 = vmul.f32 %v6778_v62, %v6628_v34  ;;  %v6632_v34 = vld [vmem:[%s15328_s5 + $0xc8] sm:$0xff] }
 0x608   : > { %8102 = vst.msk [vmem:[#allocation3 + $0xb0] sm:$0xff] %vm8079_vm8, %v6780_v38  ;;  %7085 = vrot.lane.b32.xlu1 %v6942_v13, %s10258_s8  ;;  %7087 = vrot.lane.b32.xlu0 %v6943_v9, %s10258_s8  ;;  %v6949_v29 = vmul.f32 %v6780_v38, %v6629_v28  ;;  %v6633_v28 = vld [vmem:[%s15328_s5 + $0xd0] sm:$0xff] }
 0x60a   : > { %v6782_v52 = vpop.permute.xlu1 %6781 }
 0x60b   : > { %v6784_v4 = vpop.permute.xlu0 %6783  ;;  %8103 = vst.msk [vmem:[#allocation3 + $0xb8] sm:$0xff] %vm8079_vm8, %v6782_v52  ;;  %v6950_v62 = vmul.f32 %v6782_v52, %v6630_v33  ;;  %v6634_v33 = vld [vmem:[%s15328_s5 + $0xd8] sm:$0xff] }
 0x60c   : > { %8104 = vst.msk [vmem:[#allocation3 + $0xc0] sm:$0xff] %vm8079_vm8, %v6784_v4  ;;  %7089 = vrot.lane.b32.xlu1 %v6944_v47, %s10258_s8  ;;  %7091 = vrot.lane.b32.xlu0 %v6945_v27, %s10258_s8  ;;  %v6951_v38 = vmul.f32 %v6784_v4, %v6631_v35  ;;  %v6635_v35 = vld [vmem:[%s15328_s5 + $0xe0] sm:$0xff] }
 0x60e   : > { %v6786_v13 = vpop.permute.xlu1 %6785 }
 0x60f   : > { %v6788_v9 = vpop.permute.xlu0 %6787  ;;  %8105 = vst.msk [vmem:[#allocation3 + $0xc8] sm:$0xff] %vm8079_vm8, %v6786_v13  ;;  %v6952_v52 = vmul.f32 %v6786_v13, %v6632_v34  ;;  %v6636_v34 = vld [vmem:[%s15328_s5 + $0xe8] sm:$0xff] }
 0x610   : > { %8106 = vst.msk [vmem:[#allocation3 + $0xd0] sm:$0xff] %vm8079_vm8, %v6788_v9  ;;  %7093 = vrot.lane.b32.xlu1 %v6946_v15, %s10258_s8  ;;  %7095 = vrot.lane.b32.xlu0 %v6947_v41, %s10258_s8  ;;  %v6953_v4 = vmul.f32 %v6788_v9, %v6633_v28  ;;  %v6637_v28 = vld [vmem:[%s15328_s5 + $0xf0] sm:$0xff] }
 0x612   : > { %v6790_v47 = vpop.permute.xlu1 %6789 }
 0x613   : > { %v6792_v27 = vpop.permute.xlu0 %6791  ;;  %8107 = vst.msk [vmem:[#allocation3 + $0xd8] sm:$0xff] %vm8079_vm8, %v6790_v47  ;;  %v6954_v13 = vmul.f32 %v6790_v47, %v6634_v33  ;;  %v6638_v33 = vld [vmem:[%s15328_s5 + $0xf8] sm:$0xff] }
 0x614   : > { %8108 = vst.msk [vmem:[#allocation3 + $0xe0] sm:$0xff] %vm8079_vm8, %v6792_v27  ;;  %7097 = vrot.lane.b32.xlu1 %v6948_v31, %s10258_s8  ;;  %7099 = vrot.lane.b32.xlu0 %v6949_v29, %s10258_s8  ;;  %v6955_v9 = vmul.f32 %v6792_v27, %v6635_v35  ;;  %v6639_v35 = vld [vmem:[%s15328_s5 + $0x100] sm:$0xff] }
 0x616   : > { %v6794_v15 = vpop.permute.xlu1 %6793 }
 0x617   : > { %v6796_v41 = vpop.permute.xlu0 %6795  ;;  %8109 = vst.msk [vmem:[#allocation3 + $0xe8] sm:$0xff] %vm8079_vm8, %v6794_v15  ;;  %v6956_v47 = vmul.f32 %v6794_v15, %v6636_v34  ;;  %v6640_v34 = vld [vmem:[%s15328_s5 + $0x108] sm:$0xff] }
 0x618   : > { %8110 = vst.msk [vmem:[#allocation3 + $0xf0] sm:$0xff] %vm8079_vm8, %v6796_v41  ;;  %7101 = vrot.lane.b32.xlu1 %v6950_v62, %s10258_s8  ;;  %7103 = vrot.lane.b32.xlu0 %v6951_v38, %s10258_s8  ;;  %v6957_v27 = vmul.f32 %v6796_v41, %v6637_v28  ;;  %v6641_v28 = vld [vmem:[%s15328_s5 + $0x110] sm:$0xff] }
 0x61a   : > { %v6798_v31 = vpop.permute.xlu1 %6797 }
 0x61b   : > { %v6800_v29 = vpop.permute.xlu0 %6799  ;;  %8111 = vst.msk [vmem:[#allocation3 + $0xf8] sm:$0xff] %vm8079_vm8, %v6798_v31  ;;  %v6958_v15 = vmul.f32 %v6798_v31, %v6638_v33  ;;  %v6642_v33 = vld [vmem:[%s15328_s5 + $0x118] sm:$0xff] }
 0x61c   : > { %8112 = vst.msk [vmem:[#allocation3 + $0x100] sm:$0xff] %vm8079_vm8, %v6800_v29  ;;  %7105 = vrot.lane.b32.xlu1 %v6952_v52, %s10258_s8  ;;  %7107 = vrot.lane.b32.xlu0 %v6953_v4, %s10258_s8  ;;  %v6959_v41 = vmul.f32 %v6800_v29, %v6639_v35  ;;  %v6643_v35 = vld [vmem:[%s15328_s5 + $0x120] sm:$0xff] }
 0x61e   : > { %v6802_v62 = vpop.permute.xlu1 %6801 }
 0x61f   : > { %v6804_v38 = vpop.permute.xlu0 %6803  ;;  %8113 = vst.msk [vmem:[#allocation3 + $0x108] sm:$0xff] %vm8079_vm8, %v6802_v62  ;;  %v6960_v31 = vmul.f32 %v6802_v62, %v6640_v34  ;;  %v6644_v34 = vld [vmem:[%s15328_s5 + $0x128] sm:$0xff] }
 0x620   : > { %8114 = vst.msk [vmem:[#allocation3 + $0x110] sm:$0xff] %vm8079_vm8, %v6804_v38  ;;  %7109 = vrot.lane.b32.xlu1 %v6954_v13, %s10258_s8  ;;  %7111 = vrot.lane.b32.xlu0 %v6955_v9, %s10258_s8  ;;  %v6961_v29 = vmul.f32 %v6804_v38, %v6641_v28  ;;  %v6645_v28 = vld [vmem:[%s15328_s5 + $0x130] sm:$0xff] }
 0x622   : > { %v6806_v52 = vpop.permute.xlu1 %6805 }
 0x623   : > { %v6808_v4 = vpop.permute.xlu0 %6807  ;;  %8115 = vst.msk [vmem:[#allocation3 + $0x118] sm:$0xff] %vm8079_vm8, %v6806_v52  ;;  %v6962_v62 = vmul.f32 %v6806_v52, %v6642_v33  ;;  %v6646_v33 = vld [vmem:[%s15328_s5 + $0x138] sm:$0xff] }
 0x624   : > { %8116 = vst.msk [vmem:[#allocation3 + $0x120] sm:$0xff] %vm8079_vm8, %v6808_v4  ;;  %7113 = vrot.lane.b32.xlu1 %v6956_v47, %s10258_s8  ;;  %7115 = vrot.lane.b32.xlu0 %v6957_v27, %s10258_s8  ;;  %v6963_v38 = vmul.f32 %v6808_v4, %v6643_v35  ;;  %v6647_v35 = vld [vmem:[%s15328_s5 + $0x140] sm:$0xff] }
 0x626   : > { %v6810_v13 = vpop.permute.xlu1 %6809 }
 0x627   : > { %v6812_v9 = vpop.permute.xlu0 %6811  ;;  %8117 = vst.msk [vmem:[#allocation3 + $0x128] sm:$0xff] %vm8079_vm8, %v6810_v13  ;;  %v6964_v52 = vmul.f32 %v6810_v13, %v6644_v34  ;;  %v6648_v34 = vld [vmem:[%s15328_s5 + $0x148] sm:$0xff] }
 0x628   : > { %8118 = vst.msk [vmem:[#allocation3 + $0x130] sm:$0xff] %vm8079_vm8, %v6812_v9  ;;  %7117 = vrot.lane.b32.xlu1 %v6958_v15, %s10258_s8  ;;  %7119 = vrot.lane.b32.xlu0 %v6959_v41, %s10258_s8  ;;  %v6965_v4 = vmul.f32 %v6812_v9, %v6645_v28  ;;  %v6649_v28 = vld [vmem:[%s15328_s5 + $0x150] sm:$0xff] }
 0x62a   : > { %v6814_v47 = vpop.permute.xlu1 %6813 }
 0x62b   : > { %v6816_v27 = vpop.permute.xlu0 %6815  ;;  %8119 = vst.msk [vmem:[#allocation3 + $0x138] sm:$0xff] %vm8079_vm8, %v6814_v47  ;;  %v6966_v13 = vmul.f32 %v6814_v47, %v6646_v33  ;;  %v6650_v33 = vld [vmem:[%s15328_s5 + $0x158] sm:$0xff] }
 0x62c   : > { %8120 = vst.msk [vmem:[#allocation3 + $0x140] sm:$0xff] %vm8079_vm8, %v6816_v27  ;;  %7121 = vrot.lane.b32.xlu1 %v6960_v31, %s10258_s8  ;;  %7123 = vrot.lane.b32.xlu0 %v6961_v29, %s10258_s8  ;;  %v6967_v9 = vmul.f32 %v6816_v27, %v6647_v35  ;;  %v6651_v35 = vld [vmem:[%s15328_s5 + $0x160] sm:$0xff] }
 0x62e   : > { %v6818_v15 = vpop.permute.xlu1 %6817 }
 0x62f   : > { %v6820_v41 = vpop.permute.xlu0 %6819  ;;  %8121 = vst.msk [vmem:[#allocation3 + $0x148] sm:$0xff] %vm8079_vm8, %v6818_v15  ;;  %v6968_v47 = vmul.f32 %v6818_v15, %v6648_v34  ;;  %v6652_v34 = vld [vmem:[%s15328_s5 + $0x168] sm:$0xff] }
 0x630   : > { %8122 = vst.msk [vmem:[#allocation3 + $0x150] sm:$0xff] %vm8079_vm8, %v6820_v41  ;;  %7125 = vrot.lane.b32.xlu1 %v6962_v62, %s10258_s8  ;;  %7127 = vrot.lane.b32.xlu0 %v6963_v38, %s10258_s8  ;;  %v6969_v27 = vmul.f32 %v6820_v41, %v6649_v28  ;;  %v6653_v28 = vld [vmem:[%s15328_s5 + $0x170] sm:$0xff] }
 0x632   : > { %v6822_v31 = vpop.permute.xlu1 %6821 }
 0x633   : > { %v6824_v29 = vpop.permute.xlu0 %6823  ;;  %8123 = vst.msk [vmem:[#allocation3 + $0x158] sm:$0xff] %vm8079_vm8, %v6822_v31  ;;  %v6970_v15 = vmul.f32 %v6822_v31, %v6650_v33  ;;  %v6654_v33 = vld [vmem:[%s15328_s5 + $0x178] sm:$0xff] }
 0x634   : > { %8124 = vst.msk [vmem:[#allocation3 + $0x160] sm:$0xff] %vm8079_vm8, %v6824_v29  ;;  %7129 = vrot.lane.b32.xlu1 %v6964_v52, %s10258_s8  ;;  %7131 = vrot.lane.b32.xlu0 %v6965_v4, %s10258_s8  ;;  %v6971_v41 = vmul.f32 %v6824_v29, %v6651_v35  ;;  %v6655_v35 = vld [vmem:[%s15328_s5 + $0x180] sm:$0xff] }
 0x636   : > { %v6826_v62 = vpop.permute.xlu1 %6825 }
 0x637   : > { %v6828_v38 = vpop.permute.xlu0 %6827  ;;  %8125 = vst.msk [vmem:[#allocation3 + $0x168] sm:$0xff] %vm8079_vm8, %v6826_v62  ;;  %v6972_v31 = vmul.f32 %v6826_v62, %v6652_v34  ;;  %v6656_v34 = vld [vmem:[%s15328_s5 + $0x188] sm:$0xff] }
 0x638   : > { %8126 = vst.msk [vmem:[#allocation3 + $0x170] sm:$0xff] %vm8079_vm8, %v6828_v38  ;;  %7133 = vrot.lane.b32.xlu1 %v6966_v13, %s10258_s8  ;;  %7135 = vrot.lane.b32.xlu0 %v6967_v9, %s10258_s8  ;;  %v6973_v29 = vmul.f32 %v6828_v38, %v6653_v28  ;;  %v6657_v28 = vld [vmem:[%s15328_s5 + $0x190] sm:$0xff] }
 0x63a   : > { %v6830_v52 = vpop.permute.xlu1 %6829 }
 0x63b   : > { %v6832_v4 = vpop.permute.xlu0 %6831  ;;  %8127 = vst.msk [vmem:[#allocation3 + $0x178] sm:$0xff] %vm8079_vm8, %v6830_v52  ;;  %v6974_v62 = vmul.f32 %v6830_v52, %v6654_v33  ;;  %v6658_v33 = vld [vmem:[%s15328_s5 + $0x198] sm:$0xff] }
 0x63c   : > { %8128 = vst.msk [vmem:[#allocation3 + $0x180] sm:$0xff] %vm8079_vm8, %v6832_v4  ;;  %7137 = vrot.lane.b32.xlu1 %v6968_v47, %s10258_s8  ;;  %7139 = vrot.lane.b32.xlu0 %v6969_v27, %s10258_s8  ;;  %v6975_v38 = vmul.f32 %v6832_v4, %v6655_v35  ;;  %v6659_v35 = vld [vmem:[%s15328_s5 + $0x1a0] sm:$0xff] }
 0x63e   : > { %v6834_v13 = vpop.permute.xlu1 %6833 }
 0x63f   : > { %v6836_v9 = vpop.permute.xlu0 %6835  ;;  %8129 = vst.msk [vmem:[#allocation3 + $0x188] sm:$0xff] %vm8079_vm8, %v6834_v13  ;;  %v6976_v52 = vmul.f32 %v6834_v13, %v6656_v34  ;;  %v6660_v34 = vld [vmem:[%s15328_s5 + $0x1a8] sm:$0xff] }
 0x640   : > { %8130 = vst.msk [vmem:[#allocation3 + $0x190] sm:$0xff] %vm8079_vm8, %v6836_v9  ;;  %7141 = vrot.lane.b32.xlu1 %v6970_v15, %s10258_s8  ;;  %7143 = vrot.lane.b32.xlu0 %v6971_v41, %s10258_s8  ;;  %v6977_v4 = vmul.f32 %v6836_v9, %v6657_v28  ;;  %v6661_v28 = vld [vmem:[%s15328_s5 + $0x1b0] sm:$0xff] }
 0x642   : > { %v6838_v47 = vpop.permute.xlu1 %6837 }
 0x643   : > { %v6840_v27 = vpop.permute.xlu0 %6839  ;;  %8131 = vst.msk [vmem:[#allocation3 + $0x198] sm:$0xff] %vm8079_vm8, %v6838_v47  ;;  %v6978_v13 = vmul.f32 %v6838_v47, %v6658_v33  ;;  %v6662_v33 = vld [vmem:[%s15328_s5 + $0x1b8] sm:$0xff] }
 0x644   : > { %8132 = vst.msk [vmem:[#allocation3 + $0x1a0] sm:$0xff] %vm8079_vm8, %v6840_v27  ;;  %7145 = vrot.lane.b32.xlu1 %v6972_v31, %s10258_s8  ;;  %7147 = vrot.lane.b32.xlu0 %v6973_v29, %s10258_s8  ;;  %v6979_v9 = vmul.f32 %v6840_v27, %v6659_v35  ;;  %v6663_v35 = vld [vmem:[%s15328_s5 + $0x1c0] sm:$0xff] }
 0x646   : > { %v6842_v15 = vpop.permute.xlu1 %6841 }
 0x647   : > { %v6844_v41 = vpop.permute.xlu0 %6843  ;;  %8133 = vst.msk [vmem:[#allocation3 + $0x1a8] sm:$0xff] %vm8079_vm8, %v6842_v15  ;;  %v6980_v47 = vmul.f32 %v6842_v15, %v6660_v34  ;;  %v6664_v34 = vld [vmem:[%s15328_s5 + $0x1c8] sm:$0xff] }
 0x648   : > { %8134 = vst.msk [vmem:[#allocation3 + $0x1b0] sm:$0xff] %vm8079_vm8, %v6844_v41  ;;  %7149 = vrot.lane.b32.xlu1 %v6974_v62, %s10258_s8  ;;  %7151 = vrot.lane.b32.xlu0 %v6975_v38, %s10258_s8  ;;  %v6981_v27 = vmul.f32 %v6844_v41, %v6661_v28  ;;  %v6665_v28 = vld [vmem:[%s15328_s5 + $0x1d0] sm:$0xff] }
 0x64a   : > { %v6846_v31 = vpop.permute.xlu1 %6845 }
 0x64b   : > { %v6848_v29 = vpop.permute.xlu0 %6847  ;;  %8135 = vst.msk [vmem:[#allocation3 + $0x1b8] sm:$0xff] %vm8079_vm8, %v6846_v31  ;;  %v6982_v15 = vmul.f32 %v6846_v31, %v6662_v33  ;;  %v6666_v33 = vld [vmem:[%s15328_s5 + $0x1d8] sm:$0xff] }
 0x64c   : > { %8136 = vst.msk [vmem:[#allocation3 + $0x1c0] sm:$0xff] %vm8079_vm8, %v6848_v29  ;;  %7153 = vrot.lane.b32.xlu1 %v6976_v52, %s10258_s8  ;;  %7155 = vrot.lane.b32.xlu0 %v6977_v4, %s10258_s8  ;;  %v6983_v41 = vmul.f32 %v6848_v29, %v6663_v35  ;;  %v6667_v35 = vld [vmem:[%s15328_s5 + $0x1e0] sm:$0xff] }
 0x64e   : > { %v6850_v62 = vpop.permute.xlu1 %6849 }
 0x64f   : > { %v6852_v38 = vpop.permute.xlu0 %6851  ;;  %8137 = vst.msk [vmem:[#allocation3 + $0x1c8] sm:$0xff] %vm8079_vm8, %v6850_v62  ;;  %v6984_v31 = vmul.f32 %v6850_v62, %v6664_v34  ;;  %v6668_v34 = vld [vmem:[%s15328_s5 + $0x1e8] sm:$0xff] }
 0x650   : > { %8138 = vst.msk [vmem:[#allocation3 + $0x1d0] sm:$0xff] %vm8079_vm8, %v6852_v38  ;;  %7157 = vrot.lane.b32.xlu1 %v6978_v13, %s10258_s8  ;;  %7159 = vrot.lane.b32.xlu0 %v6979_v9, %s10258_s8  ;;  %v6985_v29 = vmul.f32 %v6852_v38, %v6665_v28  ;;  %v6669_v28 = vld [vmem:[%s15328_s5 + $0x1f0] sm:$0xff] }
 0x652   : > { %v6854_v52 = vpop.permute.xlu1 %6853 }
 0x653   : > { %v6856_v4 = vpop.permute.xlu0 %6855  ;;  %8139 = vst.msk [vmem:[#allocation3 + $0x1d8] sm:$0xff] %vm8079_vm8, %v6854_v52  ;;  %v6986_v62 = vmul.f32 %v6854_v52, %v6666_v33 }
 0x654   : > { %8140 = vst.msk [vmem:[#allocation3 + $0x1e0] sm:$0xff] %vm8079_vm8, %v6856_v4  ;;  %7161 = vrot.lane.b32.xlu1 %v6980_v47, %s10258_s8  ;;  %7163 = vrot.lane.b32.xlu0 %v6981_v27, %s10258_s8  ;;  %v6987_v38 = vmul.f32 %v6856_v4, %v6667_v35 }
 0x656   : > { %v6858_v13 = vpop.permute.xlu1 %6857 }
 0x657   : > { %v6860_v9 = vpop.permute.xlu0 %6859  ;;  %8141 = vst.msk [vmem:[#allocation3 + $0x1e8] sm:$0xff] %vm8079_vm8, %v6858_v13  ;;  %v6988_v21 = vmul.f32 %v6858_v13, %v6668_v34 }
 0x658   : > { %8142 = vst.msk [vmem:[#allocation3 + $0x1f0] sm:$0xff] %vm8079_vm8, %v6860_v9  ;;  %7165 = vrot.lane.b32.xlu1 %v6982_v15, %s10258_s8  ;;  %7167 = vrot.lane.b32.xlu0 %v6983_v41, %s10258_s8  ;;  %v6989_v52 = vmul.f32 %v6860_v9, %v6669_v28  ;;  %v9770_v9 = vpop.eup %9769  ;;  %9801 = vtanh.f32 %v14009_v26 }
 0x659   : > { %v9772_v0 = vpop.eup %9771  ;;  %9803 = vtanh.f32 %v14026_v48 }
 0x65a   : > { %v6862_v47 = vpop.permute.xlu1 %6861  ;;  %v9774_v32 = vpop.eup %9773  ;;  %9805 = vtanh.f32 %v14029_v63 }
 0x65b   : > { %v14651_v27 = vpop.permute.xlu0 %7055  ;;  %8143 = vst.msk [vmem:[#allocation3 + $0x1f8] sm:$0xff] %vm8079_vm8, %v6862_v47  ;;  %v9776_v46 = vpop.eup %9775  ;;  %9807 = vtanh.f32 %v14044_v30 }
 0x65c   : > { %7169 = vrot.lane.b32.xlu1 %v6984_v31, %s10258_s8  ;;  %7171 = vrot.lane.b32.xlu0 %v6985_v29, %s10258_s8  ;;  %v6670_v29 = vld [vmem:[%s15328_s5 + $0x1f8] sm:$0xff]  ;;  %v9778_v42 = vpop.eup %9777  ;;  %9809 = vtanh.f32 %v14047_v7 }
 0x65d   : > { %v6990_v39 = vmul.f32 %v6862_v47, %v6670_v29  ;;  %v9780_v61 = vpop.eup %9779  ;;  %9811 = vtanh.f32 %v14064_v24 }
 0x65e   : > { %v14663_v15 = vpop.permute.xlu1 %7057  ;;  %v9782_v49 = vpop.eup %9781  ;;  %9813 = vtanh.f32 %v14067_v18 }
 0x65f   : > { %v14665_v41 = vpop.permute.xlu0 %7059  ;;  %v9784_v1 = vpop.eup %9783  ;;  %9815 = vtanh.f32 %v14084_v23 }
 0x660   : > { %7173 = vrot.lane.b32.xlu1 %v6986_v62, %s10258_s8  ;;  %7175 = vrot.lane.b32.xlu0 %v6987_v38, %s10258_s8  ;;  %v9786_v36 = vpop.eup %9785 }
 0x661   : > { %v9788_v58 = vpop.eup %9787 }
 0x662   : > { %v14677_v4 = vpop.permute.xlu1 %7061  ;;  %v9790_v16 = vpop.eup %9789 }
 0x663   : > { %v14679_v31 = vpop.permute.xlu0 %7063  ;;  %v9792_v2 = vpop.eup %9791 }
 0x664   : > { %7177 = vrot.lane.b32.xlu1 %v6988_v21, %s10258_s8  ;;  %7179 = vrot.lane.b32.xlu0 %v6989_v52, %s10258_s8  ;;  %v9794_v54 = vpop.eup %9793 }
 0x665   : > { %v9796_v25 = vpop.eup %9795 }
 0x666   : > { %v14688_v60 = vpop.permute.xlu1 %7065  ;;  %v9798_v26 = vpop.eup %9797 }
 0x667   : > { %v14690_v13 = vpop.permute.xlu0 %7067  ;;  %v9800_v48 = vpop.eup %9799 }
 0x668   : > { %7181 = vrot.lane.b32.xlu1 %v6990_v39, %s10258_s8  ;;  %7823 = vrot.lane.b32.xlu0 %v9770_v9, %s10257_s28  ;;  %v9802_v63 = vpop.eup %9801 }
 0x669   : > { %v9804_v30 = vpop.eup %9803 }
 0x66a   : > { %v14696_v33 = vpop.permute.xlu1 %7069  ;;  %v9806_v7 = vpop.eup %9805 }
 0x66b   : > { %v14698_v35 = vpop.permute.xlu0 %7071  ;;  %v9808_v24 = vpop.eup %9807 }
 0x66c   : > { %7825 = vrot.lane.b32.xlu1 %v9772_v0, %s10257_s28  ;;  %7827 = vrot.lane.b32.xlu0 %v9774_v32, %s10257_s28  ;;  %v9810_v18 = vpop.eup %9809 }
 0x66d   : > { %v9812_v23 = vpop.eup %9811 }
 0x66e   : > { %v14704_v47 = vpop.permute.xlu1 %7073 }
 0x66f   : > { %v14706_v62 = vpop.permute.xlu0 %7075 }
 0x670   : > { %7829 = vrot.lane.b32.xlu1 %v9776_v46, %s10257_s28  ;;  %7831 = vrot.lane.b32.xlu0 %v9778_v42, %s10257_s28 }
 0x672   : > { %v14712_v38 = vpop.permute.xlu1 %7077 }
 0x673   : > { %v14714_v34 = vpop.permute.xlu0 %7079 }
 0x674   : > { %7833 = vrot.lane.b32.xlu1 %v9780_v61, %s10257_s28  ;;  %7835 = vrot.lane.b32.xlu0 %v9782_v49, %s10257_s28 }
 0x676   : > { %v14720_v28 = vpop.permute.xlu1 %7081 }
 0x677   : > { %v14722_v21 = vpop.permute.xlu0 %7083 }
 0x678   : > { %7837 = vrot.lane.b32.xlu1 %v9784_v1, %s10257_s28  ;;  %7839 = vrot.lane.b32.xlu0 %v9786_v36, %s10257_s28  ;;  %v15979_v1 = vld [vmem:[#allocation46_spill] sm:$0xff] }
 0x679   : > { %9817 = vtanh.f32 %v15979_v1 }
 0x67a   : > { %v14728_v52 = vpop.permute.xlu1 %7085 }
 0x67b   : > { %v14730_v29 = vpop.permute.xlu0 %7087 }
 0x67c   : > { %7841 = vrot.lane.b32.xlu1 %v9788_v58, %s10257_s28  ;;  %7843 = vrot.lane.b32.xlu0 %v9790_v16, %s10257_s28  ;;  %v15980_v16 = vld [vmem:[#allocation43_spill] sm:$0xff] }
 0x67d   : > { %9819 = vtanh.f32 %v15980_v16  ;;  %v15987_v16 = vld [vmem:[#allocation47_spill] sm:$0xff] }
 0x67e   : > { %v14736_v39 = vpop.permute.xlu1 %7089 }
 0x67f   : > { %v14738_v9 = vpop.permute.xlu0 %7091 }
 0x680   : > { %7845 = vrot.lane.b32.xlu1 %v9792_v2, %s10257_s28  ;;  %7847 = vrot.lane.b32.xlu0 %v9794_v54, %s10257_s28  ;;  %v15981_v2 = vld [vmem:[#allocation42_spill] sm:$0xff] }
 0x681   : > { %9821 = vtanh.f32 %v15981_v2 }
 0x682   : > { %v14744_v0 = vpop.permute.xlu1 %7093 }
 0x683   : > { %v14746_v32 = vpop.permute.xlu0 %7095 }
 0x684   : > { %7849 = vrot.lane.b32.xlu1 %v9796_v25, %s10257_s28  ;;  %7851 = vrot.lane.b32.xlu0 %v9798_v26, %s10257_s28  ;;  %v9814_v26 = vpop.eup %9813 }
 0x686   : > { %v14752_v46 = vpop.permute.xlu1 %7097 }
 0x687   : > { %v14754_v42 = vpop.permute.xlu0 %7099 }
 0x688   : > { %7853 = vrot.lane.b32.xlu1 %v9800_v48, %s10257_s28  ;;  %7855 = vrot.lane.b32.xlu0 %v9802_v63, %s10257_s28  ;;  %v15982_v48 = vld [vmem:[#allocation39_spill] sm:$0xff]  ;;  %v15983_v63 = vld [vmem:[#allocation45_spill] sm:$0xff] }
 0x689   : > { %9823 = vtanh.f32 %v15982_v48 }
 0x68a   : > { %v14760_v61 = vpop.permute.xlu1 %7101  ;;  %9825 = vtanh.f32 %v15983_v63  ;;  %v15990_v63 = vld [vmem:[#allocation48_spill] sm:$0xff] }
 0x68b   : > { %v14762_v49 = vpop.permute.xlu0 %7103 }
 0x68c   : > { %7857 = vrot.lane.b32.xlu1 %v9804_v30, %s10257_s28  ;;  %7859 = vrot.lane.b32.xlu0 %v9806_v7, %s10257_s28  ;;  %v9816_v30 = vpop.eup %9815 }
 0x68e   : > { %v14768_v36 = vpop.permute.xlu1 %7105 }
 0x68f   : > { %v14770_v58 = vpop.permute.xlu0 %7107 }
 0x690   : > { %7861 = vrot.lane.b32.xlu1 %v9808_v24, %s10257_s28  ;;  %7863 = vrot.lane.b32.xlu0 %v9810_v18, %s10257_s28  ;;  %v9818_v24 = vpop.eup %9817  ;;  %v15986_v18 = vld [vmem:[#allocation41_spill] sm:$0xff] }
 0x691   : > { %9827 = vtanh.f32 %v15986_v18  ;;  %v9820_v2 = vpop.eup %9819 }
 0x692   : > { %v14776_v54 = vpop.permute.xlu1 %7109  ;;  %9829 = vtanh.f32 %v15987_v16  ;;  %v9822_v48 = vpop.eup %9821 }
 0x693   : > { %v14778_v25 = vpop.permute.xlu0 %7111  ;;  %9831 = vtanh.f32 %v15990_v63  ;;  %v9824_v18 = vpop.eup %9823 }
 0x694   : > { %7865 = vrot.lane.b32.xlu1 %v9812_v23, %s10257_s28  ;;  %7867 = vrot.lane.b32.xlu0 %v9814_v26, %s10257_s28  ;;  %v9826_v16 = vpop.eup %9825 }
 0x696   : > { %v14784_v7 = vpop.permute.xlu1 %7113 }
 0x697   : > { %15984 = vst [vmem:[#allocation198_spill] sm:$0xff] %v14784_v7  ;;  %v14786_v1 = vpop.permute.xlu0 %7115  ;;  %v15993_v7 = vld [vmem:[#allocation49_spill] sm:$0xff] }
 0x698   : > { %15985 = vst [vmem:[#allocation55_spill] sm:$0xff] %v14786_v1  ;;  %7869 = vrot.lane.b32.xlu1 %v9816_v30, %s10257_s28  ;;  %7871 = vrot.lane.b32.xlu0 %v9818_v24, %s10257_s28  ;;  %v15991_v1 = vld [vmem:[#allocation50_spill] sm:$0xff] }
 0x699   : > { %9833 = vtanh.f32 %v15991_v1 }
 0x69a   : > { %v14792_v23 = vpop.permute.xlu1 %7117  ;;  %9835 = vtanh.f32 %v15993_v7 }
 0x69b   : > { %15988 = vst [vmem:[#allocation56_spill] sm:$0xff] %v14792_v23  ;;  %v14794_v26 = vpop.permute.xlu0 %7119  ;;  %v9828_v63 = vpop.eup %9827  ;;  %v15995_v23 = vld [vmem:[#allocation44_spill] sm:$0xff] }
 0x69c   : > { %15989 = vst [vmem:[#allocation58_spill] sm:$0xff] %v14794_v26  ;;  %7873 = vrot.lane.b32.xlu1 %v9820_v2, %s10257_s28  ;;  %7875 = vrot.lane.b32.xlu0 %v9822_v48, %s10257_s28  ;;  %v15994_v26 = vld [vmem:[#allocation51_spill] sm:$0xff]  ;;  %v9830_v1 = vpop.eup %9829 }
 0x69d   : > { %9837 = vtanh.f32 %v15994_v26  ;;  %v9832_v7 = vpop.eup %9831 }
 0x69e   : > { %v14800_v30 = vpop.permute.xlu1 %7121  ;;  %9839 = vtanh.f32 %v15995_v23 }
 0x69f   : > { %v14802_v24 = vpop.permute.xlu0 %7123 }
 0x6a0   : > { %15992 = vst [vmem:[#allocation57_spill] sm:$0xff] %v14802_v24  ;;  %7877 = vrot.lane.b32.xlu1 %v9824_v18, %s10257_s28  ;;  %7879 = vrot.lane.b32.xlu0 %v9826_v16, %s10257_s28  ;;  %v15996_v24 = vld [vmem:[#allocation52_spill] sm:$0xff] }
 0x6a1   : > { %9841 = vtanh.f32 %v15996_v24 }
 0x6a2   : > { %v14808_v2 = vpop.permute.xlu1 %7125  ;;  %9843 = vtanh.f32 %v14211_v20 }
 0x6a3   : > { %v14810_v48 = vpop.permute.xlu0 %7127  ;;  %v9834_v26 = vpop.eup %9833  ;;  %9845 = vtanh.f32 %v14213_v10 }
 0x6a4   : > { %7881 = vrot.lane.b32.xlu1 %v9828_v63, %s10257_s28  ;;  %7883 = vrot.lane.b32.xlu0 %v9830_v1, %s10257_s28  ;;  %v9836_v23 = vpop.eup %9835  ;;  %9847 = vtanh.f32 %v14225_v14 }
 0x6a5   : > { %9849 = vtanh.f32 %v14227_v43 }
 0x6a6   : > { %v14816_v18 = vpop.permute.xlu1 %7129  ;;  %9851 = vtanh.f32 %v14239_v19 }
 0x6a7   : > { %v14818_v16 = vpop.permute.xlu0 %7131  ;;  %v9838_v24 = vpop.eup %9837  ;;  %9853 = vtanh.f32 %v14241_v17 }
 0x6a8   : > { %7885 = vrot.lane.b32.xlu1 %v9832_v7, %s10257_s28  ;;  %7887 = vrot.lane.b32.xlu0 %v9834_v26, %s10257_s28  ;;  %v9840_v20 = vpop.eup %9839  ;;  %9855 = vtanh.f32 %v14251_v44 }
 0x6a9   : > { %9857 = vtanh.f32 %v14253_v6 }
 0x6aa   : > { %v14824_v63 = vpop.permute.xlu1 %7133  ;;  %9859 = vtanh.f32 %v14261_v37 }
 0x6ab   : > { %v14826_v1 = vpop.permute.xlu0 %7135  ;;  %v9842_v10 = vpop.eup %9841  ;;  %9861 = vtanh.f32 %v14263_v40 }
 0x6ac   : > { %7889 = vrot.lane.b32.xlu1 %v9836_v23, %s10257_s28  ;;  %7891 = vrot.lane.b32.xlu0 %v9838_v24, %s10257_s28  ;;  %v9844_v14 = vpop.eup %9843  ;;  %9863 = vtanh.f32 %v14271_v22 }
 0x6ad   : > { %v9846_v43 = vpop.eup %9845  ;;  %9865 = vtanh.f32 %v14273_v5  ;;  %v15999_v5 = vld [vmem:[#allocation101_spill] sm:$0xff] }
 0x6ae   : > { %v14832_v7 = vpop.permute.xlu1 %7137  ;;  %v9848_v19 = vpop.eup %9847  ;;  %9867 = vtanh.f32 %v14281_v12  ;;  %v16000_v12 = vld [vmem:[#allocation7_spill] sm:$0xff] }
 0x6af   : > { %v14834_v26 = vpop.permute.xlu0 %7139  ;;  %v9850_v17 = vpop.eup %9849  ;;  %9869 = vtanh.f32 %v14283_v45  ;;  %v7249_v45 = vadd.f32 %v14665_v41, %v16000_v12  ;;  %v16006_v12 = vld [vmem:[#allocation103_spill] sm:$0xff] }
 0x6b0   : > { %7893 = vrot.lane.b32.xlu1 %v9840_v20, %s10257_s28  ;;  %7895 = vrot.lane.b32.xlu0 %v9842_v10, %s10257_s28  ;;  %v9852_v44 = vpop.eup %9851  ;;  %9871 = vtanh.f32 %v14291_v11  ;;  %v16001_v11 = vld [vmem:[#allocation100_spill] sm:$0xff] }
 0x6b1   : > { %v9854_v6 = vpop.eup %9853  ;;  %9873 = vtanh.f32 %v14293_v53 }
 0x6b2   : > { %v14840_v23 = vpop.permute.xlu1 %7141  ;;  %v9856_v37 = vpop.eup %9855  ;;  %9875 = vtanh.f32 %v14301_v51 }
 0x6b3   : > { %v14842_v24 = vpop.permute.xlu0 %7143  ;;  %9877 = vtanh.f32 %v14303_v57 }
 0x6b4   : > { %7897 = vrot.lane.b32.xlu1 %v9844_v14, %s10257_s28  ;;  %7899 = vrot.lane.b32.xlu0 %v9846_v43, %s10257_s28  ;;  %9879 = vtanh.f32 %v14311_v59  ;;  %v16007_v59 = vld [vmem:[#allocation197_spill] sm:$0xff] }
 0x6b5   : > { %9881 = vtanh.f32 %v14313_v3  ;;  %v16008_v3 = vld [vmem:[#allocation12_spill] sm:$0xff] }
 0x6b6   : > { %v14848_v20 = vpop.permute.xlu1 %7145 }
 0x6b7   : > { %v14850_v10 = vpop.permute.xlu0 %7147 }
 0x6b8   : > { %7901 = vrot.lane.b32.xlu1 %v9848_v19, %s10257_s28  ;;  %7903 = vrot.lane.b32.xlu0 %v9850_v17, %s10257_s28  ;;  %v9858_v17 = vpop.eup %9857 }
 0x6ba   : > { %v14856_v14 = vpop.permute.xlu1 %7149 }
 0x6bb   : > { %v14858_v43 = vpop.permute.xlu0 %7151 }
 0x6bc   : > { %15997 = vst [vmem:[#allocation59_spill] sm:$0xff] %v14858_v43  ;;  %7905 = vrot.lane.b32.xlu1 %v9852_v44, %s10257_s28  ;;  %7907 = vrot.lane.b32.xlu0 %v9854_v6, %s10257_s28  ;;  %v15998_v43 = vld [vmem:[#allocation6_spill] sm:$0xff]  ;;  %v7248_v44 = vadd.f32 %v14663_v15, %v15999_v5  ;;  %v9860_v6 = vpop.eup %9859  ;;  %v8821_v5 = vmul.f32 -1.442695, %v7249_v45 }
 0x6bd   : > { %v7247_v22 = vadd.f32 %v14651_v27, %v15998_v43  ;;  %v7250_v27 = vadd.f32 %v14677_v4, %v16001_v11  ;;  %v9862_v15 = vpop.eup %9861  ;;  %v16005_v4 = vld [vmem:[#allocation54_spill] sm:$0xff]  ;;  %v7252_v11 = vadd.f32 %v14688_v60, %v16006_v12 }
 0x6be   : > { %v14866_v40 = vpop.permute.xlu1 %7153  ;;  %v8820_v51 = vmul.f32 -1.442695, %v7248_v44  ;;  %v9864_v57 = vpop.eup %9863  ;;  %9883 = vtanh.f32 %v16005_v4  ;;  %v7253_v44 = vadd.f32 %v14690_v13, %v16008_v3  ;;  %v16009_v45 = vld [vmem:[#allocation102_spill] sm:$0xff] }
 0x6bf   : > { %v14868_v19 = vpop.permute.xlu0 %7155  ;;  %9885 = vtanh.f32 %v16007_v59  ;;  %v7254_v4 = vadd.f32 %v14696_v33, %v16009_v45  ;;  %v16010_v59 = vld [vmem:[#allocation13_spill] sm:$0xff] }
 0x6c0   : > { %7909 = vrot.lane.b32.xlu1 %v9856_v37, %s10257_s28  ;;  %7911 = vrot.lane.b32.xlu0 %v9858_v17, %s10257_s28  ;;  %v8819_v37 = vmul.f32 -1.442695, %v7247_v22  ;;  %v16004_v17 = vld [vmem:[#allocation10_spill] sm:$0xff]  ;;  %v8822_v22 = vmul.f32 -1.442695, %v7250_v27  ;;  %v7255_v3 = vadd.f32 %v14698_v35, %v16010_v59 }
 0x6c1   : > { %v7251_v41 = vadd.f32 %v14679_v31, %v16004_v17  ;;  %v8824_v27 = vmul.f32 -1.442695, %v7252_v11  ;;  %v8825_v12 = vmul.f32 -1.442695, %v7253_v44  ;;  %v16012_v44 = vld [vmem:[#allocation15_spill] sm:$0xff] }
 0x6c2   : > { %v14884_v43 = vpop.permute.xlu1 %7157  ;;  %9887 = vpow2.f32 %v8819_v37  ;;  %v7257_v45 = vadd.f32 %v14706_v62, %v16012_v44 }
 0x6c3   : > { %16002 = vst [vmem:[#allocation62_spill] sm:$0xff] %v14884_v43  ;;  %v14886_v53 = vpop.permute.xlu0 %7159  ;;  %9889 = vpow2.f32 %v8820_v51  ;;  %v8823_v17 = vmul.f32 -1.442695, %v7251_v41 }
 0x6c4   : > { %16003 = vst [vmem:[#allocation5_spill] sm:$0xff] %v14886_v53  ;;  %7913 = vrot.lane.b32.xlu1 %v9860_v6, %s10257_s28  ;;  %7915 = vrot.lane.b32.xlu0 %v9862_v15, %s10257_s28  ;;  %v9866_v53 = vpop.eup %9865  ;;  %9891 = vpow2.f32 %v8821_v5 }
 0x6c5   : > { %v9868_v6 = vpop.eup %9867  ;;  %9893 = vpow2.f32 %v8822_v22  ;;  %v8827_v22 = vmul.f32 -1.442695, %v7255_v3 }
 0x6c6   : > { %v14900_v43 = vpop.permute.xlu1 %7161  ;;  %v9870_v15 = vpop.eup %9869  ;;  %9895 = vtanh.f32 %v14332_v56 }
 0x6c7   : > { %v14902_v31 = vpop.permute.xlu0 %7163  ;;  %v9872_v60 = vpop.eup %9871  ;;  %9897 = vpow2.f32 %v8823_v17 }
 0x6c8   : > { %7917 = vrot.lane.b32.xlu1 %v9864_v57, %s10257_s28  ;;  %7919 = vrot.lane.b32.xlu0 %v9866_v53, %s10257_s28  ;;  %v9874_v13 = vpop.eup %9873  ;;  %v8826_v57 = vmul.f32 -1.442695, %v7254_v4  ;;  %v16011_v53 = vld [vmem:[#allocation16_spill] sm:$0xff]  ;;  %9899 = vpow2.f32 %v8824_v27 }
 0x6c9   : > { %v9876_v41 = vpop.eup %9875  ;;  %v7256_v5 = vadd.f32 %v14704_v47, %v16011_v53  ;;  %9901 = vpow2.f32 %v8825_v12  ;;  %v16013_v47 = vld [vmem:[#allocation14_spill] sm:$0xff]  ;;  %v8829_v12 = vmul.f32 -1.442695, %v7257_v45 }
 0x6ca   : > { %v14910_v37 = vpop.permute.xlu1 %7165  ;;  %v9878_v33 = vpop.eup %9877  ;;  %9903 = vtanh.f32 %v14334_v55 }
 0x6cb   : > { %v14912_v51 = vpop.permute.xlu0 %7167  ;;  %v9880_v11 = vpop.eup %9879  ;;  %9905 = vpow2.f32 %v8826_v57 }
 0x6cc   : > { %7921 = vrot.lane.b32.xlu1 %v9868_v6, %s10257_s28  ;;  %7923 = vrot.lane.b32.xlu0 %v9870_v15, %s10257_s28  ;;  %v9882_v35 = vpop.eup %9881  ;;  %v7258_v6 = vadd.f32 %v14712_v38, %v16013_v47  ;;  %v8828_v15 = vmul.f32 -1.442695, %v7256_v5  ;;  %9907 = vtanh.f32 %v14344_v50 }
 0x6cd   : > { %v9884_v17 = vpop.eup %9883  ;;  %9909 = vpow2.f32 %v8827_v22  ;;  %v16016_v22 = vld [vmem:[#allocation53_spill] sm:$0xff] }
 0x6ce   : > { %v14921_v59 = vpop.permute.xlu1 %7169  ;;  %v9886_v4 = vpop.eup %9885  ;;  %9911 = vtanh.f32 %v14346_v8  ;;  %v8830_v38 = vmul.f32 -1.442695, %v7258_v6 }
 0x6cf   : > { %v14923_v56 = vpop.permute.xlu0 %7171  ;;  %v9888_v27 = vpop.eup %9887  ;;  %9913 = vpow2.f32 %v8828_v15 }
 0x6d0   : > { %7925 = vrot.lane.b32.xlu1 %v9872_v60, %s10257_s28  ;;  %7927 = vrot.lane.b32.xlu0 %v9874_v13, %s10257_s28  ;;  %v9890_v62 = vpop.eup %9889  ;;  %v7503_v5 = vadd.f32 1.0, %v9888_v27  ;;  %v16015_v60 = vld [vmem:[#allocation17_spill] sm:$0xff]  ;;  %9915 = vtanh.f32 %v16016_v22 }
 0x6d1   : > { %v9892_v55 = vpop.eup %9891  ;;  %v7259_v13 = vadd.f32 %v14714_v34, %v16015_v60  ;;  %v7504_v44 = vadd.f32 1.0, %v9890_v62  ;;  %9917 = vpow2.f32 %v8829_v12  ;;  %v16019_v22 = vld [vmem:[#allocation109_spill] sm:$0xff] }
 0x6d2   : > { %v14931_v3 = vpop.permute.xlu1 %7173  ;;  %v9894_v57 = vpop.eup %9893  ;;  %v7505_v47 = vadd.f32 1.0, %v9892_v55  ;;  %9919 = vpow2.f32 %v8830_v38 }
 0x6d3   : > { %v14933_v53 = vpop.permute.xlu0 %7175  ;;  %v9896_v50 = vpop.eup %9895  ;;  %v7506_v15 = vadd.f32 1.0, %v9894_v57  ;;  %9921 = vrcp.f32 %v7503_v5  ;;  %v8831_v34 = vmul.f32 -1.442695, %v7259_v13  ;;  %v7261_v57 = vadd.f32 %v14722_v21, %v16019_v22 }
 0x6d4   : > { %16014 = vst [vmem:[#allocation60_spill] sm:$0xff] %v14933_v53  ;;  %7929 = vrot.lane.b32.xlu1 %v9876_v41, %s10257_s28  ;;  %7931 = vrot.lane.b32.xlu0 %v9878_v33, %s10257_s28  ;;  %v9898_v45 = vpop.eup %9897  ;;  %v16018_v41 = vld [vmem:[#allocation20_spill] sm:$0xff]  ;;  %9923 = vrcp.f32 %v7504_v44 }
 0x6d5   : > { %v9900_v6 = vpop.eup %9899  ;;  %v7260_v33 = vadd.f32 %v14720_v28, %v16018_v41  ;;  %v7507_v12 = vadd.f32 1.0, %v9898_v45  ;;  %9925 = vrcp.f32 %v7505_v47  ;;  %v16021_v41 = vld [vmem:[#allocation18_spill] sm:$0xff]  ;;  %v8833_v47 = vmul.f32 -1.442695, %v7261_v57 }
 0x6d6   : > { %v14941_v53 = vpop.permute.xlu1 %7177  ;;  %v9902_v27 = vpop.eup %9901  ;;  %v7508_v60 = vadd.f32 1.0, %v9900_v6  ;;  %9927 = vrcp.f32 %v7506_v15  ;;  %v16022_v6 = vld [vmem:[#allocation22_spill] sm:$0xff] }
 0x6d7   : > { %v14943_v8 = vpop.permute.xlu0 %7179  ;;  %v9904_v62 = vpop.eup %9903  ;;  %9929 = vpow2.f32 %v8831_v34  ;;  %v7263_v15 = vadd.f32 %v14730_v29, %v16022_v6 }
 0x6d8   : > { %16017 = vst [vmem:[#allocation11_spill] sm:$0xff] %v14943_v8  ;;  %7933 = vrot.lane.b32.xlu1 %v9880_v11, %s10257_s28  ;;  %7935 = vrot.lane.b32.xlu0 %v9882_v35, %s10257_s28  ;;  %v9906_v55 = vpop.eup %9905  ;;  %v7509_v8 = vadd.f32 1.0, %v9902_v27  ;;  %v8832_v11 = vmul.f32 -1.442695, %v7260_v33  ;;  %v7262_v35 = vadd.f32 %v14728_v52, %v16021_v41  ;;  %9931 = vrcp.f32 %v7507_v12  ;;  %v16023_v12 = vld [vmem:[#allocation113_spill] sm:$0xff] }
 0x6d9   : > { %v9908_v13 = vpop.eup %9907  ;;  %v7510_v45 = vadd.f32 1.0, %v9906_v55  ;;  %9933 = vrcp.f32 %v7508_v60  ;;  %v7264_v55 = vadd.f32 %v14736_v39, %v16023_v12  ;;  %v8835_v29 = vmul.f32 -1.442695, %v7263_v15  ;;  %v16026_v15 = vld [vmem:[#allocation115_spill] sm:$0xff] }
 0x6da   : > { %v14951_v38 = vpop.permute.xlu1 %7181  ;;  %v9910_v28 = vpop.eup %9909  ;;  %9935 = vrcp.f32 %v7509_v8  ;;  %v8834_v52 = vmul.f32 -1.442695, %v7262_v35 }
 0x6db   : > { %16020 = vst [vmem:[#allocation63_spill] sm:$0xff] %v14951_v38  ;;  %v7824_v5 = vpop.permute.xlu0 %7823  ;;  %v9912_v44 = vpop.eup %9911  ;;  %v7511_v33 = vadd.f32 1.0, %v9910_v28  ;;  %9937 = vpow2.f32 %v8832_v11  ;;  %v16024_v11 = vld [vmem:[#allocation23_spill] sm:$0xff] }
 0x6dc   : > { %7937 = vrot.lane.b32.xlu1 %v9884_v17, %s10257_s28  ;;  %7939 = vrot.lane.b32.xlu0 %v9886_v4, %s10257_s28  ;;  %v9914_v21 = vpop.eup %9913  ;;  %9939 = vrcp.f32 %v7510_v45  ;;  %v7265_v35 = vadd.f32 %v14738_v9, %v16024_v11  ;;  %v16027_v11 = vld [vmem:[#allocation29_spill] sm:$0xff] }
 0x6dd   : > { %v9916_v34 = vpop.eup %9915  ;;  %v7512_v4 = vadd.f32 1.0, %v9914_v21  ;;  %9941 = vpow2.f32 %v8833_v47  ;;  %v8836_v21 = vmul.f32 -1.442695, %v7264_v55 }
 0x6de   : > { %v7826_v27 = vpop.permute.xlu1 %7825  ;;  %v9918_v38 = vpop.eup %9917  ;;  %9943 = vrcp.f32 %v7511_v33 }
 0x6df   : > { %v7828_v22 = vpop.permute.xlu0 %7827  ;;  %v9920_v17 = vpop.eup %9919  ;;  %v7513_v28 = vadd.f32 1.0, %v9918_v38  ;;  %9945 = vpow2.f32 %v8834_v52  ;;  %v7267_v38 = vadd.f32 %v14746_v32, %v16026_v15  ;;  %v8837_v52 = vmul.f32 -1.442695, %v7265_v35 }
 0x6e0   : > { %7941 = vrot.lane.b32.xlu1 %v9896_v50, %s10257_s28  ;;  %7943 = vrot.lane.b32.xlu0 %v9904_v62, %s10257_s28  ;;  %v9922_v60 = vpop.eup %9921  ;;  %v7514_v6 = vadd.f32 1.0, %v9920_v17  ;;  %v16025_v62 = vld [vmem:[#allocation112_spill] sm:$0xff]  ;;  %9947 = vrcp.f32 %v7512_v4 }
 0x6e1   : > { %v9924_v8 = vpop.eup %9923  ;;  %v7266_v45 = vadd.f32 %v14744_v0, %v16025_v62  ;;  %9949 = vpow2.f32 %v8835_v29  ;;  %v8015_v33 = vmul.f32 %v9922_v60, %v7824_v5  ;;  %v7268_v0 = vadd.f32 %v14752_v46, %v16027_v11  ;;  %v16028_v62 = vld [vmem:[#allocation114_spill] sm:$0xff]  ;;  %v16029_v29 = vld [vmem:[#allocation28_spill] sm:$0xff] }
 0x6e2   : > { %v7830_v57 = vpop.permute.xlu1 %7829  ;;  %v9926_v50 = vpop.eup %9925  ;;  %9951 = vrcp.f32 %v7513_v28  ;;  %v7269_v4 = vadd.f32 %v14754_v42, %v16028_v62  ;;  %v8839_v60 = vmul.f32 -1.442695, %v7267_v38  ;;  %v7270_v28 = vadd.f32 %v14760_v61, %v16029_v29  ;;  %v16030_v62 = vld [vmem:[#allocation117_spill] sm:$0xff] }
 0x6e3   : > { %v7832_v41 = vpop.permute.xlu0 %7831  ;;  %v9928_v39 = vpop.eup %9927  ;;  %9953 = vrcp.f32 %v7514_v6  ;;  %v8016_v35 = vmul.f32 %v9924_v8, %v7826_v27  ;;  %v8017_v46 = vmul.f32 %v9926_v50, %v7828_v22  ;;  %v8840_v11 = vmul.f32 -1.442695, %v7268_v0 }
 0x6e4   : > { %7945 = vrot.lane.b32.xlu1 %v9908_v13, %s10257_s28  ;;  %7947 = vrot.lane.b32.xlu0 %v9912_v44, %s10257_s28  ;;  %v9930_v47 = vpop.eup %9929  ;;  %v8838_v44 = vmul.f32 -1.442695, %v7266_v45  ;;  %9955 = vpow2.f32 %v8836_v21  ;;  %v8842_v22 = vmul.f32 -1.442695, %v7270_v28  ;;  %v8018_v8 = vmul.f32 %v9928_v39, %v7830_v57  ;;  %v16032_v57 = vld [vmem:[#allocation116_spill] sm:$0xff] }
 0x6e5   : > { %v9932_v17 = vpop.eup %9931  ;;  %v7515_v5 = vadd.f32 1.0, %v9930_v47  ;;  %9957 = vpow2.f32 %v8837_v52 }
 0x6e6   : > { %v7834_v9 = vpop.permute.xlu1 %7833  ;;  %v9934_v13 = vpop.eup %9933  ;;  %9959 = vpow2.f32 %v8838_v44  ;;  %v8019_v50 = vmul.f32 %v9932_v17, %v7832_v41  ;;  %v16031_v44 = vld [vmem:[#allocation33_spill] sm:$0xff]  ;;  %v7273_v41 = vadd.f32 %v14770_v58, %v16032_v57 }
 0x6e7   : > { %v7836_v12 = vpop.permute.xlu0 %7835  ;;  %v9936_v32 = vpop.eup %9935  ;;  %9961 = vrcp.f32 %v7515_v5  ;;  %v8020_v17 = vmul.f32 %v9934_v13, %v7834_v9 }
 0x6e8   : > { %7949 = vrot.lane.b32.xlu1 %v9916_v34, %s10257_s28  ;;  %8208 = vrot.lane.b32.xlu0 %v8015_v33, %s10256_s10  ;;  %v9938_v55 = vpop.eup %9937  ;;  %v8841_v34 = vmul.f32 -1.442695, %v7269_v4  ;;  %v7271_v33 = vadd.f32 %v14762_v49, %v16030_v62  ;;  %9963 = vpow2.f32 %v8839_v60  ;;  %v7272_v49 = vadd.f32 %v14768_v36, %v16031_v44 }
 0x6e9   : > { %v9940_v45 = vpop.eup %9939  ;;  %v7516_v61 = vadd.f32 1.0, %v9938_v55  ;;  %9965 = vpow2.f32 %v8840_v11  ;;  %v8021_v60 = vmul.f32 %v9936_v32, %v7836_v12  ;;  %v16033_v11 = vld [vmem:[#allocation32_spill] sm:$0xff]  ;;  %v8845_v58 = vmul.f32 -1.442695, %v7273_v41  ;;  %v16034_v12 = vld [vmem:[#allocation119_spill] sm:$0xff] }
 0x6ea   : > { %v7838_v15 = vpop.permute.xlu1 %7837  ;;  %v9942_v42 = vpop.eup %9941  ;;  %9967 = vpow2.f32 %v8841_v34  ;;  %v8843_v29 = vmul.f32 -1.442695, %v7271_v33  ;;  %v7275_v13 = vadd.f32 %v14778_v25, %v16034_v12 }
 0x6eb   : > { %v7840_v6 = vpop.permute.xlu0 %7839  ;;  %v9944_v21 = vpop.eup %9943  ;;  %v7517_v0 = vadd.f32 1.0, %v9942_v42  ;;  %9969 = vrcp.f32 %v7516_v61  ;;  %v7274_v42 = vadd.f32 %v14776_v54, %v16033_v11  ;;  %v8022_v32 = vmul.f32 %v9940_v45, %v7838_v15  ;;  %v16038_v11 = vld [vmem:[#allocation55_spill] sm:$0xff] }
 0x6ec   : > { %8210 = vrot.lane.b32.xlu1 %v8016_v35, %s10256_s10  ;;  %8212 = vrot.lane.b32.xlu0 %v8017_v46, %s10256_s10  ;;  %v9946_v27 = vpop.eup %9945  ;;  %9971 = vpow2.f32 %v8842_v22  ;;  %v8844_v46 = vmul.f32 -1.442695, %v7272_v49  ;;  %v8023_v61 = vmul.f32 %v9944_v21, %v7840_v6  ;;  %v8847_v6 = vmul.f32 -1.442695, %v7275_v13 }
 0x6ed   : > { %v9948_v52 = vpop.eup %9947  ;;  %v7518_v55 = vadd.f32 1.0, %v9946_v27  ;;  %9973 = vrcp.f32 %v7517_v0  ;;  %v8846_v54 = vmul.f32 -1.442695, %v7274_v42 }
 0x6ee   : > { %v7842_v47 = vpop.permute.xlu1 %7841  ;;  %v9950_v4 = vpop.eup %9949  ;;  %9975 = vpow2.f32 %v8843_v29  ;;  %v16036_v29 = vld [vmem:[#allocation198_spill] sm:$0xff] }
 0x6ef   : > { %v7844_v38 = vpop.permute.xlu0 %7843  ;;  %v9952_v5 = vpop.eup %9951  ;;  %v7519_v34 = vadd.f32 1.0, %v9950_v4  ;;  %9977 = vrcp.f32 %v7518_v55  ;;  %v16035_v4 = vld [vmem:[#allocation122_spill] sm:$0xff]  ;;  %v8024_v45 = vmul.f32 %v9948_v52, %v7842_v47  ;;  %v16039_v52 = vld [vmem:[#allocation36_spill] sm:$0xff] }
 0x6f0   : > { %8214 = vrot.lane.b32.xlu1 %v8018_v8, %s10256_s10  ;;  %8216 = vrot.lane.b32.xlu0 %v8019_v50, %s10256_s10  ;;  %v9954_v39 = vpop.eup %9953  ;;  %9979 = vpow2.f32 %v8844_v46  ;;  %v7276_v25 = vadd.f32 %v16036_v29, %v16035_v4  ;;  %v8025_v21 = vmul.f32 %v9952_v5, %v7844_v38  ;;  %v16037_v46 = vld [vmem:[#allocation35_spill] sm:$0xff]  ;;  %v16040_v5 = vld [vmem:[#allocation56_spill] sm:$0xff]  ;;  %v16043_v29 = vld [vmem:[#allocation129_spill] sm:$0xff] }
 0x6f1   : > { %v9956_v36 = vpop.eup %9955  ;;  %9981 = vrcp.f32 %v7519_v34  ;;  %v7277_v42 = vadd.f32 %v16038_v11, %v16037_v46 }
 0x6f2   : > { %v7846_v28 = vpop.permute.xlu1 %7845  ;;  %v9958_v62 = vpop.eup %9957  ;;  %v7520_v9 = vadd.f32 1.0, %v9956_v36  ;;  %9983 = vpow2.f32 %v8845_v58  ;;  %v8848_v47 = vmul.f32 -1.442695, %v7276_v25  ;;  %v7278_v58 = vadd.f32 %v16040_v5, %v16039_v52 }
 0x6f3   : > { %v7848_v35 = vpop.permute.xlu0 %7847  ;;  %v9960_v33 = vpop.eup %9959  ;;  %v7521_v0 = vadd.f32 1.0, %v9958_v62 }
 0x6f4   : > { %8218 = vrot.lane.b32.xlu1 %v8020_v17, %s10256_s10  ;;  %8220 = vrot.lane.b32.xlu0 %v8021_v60, %s10256_s10  ;;  %v9962_v8 = vpop.eup %9961  ;;  %v7522_v49 = vadd.f32 1.0, %v9960_v33  ;;  %9985 = vrcp.f32 %v7520_v9  ;;  %v8026_v33 = vmul.f32 %v9954_v39, %v7846_v28  ;;  %v7280_v39 = vadd.f32 %v14800_v30, %v16043_v29 }
 0x6f5   : > { %v9964_v50 = vpop.eup %9963  ;;  %9987 = vpow2.f32 %v8846_v54  ;;  %v8027_v9 = vmul.f32 %v9962_v8, %v7848_v35  ;;  %v16041_v54 = vld [vmem:[#allocation125_spill] sm:$0xff]  ;;  %v8850_v35 = vmul.f32 -1.442695, %v7278_v58 }
 0x6f6   : > { %v7850_v27 = vpop.permute.xlu1 %7849  ;;  %v9966_v44 = vpop.eup %9965  ;;  %v7523_v17 = vadd.f32 1.0, %v9964_v50  ;;  %9989 = vrcp.f32 %v7521_v0  ;;  %v16042_v50 = vld [vmem:[#allocation58_spill] sm:$0xff] }
 0x6f7   : > { %v7852_v22 = vpop.permute.xlu0 %7851  ;;  %v9968_v15 = vpop.eup %9967  ;;  %v7524_v36 = vadd.f32 1.0, %v9966_v44  ;;  %9991 = vrcp.f32 %v7522_v49  ;;  %v7279_v0 = vadd.f32 %v16042_v50, %v16041_v54  ;;  %v8849_v44 = vmul.f32 -1.442695, %v7277_v42 }
 0x6f8   : > { %8222 = vrot.lane.b32.xlu1 %v8022_v32, %s10256_s10  ;;  %8224 = vrot.lane.b32.xlu0 %v8023_v61, %s10256_s10  ;;  %v9970_v41 = vpop.eup %9969  ;;  %v7525_v62 = vadd.f32 1.0, %v9968_v15  ;;  %9993 = vpow2.f32 %v8847_v6  ;;  %v8852_v42 = vmul.f32 -1.442695, %v7280_v39 }
 0x6f9   : > { %v9972_v60 = vpop.eup %9971  ;;  %9995 = vrcp.f32 %v7523_v17  ;;  %v8028_v8 = vmul.f32 %v9970_v41, %v7850_v27  ;;  %v16044_v17 = vld [vmem:[#allocation123_spill] sm:$0xff] }
 0x6fa   : > { %v7854_v55 = vpop.permute.xlu1 %7853  ;;  %v9974_v34 = vpop.eup %9973  ;;  %v7526_v61 = vadd.f32 1.0, %v9972_v60  ;;  %9997 = vrcp.f32 %v7524_v36  ;;  %v16045_v60 = vld [vmem:[#allocation57_spill] sm:$0xff]  ;;  %v16046_v27 = vld [vmem:[#allocation127_spill] sm:$0xff] }
 0x6fb   : > { %v7856_v57 = vpop.permute.xlu0 %7855  ;;  %v9976_v38 = vpop.eup %9975  ;;  %9999 = vrcp.f32 %v7525_v62  ;;  %v8029_v25 = vmul.f32 %v9974_v34, %v7852_v22  ;;  %v7281_v36 = vadd.f32 %v16045_v60, %v16044_v17  ;;  %v7282_v22 = vadd.f32 %v14808_v2, %v16046_v27 }
 0x6fc   : > { %8226 = vrot.lane.b32.xlu1 %v8024_v45, %s10256_s10  ;;  %8228 = vrot.lane.b32.xlu0 %v8025_v21, %s10256_s10  ;;  %v9978_v32 = vpop.eup %9977  ;;  %v7527_v4 = vadd.f32 1.0, %v9976_v38  ;;  %10001 = vpow2.f32 %v8848_v47  ;;  %v8851_v21 = vmul.f32 -1.442695, %v7279_v0  ;;  %v16049_v0 = vld [vmem:[#allocation130_spill] sm:$0xff] }
 0x6fd   : > { %v9980_v49 = vpop.eup %9979  ;;  %10003 = vrcp.f32 %v7526_v61  ;;  %v8030_v62 = vmul.f32 %v9978_v32, %v7854_v55  ;;  %v8853_v58 = vmul.f32 -1.442695, %v7281_v36  ;;  %v16047_v61 = vld [vmem:[#allocation132_spill] sm:$0xff]  ;;  %v8854_v50 = vmul.f32 -1.442695, %v7282_v22  ;;  %v16048_v55 = vld [vmem:[#allocation134_spill] sm:$0xff] }
 0x6fe   : > { %v7858_v12 = vpop.permute.xlu1 %7857  ;;  %v9982_v28 = vpop.eup %9981  ;;  %v7528_v11 = vadd.f32 1.0, %v9980_v49  ;;  %10005 = vpow2.f32 %v8849_v44  ;;  %v7283_v54 = vadd.f32 %v14810_v48, %v16047_v61  ;;  %v7285_v44 = vadd.f32 %v14818_v16, %v16049_v0  ;;  %v16053_v61 = vld [vmem:[#allocation138_spill] sm:$0xff] }
 0x6ff   : > { %v7860_v13 = vpop.permute.xlu0 %7859  ;;  %v9984_v45 = vpop.eup %9983  ;;  %10007 = vrcp.f32 %v7527_v4  ;;  %v8031_v47 = vmul.f32 %v9982_v28, %v7856_v57  ;;  %v7284_v57 = vadd.f32 %v14816_v18, %v16048_v55 }
 0x700   : > { %8230 = vrot.lane.b32.xlu1 %v8026_v33, %s10256_s10  ;;  %8232 = vrot.lane.b32.xlu0 %v8027_v9, %s10256_s10  ;;  %v9986_v46 = vpop.eup %9985  ;;  %v7529_v34 = vadd.f32 1.0, %v9984_v45  ;;  %10009 = vpow2.f32 %v8850_v35 }
 0x701   : > { %v9988_v30 = vpop.eup %9987  ;;  %10011 = vpow2.f32 %v8851_v21  ;;  %v8032_v49 = vmul.f32 %v9986_v46, %v7858_v12  ;;  %v8856_v16 = vmul.f32 -1.442695, %v7284_v57  ;;  %v16051_v21 = vld [vmem:[#allocation139_spill] sm:$0xff] }
 0x702   : > { %v7862_v15 = vpop.permute.xlu1 %7861  ;;  %v9990_v41 = vpop.eup %9989  ;;  %10013 = vrcp.f32 %v7528_v11  ;;  %v7530_v9 = vadd.f32 1.0, %v9988_v30  ;;  %v7287_v17 = vadd.f32 %v14826_v1, %v16051_v21 }
 0x703   : > { %v7864_v6 = vpop.permute.xlu0 %7863  ;;  %v9992_v5 = vpop.eup %9991  ;;  %10015 = vpow2.f32 %v8852_v42  ;;  %v8033_v4 = vmul.f32 %v9990_v41, %v7860_v13  ;;  %v8857_v13 = vmul.f32 -1.442695, %v7285_v44 }
 0x704   : > { %8234 = vrot.lane.b32.xlu1 %v8028_v8, %s10256_s10  ;;  %8236 = vrot.lane.b32.xlu0 %v8029_v25, %s10256_s10  ;;  %v9994_v33 = vpop.eup %9993  ;;  %10017 = vrcp.f32 %v7529_v34  ;;  %v8855_v8 = vmul.f32 -1.442695, %v7283_v54  ;;  %v16050_v25 = vld [vmem:[#allocation133_spill] sm:$0xff]  ;;  %v8034_v60 = vmul.f32 %v9992_v5, %v7862_v15  ;;  %v16052_v34 = vld [vmem:[#allocation143_spill] sm:$0xff]  ;;  %v7289_v54 = vadd.f32 %v14834_v26, %v16053_v61 }
 0x705   : > { %v9996_v2 = vpop.eup %9995  ;;  %v7531_v28 = vadd.f32 1.0, %v9994_v33  ;;  %10019 = vpow2.f32 %v8853_v58  ;;  %v7286_v45 = vadd.f32 %v14824_v63, %v16050_v25  ;;  %v7288_v1 = vadd.f32 %v14832_v7, %v16052_v34 }
 0x706   : > { %v7866_v38 = vpop.permute.xlu1 %7865  ;;  %v9998_v32 = vpop.eup %9997  ;;  %10021 = vrcp.f32 %v7530_v9  ;;  %v8035_v36 = vmul.f32 %v9996_v2, %v7864_v6  ;;  %v8859_v6 = vmul.f32 -1.442695, %v7287_v17  ;;  %v16056_v17 = vld [vmem:[#allocation150_spill] sm:$0xff] }
 0x707   : > { %v7868_v52 = vpop.permute.xlu0 %7867  ;;  %v10000_v48 = vpop.eup %9999  ;;  %10023 = vpow2.f32 %v8854_v50  ;;  %v8858_v27 = vmul.f32 -1.442695, %v7286_v45  ;;  %v8860_v55 = vmul.f32 -1.442695, %v7288_v1 }
 0x708   : > { %8238 = vrot.lane.b32.xlu1 %v8030_v62, %s10256_s10  ;;  %8240 = vrot.lane.b32.xlu0 %v8031_v47, %s10256_s10  ;;  %v10002_v35 = vpop.eup %10001  ;;  %10025 = vrcp.f32 %v7531_v28  ;;  %v8036_v62 = vmul.f32 %v9998_v32, %v7866_v38  ;;  %v8037_v47 = vmul.f32 %v10000_v48, %v7868_v52  ;;  %v16054_v38 = vld [vmem:[#allocation140_spill] sm:$0xff]  ;;  %v8861_v48 = vmul.f32 -1.442695, %v7289_v54  ;;  %v16055_v28 = vld [vmem:[#allocation147_spill] sm:$0xff] }
 0x709   : > { %v10004_v18 = vpop.eup %10003  ;;  %v7532_v42 = vadd.f32 1.0, %v10002_v35  ;;  %10027 = vpow2.f32 %v8855_v8  ;;  %v7290_v52 = vadd.f32 %v14840_v23, %v16054_v38  ;;  %v7291_v35 = vadd.f32 %v14842_v24, %v16055_v28 }
 0x70a   : > { %v7870_v29 = vpop.permute.xlu1 %7869  ;;  %v10006_v12 = vpop.eup %10005  ;;  %10029 = vpow2.f32 %v8856_v16 }
 0x70b   : > { %v7872_v39 = vpop.permute.xlu0 %7871  ;;  %v10008_v30 = vpop.eup %10007  ;;  %v7533_v41 = vadd.f32 1.0, %v10006_v12  ;;  %10031 = vpow2.f32 %v8857_v13  ;;  %v8038_v0 = vmul.f32 %v10004_v18, %v7870_v29  ;;  %v8862_v25 = vmul.f32 -1.442695, %v7290_v52  ;;  %v16061_v52 = vld [vmem:[#allocation158_spill] sm:$0xff] }
 0x70c   : > { %8242 = vrot.lane.b32.xlu1 %v8032_v49, %s10256_s10  ;;  %8244 = vrot.lane.b32.xlu0 %v8033_v4, %s10256_s10  ;;  %v10010_v63 = vpop.eup %10009  ;;  %10033 = vrcp.f32 %v7532_v42  ;;  %v8039_v44 = vmul.f32 %v10008_v30, %v7872_v39  ;;  %v8863_v13 = vmul.f32 -1.442695, %v7291_v35  ;;  %v16057_v42 = vld [vmem:[#allocation144_spill] sm:$0xff] }
 0x70d   : > { %v10012_v22 = vpop.eup %10011  ;;  %v7534_v9 = vadd.f32 1.0, %v10010_v63  ;;  %10035 = vpow2.f32 %v8858_v27  ;;  %v7293_v63 = vadd.f32 %v14850_v10, %v16057_v42 }
 0x70e   : > { %v7874_v46 = vpop.permute.xlu1 %7873  ;;  %v10014_v15 = vpop.eup %10013  ;;  %v7535_v50 = vadd.f32 1.0, %v10012_v22  ;;  %10037 = vrcp.f32 %v7533_v41 }
 0x70f   : > { %v7876_v11 = vpop.permute.xlu0 %7875  ;;  %v10016_v33 = vpop.eup %10015  ;;  %10039 = vpow2.f32 %v8859_v6  ;;  %v8040_v29 = vmul.f32 %v10014_v15, %v7874_v46  ;;  %v8865_v54 = vmul.f32 -1.442695, %v7293_v63 }
 0x710   : > { %8246 = vrot.lane.b32.xlu1 %v8034_v60, %s10256_s10  ;;  %8248 = vrot.lane.b32.xlu0 %v8035_v36, %s10256_s10  ;;  %v10018_v2 = vpop.eup %10017  ;;  %v7536_v32 = vadd.f32 1.0, %v10016_v33  ;;  %10041 = vrcp.f32 %v7534_v9  ;;  %v7292_v60 = vadd.f32 %v14848_v20, %v16056_v17 }
 0x711   : > { %v10020_v7 = vpop.eup %10019  ;;  %10043 = vrcp.f32 %v7535_v50  ;;  %v8041_v39 = vmul.f32 %v10018_v2, %v7876_v11 }
 0x712   : > { %v7878_v5 = vpop.permute.xlu1 %7877  ;;  %v10022_v57 = vpop.eup %10021  ;;  %v7537_v8 = vadd.f32 1.0, %v10020_v7  ;;  %10045 = vpow2.f32 %v8860_v55  ;;  %v8864_v6 = vmul.f32 -1.442695, %v7292_v60 }
 0x713   : > { %v7880_v58 = vpop.permute.xlu0 %7879  ;;  %v10024_v4 = vpop.eup %10023  ;;  %10047 = vrcp.f32 %v7536_v32  ;;  %v8042_v27 = vmul.f32 %v10022_v57, %v7878_v5  ;;  %v16059_v5 = vld [vmem:[#allocation155_spill] sm:$0xff]  ;;  %v7296_v57 = vadd.f32 %v14866_v40, %v16061_v52 }
 0x714   : > { %8250 = vrot.lane.b32.xlu1 %v8036_v62, %s10256_s10  ;;  %8252 = vrot.lane.b32.xlu0 %v8037_v47, %s10256_s10  ;;  %v10026_v23 = vpop.eup %10025  ;;  %10049 = vpow2.f32 %v8861_v48  ;;  %v7538_v24 = vadd.f32 1.0, %v10024_v4  ;;  %v16058_v62 = vld [vmem:[#allocation148_spill] sm:$0xff] }
 0x715   : > { %v10028_v45 = vpop.eup %10027  ;;  %10051 = vrcp.f32 %v7537_v8  ;;  %v8043_v22 = vmul.f32 %v10026_v23, %v7880_v58  ;;  %v7294_v47 = vadd.f32 %v14856_v14, %v16058_v62  ;;  %v16060_v58 = vld [vmem:[#allocation59_spill] sm:$0xff] }
 0x716   : > { %v7882_v49 = vpop.permute.xlu1 %7881  ;;  %v10030_v12 = vpop.eup %10029  ;;  %v7539_v30 = vadd.f32 1.0, %v10028_v45  ;;  %10053 = vpow2.f32 %v8862_v25  ;;  %v7295_v9 = vadd.f32 %v16060_v58, %v16059_v5  ;;  %v8868_v45 = vmul.f32 -1.442695, %v7296_v57 }
 0x717   : > { %v7884_v26 = vpop.permute.xlu0 %7883  ;;  %v10032_v21 = vpop.eup %10031  ;;  %v7540_v11 = vadd.f32 1.0, %v10030_v12  ;;  %10055 = vpow2.f32 %v8863_v13 }
 0x718   : > { %8254 = vrot.lane.b32.xlu1 %v8038_v0, %s10256_s10  ;;  %8256 = vrot.lane.b32.xlu0 %v8039_v44, %s10256_s10  ;;  %v10034_v36 = vpop.eup %10033  ;;  %v7541_v15 = vadd.f32 1.0, %v10032_v21  ;;  %10057 = vrcp.f32 %v7538_v24  ;;  %v8866_v0 = vmul.f32 -1.442695, %v7294_v47  ;;  %v8867_v4 = vmul.f32 -1.442695, %v7295_v9  ;;  %v16065_v24 = vld [vmem:[#allocation161_spill] sm:$0xff] }
 0x719   : > { %v10036_v46 = vpop.eup %10035  ;;  %10059 = vrcp.f32 %v7539_v30  ;;  %v8044_v2 = vmul.f32 %v10034_v36, %v7882_v49  ;;  %v16062_v49 = vld [vmem:[#allocation152_spill] sm:$0xff] }
 0x71a   : > { %v7886_v18 = vpop.permute.xlu1 %7885  ;;  %v10038_v1 = vpop.eup %10037  ;;  %v7542_v10 = vadd.f32 1.0, %v10036_v46  ;;  %10061 = vrcp.f32 %v7540_v11 }
 0x71b   : > { %v7888_v16 = vpop.permute.xlu0 %7887  ;;  %v10040_v20 = vpop.eup %10039  ;;  %v8045_v50 = vmul.f32 %v10038_v1, %v7884_v26  ;;  %10063 = vrcp.f32 %v7541_v15  ;;  %v7297_v26 = vadd.f32 %v14868_v19, %v16062_v49 }
 0x71c   : > { %8258 = vrot.lane.b32.xlu1 %v8040_v29, %s10256_s10  ;;  %8260 = vrot.lane.b32.xlu0 %v8041_v39, %s10256_s10  ;;  %v10042_v33 = vpop.eup %10041  ;;  %v7543_v14 = vadd.f32 1.0, %v10040_v20  ;;  %10065 = vpow2.f32 %v8864_v6  ;;  %v16063_v29 = vld [vmem:[#allocation156_spill] sm:$0xff]  ;;  %v16064_v39 = vld [vmem:[#allocation62_spill] sm:$0xff] }
 0x71d   : > { %v10044_v61 = vpop.eup %10043  ;;  %10067 = vrcp.f32 %v7542_v10  ;;  %v8046_v35 = vmul.f32 %v10042_v33, %v7886_v18  ;;  %v7298_v12 = vadd.f32 %v16064_v39, %v16063_v29  ;;  %v8869_v21 = vmul.f32 -1.442695, %v7297_v26  ;;  %v16066_v18 = vld [vmem:[#allocation5_spill] sm:$0xff] }
 0x71e   : > { %v7890_v41 = vpop.permute.xlu1 %7889  ;;  %v10046_v38 = vpop.eup %10045  ;;  %10069 = vpow2.f32 %v8865_v54  ;;  %v8047_v8 = vmul.f32 %v10044_v61, %v7888_v16  ;;  %v7299_v16 = vadd.f32 %v16066_v18, %v16065_v24  ;;  %v16069_v61 = vld [vmem:[#allocation164_spill] sm:$0xff]  ;;  %v16073_v24 = vld [vmem:[#allocation170_spill] sm:$0xff] }
 0x71f   : > { %v7892_v34 = vpop.permute.xlu0 %7891  ;;  %v10048_v32 = vpop.eup %10047  ;;  %v7544_v28 = vadd.f32 1.0, %v10046_v38  ;;  %10071 = vrcp.f32 %v7543_v14  ;;  %v8870_v63 = vmul.f32 -1.442695, %v7298_v12  ;;  %v7302_v54 = vadd.f32 %v14910_v37, %v16069_v61 }
 0x720   : > { %8262 = vrot.lane.b32.xlu1 %v8042_v27, %s10256_s10  ;;  %8264 = vrot.lane.b32.xlu0 %v8043_v22, %s10256_s10  ;;  %v10050_v44 = vpop.eup %10049  ;;  %10073 = vpow2.f32 %v8866_v0  ;;  %v8048_v36 = vmul.f32 %v10048_v32, %v7890_v41  ;;  %v16067_v27 = vld [vmem:[#allocation165_spill] sm:$0xff]  ;;  %v8871_v6 = vmul.f32 -1.442695, %v7299_v16  ;;  %v7306_v18 = vadd.f32 %v14931_v3, %v16073_v24 }
 0x721   : > { %v10052_v48 = vpop.eup %10051  ;;  %v7545_v13 = vadd.f32 1.0, %v10050_v44  ;;  %10075 = vpow2.f32 %v8867_v4  ;;  %v7300_v22 = vadd.f32 %v14900_v43, %v16067_v27  ;;  %v8874_v4 = vmul.f32 -1.442695, %v7302_v54 }
 0x722   : > { %v7894_v7 = vpop.permute.xlu1 %7893  ;;  %v10054_v25 = vpop.eup %10053  ;;  %10077 = vrcp.f32 %v7544_v28  ;;  %v8049_v30 = vmul.f32 %v10052_v48, %v7892_v34  ;;  %v16068_v34 = vld [vmem:[#allocation160_spill] sm:$0xff]  ;;  %v16071_v48 = vld [vmem:[#allocation173_spill] sm:$0xff]  ;;  %v8878_v3 = vmul.f32 -1.442695, %v7306_v18 }
 0x723   : > { %v7896_v55 = vpop.permute.xlu0 %7895  ;;  %v10056_v19 = vpop.eup %10055  ;;  %v7546_v60 = vadd.f32 1.0, %v10054_v25  ;;  %10079 = vpow2.f32 %v8868_v45  ;;  %v7301_v62 = vadd.f32 %v14902_v31, %v16068_v34  ;;  %v8872_v58 = vmul.f32 -1.442695, %v7300_v22 }
 0x724   : > { %8266 = vrot.lane.b32.xlu1 %v8044_v2, %s10256_s10  ;;  %8268 = vrot.lane.b32.xlu0 %v8045_v50, %s10256_s10  ;;  %v10058_v17 = vpop.eup %10057  ;;  %10081 = vrcp.f32 %v7545_v13  ;;  %v7547_v15 = vadd.f32 1.0, %v10056_v19  ;;  %v7304_v28 = vadd.f32 %v14921_v59, %v16071_v48 }
 0x725   : > { %v10060_v42 = vpop.eup %10059  ;;  %10083 = vpow2.f32 %v8869_v21  ;;  %v8050_v47 = vmul.f32 %v10058_v17, %v7894_v7  ;;  %v8873_v7 = vmul.f32 -1.442695, %v7301_v62  ;;  %v16074_v17 = vld [vmem:[#allocation175_spill] sm:$0xff] }
 0x726   : > { %v7898_v23 = vpop.permute.xlu1 %7897  ;;  %v10062_v1 = vpop.eup %10061  ;;  %10085 = vrcp.f32 %v7546_v60  ;;  %v8051_v33 = vmul.f32 %v10060_v42, %v7896_v55  ;;  %v16070_v55 = vld [vmem:[#allocation169_spill] sm:$0xff]  ;;  %v16075_v60 = vld [vmem:[#allocation60_spill] sm:$0xff] }
 0x727   : > { %v7900_v40 = vpop.permute.xlu0 %7899  ;;  %v10064_v20 = vpop.eup %10063  ;;  %10087 = vpow2.f32 %v8870_v63  ;;  %v7303_v38 = vadd.f32 %v14912_v51, %v16070_v55  ;;  %v8052_v14 = vmul.f32 %v10062_v1, %v7898_v23  ;;  %v16072_v51 = vld [vmem:[#allocation166_spill] sm:$0xff] }
 0x728   : > { %8270 = vrot.lane.b32.xlu1 %v8046_v35, %s10256_s10  ;;  %8272 = vrot.lane.b32.xlu0 %v8047_v8, %s10256_s10  ;;  %v10066_v41 = vpop.eup %10065  ;;  %10089 = vrcp.f32 %v7547_v15  ;;  %v8053_v52 = vmul.f32 %v10064_v20, %v7900_v40  ;;  %v7305_v35 = vadd.f32 %v14923_v56, %v16072_v51  ;;  %v8876_v56 = vmul.f32 -1.442695, %v7304_v28  ;;  %v16076_v15 = vld [vmem:[#allocation179_spill] sm:$0xff] }
 0x729   : > { %v10068_v43 = vpop.eup %10067  ;;  %v7548_v50 = vadd.f32 1.0, %v10066_v41  ;;  %10091 = vpow2.f32 %v8871_v6  ;;  %v8875_v23 = vmul.f32 -1.442695, %v7303_v38  ;;  %v7308_v20 = vadd.f32 %v14941_v53, %v16076_v15  ;;  %v16077_v6 = vld [vmem:[#allocation174_spill] sm:$0xff]  ;;  %v16078_v41 = vld [vmem:[#allocation11_spill] sm:$0xff] }
 0x72a   : > { %v7902_v46 = vpop.permute.xlu1 %7901  ;;  %v10070_v9 = vpop.eup %10069  ;;  %10093 = vpow2.f32 %v8872_v58  ;;  %v8877_v21 = vmul.f32 -1.442695, %v7305_v35  ;;  %v7309_v34 = vadd.f32 %v16078_v41, %v16077_v6 }
 0x72b   : > { %v7904_v11 = vpop.permute.xlu0 %7903  ;;  %v10072_v2 = vpop.eup %10071  ;;  %v7549_v44 = vadd.f32 1.0, %v10070_v9  ;;  %10095 = vrcp.f32 %v7548_v50  ;;  %v8054_v40 = vmul.f32 %v10068_v43, %v7902_v46  ;;  %v8880_v54 = vmul.f32 -1.442695, %v7308_v20 }
 0x72c   : > { %8274 = vrot.lane.b32.xlu1 %v8048_v36, %s10256_s10  ;;  %8276 = vrot.lane.b32.xlu0 %v8049_v30, %s10256_s10  ;;  %v10074_v31 = vpop.eup %10073  ;;  %10097 = vpow2.f32 %v8873_v7  ;;  %v8055_v25 = vmul.f32 %v10072_v2, %v7904_v11  ;;  %v7307_v36 = vadd.f32 %v16075_v60, %v16074_v17  ;;  %v8881_v2 = vmul.f32 -1.442695, %v7309_v34  ;;  %v16080_v7 = vld [vmem:[#allocation63_spill] sm:$0xff] }
 0x72d   : > { %v10076_v0 = vpop.eup %10075  ;;  %v7550_v26 = vadd.f32 1.0, %v10074_v31  ;;  %10099 = vrcp.f32 %v7549_v44  ;;  %v16079_v31 = vld [vmem:[#allocation178_spill] sm:$0xff] }
 0x72e   : > { %v7906_v10 = vpop.permute.xlu1 %7905  ;;  %v10078_v37 = vpop.eup %10077  ;;  %v7551_v12 = vadd.f32 1.0, %v10076_v0  ;;  %10101 = vpow2.f32 %v8874_v4  ;;  %v8879_v62 = vmul.f32 -1.442695, %v7307_v36  ;;  %v7310_v55 = vadd.f32 %v16080_v7, %v16079_v31 }
 0x72f   : > { %v7908_v5 = vpop.permute.xlu0 %7907  ;;  %v10080_v49 = vpop.eup %10079  ;;  %10103 = vrcp.f32 %v7550_v26  ;;  %v8056_v30 = vmul.f32 %v10078_v37, %v7906_v10 }
 0x730   : > { %8278 = vrot.lane.b32.xlu1 %v8050_v47, %s10256_s10  ;;  %8280 = vrot.lane.b32.xlu0 %v8051_v33, %s10256_s10  ;;  %v10082_v8 = vpop.eup %10081  ;;  %v7552_v19 = vadd.f32 1.0, %v10080_v49  ;;  %10105 = vpow2.f32 %v8875_v23  ;;  %v8882_v26 = vmul.f32 -1.442695, %v7310_v55 }
 0x731   : > { %v10084_v39 = vpop.eup %10083  ;;  %v8057_v46 = vmul.f32 %v10082_v8, %v7908_v5  ;;  %10107 = vrcp.f32 %v7551_v12 }
 0x732   : > { %v7910_v57 = vpop.permute.xlu1 %7909  ;;  %v10086_v13 = vpop.eup %10085  ;;  %v7553_v27 = vadd.f32 1.0, %v10084_v39  ;;  %10109 = vrcp.f32 %v7552_v19 }
 0x733   : > { %v7912_v32 = vpop.permute.xlu0 %7911  ;;  %v10088_v59 = vpop.eup %10087  ;;  %10111 = vpow2.f32 %v8876_v56  ;;  %v8058_v47 = vmul.f32 %v10086_v13, %v7910_v57 }
 0x734   : > { %8282 = vrot.lane.b32.xlu1 %v8052_v14, %s10256_s10  ;;  %8284 = vrot.lane.b32.xlu0 %v8053_v52, %s10256_s10  ;;  %v10090_v16 = vpop.eup %10089  ;;  %v7554_v22 = vadd.f32 1.0, %v10088_v59  ;;  %10113 = vpow2.f32 %v8877_v21 }
 0x735   : > { %v10092_v63 = vpop.eup %10091  ;;  %v8059_v33 = vmul.f32 %v10090_v16, %v7912_v32  ;;  %10115 = vrcp.f32 %v7553_v27 }
 0x736   : > { %v7914_v45 = vpop.permute.xlu1 %7913  ;;  %v10094_v1 = vpop.eup %10093  ;;  %v7555_v58 = vadd.f32 1.0, %v10092_v63  ;;  %10117 = vrcp.f32 %v7554_v22 }
 0x737   : > { %v7916_v29 = vpop.permute.xlu0 %7915  ;;  %v10096_v43 = vpop.eup %10095  ;;  %v7556_v61 = vadd.f32 1.0, %v10094_v1  ;;  %10119 = vpow2.f32 %v8878_v3 }
 0x738   : > { %8286 = vrot.lane.b32.xlu1 %v8054_v40, %s10256_s10  ;;  %8288 = vrot.lane.b32.xlu0 %v8055_v25, %s10256_s10  ;;  %v10098_v9 = vpop.eup %10097  ;;  %10121 = vpow2.f32 %v8879_v62  ;;  %v8060_v38 = vmul.f32 %v10096_v43, %v7914_v45 }
 0x739   : > { %v10100_v53 = vpop.eup %10099  ;;  %10123 = vrcp.f32 %v7555_v58  ;;  %v7557_v0 = vadd.f32 1.0, %v10098_v9 }
 0x73a   : > { %v7918_v11 = vpop.permute.xlu1 %7917  ;;  %v10102_v50 = vpop.eup %10101  ;;  %v8061_v14 = vmul.f32 %v10100_v53, %v7916_v29  ;;  %10125 = vrcp.f32 %v7556_v61 }
 0x73b   : > { %v7920_v42 = vpop.permute.xlu0 %7919  ;;  %v10104_v32 = vpop.eup %10103  ;;  %v7558_v4 = vadd.f32 1.0, %v10102_v50  ;;  %10127 = vpow2.f32 %v8880_v54 }
 0x73c   : > { %8290 = vrot.lane.b32.xlu1 %v8056_v30, %s10256_s10  ;;  %8292 = vrot.lane.b32.xlu0 %v8057_v46, %s10256_s10  ;;  %v10106_v44 = vpop.eup %10105  ;;  %10129 = vpow2.f32 %v8881_v2  ;;  %v8062_v48 = vmul.f32 %v10104_v32, %v7918_v11 }
 0x73d   : > { %v10108_v37 = vpop.eup %10107  ;;  %10131 = vrcp.f32 %v7557_v0  ;;  %v7559_v23 = vadd.f32 1.0, %v10106_v44 }
 0x73e   : > { %v7922_v10 = vpop.permute.xlu1 %7921  ;;  %v10110_v49 = vpop.eup %10109  ;;  %v8063_v28 = vmul.f32 %v10108_v37, %v7920_v42  ;;  %10133 = vrcp.f32 %v7558_v4 }
 0x73f   : > { %v7924_v5 = vpop.permute.xlu0 %7923  ;;  %v10112_v8 = vpop.eup %10111  ;;  %10135 = vpow2.f32 %v8882_v26  ;;  %v8064_v39 = vmul.f32 %v10110_v49, %v7922_v10 }
 0x740   : > { %8294 = vrot.lane.b32.xlu1 %v8058_v47, %s10256_s10  ;;  %8296 = vrot.lane.b32.xlu0 %v8059_v33, %s10256_s10  ;;  %v10114_v40 = vpop.eup %10113  ;;  %v7560_v29 = vadd.f32 1.0, %v10112_v8  ;;  %10137 = vrcp.f32 %v7559_v23 }
 0x741   : > { %v10116_v25 = vpop.eup %10115  ;;  %v7561_v56 = vadd.f32 1.0, %v10114_v40 }
 0x742   : > { %v7926_v52 = vpop.permute.xlu1 %7925  ;;  %v10118_v45 = vpop.eup %10117  ;;  %v8065_v12 = vmul.f32 %v10116_v25, %v7924_v5  ;;  %10139 = vrcp.f32 %v7560_v29 }
 0x743   : > { %v7928_v57 = vpop.permute.xlu0 %7927  ;;  %v10120_v59 = vpop.eup %10119  ;;  %v8066_v17 = vmul.f32 %v10118_v45, %v7926_v52  ;;  %10141 = vrcp.f32 %v7561_v56 }
 0x744   : > { %8298 = vrot.lane.b32.xlu1 %v8060_v38, %s10256_s10  ;;  %8300 = vrot.lane.b32.xlu0 %v8061_v14, %s10256_s10  ;;  %v10122_v21 = vpop.eup %10121  ;;  %v7562_v16 = vadd.f32 1.0, %v10120_v59 }
 0x745   : > { %v10124_v24 = vpop.eup %10123  ;;  %v7563_v11 = vadd.f32 1.0, %v10122_v21 }
 0x746   : > { %v7930_v51 = vpop.permute.xlu1 %7929  ;;  %v10126_v18 = vpop.eup %10125  ;;  %v8067_v60 = vmul.f32 %v10124_v24, %v7928_v57  ;;  %10143 = vrcp.f32 %v7562_v16 }
 0x747   : > { %v7932_v35 = vpop.permute.xlu0 %7931  ;;  %v10128_v46 = vpop.eup %10127  ;;  %v8068_v22 = vmul.f32 %v10126_v18, %v7930_v51  ;;  %10145 = vrcp.f32 %v7563_v11 }
 0x748   : > { %8302 = vrot.lane.b32.xlu1 %v8062_v48, %s10256_s10  ;;  %8304 = vrot.lane.b32.xlu0 %v8063_v28, %s10256_s10  ;;  %v10130_v42 = vpop.eup %10129  ;;  %v7564_v27 = vadd.f32 1.0, %v10128_v46 }
 0x749   : > { %v10132_v63 = vpop.eup %10131  ;;  %v7565_v6 = vadd.f32 1.0, %v10130_v42 }
 0x74a   : > { %v7934_v13 = vpop.permute.xlu1 %7933  ;;  %v8069_v1 = vmul.f32 %v10132_v63, %v7932_v35  ;;  %v10134_v20 = vpop.eup %10133  ;;  %10147 = vrcp.f32 %v7564_v27 }
 0x74b   : > { %v7936_v19 = vpop.permute.xlu0 %7935  ;;  %v10136_v41 = vpop.eup %10135  ;;  %v8070_v62 = vmul.f32 %v10134_v20, %v7934_v13  ;;  %10149 = vrcp.f32 %v7565_v6 }
 0x74c   : > { %8306 = vrot.lane.b32.xlu1 %v8064_v39, %s10256_s10  ;;  %8308 = vrot.lane.b32.xlu0 %v8065_v12, %s10256_s10  ;;  %v10138_v34 = vpop.eup %10137  ;;  %v7566_v5 = vadd.f32 1.0, %v10136_v41 }
 0x74d   : > { %v8071_v47 = vmul.f32 %v10138_v34, %v7936_v19  ;;  %v10140_v43 = vpop.eup %10139 }
 0x74e   : > { %v7938_v36 = vpop.permute.xlu1 %7937  ;;  %v10142_v58 = vpop.eup %10141  ;;  %10151 = vrcp.f32 %v7566_v5 }
 0x74f   : > { %v7940_v30 = vpop.permute.xlu0 %7939  ;;  %v8072_v9 = vmul.f32 %v10140_v43, %v7938_v36 }
 0x750   : > { %8310 = vrot.lane.b32.xlu1 %v8066_v17, %s10256_s10  ;;  %8312 = vrot.lane.b32.xlu0 %v8067_v60, %s10256_s10  ;;  %v8073_v61 = vmul.f32 %v10142_v58, %v7940_v30  ;;  %v10144_v2 = vpop.eup %10143 }
 0x751   : > { %v10146_v50 = vpop.eup %10145 }
 0x752   : > { %v7942_v3 = vpop.permute.xlu1 %7941 }
 0x753   : > { %v7944_v15 = vpop.permute.xlu0 %7943  ;;  %v8074_v31 = vmul.f32 %v10144_v2, %v7942_v3 }
 0x754   : > { %8314 = vrot.lane.b32.xlu1 %v8068_v22, %s10256_s10  ;;  %8316 = vrot.lane.b32.xlu0 %v8069_v1, %s10256_s10  ;;  %v8075_v7 = vmul.f32 %v10146_v50, %v7944_v15  ;;  %v10148_v14 = vpop.eup %10147 }
 0x755   : > { %v10150_v52 = vpop.eup %10149 }
 0x756   : > { %v7946_v33 = vpop.permute.xlu1 %7945 }
 0x757   : > { %v7948_v10 = vpop.permute.xlu0 %7947  ;;  %v8076_v57 = vmul.f32 %v10148_v14, %v7946_v33 }
 0x758   : > { %8318 = vrot.lane.b32.xlu1 %v8070_v62, %s10256_s10  ;;  %8320 = vrot.lane.b32.xlu0 %v8071_v47, %s10256_s10  ;;  %v8077_v32 = vmul.f32 %v10150_v52, %v7948_v10  ;;  %v10152_v37 = vpop.eup %10151 }
 0x75a   : > { %v7950_v53 = vpop.permute.xlu1 %7949 }
 0x75b   : > { %v8209_v54 = vpop.permute.xlu0 %8208  ;;  %v8078_v4 = vmul.f32 %v10152_v37, %v7950_v53 }
 0x75c   : > { %8400 = vst.msk [vmem:[%s10320_s9] sm:$0xff] %vm8079_vm8, %v8209_v54  ;;  %8464 = vst.msk [vmem:[#allocation2 + $0x19] sm:$0xff] %vm8079_vm8, %v8209_v54  ;;  %8322 = vrot.lane.b32.xlu1 %v8072_v9, %s10256_s10  ;;  %8324 = vrot.lane.b32.xlu0 %v8073_v61, %s10256_s10 }
 0x75e   : > { %v8211_v55 = vpop.permute.xlu1 %8210 }
 0x75f   : > { %v8213_v38 = vpop.permute.xlu0 %8212  ;;  %8401 = vst.msk [vmem:[%s10320_s9 + $0x8] sm:$0xff] %vm8079_vm8, %v8211_v55  ;;  %8465 = vst.msk [vmem:[#allocation2 + $0x21] sm:$0xff] %vm8079_vm8, %v8211_v55 }
 0x760   : > { %8402 = vst.msk [vmem:[%s10320_s9 + $0x10] sm:$0xff] %vm8079_vm8, %v8213_v38  ;;  %8466 = vst.msk [vmem:[#allocation2 + $0x31] sm:$0xff] %vm8079_vm8, %v8213_v38  ;;  %8326 = vrot.lane.b32.xlu1 %v8074_v31, %s10256_s10  ;;  %8328 = vrot.lane.b32.xlu0 %v8075_v7, %s10256_s10 }
 0x762   : > { %v8215_v0 = vpop.permute.xlu1 %8214 }
 0x763   : > { %v8217_v44 = vpop.permute.xlu0 %8216  ;;  %8403 = vst.msk [vmem:[%s10320_s9 + $0x18] sm:$0xff] %vm8079_vm8, %v8215_v0  ;;  %8467 = vst.msk [vmem:[#allocation2 + $0x39] sm:$0xff] %vm8079_vm8, %v8215_v0 }
 0x764   : > { %8404 = vst.msk [vmem:[%s10320_s9 + $0x20] sm:$0xff] %vm8079_vm8, %v8217_v44  ;;  %8468 = vst.msk [vmem:[#allocation2 + $0x49] sm:$0xff] %vm8079_vm8, %v8217_v44  ;;  %8330 = vrot.lane.b32.xlu1 %v8076_v57, %s10256_s10  ;;  %8332 = vrot.lane.b32.xlu0 %v8077_v32, %s10256_s10 }
 0x766   : > { %v8219_v49 = vpop.permute.xlu1 %8218 }
 0x767   : > { %v8221_v26 = vpop.permute.xlu0 %8220  ;;  %8405 = vst.msk [vmem:[%s10320_s9 + $0x28] sm:$0xff] %vm8079_vm8, %v8219_v49  ;;  %8469 = vst.msk [vmem:[#allocation2 + $0x51] sm:$0xff] %vm8079_vm8, %v8219_v49 }
 0x768   : > { %8406 = vst.msk [vmem:[%s10320_s9 + $0x30] sm:$0xff] %vm8079_vm8, %v8221_v26  ;;  %8470 = vst.msk [vmem:[#allocation2 + $0x61] sm:$0xff] %vm8079_vm8, %v8221_v26  ;;  %8334 = vrot.lane.b32.xlu1 %v8078_v4, %s10256_s10 }
 0x76a   : > { %v8223_v48 = vpop.permute.xlu1 %8222 }
 0x76b   : > { %v8225_v28 = vpop.permute.xlu0 %8224  ;;  %8407 = vst.msk [vmem:[%s10320_s9 + $0x38] sm:$0xff] %vm8079_vm8, %v8223_v48  ;;  %8471 = vst.msk [vmem:[#allocation2 + $0x69] sm:$0xff] %vm8079_vm8, %v8223_v48 }
 0x76c   : > { %8408 = vst.msk [vmem:[%s10320_s9 + $0x40] sm:$0xff] %vm8079_vm8, %v8225_v28  ;;  %8472 = vst.msk [vmem:[#allocation2 + $0x79] sm:$0xff] %vm8079_vm8, %v8225_v28 }
 0x76e   : > { %v8227_v51 = vpop.permute.xlu1 %8226 }
 0x76f   : > { %v8229_v35 = vpop.permute.xlu0 %8228  ;;  %8409 = vst.msk [vmem:[%s10320_s9 + $0x48] sm:$0xff] %vm8079_vm8, %v8227_v51  ;;  %8473 = vst.msk [vmem:[#allocation2 + $0x81] sm:$0xff] %vm8079_vm8, %v8227_v51 }
 0x770   : > { %8410 = vst.msk [vmem:[%s10320_s9 + $0x50] sm:$0xff] %vm8079_vm8, %v8229_v35  ;;  %8474 = vst.msk [vmem:[#allocation2 + $0x91] sm:$0xff] %vm8079_vm8, %v8229_v35 }
 0x772   : > { %v8231_v8 = vpop.permute.xlu1 %8230 }
 0x773   : > { %v8233_v23 = vpop.permute.xlu0 %8232  ;;  %8411 = vst.msk [vmem:[%s10320_s9 + $0x58] sm:$0xff] %vm8079_vm8, %v8231_v8  ;;  %8475 = vst.msk [vmem:[#allocation2 + $0x99] sm:$0xff] %vm8079_vm8, %v8231_v8 }
 0x774   : > { %8412 = vst.msk [vmem:[%s10320_s9 + $0x60] sm:$0xff] %vm8079_vm8, %v8233_v23  ;;  %8476 = vst.msk [vmem:[#allocation2 + $0xa9] sm:$0xff] %vm8079_vm8, %v8233_v23 }
 0x776   : > { %v8235_v40 = vpop.permute.xlu1 %8234 }
 0x777   : > { %v8237_v25 = vpop.permute.xlu0 %8236  ;;  %8413 = vst.msk [vmem:[%s10320_s9 + $0x68] sm:$0xff] %vm8079_vm8, %v8235_v40  ;;  %8477 = vst.msk [vmem:[#allocation2 + $0xb1] sm:$0xff] %vm8079_vm8, %v8235_v40 }
 0x778   : > { %8414 = vst.msk [vmem:[%s10320_s9 + $0x70] sm:$0xff] %vm8079_vm8, %v8237_v25  ;;  %8478 = vst.msk [vmem:[#allocation2 + $0xc1] sm:$0xff] %vm8079_vm8, %v8237_v25 }
 0x77a   : > { %v8239_v45 = vpop.permute.xlu1 %8238 }
 0x77b   : > { %v8241_v29 = vpop.permute.xlu0 %8240  ;;  %8415 = vst.msk [vmem:[%s10320_s9 + $0x78] sm:$0xff] %vm8079_vm8, %v8239_v45  ;;  %8479 = vst.msk [vmem:[#allocation2 + $0xc9] sm:$0xff] %vm8079_vm8, %v8239_v45 }
 0x77c   : > { %8416 = vst.msk [vmem:[%s10320_s9 + $0x80] sm:$0xff] %vm8079_vm8, %v8241_v29  ;;  %8480 = vst.msk [vmem:[#allocation2 + $0xd9] sm:$0xff] %vm8079_vm8, %v8241_v29 }
 0x77e   : > { %v8243_v39 = vpop.permute.xlu1 %8242 }
 0x77f   : > { %v8245_v12 = vpop.permute.xlu0 %8244  ;;  %8417 = vst.msk [vmem:[%s10320_s9 + $0x88] sm:$0xff] %vm8079_vm8, %v8243_v39  ;;  %8481 = vst.msk [vmem:[#allocation2 + $0xe1] sm:$0xff] %vm8079_vm8, %v8243_v39 }
 0x780   : > { %8418 = vst.msk [vmem:[%s10320_s9 + $0x90] sm:$0xff] %vm8079_vm8, %v8245_v12  ;;  %8482 = vst.msk [vmem:[#allocation2 + $0xf1] sm:$0xff] %vm8079_vm8, %v8245_v12 }
 0x782   : > { %v8247_v13 = vpop.permute.xlu1 %8246 }
 0x783   : > { %v8249_v19 = vpop.permute.xlu0 %8248  ;;  %8419 = vst.msk [vmem:[%s10320_s9 + $0x98] sm:$0xff] %vm8079_vm8, %v8247_v13  ;;  %8483 = vst.msk [vmem:[#allocation2 + $0xf9] sm:$0xff] %vm8079_vm8, %v8247_v13 }
 0x784   : > { %8420 = vst.msk [vmem:[%s10320_s9 + $0xa0] sm:$0xff] %vm8079_vm8, %v8249_v19  ;;  %8484 = vst.msk [vmem:[#allocation2 + $0x109] sm:$0xff] %vm8079_vm8, %v8249_v19 }
 0x786   : > { %v8251_v59 = vpop.permute.xlu1 %8250 }
 0x787   : > { %v8253_v56 = vpop.permute.xlu0 %8252  ;;  %8421 = vst.msk [vmem:[%s10320_s9 + $0xa8] sm:$0xff] %vm8079_vm8, %v8251_v59  ;;  %8485 = vst.msk [vmem:[#allocation2 + $0x111] sm:$0xff] %vm8079_vm8, %v8251_v59 }
 0x788   : > { %8422 = vst.msk [vmem:[%s10320_s9 + $0xb0] sm:$0xff] %vm8079_vm8, %v8253_v56  ;;  %8486 = vst.msk [vmem:[#allocation2 + $0x121] sm:$0xff] %vm8079_vm8, %v8253_v56 }
 0x78a   : > { %v8255_v21 = vpop.permute.xlu1 %8254 }
 0x78b   : > { %v8257_v24 = vpop.permute.xlu0 %8256  ;;  %8423 = vst.msk [vmem:[%s10320_s9 + $0xb8] sm:$0xff] %vm8079_vm8, %v8255_v21  ;;  %8487 = vst.msk [vmem:[#allocation2 + $0x129] sm:$0xff] %vm8079_vm8, %v8255_v21 }
 0x78c   : > { %8424 = vst.msk [vmem:[%s10320_s9 + $0xc0] sm:$0xff] %vm8079_vm8, %v8257_v24  ;;  %8488 = vst.msk [vmem:[#allocation2 + $0x139] sm:$0xff] %vm8079_vm8, %v8257_v24 }
 0x78e   : > { %v8259_v18 = vpop.permute.xlu1 %8258 }
 0x78f   : > { %v8261_v16 = vpop.permute.xlu0 %8260  ;;  %8425 = vst.msk [vmem:[%s10320_s9 + $0xc8] sm:$0xff] %vm8079_vm8, %v8259_v18  ;;  %8489 = vst.msk [vmem:[#allocation2 + $0x141] sm:$0xff] %vm8079_vm8, %v8259_v18 }
 0x790   : > { %8426 = vst.msk [vmem:[%s10320_s9 + $0xd0] sm:$0xff] %vm8079_vm8, %v8261_v16  ;;  %8490 = vst.msk [vmem:[#allocation2 + $0x151] sm:$0xff] %vm8079_vm8, %v8261_v16 }
 0x792   : > { %v8263_v17 = vpop.permute.xlu1 %8262 }
 0x793   : > { %v8265_v60 = vpop.permute.xlu0 %8264  ;;  %8427 = vst.msk [vmem:[%s10320_s9 + $0xd8] sm:$0xff] %vm8079_vm8, %v8263_v17  ;;  %8491 = vst.msk [vmem:[#allocation2 + $0x159] sm:$0xff] %vm8079_vm8, %v8263_v17 }
 0x794   : > { %8428 = vst.msk [vmem:[%s10320_s9 + $0xe0] sm:$0xff] %vm8079_vm8, %v8265_v60  ;;  %8492 = vst.msk [vmem:[#allocation2 + $0x169] sm:$0xff] %vm8079_vm8, %v8265_v60 }
 0x796   : > { %v8267_v36 = vpop.permute.xlu1 %8266 }
 0x797   : > { %v8269_v30 = vpop.permute.xlu0 %8268  ;;  %8429 = vst.msk [vmem:[%s10320_s9 + $0xe8] sm:$0xff] %vm8079_vm8, %v8267_v36  ;;  %8493 = vst.msk [vmem:[#allocation2 + $0x171] sm:$0xff] %vm8079_vm8, %v8267_v36 }
 0x798   : > { %8430 = vst.msk [vmem:[%s10320_s9 + $0xf0] sm:$0xff] %vm8079_vm8, %v8269_v30  ;;  %8494 = vst.msk [vmem:[#allocation2 + $0x181] sm:$0xff] %vm8079_vm8, %v8269_v30 }
 0x79a   : > { %v8271_v46 = vpop.permute.xlu1 %8270 }
 0x79b   : > { %v8273_v11 = vpop.permute.xlu0 %8272  ;;  %8431 = vst.msk [vmem:[%s10320_s9 + $0xf8] sm:$0xff] %vm8079_vm8, %v8271_v46  ;;  %8495 = vst.msk [vmem:[#allocation2 + $0x189] sm:$0xff] %vm8079_vm8, %v8271_v46 }
 0x79c   : > { %8432 = vst.msk [vmem:[%s10320_s9 + $0x100] sm:$0xff] %vm8079_vm8, %v8273_v11  ;;  %8496 = vst.msk [vmem:[#allocation2 + $0x1c9] sm:$0xff] %vm8079_vm8, %v8273_v11 }
 0x79e   : > { %v8275_v42 = vpop.permute.xlu1 %8274 }
 0x79f   : > { %v8277_v63 = vpop.permute.xlu0 %8276  ;;  %8433 = vst.msk [vmem:[%s10320_s9 + $0x108] sm:$0xff] %vm8079_vm8, %v8275_v42  ;;  %8497 = vst.msk [vmem:[#allocation2 + $0x1d1] sm:$0xff] %vm8079_vm8, %v8275_v42 }
 0x7a0   : > { %8434 = vst.msk [vmem:[%s10320_s9 + $0x110] sm:$0xff] %vm8079_vm8, %v8277_v63  ;;  %8498 = vst.msk [vmem:[#allocation2 + $0x1e1] sm:$0xff] %vm8079_vm8, %v8277_v63 }
 0x7a2   : > { %v8279_v27 = vpop.permute.xlu1 %8278 }
 0x7a3   : > { %v8281_v22 = vpop.permute.xlu0 %8280  ;;  %8435 = vst.msk [vmem:[%s10320_s9 + $0x118] sm:$0xff] %vm8079_vm8, %v8279_v27  ;;  %8499 = vst.msk [vmem:[#allocation2 + $0x1e9] sm:$0xff] %vm8079_vm8, %v8279_v27 }
 0x7a4   : > { %8436 = vst.msk [vmem:[%s10320_s9 + $0x120] sm:$0xff] %vm8079_vm8, %v8281_v22  ;;  %8500 = vst.msk [vmem:[#allocation2 + $0x1f9] sm:$0xff] %vm8079_vm8, %v8281_v22 }
 0x7a6   : > { %v8283_v1 = vpop.permute.xlu1 %8282 }
 0x7a7   : > { %v8285_v3 = vpop.permute.xlu0 %8284  ;;  %8437 = vst.msk [vmem:[%s10320_s9 + $0x128] sm:$0xff] %vm8079_vm8, %v8283_v1  ;;  %8501 = vst.msk [vmem:[#allocation2 + $0x201] sm:$0xff] %vm8079_vm8, %v8283_v1 }
 0x7a8   : > { %8438 = vst.msk [vmem:[%s10320_s9 + $0x130] sm:$0xff] %vm8079_vm8, %v8285_v3  ;;  %8502 = vst.msk [vmem:[#allocation2 + $0x211] sm:$0xff] %vm8079_vm8, %v8285_v3 }
 0x7aa   : > { %v8287_v15 = vpop.permute.xlu1 %8286 }
 0x7ab   : > { %v8289_v20 = vpop.permute.xlu0 %8288  ;;  %8439 = vst.msk [vmem:[%s10320_s9 + $0x138] sm:$0xff] %vm8079_vm8, %v8287_v15  ;;  %8503 = vst.msk [vmem:[#allocation2 + $0x219] sm:$0xff] %vm8079_vm8, %v8287_v15 }
 0x7ac   : > { %8440 = vst.msk [vmem:[%s10320_s9 + $0x140] sm:$0xff] %vm8079_vm8, %v8289_v20  ;;  %8504 = vst.msk [vmem:[#allocation2 + $0x229] sm:$0xff] %vm8079_vm8, %v8289_v20 }
 0x7ae   : > { %v8291_v6 = vpop.permute.xlu1 %8290 }
 0x7af   : > { %v8293_v41 = vpop.permute.xlu0 %8292  ;;  %8441 = vst.msk [vmem:[%s10320_s9 + $0x148] sm:$0xff] %vm8079_vm8, %v8291_v6  ;;  %8505 = vst.msk [vmem:[#allocation2 + $0x231] sm:$0xff] %vm8079_vm8, %v8291_v6 }
 0x7b0   : > { %8442 = vst.msk [vmem:[%s10320_s9 + $0x150] sm:$0xff] %vm8079_vm8, %v8293_v41  ;;  %8506 = vst.msk [vmem:[#allocation2 + $0x241] sm:$0xff] %vm8079_vm8, %v8293_v41 }
 0x7b2   : > { %v8295_v34 = vpop.permute.xlu1 %8294 }
 0x7b3   : > { %v8297_v62 = vpop.permute.xlu0 %8296  ;;  %8443 = vst.msk [vmem:[%s10320_s9 + $0x158] sm:$0xff] %vm8079_vm8, %v8295_v34  ;;  %8507 = vst.msk [vmem:[#allocation2 + $0x249] sm:$0xff] %vm8079_vm8, %v8295_v34 }
 0x7b4   : > { %8444 = vst.msk [vmem:[%s10320_s9 + $0x160] sm:$0xff] %vm8079_vm8, %v8297_v62  ;;  %8508 = vst.msk [vmem:[#allocation2 + $0x259] sm:$0xff] %vm8079_vm8, %v8297_v62 }
 0x7b6   : > { %v8299_v47 = vpop.permute.xlu1 %8298 }
 0x7b7   : > { %v8301_v33 = vpop.permute.xlu0 %8300  ;;  %8445 = vst.msk [vmem:[%s10320_s9 + $0x168] sm:$0xff] %vm8079_vm8, %v8299_v47  ;;  %8509 = vst.msk [vmem:[#allocation2 + $0x261] sm:$0xff] %vm8079_vm8, %v8299_v47 }
 0x7b8   : > { %8446 = vst.msk [vmem:[%s10320_s9 + $0x170] sm:$0xff] %vm8079_vm8, %v8301_v33  ;;  %8510 = vst.msk [vmem:[#allocation2 + $0x271] sm:$0xff] %vm8079_vm8, %v8301_v33 }
 0x7ba   : > { %v8303_v10 = vpop.permute.xlu1 %8302 }
 0x7bb   : > { %v8305_v5 = vpop.permute.xlu0 %8304  ;;  %8447 = vst.msk [vmem:[%s10320_s9 + $0x178] sm:$0xff] %vm8079_vm8, %v8303_v10  ;;  %8511 = vst.msk [vmem:[#allocation2 + $0x279] sm:$0xff] %vm8079_vm8, %v8303_v10 }
 0x7bc   : > { %8448 = vst.msk [vmem:[%s10320_s9 + $0x180] sm:$0xff] %vm8079_vm8, %v8305_v5  ;;  %8512 = vst.msk [vmem:[#allocation2 + $0x289] sm:$0xff] %vm8079_vm8, %v8305_v5 }
 0x7be   : > { %v8307_v43 = vpop.permute.xlu1 %8306 }
 0x7bf   : > { %v8309_v58 = vpop.permute.xlu0 %8308  ;;  %8449 = vst.msk [vmem:[%s10320_s9 + $0x188] sm:$0xff] %vm8079_vm8, %v8307_v43  ;;  %8513 = vst.msk [vmem:[#allocation2 + $0x291] sm:$0xff] %vm8079_vm8, %v8307_v43 }
 0x7c0   : > { %8450 = vst.msk [vmem:[%s10320_s9 + $0x190] sm:$0xff] %vm8079_vm8, %v8309_v58  ;;  %8514 = vst.msk [vmem:[#allocation2 + $0x2a1] sm:$0xff] %vm8079_vm8, %v8309_v58 }
 0x7c2   : > { %v8311_v9 = vpop.permute.xlu1 %8310 }
 0x7c3   : > { %v8313_v61 = vpop.permute.xlu0 %8312  ;;  %8451 = vst.msk [vmem:[%s10320_s9 + $0x198] sm:$0xff] %vm8079_vm8, %v8311_v9  ;;  %8515 = vst.msk [vmem:[#allocation2 + $0x2a9] sm:$0xff] %vm8079_vm8, %v8311_v9 }
 0x7c4   : > { %8452 = vst.msk [vmem:[%s10320_s9 + $0x1a0] sm:$0xff] %vm8079_vm8, %v8313_v61  ;;  %8516 = vst.msk [vmem:[#allocation2 + $0x2b9] sm:$0xff] %vm8079_vm8, %v8313_v61 }
 0x7c6   : > { %v8315_v53 = vpop.permute.xlu1 %8314 }
 0x7c7   : > { %v8317_v54 = vpop.permute.xlu0 %8316  ;;  %8453 = vst.msk [vmem:[%s10320_s9 + $0x1a8] sm:$0xff] %vm8079_vm8, %v8315_v53  ;;  %8517 = vst.msk [vmem:[#allocation2 + $0x2c1] sm:$0xff] %vm8079_vm8, %v8315_v53 }
 0x7c8   : > { %8454 = vst.msk [vmem:[%s10320_s9 + $0x1b0] sm:$0xff] %vm8079_vm8, %v8317_v54  ;;  %8518 = vst.msk [vmem:[#allocation2 + $0x2d1] sm:$0xff] %vm8079_vm8, %v8317_v54 }
 0x7ca   : > { %v8319_v2 = vpop.permute.xlu1 %8318 }
 0x7cb   : > { %v8321_v50 = vpop.permute.xlu0 %8320  ;;  %8455 = vst.msk [vmem:[%s10320_s9 + $0x1b8] sm:$0xff] %vm8079_vm8, %v8319_v2  ;;  %8519 = vst.msk [vmem:[#allocation2 + $0x2d9] sm:$0xff] %vm8079_vm8, %v8319_v2 }
 0x7cc   : > { %8456 = vst.msk [vmem:[%s10320_s9 + $0x1c0] sm:$0xff] %vm8079_vm8, %v8321_v50  ;;  %8520 = vst.msk [vmem:[#allocation2 + $0x2e9] sm:$0xff] %vm8079_vm8, %v8321_v50 }
 0x7ce   : > { %v8323_v31 = vpop.permute.xlu1 %8322 }
 0x7cf   : > { %v8325_v7 = vpop.permute.xlu0 %8324  ;;  %8457 = vst.msk [vmem:[%s10320_s9 + $0x1c8] sm:$0xff] %vm8079_vm8, %v8323_v31  ;;  %8521 = vst.msk [vmem:[#allocation2 + $0x2f1] sm:$0xff] %vm8079_vm8, %v8323_v31 }
 0x7d0   : > { %8458 = vst.msk [vmem:[%s10320_s9 + $0x1d0] sm:$0xff] %vm8079_vm8, %v8325_v7  ;;  %8522 = vst.msk [vmem:[#allocation2 + $0x301] sm:$0xff] %vm8079_vm8, %v8325_v7 }
 0x7d2   : > { %v8327_v55 = vpop.permute.xlu1 %8326 }
 0x7d3   : > { %v8329_v38 = vpop.permute.xlu0 %8328  ;;  %8459 = vst.msk [vmem:[%s10320_s9 + $0x1d8] sm:$0xff] %vm8079_vm8, %v8327_v55  ;;  %8523 = vst.msk [vmem:[#allocation2 + $0x309] sm:$0xff] %vm8079_vm8, %v8327_v55 }
 0x7d4   : > { %8460 = vst.msk [vmem:[%s10320_s9 + $0x1e0] sm:$0xff] %vm8079_vm8, %v8329_v38  ;;  %8524 = vst.msk [vmem:[#allocation2 + $0x319] sm:$0xff] %vm8079_vm8, %v8329_v38 }
 0x7d6   : > { %v8331_v14 = vpop.permute.xlu1 %8330 }
 0x7d7   : > { %v8333_v52 = vpop.permute.xlu0 %8332  ;;  %8461 = vst.msk [vmem:[%s10320_s9 + $0x1e8] sm:$0xff] %vm8079_vm8, %v8331_v14  ;;  %8525 = vst.msk [vmem:[#allocation2 + $0x321] sm:$0xff] %vm8079_vm8, %v8331_v14 }
 0x7d8   : > { %8462 = vst.msk [vmem:[%s10320_s9 + $0x1f0] sm:$0xff] %vm8079_vm8, %v8333_v52  ;;  %8526 = vst.msk [vmem:[#allocation2 + $0x331] sm:$0xff] %vm8079_vm8, %v8333_v52 }
 0x7da   : > { %v8335_v57 = vpop.permute.xlu1 %8334 }
 0x7db   : > { %8463 = vst.msk [vmem:[%s10320_s9 + $0x1f8] sm:$0xff] %vm8079_vm8, %v8335_v57  ;;  %8527 = vst.msk [vmem:[#allocation2 + $0x339] sm:$0xff] %vm8079_vm8, %v8335_v57 }
 0x7dc PF: > { %s16_s23 = sadd.s32 1, %s10247_s23   ;;  %s16081_s21 = smov %s10243_s22 }
 0x7dd   : > { %p13_p6 = scmp.ge.s32.totalorder %s16_s23, 10   ;;  %s16082_s22 = smov %s16084_s24 }
 0x7df   :  { %15 = sbr.rel (!%p13_p6) target bundleno = 2 (0x2), region = 83 }

</bundles_post_ra>
